<compile_context>
chip_gen: v6e
topology: v6e:2x2x1
jax: 0.10.0
libtpu: 0.0.40
codegen_flags: <defaults>
</compile_context>

<pallas_src>
import functools

import numpy as np
import jax
import jax.numpy as jnp
from jax import lax
from jax.experimental import pallas as pl
from jax.experimental.pallas import tpu as pltpu

MP_ITER = 9
NCLASS = 14
PAD_CLASS = 128          # lane-dense padded width of the classifier output


def _recip(x):
    # EUP approx reciprocal (separate issue slot) + one Newton step -> ~f32
    # accuracy, so the error does not compound through the 9-step recurrence.
    r = pl.reciprocal(x, approx=True)
    return r * (2.0 - x * r)


def _bslstm_kernel(data_ref, mask_ref, mnext_ref,
                   wn_ref, bn_ref,
                   wgh_ref, whb_ref, ba_ref, bo_ref,
                   wup_ref, bup_ref,
                   wfc_ref, bfc_ref,
                   pred_ref,
                   nhs_ref, ncs_ref, gh_ref, gc_ref,
                   mask3_ref, gaddn_ref, sfm_ref, sbm_ref, embs16_ref):
    TB, L, H = data_ref.shape
    BL = TB * L
    f32 = jnp.float32
    bf16 = jnp.bfloat16

    embs = data_ref[...]                                  # (TB, L, H) f32
    mask = mask_ref[...][:, 0, :]                         # (TB, L)
    mnext = mnext_ref[...][:, 0, :]                       # (TB, L)

    # Loop-invariant full-size terms staged once per grid step into VMEM scratch
    # (reloaded at point of use; not pinned in vregs across the loop).
    l_iota = lax.broadcasted_iota(jnp.int32, (TB, L, H), 1)
    sfm_ref[...] = (l_iota != 0).astype(f32)              # zero row l==0 after fwd shift
    sbm_ref[...] = (l_iota != L - 1).astype(f32)          # zero row l==L-1 after bwd shift
    mask3_ref[...] = jnp.broadcast_to(mask[:, :, None], (TB, L, H))
    gaddn_ref[...] = jnp.broadcast_to(((1.0 - mnext) * 200.0)[:, :, None],
                                      (TB, L, H))
    embs16_ref[...] = embs.reshape(BL, H).astype(bf16)    # hoisted invariant cast

    gadd0 = (1.0 - mask[:, 0:1]) * 200.0                  # (TB, 1) h_bar slot mask-add
    invm = 1.0 / jnp.sum(mask, axis=1, keepdims=True)     # (TB, 1)

    # Initial state (unmasked embs; faithful to the reference).
    nhs_ref[...] = embs
    ncs_ref[...] = embs
    gh0 = jnp.sum(embs, axis=1) * invm
    gh_ref[...] = gh0
    gc_ref[...] = gh0

    def dot(a, b):
        return jnp.dot(a, b, preferred_element_type=f32)

    def shift_fwd(x):   # torch.cat([zeros(B,1,H), x[:, :-1, :]], 1)
        return sfm_ref[...] * pltpu.roll(x, shift=1, axis=1)

    def shift_bwd(x):   # torch.cat([x[:, 1:, :], zeros(B,1,H)], 1)
        return sbm_ref[...] * pltpu.roll(x, shift=L - 1, axis=1)

    @pl.loop(0, MP_ITER)
    def _(it):
        nhs = nhs_ref[...]
        ncs = ncs_ref[...]
        gh = gh_ref[...]
        gc = gc_ref[...]
        nhs_f = nhs.reshape(BL, H)
        gh16 = gh.astype(bf16)

        # ---------------- update_g_node (uses current state) ----------------
        h_bar = jnp.sum(nhs, axis=1) * invm                          # (TB, H)
        # gh head: fused g_att | g_out columns -> one push.
        gfs = dot(gh16, wgh_ref[...])                                # (TB, 2H)
        # h_bar row + the L node rows share the second-input weights -> one push
        # (extra out-gate columns computed for node rows are free on the MXU).
        hin = jnp.concatenate([h_bar, nhs_f], axis=0).astype(bf16)   # (TB+BL, H)
        hfs_all = dot(hin, whb_ref[...])                             # (TB+BL, 2H)
        hfs0 = hfs_all[:TB]                                          # (TB, 2H)
        hfs_n = hfs_all[TB:, :H].reshape(TB, L, H)                   # (TB, L, H)

        fs_gh = gfs[:, :H] + ba_ref[...]                             # shared att term
        fs0 = fs_gh + hfs0[:, :H] + gadd0                            # slot 0 (h_bar/gc)
        fs_nodes = fs_gh[:, None, :] + hfs_n + gaddn_ref[...]        # slots 1..L
        m = jnp.maximum(jnp.max(fs_nodes, axis=1), fs0)              # softmax over L+1 slots
        e0 = jnp.exp(fs0 - m)
        en = jnp.exp(fs_nodes - m[:, None, :])
        z = e0 + jnp.sum(en, axis=1)
        n_gc = (e0 * gc + jnp.sum(en * ncs, axis=1)) * _recip(z)
        n_gh = jax.nn.sigmoid(gfs[:, H:] + hfs0[:, H:] + bo_ref[...]) * jnp.tanh(n_gc)

        # ---------------- update_nodes (uses OLD gh, gc) ---------------------
        h_l = shift_fwd(nhs)
        h_r = shift_bwd(nhs)
        c_l = shift_fwd(ncs)
        c_r = shift_bwd(ncs)
        ghb = jnp.broadcast_to(gh[:, None, :], (TB, L, H)).reshape(BL, H)
        # One K=5H MXU push for [h_left, nhs, h_right, embs, gh]; no in-loop
        # weight-ref slicing (weights pre-split / pre-fused in the wrapper).
        xcat = jnp.concatenate(
            [h_l.reshape(BL, H).astype(bf16),
             nhs_f.astype(bf16),
             h_r.reshape(BL, H).astype(bf16),
             embs16_ref[...],
             ghb.astype(bf16)], axis=-1)                             # (BL, 5H)
        fs = (dot(xcat, wn_ref[...]) + bn_ref[...]).reshape(TB, L, 6 * H)
        # Trimmed layout (unused 'uh' output columns removed in the wrapper):
        og = jax.nn.sigmoid(fs[:, :, 0:H])
        g0 = fs[:, :, 1 * H:2 * H]
        g1 = fs[:, :, 2 * H:3 * H]
        g2 = fs[:, :, 3 * H:4 * H]
        g3 = fs[:, :, 4 * H:5 * H]
        g4 = fs[:, :, 5 * H:6 * H]
        gm = jnp.maximum(jnp.maximum(jnp.maximum(g0, g1), jnp.maximum(g2, g3)), g4)
        e_0 = jnp.exp(g0 - gm)
        e_1 = jnp.exp(g1 - gm)
        e_2 = jnp.exp(g2 - gm)
        e_3 = jnp.exp(g3 - gm)
        e_4 = jnp.exp(g4 - gm)
        zg = e_0 + e_1 + e_2 + e_3 + e_4
        # ics = [c_left, ncs, c_right, gc, embs]
        n_c = (e_0 * c_l + e_1 * ncs + e_2 * c_r
               + e_3 * gc[:, None, :] + e_4 * data_ref[...]) * _recip(zg)
        n_nhs = og * jnp.tanh(n_c)

        msk = mask3_ref[...]
        nhs_ref[...] = msk * n_nhs
        ncs_ref[...] = msk * n_c
        gh_ref[...] = n_gh
        gc_ref[...] = n_gc

    # ------------------------ readout head (drop2 = identity in eval) --------
    rep = (jnp.sum(nhs_ref[...], axis=1) + gh_ref[...]) * invm       # (TB, H)
    rep = jnp.tanh(dot(rep.astype(bf16), wup_ref[...]) + bup_ref[...])    # (TB, 2H)
    # Lane-dense classifier: 128 output columns, padded bias = -1e30 keeps the
    # log_softmax normalizer exact over the 14 real classes.
    logits = dot(rep.astype(bf16), wfc_ref[...]) + bfc_ref[...]      # (TB, 128)
    lmax = jnp.max(logits, axis=-1, keepdims=True)
    s = logits - lmax
    pred_ref[...] = s - jnp.log(jnp.sum(jnp.exp(s), axis=-1, keepdims=True))


def make_params(key, nhid):
    """Deterministic init mimicking torch.nn.Linear default (uniform +/- 1/sqrt(fan_in))."""
    H = nhid

    def linear(k, nin, nout):
        k1, k2 = jax.random.split(k)
        bound = 1.0 / (nin ** 0.5)
        w = jax.random.uniform(k1, (nout, nin), jnp.float32, -bound, bound)
        b = jax.random.uniform(k2, (nout,), jnp.float32, -bound, bound)
        return w, b

    keys = jax.random.split(key, 5)
    return {
        "n_fc": linear(keys[0], 5 * H, 7 * H),
        "g_att_fc": linear(keys[1], 2 * H, H),
        "g_out_fc": linear(keys[2], 2 * H, H),
        "up_fc": linear(keys[3], H, 2 * H),
        "fc": linear(keys[4], 2 * H, NCLASS),
    }


@functools.partial(jax.jit, static_argnames=("nhid", "batch_block",
                                             "core_parallel", "single_buffer_weights"))
def bslstm_forward(params, data, mask, *, nhid, batch_block=16,
                   core_parallel=False, single_buffer_weights=False):
    # batch_block=16 -> M = TB*L = 128 MXU rows at L=8 (v5e-full); use 32 on
    # v6e/v7x if the batch allows.  core_parallel=True shards the batch grid
    # across the two v7x TensorCores.
    H = nhid
    B, L, Hd = data.shape
    assert Hd == H, "forward requires nemb == nhid"
    assert L % 8 == 0, "keep (TB,L,H)<->(TB*L,H) reshapes trivial sublane retiles"
    TB = min(batch_block, B)
    assert B % TB == 0, "batch_block must divide batch"
    assert TB % 8 == 0 or TB == B, "batch block must be sublane-aligned (or the full batch)"

    f32 = jnp.float32
    bf16 = jnp.bfloat16

    wn, bn = params["n_fc"]         # (7H, 5H), (7H,)
    wa, ba = params["g_att_fc"]     # (H, 2H),  (H,)
    wo, bo = params["g_out_fc"]     # (H, 2H),  (H,)
    wup, bup = params["up_fc"]      # (2H, H),  (2H,)
    wfc, bfc = params["fc"]         # (14, 2H), (14,)

    # n_fc: transpose to (in=5H, out=7H) and drop the never-used 'uh' output
    # columns H:2H -> (5H, 6H).  New output layout: [og, g0, g1, g2, g3, g4].
    wn_t = wn.T
    wn_t = jnp.concatenate([wn_t[:, :H], wn_t[:, 2 * H:]], axis=1)      # (5H, 6H)
    bn_t = jnp.concatenate([bn[:H], bn[2 * H:]])[None, :]               # (1, 6H)

    # Fuse g_att_fc / g_out_fc column-wise and pre-split by input block so the
    # kernel never slices weight refs: wgh applies to gh, whb to [h_bar; nodes].
    wgh = jnp.concatenate([wa[:, :H].T, wo[:, :H].T], axis=1)           # (H, 2H)
    whb = jnp.concatenate([wa[:, H:].T, wo[:, H:].T], axis=1)           # (H, 2H)

    # Lane-dense classifier head: pad to 128 output columns, padded bias -1e30.
    wfc_p = jnp.zeros((2 * H, PAD_CLASS), f32).at[:, :NCLASS].set(wfc.T)
    bfc_p = jnp.full((1, PAD_CLASS), -1e30, f32).at[0, :NCLASS].set(bfc)

    mask = mask.astype(f32)
    # Mask-add term of update_g_node: node j pairs with mask[:, j+1] (last node: 1),
    # mirroring the reference's concat order (the +200 sign is inherited as-is).
    mask_next = jnp.concatenate([mask[:, 1:], jnp.ones((B, 1), f32)], axis=1)

    args = (
        data.astype(f32),
        mask[:, None, :],                       # (B, 1, L)
        mask_next[:, None, :],                  # (B, 1, L)
        wn_t.astype(bf16), bn_t.astype(f32),
        wgh.astype(bf16), whb.astype(bf16),
        ba[None, :].astype(f32), bo[None, :].astype(f32),
        wup.T.astype(bf16), bup[None, :].astype(f32),
        wfc_p.astype(bf16), bfc_p,
    )

    def batched(shape):
        nd = len(shape)
        return pl.BlockSpec((TB,) + tuple(shape[1:]),
                            lambda i, _nd=nd: (i,) + (0,) * (_nd - 1))

    def resident(shape):
        nd = len(shape)
        kwargs = {}
        if single_buffer_weights:
            # v7x (64 MiB VMEM): halve the constant-weight footprint at large H.
            kwargs["pipeline_mode"] = pl.Buffered(1)
        return pl.BlockSpec(tuple(shape), lambda i, _nd=nd: (0,) * _nd, **kwargs)

    in_specs = ([batched(args[0].shape), batched(args[1].shape), batched(args[2].shape)]
                + [resident(a.shape) for a in args[3:]])

    scratch = [
        pltpu.VMEM((TB, L, H), f32),        # nhs (recurrent state)
        pltpu.VMEM((TB, L, H), f32),        # ncs (recurrent state)
        pltpu.VMEM((TB, H), f32),           # gh
        pltpu.VMEM((TB, H), f32),           # gc
        pltpu.VMEM((TB, L, H), f32),        # node mask broadcast
        pltpu.VMEM((TB, L, H), f32),        # +200*(1-mask_next) broadcast
        pltpu.VMEM((TB, L, H), f32),        # shift-fwd row mask
        pltpu.VMEM((TB, L, H), f32),        # shift-bwd row mask
        pltpu.VMEM((TB * L, H), bf16),      # hoisted bf16 embs
    ]

    sem = (pltpu.CORE_PARALLEL,) if core_parallel else ("parallel",)

    out = pl.pallas_call(
        _bslstm_kernel,
        out_shape=jax.ShapeDtypeStruct((B, PAD_CLASS), f32),
        grid=(B // TB,),
        in_specs=in_specs,
        out_specs=pl.BlockSpec((TB, PAD_CLASS), lambda i: (i, 0)),
        scratch_shapes=scratch,
        compiler_params=pltpu.CompilerParams(
            dimension_semantics=sem,
            vmem_limit_bytes=32 * 1024 * 1024),
    )(*args)
    return out[:, :NCLASS]


def bslstm_reference(params, data, mask):
    """Pure-JAX transliteration of the PyTorch forward (eval mode) for checking."""
    B, L, H = data.shape
    wn, bn = params["n_fc"]
    wa, ba = params["g_att_fc"]
    wo, bo = params["g_out_fc"]
    wup, bup = params["up_fc"]
    wfc, bfc = params["fc"]

    def lin(x, w, b):
        return x @ w.T + b

    def update_nodes(embs, nhs, ncs, gh, gc):
        z = jnp.zeros((B, 1, H), jnp.float32)
        ihs = jnp.concatenate([
            jnp.concatenate([z, nhs[:, :-1, :]], 1),
            nhs,
            jnp.concatenate([nhs[:, 1:, :], z], 1),
            embs,
            jnp.broadcast_to(gh[:, None, :], (B, L, H))], 2)
        fs = lin(ihs, wn, bn)
        og = jax.nn.sigmoid(fs[:, :, :H])
        gs = jax.nn.softmax(fs[:, :, 2 * H:].reshape(B, L, 5, H), axis=2)
        ics = jnp.stack([
            jnp.concatenate([z, ncs[:, :-1, :]], 1),
            ncs,
            jnp.concatenate([ncs[:, 1:, :], z], 1),
            jnp.broadcast_to(gc[:, None, :], (B, L, H)),
            embs], 2)
        n_c = jnp.sum(gs * ics, 2)
        return og * jnp.tanh(n_c), n_c

    def update_g_node(nhs, ncs, gh, gc, mask):
        h_bar = nhs.sum(1) / mask.sum(1)[:, None]
        ihs = jnp.concatenate([h_bar[:, None, :], nhs], 1)
        ics = jnp.concatenate([gc[:, None, :], ncs], 1)
        xxx = jnp.concatenate([jnp.broadcast_to(gh[:, None, :], (B, L + 1, H)), ihs], 2)
        fs = lin(xxx, wa, ba)
        mm = jnp.concatenate([jnp.broadcast_to(mask[:, :, None], (B, L, H)),
                              jnp.ones((B, 1, H), jnp.float32)], 1)
        fs = fs + (1.0 - mm) * 200.0
        n_gc = jnp.sum(jax.nn.softmax(fs, axis=1) * ics, 1)
        n_gh = jax.nn.sigmoid(lin(jnp.concatenate([gh, h_bar], 1), wo, bo)) * jnp.tanh(n_gc)
        return n_gh, n_gc

    embs = data
    nhs = ncs = embs
    gh = gc = embs.sum(1) / mask.sum(1)[:, None]
    for _ in range(MP_ITER):
        n_gh, n_gc = update_g_node(nhs, ncs, gh, gc, mask)
        nhs, ncs = update_nodes(embs, nhs, ncs, gh, gc)
        nhs = mask[:, :, None] * nhs
        ncs = mask[:, :, None] * ncs
        gh, gc = n_gh, n_gc
    rep = jnp.concatenate([nhs, gh[:, None, :]], 1).sum(1) / mask.sum(1)[:, None]
    rep = jnp.tanh(lin(rep, wup, bup))
    return jax.nn.log_softmax(lin(rep, wfc, bfc), axis=1)


if __name__ == "__main__":
    B, L, H = 32, 8, 32          # batch, seq, hidden (nemb == nhid == H)
    key = jax.random.PRNGKey(0)
    kp, kd, kl = jax.random.split(key, 3)
    params = make_params(kp, H)
    data = jax.random.normal(kd, (B, L, H), jnp.float32)
    lengths = jax.random.randint(kl, (B,), 2, L + 1)
    mask = (jnp.arange(L)[None, :] < lengths[:, None]).astype(jnp.float32)

    # Default batch_block=16 -> grid of 2 batch blocks, M = TB*L = 128.
    pred = jax.block_until_ready(bslstm_forward(params, data, mask, nhid=H))
    assert pred.shape == (B, NCLASS)
    assert bool(jnp.all(jnp.isfinite(pred)))

    with jax.default_matmul_precision("float32"):
        ref = jax.block_until_ready(bslstm_reference(params, data, mask))
    # bf16 MXU operands accumulate small rounding through the 9-step recurrence
    # (the Newton-refined reciprocals keep the rest of the math ~f32); the
    # tolerance absorbs that vs. the f32 reference.
    if not np.allclose(np.asarray(pred), np.asarray(ref), atol=7e-2, rtol=7e-2):
        raise AssertionError(
            "Pallas kernel disagrees with pure-JAX reference; max abs diff = "
            f"{float(jnp.max(jnp.abs(pred - ref)))}")

    print("KERNEL_OK")
</pallas_src>

<mosaic_0001>
module attributes {stable_mosaic.version = 11 : i64} {
  func.func @_bslstm_kernel(%arg0: i32, %arg1: memref<16x8x32xf32, #tpu.memory_space<vmem>>, %arg2: memref<16x1x8xf32, #tpu.memory_space<vmem>>, %arg3: memref<16x1x8xf32, #tpu.memory_space<vmem>>, %arg4: memref<160x192xbf16, #tpu.memory_space<vmem>>, %arg5: memref<1x192xf32, #tpu.memory_space<vmem>>, %arg6: memref<32x64xbf16, #tpu.memory_space<vmem>>, %arg7: memref<32x64xbf16, #tpu.memory_space<vmem>>, %arg8: memref<1x32xf32, #tpu.memory_space<vmem>>, %arg9: memref<1x32xf32, #tpu.memory_space<vmem>>, %arg10: memref<32x64xbf16, #tpu.memory_space<vmem>>, %arg11: memref<1x64xf32, #tpu.memory_space<vmem>>, %arg12: memref<64x128xbf16, #tpu.memory_space<vmem>>, %arg13: memref<1x128xf32, #tpu.memory_space<vmem>>, %arg14: memref<16x128xf32, #tpu.memory_space<vmem>>, %arg15: memref<16x8x32xf32, #tpu.memory_space<vmem>>, %arg16: memref<16x8x32xf32, #tpu.memory_space<vmem>>, %arg17: memref<16x32xf32, #tpu.memory_space<vmem>>, %arg18: memref<16x32xf32, #tpu.memory_space<vmem>>, %arg19: memref<16x8x32xf32, #tpu.memory_space<vmem>>, %arg20: memref<16x8x32xf32, #tpu.memory_space<vmem>>, %arg21: memref<16x8x32xf32, #tpu.memory_space<vmem>>, %arg22: memref<16x8x32xf32, #tpu.memory_space<vmem>>, %arg23: memref<128x32xbf16, #tpu.memory_space<vmem>>) attributes {dimension_semantics = [#tpu.dimension_semantics<parallel>], iteration_bounds = array<i64: 2>, scalar_prefetch = 0 : i64, scratch_operands = 9 : i64, tpu.core_type = #tpu.core_type<tc>, window_params = [{transform_indices = @transform_0, window_bounds = array<i64: 16, 8, 32>}, {transform_indices = @transform_1, window_bounds = array<i64: 16, 1, 8>}, {transform_indices = @transform_2, window_bounds = array<i64: 16, 1, 8>}, {pipeline_mode = #tpu.pipeline_mode<synchronous>, transform_indices = @transform_3, window_bounds = array<i64: 160, 192>}, {pipeline_mode = #tpu.pipeline_mode<synchronous>, transform_indices = @transform_4, window_bounds = array<i64: 1, 192>}, {pipeline_mode = #tpu.pipeline_mode<synchronous>, transform_indices = @transform_5, window_bounds = array<i64: 32, 64>}, {pipeline_mode = #tpu.pipeline_mode<synchronous>, transform_indices = @transform_6, window_bounds = array<i64: 32, 64>}, {pipeline_mode = #tpu.pipeline_mode<synchronous>, transform_indices = @transform_7, window_bounds = array<i64: 1, 32>}, {pipeline_mode = #tpu.pipeline_mode<synchronous>, transform_indices = @transform_8, window_bounds = array<i64: 1, 32>}, {pipeline_mode = #tpu.pipeline_mode<synchronous>, transform_indices = @transform_9, window_bounds = array<i64: 32, 64>}, {pipeline_mode = #tpu.pipeline_mode<synchronous>, transform_indices = @transform_10, window_bounds = array<i64: 1, 64>}, {pipeline_mode = #tpu.pipeline_mode<synchronous>, transform_indices = @transform_11, window_bounds = array<i64: 64, 128>}, {pipeline_mode = #tpu.pipeline_mode<synchronous>, transform_indices = @transform_12, window_bounds = array<i64: 1, 128>}, {transform_indices = @transform_13, window_bounds = array<i64: 16, 128>}]} {
    %c0 = arith.constant 0 : index
    %c0_0 = arith.constant 0 : index
    %c0_1 = arith.constant 0 : index
    %0 = vector.load %arg1[%c0, %c0_0, %c0_1] : memref<16x8x32xf32, #tpu.memory_space<vmem>>, vector<16x8x32xf32>
    %c0_2 = arith.constant 0 : index
    %c0_3 = arith.constant 0 : index
    %c0_4 = arith.constant 0 : index
    %1 = vector.load %arg2[%c0_2, %c0_3, %c0_4] : memref<16x1x8xf32, #tpu.memory_space<vmem>>, vector<16x1x8xf32>
    %2 = vector.shape_cast %1 : vector<16x1x8xf32> to vector<16x8xf32>
    %c0_5 = arith.constant 0 : index
    %c0_6 = arith.constant 0 : index
    %c0_7 = arith.constant 0 : index
    %3 = vector.load %arg3[%c0_5, %c0_6, %c0_7] : memref<16x1x8xf32, #tpu.memory_space<vmem>>, vector<16x1x8xf32>
    %4 = vector.shape_cast %3 : vector<16x1x8xf32> to vector<16x8xf32>
    %5 = tpu.iota {dimensions = array<i32: 1>} : vector<16x8x32xi32>
    %c0_i32 = arith.constant 0 : i32
    %6 = vector.broadcast %c0_i32 : i32 to vector<16x8x32xi32>
    %7 = arith.cmpi ne, %5, %6 : vector<16x8x32xi32>
    %8 = arith.extui %7 : vector<16x8x32xi1> to vector<16x8x32xi32>
    %9 = arith.sitofp %8 : vector<16x8x32xi32> to vector<16x8x32xf32>
    %c0_8 = arith.constant 0 : index
    %c0_9 = arith.constant 0 : index
    %c0_10 = arith.constant 0 : index
    %10 = vector.load %arg21[%c0_8, %c0_9, %c0_10] : memref<16x8x32xf32, #tpu.memory_space<vmem>>, vector<16x8x32xf32>
    tpu.vector_store %arg21[%c0_8, %c0_9, %c0_10], %9 {strides = array<i32>} : memref<16x8x32xf32, #tpu.memory_space<vmem>>, vector<16x8x32xf32>,
    %c7_i32 = arith.constant 7 : i32
    %11 = vector.broadcast %c7_i32 : i32 to vector<16x8x32xi32>
    %12 = arith.cmpi ne, %5, %11 : vector<16x8x32xi32>
    %13 = arith.extui %12 : vector<16x8x32xi1> to vector<16x8x32xi32>
    %14 = arith.sitofp %13 : vector<16x8x32xi32> to vector<16x8x32xf32>
    %c0_11 = arith.constant 0 : index
    %c0_12 = arith.constant 0 : index
    %c0_13 = arith.constant 0 : index
    %15 = vector.load %arg22[%c0_11, %c0_12, %c0_13] : memref<16x8x32xf32, #tpu.memory_space<vmem>>, vector<16x8x32xf32>
    tpu.vector_store %arg22[%c0_11, %c0_12, %c0_13], %14 {strides = array<i32>} : memref<16x8x32xf32, #tpu.memory_space<vmem>>, vector<16x8x32xf32>,
    %16 = vector.shape_cast %2 : vector<16x8xf32> to vector<16x8x1xf32>
    %17 = vector.shape_cast %16 : vector<16x8x1xf32> to vector<16x8x1xf32>
    %18 = vector.broadcast %17 : vector<16x8x1xf32> to vector<16x8x32xf32>
    %c0_14 = arith.constant 0 : index
    %c0_15 = arith.constant 0 : index
    %c0_16 = arith.constant 0 : index
    %19 = vector.load %arg19[%c0_14, %c0_15, %c0_16] : memref<16x8x32xf32, #tpu.memory_space<vmem>>, vector<16x8x32xf32>
    tpu.vector_store %arg19[%c0_14, %c0_15, %c0_16], %18 {strides = array<i32>} : memref<16x8x32xf32, #tpu.memory_space<vmem>>, vector<16x8x32xf32>,
    %cst = arith.constant 1.000000e+00 : f32
    %20 = vector.broadcast %cst : f32 to vector<16x8xf32>
    %21 = arith.subf %20, %4 : vector<16x8xf32>
    %cst_17 = arith.constant 2.000000e+02 : f32
    %22 = vector.broadcast %cst_17 : f32 to vector<16x8xf32>
    %23 = arith.mulf %21, %22 : vector<16x8xf32>
    %24 = vector.shape_cast %23 : vector<16x8xf32> to vector<16x8x1xf32>
    %25 = vector.shape_cast %24 : vector<16x8x1xf32> to vector<16x8x1xf32>
    %26 = vector.broadcast %25 : vector<16x8x1xf32> to vector<16x8x32xf32>
    %c0_18 = arith.constant 0 : index
    %c0_19 = arith.constant 0 : index
    %c0_20 = arith.constant 0 : index
    %27 = vector.load %arg20[%c0_18, %c0_19, %c0_20] : memref<16x8x32xf32, #tpu.memory_space<vmem>>, vector<16x8x32xf32>
    tpu.vector_store %arg20[%c0_18, %c0_19, %c0_20], %26 {strides = array<i32>} : memref<16x8x32xf32, #tpu.memory_space<vmem>>, vector<16x8x32xf32>,
    %28 = vector.shape_cast %0 : vector<16x8x32xf32> to vector<128x32xf32>
    %29 = arith.truncf %28 : vector<128x32xf32> to vector<128x32xbf16>
    %c0_21 = arith.constant 0 : index
    %c0_22 = arith.constant 0 : index
    %30 = vector.load %arg23[%c0_21, %c0_22] : memref<128x32xbf16, #tpu.memory_space<vmem>>, vector<128x32xbf16>
    tpu.vector_store %arg23[%c0_21, %c0_22], %29 {strides = array<i32>} : memref<128x32xbf16, #tpu.memory_space<vmem>>, vector<128x32xbf16>,
    %31 = vector.extract_strided_slice %2 {offsets = [0, 0], sizes = [16, 1], strides = [1, 1]} : vector<16x8xf32> to vector<16x1xf32>
    %cst_23 = arith.constant 1.000000e+00 : f32
    %32 = vector.broadcast %cst_23 : f32 to vector<16x1xf32>
    %33 = arith.subf %32, %31 : vector<16x1xf32>
    %cst_24 = arith.constant 2.000000e+02 : f32
    %34 = vector.broadcast %cst_24 : f32 to vector<16x1xf32>
    %35 = arith.mulf %33, %34 : vector<16x1xf32>
    %cst_25 = arith.constant dense<0.000000e+00> : vector<16xf32>
    %36 = vector.multi_reduction <add>, %2, %cst_25 [1] : vector<16x8xf32> to vector<16xf32>
    %37 = vector.shape_cast %36 : vector<16xf32> to vector<16x1xf32>
    %cst_26 = arith.constant 1.000000e+00 : f32
    %38 = vector.broadcast %cst_26 : f32 to vector<16x1xf32>
    %39 = arith.divf %38, %37 : vector<16x1xf32>
    %c0_27 = arith.constant 0 : index
    %c0_28 = arith.constant 0 : index
    %c0_29 = arith.constant 0 : index
    %40 = vector.load %arg15[%c0_27, %c0_28, %c0_29] : memref<16x8x32xf32, #tpu.memory_space<vmem>>, vector<16x8x32xf32>
    tpu.vector_store %arg15[%c0_27, %c0_28, %c0_29], %0 {strides = array<i32>} : memref<16x8x32xf32, #tpu.memory_space<vmem>>, vector<16x8x32xf32>,
    %c0_30 = arith.constant 0 : index
    %c0_31 = arith.constant 0 : index
    %c0_32 = arith.constant 0 : index
    %41 = vector.load %arg16[%c0_30, %c0_31, %c0_32] : memref<16x8x32xf32, #tpu.memory_space<vmem>>, vector<16x8x32xf32>
    tpu.vector_store %arg16[%c0_30, %c0_31, %c0_32], %0 {strides = array<i32>} : memref<16x8x32xf32, #tpu.memory_space<vmem>>, vector<16x8x32xf32>,
    %cst_33 = arith.constant dense<0.000000e+00> : vector<16x32xf32>
    %42 = vector.multi_reduction <add>, %0, %cst_33 [1] : vector<16x8x32xf32> to vector<16x32xf32>
    %43 = vector.broadcast %39 : vector<16x1xf32> to vector<16x32xf32>
    %44 = arith.mulf %42, %43 : vector<16x32xf32>
    %c0_34 = arith.constant 0 : index
    %c0_35 = arith.constant 0 : index
    %45 = vector.load %arg17[%c0_34, %c0_35] : memref<16x32xf32, #tpu.memory_space<vmem>>, vector<16x32xf32>
    tpu.vector_store %arg17[%c0_34, %c0_35], %44 {strides = array<i32>} : memref<16x32xf32, #tpu.memory_space<vmem>>, vector<16x32xf32>,
    %c0_36 = arith.constant 0 : index
    %c0_37 = arith.constant 0 : index
    %46 = vector.load %arg18[%c0_36, %c0_37] : memref<16x32xf32, #tpu.memory_space<vmem>>, vector<16x32xf32>
    tpu.vector_store %arg18[%c0_36, %c0_37], %44 {strides = array<i32>} : memref<16x32xf32, #tpu.memory_space<vmem>>, vector<16x32xf32>,
    %c0_i32_38 = arith.constant 0 : i32
    %c9_i32 = arith.constant 9 : i32
    %47 = arith.addi %c0_i32_38, %c9_i32 : i32
    %c1_i32 = arith.constant 1 : i32
    scf.for %arg24 = %c0_i32_38 to %47 step %c1_i32  : i32 {
      %c0_59 = arith.constant 0 : index
      %c0_60 = arith.constant 0 : index
      %c0_61 = arith.constant 0 : index
      %78 = vector.load %arg15[%c0_59, %c0_60, %c0_61] : memref<16x8x32xf32, #tpu.memory_space<vmem>>, vector<16x8x32xf32>
      %c0_62 = arith.constant 0 : index
      %c0_63 = arith.constant 0 : index
      %c0_64 = arith.constant 0 : index
      %79 = vector.load %arg16[%c0_62, %c0_63, %c0_64] : memref<16x8x32xf32, #tpu.memory_space<vmem>>, vector<16x8x32xf32>
      %c0_65 = arith.constant 0 : index
      %c0_66 = arith.constant 0 : index
      %80 = vector.load %arg17[%c0_65, %c0_66] : memref<16x32xf32, #tpu.memory_space<vmem>>, vector<16x32xf32>
      %c0_67 = arith.constant 0 : index
      %c0_68 = arith.constant 0 : index
      %81 = vector.load %arg18[%c0_67, %c0_68] : memref<16x32xf32, #tpu.memory_space<vmem>>, vector<16x32xf32>
      %82 = vector.shape_cast %78 : vector<16x8x32xf32> to vector<128x32xf32>
      %83 = arith.truncf %80 : vector<16x32xf32> to vector<16x32xbf16>
      %cst_69 = arith.constant dense<0.000000e+00> : vector<16x32xf32>
      %84 = vector.multi_reduction <add>, %78, %cst_69 [1] : vector<16x8x32xf32> to vector<16x32xf32>
      %85 = vector.broadcast %39 : vector<16x1xf32> to vector<16x32xf32>
      %86 = arith.mulf %84, %85 : vector<16x32xf32>
      %c0_70 = arith.constant 0 : index
      %c0_71 = arith.constant 0 : index
      %87 = vector.load %arg6[%c0_70, %c0_71] : memref<32x64xbf16, #tpu.memory_space<vmem>>, vector<32x64xbf16>
      %cst_72 = arith.constant dense<0.000000e+00> : vector<16x64xf32>
      %88 = tpu.matmul %83, %87, %cst_72 {dimension_numbers = #tpu.dot_dimension_numbers<[1], [0], [0], [1], [0, 0, 1, 1], [], []>} : vector<16x32xbf16>, vector<32x64xbf16>, vector<16x64xf32> -> vector<16x64xf32>
      %89 = tpu.concatenate %86, %82 in 0 : vector<16x32xf32>, vector<128x32xf32> -> vector<144x32xf32>
      %90 = arith.truncf %89 : vector<144x32xf32> to vector<144x32xbf16>
      %c0_73 = arith.constant 0 : index
      %c0_74 = arith.constant 0 : index
      %91 = vector.load %arg7[%c0_73, %c0_74] : memref<32x64xbf16, #tpu.memory_space<vmem>>, vector<32x64xbf16>
      %cst_75 = arith.constant dense<0.000000e+00> : vector<144x64xf32>
      %92 = tpu.matmul %90, %91, %cst_75 {dimension_numbers = #tpu.dot_dimension_numbers<[1], [0], [0], [1], [0, 0, 1, 1], [], []>} : vector<144x32xbf16>, vector<32x64xbf16>, vector<144x64xf32> -> vector<144x64xf32>
      %93 = vector.extract_strided_slice %92 {offsets = [0, 0], sizes = [16, 64], strides = [1, 1]} : vector<144x64xf32> to vector<16x64xf32>
      %94 = vector.extract_strided_slice %92 {offsets = [16, 0], sizes = [128, 32], strides = [1, 1]} : vector<144x64xf32> to vector<128x32xf32>
      %95 = vector.shape_cast %94 : vector<128x32xf32> to vector<16x8x32xf32>
      %96 = vector.extract_strided_slice %88 {offsets = [0, 0], sizes = [16, 32], strides = [1, 1]} : vector<16x64xf32> to vector<16x32xf32>
      %c0_76 = arith.constant 0 : index
      %c0_77 = arith.constant 0 : index
      %97 = vector.load %arg8[%c0_76, %c0_77] : memref<1x32xf32, #tpu.memory_space<vmem>>, vector<1x32xf32>
      %98 = vector.broadcast %97 : vector<1x32xf32> to vector<16x32xf32>
      %99 = arith.addf %96, %98 : vector<16x32xf32>
      %100 = vector.extract_strided_slice %93 {offsets = [0, 0], sizes = [16, 32], strides = [1, 1]} : vector<16x64xf32> to vector<16x32xf32>
      %101 = arith.addf %99, %100 : vector<16x32xf32>
      %102 = vector.broadcast %35 : vector<16x1xf32> to vector<16x32xf32>
      %103 = arith.addf %101, %102 : vector<16x32xf32>
      %104 = vector.shape_cast %99 : vector<16x32xf32> to vector<16x1x32xf32>
      %105 = vector.broadcast %104 : vector<16x1x32xf32> to vector<16x8x32xf32>
      %106 = arith.addf %105, %95 : vector<16x8x32xf32>
      %c0_78 = arith.constant 0 : index
      %c0_79 = arith.constant 0 : index
      %c0_80 = arith.constant 0 : index
      %107 = vector.load %arg20[%c0_78, %c0_79, %c0_80] : memref<16x8x32xf32, #tpu.memory_space<vmem>>, vector<16x8x32xf32>
      %108 = arith.addf %106, %107 : vector<16x8x32xf32>
      %cst_81 = arith.constant dense<0xFF800000> : vector<16x32xf32>
      %109 = vector.multi_reduction <maximumf>, %108, %cst_81 [1] : vector<16x8x32xf32> to vector<16x32xf32>
      %110 = arith.maximumf %109, %103 : vector<16x32xf32>
      %111 = arith.subf %103, %110 : vector<16x32xf32>
      %112 = math.exp %111 : vector<16x32xf32>
      %113 = vector.shape_cast %110 : vector<16x32xf32> to vector<16x1x32xf32>
      %114 = vector.broadcast %113 : vector<16x1x32xf32> to vector<16x8x32xf32>
      %115 = arith.subf %108, %114 : vector<16x8x32xf32>
      %116 = math.exp %115 : vector<16x8x32xf32>
      %cst_82 = arith.constant dense<0.000000e+00> : vector<16x32xf32>
      %117 = vector.multi_reduction <add>, %116, %cst_82 [1] : vector<16x8x32xf32> to vector<16x32xf32>
      %118 = arith.addf %112, %117 : vector<16x32xf32>
      %119 = arith.mulf %112, %81 : vector<16x32xf32>
      %120 = arith.mulf %116, %79 : vector<16x8x32xf32>
      %cst_83 = arith.constant dense<0.000000e+00> : vector<16x32xf32>
      %121 = vector.multi_reduction <add>, %120, %cst_83 [1] : vector<16x8x32xf32> to vector<16x32xf32>
      %122 = arith.addf %119, %121 : vector<16x32xf32>
      %123 = tpu.reciprocal %118 {approx = true} : vector<16x32xf32> -> vector<16x32xf32>
      %124 = arith.mulf %118, %123 : vector<16x32xf32>
      %cst_84 = arith.constant 2.000000e+00 : f32
      %125 = vector.broadcast %cst_84 : f32 to vector<16x32xf32>
      %126 = arith.subf %125, %124 : vector<16x32xf32>
      %127 = arith.mulf %123, %126 : vector<16x32xf32>
      %128 = arith.mulf %122, %127 : vector<16x32xf32>
      %129 = vector.extract_strided_slice %88 {offsets = [0, 32], sizes = [16, 32], strides = [1, 1]} : vector<16x64xf32> to vector<16x32xf32>
      %130 = vector.extract_strided_slice %93 {offsets = [0, 32], sizes = [16, 32], strides = [1, 1]} : vector<16x64xf32> to vector<16x32xf32>
      %131 = arith.addf %129, %130 : vector<16x32xf32>
      %c0_85 = arith.constant 0 : index
      %c0_86 = arith.constant 0 : index
      %132 = vector.load %arg9[%c0_85, %c0_86] : memref<1x32xf32, #tpu.memory_space<vmem>>, vector<1x32xf32>
      %133 = vector.broadcast %132 : vector<1x32xf32> to vector<16x32xf32>
      %134 = arith.addf %131, %133 : vector<16x32xf32>
      %135 = arith.negf %134 : vector<16x32xf32>
      %136 = math.exp %135 : vector<16x32xf32>
      %cst_87 = arith.constant 1.000000e+00 : f32
      %137 = vector.broadcast %cst_87 : f32 to vector<16x32xf32>
      %138 = arith.addf %137, %136 : vector<16x32xf32>
      %139 = arith.divf %137, %138 : vector<16x32xf32>
      %140 = math.tanh %128 : vector<16x32xf32>
      %141 = arith.mulf %139, %140 : vector<16x32xf32>
      %c0_88 = arith.constant 0 : index
      %c0_89 = arith.constant 0 : index
      %c0_90 = arith.constant 0 : index
      %142 = vector.load %arg21[%c0_88, %c0_89, %c0_90] : memref<16x8x32xf32, #tpu.memory_space<vmem>>, vector<16x8x32xf32>
      %c1_i32_91 = arith.constant 1 : i32
      %143 = tpu.dynamic_rotate %78 by %c1_i32_91 dim 1 : vector<16x8x32xf32>, i32 -> vector<16x8x32xf32>
      %144 = arith.mulf %142, %143 : vector<16x8x32xf32>
      %c0_92 = arith.constant 0 : index
      %c0_93 = arith.constant 0 : index
      %c0_94 = arith.constant 0 : index
      %145 = vector.load %arg22[%c0_92, %c0_93, %c0_94] : memref<16x8x32xf32, #tpu.memory_space<vmem>>, vector<16x8x32xf32>
      %c7_i32_95 = arith.constant 7 : i32
      %146 = tpu.dynamic_rotate %78 by %c7_i32_95 dim 1 : vector<16x8x32xf32>, i32 -> vector<16x8x32xf32>
      %147 = arith.mulf %145, %146 : vector<16x8x32xf32>
      %c0_96 = arith.constant 0 : index
      %c0_97 = arith.constant 0 : index
      %c0_98 = arith.constant 0 : index
      %148 = vector.load %arg21[%c0_96, %c0_97, %c0_98] : memref<16x8x32xf32, #tpu.memory_space<vmem>>, vector<16x8x32xf32>
      %c1_i32_99 = arith.constant 1 : i32
      %149 = tpu.dynamic_rotate %79 by %c1_i32_99 dim 1 : vector<16x8x32xf32>, i32 -> vector<16x8x32xf32>
      %150 = arith.mulf %148, %149 : vector<16x8x32xf32>
      %c0_100 = arith.constant 0 : index
      %c0_101 = arith.constant 0 : index
      %c0_102 = arith.constant 0 : index
      %151 = vector.load %arg22[%c0_100, %c0_101, %c0_102] : memref<16x8x32xf32, #tpu.memory_space<vmem>>, vector<16x8x32xf32>
      %c7_i32_103 = arith.constant 7 : i32
      %152 = tpu.dynamic_rotate %79 by %c7_i32_103 dim 1 : vector<16x8x32xf32>, i32 -> vector<16x8x32xf32>
      %153 = arith.mulf %151, %152 : vector<16x8x32xf32>
      %154 = vector.shape_cast %80 : vector<16x32xf32> to vector<16x1x32xf32>
      %155 = vector.shape_cast %154 : vector<16x1x32xf32> to vector<16x1x32xf32>
      %156 = vector.broadcast %155 : vector<16x1x32xf32> to vector<16x8x32xf32>
      %157 = vector.shape_cast %156 : vector<16x8x32xf32> to vector<128x32xf32>
      %158 = vector.shape_cast %144 : vector<16x8x32xf32> to vector<128x32xf32>
      %159 = arith.truncf %158 : vector<128x32xf32> to vector<128x32xbf16>
      %160 = arith.truncf %82 : vector<128x32xf32> to vector<128x32xbf16>
      %161 = vector.shape_cast %147 : vector<16x8x32xf32> to vector<128x32xf32>
      %162 = arith.truncf %161 : vector<128x32xf32> to vector<128x32xbf16>
      %c0_104 = arith.constant 0 : index
      %c0_105 = arith.constant 0 : index
      %163 = vector.load %arg23[%c0_104, %c0_105] : memref<128x32xbf16, #tpu.memory_space<vmem>>, vector<128x32xbf16>
      %164 = arith.truncf %157 : vector<128x32xf32> to vector<128x32xbf16>
      %165 = tpu.concatenate %159, %160, %162, %163, %164 in 1 : vector<128x32xbf16>, vector<128x32xbf16>, vector<128x32xbf16>, vector<128x32xbf16>, vector<128x32xbf16> -> vector<128x160xbf16>
      %c0_106 = arith.constant 0 : index
      %c0_107 = arith.constant 0 : index
      %166 = vector.load %arg4[%c0_106, %c0_107] : memref<160x192xbf16, #tpu.memory_space<vmem>>, vector<160x192xbf16>
      %cst_108 = arith.constant dense<0.000000e+00> : vector<128x192xf32>
      %167 = tpu.matmul %165, %166, %cst_108 {dimension_numbers = #tpu.dot_dimension_numbers<[1], [0], [0], [1], [0, 0, 1, 1], [], []>} : vector<128x160xbf16>, vector<160x192xbf16>, vector<128x192xf32> -> vector<128x192xf32>
      %c0_109 = arith.constant 0 : index
      %c0_110 = arith.constant 0 : index
      %168 = vector.load %arg5[%c0_109, %c0_110] : memref<1x192xf32, #tpu.memory_space<vmem>>, vector<1x192xf32>
      %169 = vector.broadcast %168 : vector<1x192xf32> to vector<128x192xf32>
      %170 = arith.addf %167, %169 : vector<128x192xf32>
      %171 = vector.shape_cast %170 : vector<128x192xf32> to vector<16x8x192xf32>
      %172 = vector.extract_strided_slice %171 {offsets = [0, 0, 0], sizes = [16, 8, 32], strides = [1, 1, 1]} : vector<16x8x192xf32> to vector<16x8x32xf32>
      %173 = arith.negf %172 : vector<16x8x32xf32>
      %174 = math.exp %173 : vector<16x8x32xf32>
      %cst_111 = arith.constant 1.000000e+00 : f32
      %175 = vector.broadcast %cst_111 : f32 to vector<16x8x32xf32>
      %176 = arith.addf %175, %174 : vector<16x8x32xf32>
      %177 = arith.divf %175, %176 : vector<16x8x32xf32>
      %178 = vector.extract_strided_slice %171 {offsets = [0, 0, 32], sizes = [16, 8, 32], strides = [1, 1, 1]} : vector<16x8x192xf32> to vector<16x8x32xf32>
      %179 = vector.extract_strided_slice %171 {offsets = [0, 0, 64], sizes = [16, 8, 32], strides = [1, 1, 1]} : vector<16x8x192xf32> to vector<16x8x32xf32>
      %180 = vector.extract_strided_slice %171 {offsets = [0, 0, 96], sizes = [16, 8, 32], strides = [1, 1, 1]} : vector<16x8x192xf32> to vector<16x8x32xf32>
      %181 = vector.extract_strided_slice %171 {offsets = [0, 0, 128], sizes = [16, 8, 32], strides = [1, 1, 1]} : vector<16x8x192xf32> to vector<16x8x32xf32>
      %182 = vector.extract_strided_slice %171 {offsets = [0, 0, 160], sizes = [16, 8, 32], strides = [1, 1, 1]} : vector<16x8x192xf32> to vector<16x8x32xf32>
      %183 = arith.maximumf %178, %179 : vector<16x8x32xf32>
      %184 = arith.maximumf %180, %181 : vector<16x8x32xf32>
      %185 = arith.maximumf %183, %184 : vector<16x8x32xf32>
      %186 = arith.maximumf %185, %182 : vector<16x8x32xf32>
      %187 = arith.subf %178, %186 : vector<16x8x32xf32>
      %188 = math.exp %187 : vector<16x8x32xf32>
      %189 = arith.subf %179, %186 : vector<16x8x32xf32>
      %190 = math.exp %189 : vector<16x8x32xf32>
      %191 = arith.subf %180, %186 : vector<16x8x32xf32>
      %192 = math.exp %191 : vector<16x8x32xf32>
      %193 = arith.subf %181, %186 : vector<16x8x32xf32>
      %194 = math.exp %193 : vector<16x8x32xf32>
      %195 = arith.subf %182, %186 : vector<16x8x32xf32>
      %196 = math.exp %195 : vector<16x8x32xf32>
      %197 = arith.addf %188, %190 : vector<16x8x32xf32>
      %198 = arith.addf %197, %192 : vector<16x8x32xf32>
      %199 = arith.addf %198, %194 : vector<16x8x32xf32>
      %200 = arith.addf %199, %196 : vector<16x8x32xf32>
      %201 = arith.mulf %188, %150 : vector<16x8x32xf32>
      %202 = arith.mulf %190, %79 : vector<16x8x32xf32>
      %203 = arith.addf %201, %202 : vector<16x8x32xf32>
      %204 = arith.mulf %192, %153 : vector<16x8x32xf32>
      %205 = arith.addf %203, %204 : vector<16x8x32xf32>
      %206 = vector.shape_cast %81 : vector<16x32xf32> to vector<16x1x32xf32>
      %207 = vector.broadcast %206 : vector<16x1x32xf32> to vector<16x8x32xf32>
      %208 = arith.mulf %194, %207 : vector<16x8x32xf32>
      %209 = arith.addf %205, %208 : vector<16x8x32xf32>
      %c0_112 = arith.constant 0 : index
      %c0_113 = arith.constant 0 : index
      %c0_114 = arith.constant 0 : index
      %210 = vector.load %arg1[%c0_112, %c0_113, %c0_114] : memref<16x8x32xf32, #tpu.memory_space<vmem>>, vector<16x8x32xf32>
      %211 = arith.mulf %196, %210 : vector<16x8x32xf32>
      %212 = arith.addf %209, %211 : vector<16x8x32xf32>
      %213 = tpu.reciprocal %200 {approx = true} : vector<16x8x32xf32> -> vector<16x8x32xf32>
      %214 = arith.mulf %200, %213 : vector<16x8x32xf32>
      %cst_115 = arith.constant 2.000000e+00 : f32
      %215 = vector.broadcast %cst_115 : f32 to vector<16x8x32xf32>
      %216 = arith.subf %215, %214 : vector<16x8x32xf32>
      %217 = arith.mulf %213, %216 : vector<16x8x32xf32>
      %218 = arith.mulf %212, %217 : vector<16x8x32xf32>
      %219 = math.tanh %218 : vector<16x8x32xf32>
      %220 = arith.mulf %177, %219 : vector<16x8x32xf32>
      %c0_116 = arith.constant 0 : index
      %c0_117 = arith.constant 0 : index
      %c0_118 = arith.constant 0 : index
      %221 = vector.load %arg19[%c0_116, %c0_117, %c0_118] : memref<16x8x32xf32, #tpu.memory_space<vmem>>, vector<16x8x32xf32>
      %222 = arith.mulf %221, %220 : vector<16x8x32xf32>
      %c0_119 = arith.constant 0 : index
      %c0_120 = arith.constant 0 : index
      %c0_121 = arith.constant 0 : index
      %223 = vector.load %arg15[%c0_119, %c0_120, %c0_121] : memref<16x8x32xf32, #tpu.memory_space<vmem>>, vector<16x8x32xf32>
      tpu.vector_store %arg15[%c0_119, %c0_120, %c0_121], %222 {strides = array<i32>} : memref<16x8x32xf32, #tpu.memory_space<vmem>>, vector<16x8x32xf32>,
      %224 = arith.mulf %221, %218 : vector<16x8x32xf32>
      %c0_122 = arith.constant 0 : index
      %c0_123 = arith.constant 0 : index
      %c0_124 = arith.constant 0 : index
      %225 = vector.load %arg16[%c0_122, %c0_123, %c0_124] : memref<16x8x32xf32, #tpu.memory_space<vmem>>, vector<16x8x32xf32>
      tpu.vector_store %arg16[%c0_122, %c0_123, %c0_124], %224 {strides = array<i32>} : memref<16x8x32xf32, #tpu.memory_space<vmem>>, vector<16x8x32xf32>,
      %c0_125 = arith.constant 0 : index
      %c0_126 = arith.constant 0 : index
      %226 = vector.load %arg17[%c0_125, %c0_126] : memref<16x32xf32, #tpu.memory_space<vmem>>, vector<16x32xf32>
      tpu.vector_store %arg17[%c0_125, %c0_126], %141 {strides = array<i32>} : memref<16x32xf32, #tpu.memory_space<vmem>>, vector<16x32xf32>,
      %c0_127 = arith.constant 0 : index
      %c0_128 = arith.constant 0 : index
      %227 = vector.load %arg18[%c0_127, %c0_128] : memref<16x32xf32, #tpu.memory_space<vmem>>, vector<16x32xf32>
      tpu.vector_store %arg18[%c0_127, %c0_128], %128 {strides = array<i32>} : memref<16x32xf32, #tpu.memory_space<vmem>>, vector<16x32xf32>,
    }
    %c0_39 = arith.constant 0 : index
    %c0_40 = arith.constant 0 : index
    %c0_41 = arith.constant 0 : index
    %48 = vector.load %arg15[%c0_39, %c0_40, %c0_41] : memref<16x8x32xf32, #tpu.memory_space<vmem>>, vector<16x8x32xf32>
    %cst_42 = arith.constant dense<0.000000e+00> : vector<16x32xf32>
    %49 = vector.multi_reduction <add>, %48, %cst_42 [1] : vector<16x8x32xf32> to vector<16x32xf32>
    %c0_43 = arith.constant 0 : index
    %c0_44 = arith.constant 0 : index
    %50 = vector.load %arg17[%c0_43, %c0_44] : memref<16x32xf32, #tpu.memory_space<vmem>>, vector<16x32xf32>
    %51 = arith.addf %49, %50 : vector<16x32xf32>
    %52 = vector.broadcast %39 : vector<16x1xf32> to vector<16x32xf32>
    %53 = arith.mulf %51, %52 : vector<16x32xf32>
    %54 = arith.truncf %53 : vector<16x32xf32> to vector<16x32xbf16>
    %c0_45 = arith.constant 0 : index
    %c0_46 = arith.constant 0 : index
    %55 = vector.load %arg10[%c0_45, %c0_46] : memref<32x64xbf16, #tpu.memory_space<vmem>>, vector<32x64xbf16>
    %cst_47 = arith.constant dense<0.000000e+00> : vector<16x64xf32>
    %56 = tpu.matmul %54, %55, %cst_47 {dimension_numbers = #tpu.dot_dimension_numbers<[1], [0], [0], [1], [0, 0, 1, 1], [], []>} : vector<16x32xbf16>, vector<32x64xbf16>, vector<16x64xf32> -> vector<16x64xf32>
    %c0_48 = arith.constant 0 : index
    %c0_49 = arith.constant 0 : index
    %57 = vector.load %arg11[%c0_48, %c0_49] : memref<1x64xf32, #tpu.memory_space<vmem>>, vector<1x64xf32>
    %58 = vector.broadcast %57 : vector<1x64xf32> to vector<16x64xf32>
    %59 = arith.addf %56, %58 : vector<16x64xf32>
    %60 = math.tanh %59 : vector<16x64xf32>
    %61 = arith.truncf %60 : vector<16x64xf32> to vector<16x64xbf16>
    %c0_50 = arith.constant 0 : index
    %c0_51 = arith.constant 0 : index
    %62 = vector.load %arg12[%c0_50, %c0_51] : memref<64x128xbf16, #tpu.memory_space<vmem>>, vector<64x128xbf16>
    %cst_52 = arith.constant dense<0.000000e+00> : vector<16x128xf32>
    %63 = tpu.matmul %61, %62, %cst_52 {dimension_numbers = #tpu.dot_dimension_numbers<[1], [0], [0], [1], [0, 0, 1, 1], [], []>} : vector<16x64xbf16>, vector<64x128xbf16>, vector<16x128xf32> -> vector<16x128xf32>
    %c0_53 = arith.constant 0 : index
    %c0_54 = arith.constant 0 : index
    %64 = vector.load %arg13[%c0_53, %c0_54] : memref<1x128xf32, #tpu.memory_space<vmem>>, vector<1x128xf32>
    %65 = vector.broadcast %64 : vector<1x128xf32> to vector<16x128xf32>
    %66 = arith.addf %63, %65 : vector<16x128xf32>
    %cst_55 = arith.constant dense<0xFF800000> : vector<16xf32>
    %67 = vector.multi_reduction <maximumf>, %66, %cst_55 [1] : vector<16x128xf32> to vector<16xf32>
    %68 = vector.shape_cast %67 : vector<16xf32> to vector<16x1xf32>
    %69 = vector.broadcast %68 : vector<16x1xf32> to vector<16x128xf32>
    %70 = arith.subf %66, %69 : vector<16x128xf32>
    %71 = math.exp %70 : vector<16x128xf32>
    %cst_56 = arith.constant dense<0.000000e+00> : vector<16xf32>
    %72 = vector.multi_reduction <add>, %71, %cst_56 [1] : vector<16x128xf32> to vector<16xf32>
    %73 = vector.shape_cast %72 : vector<16xf32> to vector<16x1xf32>
    %74 = math.log %73 : vector<16x1xf32>
    %75 = vector.broadcast %74 : vector<16x1xf32> to vector<16x128xf32>
    %76 = arith.subf %70, %75 : vector<16x128xf32>
    %c0_57 = arith.constant 0 : index
    %c0_58 = arith.constant 0 : index
    %77 = vector.load %arg14[%c0_57, %c0_58] : memref<16x128xf32, #tpu.memory_space<vmem>>, vector<16x128xf32>
    tpu.vector_store %arg14[%c0_57, %c0_58], %76 {strides = array<i32>} : memref<16x128xf32, #tpu.memory_space<vmem>>, vector<16x128xf32>,
    return
  }
  func.func @transform_0(%arg0: i32) -> (i32, i32, i32) {
    %c0_i32 = arith.constant 0 : i32
    %c0_i32_0 = arith.constant 0 : i32
    %c0_i32_1 = arith.constant 0 : i32
    return %arg0, %c0_i32, %c0_i32_0 : i32, i32, i32
  }
  func.func @transform_1(%arg0: i32) -> (i32, i32, i32) {
    %c0_i32 = arith.constant 0 : i32
    %c0_i32_0 = arith.constant 0 : i32
    %c0_i32_1 = arith.constant 0 : i32
    return %arg0, %c0_i32, %c0_i32_0 : i32, i32, i32
  }
  func.func @transform_2(%arg0: i32) -> (i32, i32, i32) {
    %c0_i32 = arith.constant 0 : i32
    %c0_i32_0 = arith.constant 0 : i32
    %c0_i32_1 = arith.constant 0 : i32
    return %arg0, %c0_i32, %c0_i32_0 : i32, i32, i32
  }
  func.func @transform_3(%arg0: i32) -> (i32, i32) {
    %c0_i32 = arith.constant 0 : i32
    %c0_i32_0 = arith.constant 0 : i32
    %c0_i32_1 = arith.constant 0 : i32
    return %c0_i32, %c0_i32_0 : i32, i32
  }
  func.func @transform_4(%arg0: i32) -> (i32, i32) {
    %c0_i32 = arith.constant 0 : i32
    %c0_i32_0 = arith.constant 0 : i32
    %c0_i32_1 = arith.constant 0 : i32
    return %c0_i32, %c0_i32_0 : i32, i32
  }
  func.func @transform_5(%arg0: i32) -> (i32, i32) {
    %c0_i32 = arith.constant 0 : i32
    %c0_i32_0 = arith.constant 0 : i32
    %c0_i32_1 = arith.constant 0 : i32
    return %c0_i32, %c0_i32_0 : i32, i32
  }
  func.func @transform_6(%arg0: i32) -> (i32, i32) {
    %c0_i32 = arith.constant 0 : i32
    %c0_i32_0 = arith.constant 0 : i32
    %c0_i32_1 = arith.constant 0 : i32
    return %c0_i32, %c0_i32_0 : i32, i32
  }
  func.func @transform_7(%arg0: i32) -> (i32, i32) {
    %c0_i32 = arith.constant 0 : i32
    %c0_i32_0 = arith.constant 0 : i32
    %c0_i32_1 = arith.constant 0 : i32
    return %c0_i32, %c0_i32_0 : i32, i32
  }
  func.func @transform_8(%arg0: i32) -> (i32, i32) {
    %c0_i32 = arith.constant 0 : i32
    %c0_i32_0 = arith.constant 0 : i32
    %c0_i32_1 = arith.constant 0 : i32
    return %c0_i32, %c0_i32_0 : i32, i32
  }
  func.func @transform_9(%arg0: i32) -> (i32, i32) {
    %c0_i32 = arith.constant 0 : i32
    %c0_i32_0 = arith.constant 0 : i32
    %c0_i32_1 = arith.constant 0 : i32
    return %c0_i32, %c0_i32_0 : i32, i32
  }
  func.func @transform_10(%arg0: i32) -> (i32, i32) {
    %c0_i32 = arith.constant 0 : i32
    %c0_i32_0 = arith.constant 0 : i32
    %c0_i32_1 = arith.constant 0 : i32
    return %c0_i32, %c0_i32_0 : i32, i32
  }
  func.func @transform_11(%arg0: i32) -> (i32, i32) {
    %c0_i32 = arith.constant 0 : i32
    %c0_i32_0 = arith.constant 0 : i32
    %c0_i32_1 = arith.constant 0 : i32
    return %c0_i32, %c0_i32_0 : i32, i32
  }
  func.func @transform_12(%arg0: i32) -> (i32, i32) {
    %c0_i32 = arith.constant 0 : i32
    %c0_i32_0 = arith.constant 0 : i32
    %c0_i32_1 = arith.constant 0 : i32
    return %c0_i32, %c0_i32_0 : i32, i32
  }
  func.func @transform_13(%arg0: i32) -> (i32, i32) {
    %c0_i32 = arith.constant 0 : i32
    %c0_i32_0 = arith.constant 0 : i32
    return %arg0, %c0_i32 : i32, i32
  }
}

</mosaic_0001>

<bundles_post_ra>
// kernel: bslstm_forward.1
= control target key start
LH: loop header
LB: loop body
LE: loop exit
PB: predicated region body
PF: predicated region fallthrough
CT: control target
= control target key end

     0   :  { %s7238_s25 = smov 0   ;;  %s10565_s0 = inlined_call_operand.vmem [shape: f32[32,8,32], index: 0, kind: input, shape index: {}]   ;;  %s10566_s1 = inlined_call_operand.vmem [shape: f32[32,1,8], index: 1, kind: input, shape index: {}]   ;;  %s10567_s2 = inlined_call_operand.vmem [shape: f32[32,1,8], index: 2, kind: input, shape index: {}]   ;;  %s10568_s3 = inlined_call_operand.vmem [shape: bf16[160,192], index: 3, kind: input, shape index: {}]   ;;  %s10569_s4 = inlined_call_operand.vmem [shape: f32[1,192], index: 4, kind: input, shape index: {}]   ;;  %s10570_s5 = inlined_call_operand.vmem [shape: bf16[32,64], index: 5, kind: input, shape index: {}]   ;;  %s10571_s6 = inlined_call_operand.vmem [shape: bf16[32,64], index: 6, kind: input, shape index: {}]   ;;  %s10572_s7 = inlined_call_operand.vmem [shape: f32[1,32], index: 7, kind: input, shape index: {}]   ;;  %s10573_s8 = inlined_call_operand.vmem [shape: f32[1,32], index: 8, kind: input, shape index: {}]   ;;  %s10574_s9 = inlined_call_operand.vmem [shape: bf16[32,64], index: 9, kind: input, shape index: {}]   ;;  %s10575_s10 = inlined_call_operand.vmem [shape: f32[1,64], index: 10, kind: input, shape index: {}]   ;;  %s10576_s11 = inlined_call_operand.vmem [shape: bf16[64,128], index: 11, kind: input, shape index: {}]   ;;  %s10577_s12 = inlined_call_operand.vmem [shape: f32[1,128], index: 12, kind: input, shape index: {}]   ;;  %s10578_s13 = inlined_call_operand.vmem [shape: f32[32,128], index: 13, kind: output, shape index: {}]  }
   0x1 LB: > { %s6438_s26 = sadd.s32 4294967295, %s7153_s25   ;;  %p6442_p0 = scmp.ge.s32.totalorder %s7153_s25, 1  ;;  %s7153_s25 = sphi %s7238_s25, %s23_s25  }
   0x2   : > { %p408_p1 = scmp.lt.s32.totalorder %s7153_s25, 3 }
   0x4   : > { %p409_p2 = pnand %p6442_p0, %p408_p1 }
   0x6   : > { %412 = sbr.rel (%p409_p2) target bundleno = 2291 (0x8f3), region = 72 }
   0xb   : > { %s6443_s27 = sshll.u32 %s6438_s26, 4  ;;  %v531_v0 = vlaneseq  ;;  %v7159_v2 = vmov 1966171168   ;;  %v10579_v6 = vmov 0.0   ;;  %vm536_vm2 = vcmask 261120   ;;  %s6447_s21 = sshll.u32 %s6438_s26, 1 }
   0xc   : > { %p461_p3 = scmp.lt.s32.totalorder %s6443_s27, 31  ;;  %v994_v3 = vunpack.c.l.s4 %v7159_v2  ;;  %vm924_vm3 = vcmask 257024   ;;  %vm1089_vm4 = vcmask 64512   ;;  %p477_p4 = scmp.lt.s32.totalorder %s6447_s21, 3  ;;  %vm1309_vm5 = vcmask 1041409  }
   0xd   : > { %v7248_v1 = vshrl.u32 %v531_v0, 7  ;;  %vm1312_vm6 = vcmask 1042434   ;;  %vm1315_vm7 = vcmask 1043459   ;;  %vm1318_vm8 = vcmask 1044484   ;;  %s7798_s26 = smov 0  }
   0xe   : > { %s11017_s27 = smov (!%p461_p3, %s6443_s27), 31  ;;  %v995_v5 = vunpack.c.0.s8 %v994_v3  ;;  %s11019_s21 = smov (!%p477_p4, %s6447_s21), 3  ;;  %vm1321_vm9 = vcmask 1045509   ;;  %vm1324_vm10 = vcmask 1046534   ;;  %vm1327_vm11 = vcmask 1047559  }
   0xf   : > { %10676 = vst [vmem:[#allocation11_spill] sm:$0xff] %v7248_v1  ;;  %vm533_vm0 = vcmp.ne.s32.totalorder %v7248_v1, 0  ;;  %vm553_vm1 = vcmp.ne.s32.totalorder %v7248_v1, 7  ;;  %v7255_v4 = vsub.s32 0, %v7248_v1  ;;  %s7261_s30 = scalar_lea.vmem %s10566_s1, %s11017_s27  ;;  %s6444_s14 = sshll.u32 %s11017_s27, 3 }
  0x10   : > { %v6449_v7 = vsel %vm533_vm0, 1.0, %v10579_v6  ;;  %v6450_v8 = vsel %vm553_vm1, 1.0, %v10579_v6  ;;  %v7267_v9 = vld [vmem:[%s7261_s30] sm:$0x1]  ;;  %v7270_v10 = vld [vmem:[%s7261_s30 + $0x1] sm:$0x1]  ;;  %s7312_s17 = scalar_lea.vmem %s10565_s0, %s6444_s14  ;;  %v7326_v16 = vsub.s32 %v995_v5, %v7248_v1  ;;  %s7600_s20 = scalar_lea.vmem %s10567_s2, %s11017_s27 }
  0x11   : > { %10677 = vst [vmem:[#allocation12_spill] sm:$0xff] %v7255_v4  ;;  %v7273_v11 = vld [vmem:[%s7261_s30 + $0x2] sm:$0x1]  ;;  %537 = vst.msk [vmem:[#allocation8] sm:$0xff] %vm536_vm2, %v6449_v7  ;;  %v7315_v12 = vld [vmem:[%s7261_s30 + $0x3] sm:$0x1]  ;;  %v989_v15 = vcombine.low %v7267_v9, %v7270_v10  ;;  %v575_v17 = vrot.slane %v7267_v9, %v7255_v4  ;;  %v582_v18 = vrot.slane %v7270_v10, %v7255_v4 }
  0x12   : > { %538 = vst.msk [vmem:[#allocation8 + $0x8] sm:$0xff] %vm536_vm2, %v6449_v7  ;;  %539 = vst.msk [vmem:[#allocation8 + $0x10] sm:$0xff] %vm536_vm2, %v6449_v7  ;;  %v7318_v13 = vld [vmem:[%s7261_s30 + $0x4] sm:$0x1]  ;;  %v7321_v14 = vld [vmem:[%s7261_s30 + $0x5] sm:$0x1]  ;;  %v990_v23 = vcombine.low %v7273_v11, %v7315_v12 }
  0x13   : > { %540 = vst.msk [vmem:[#allocation8 + $0x18] sm:$0xff] %vm536_vm2, %v6449_v7  ;;  %541 = vst.msk [vmem:[#allocation8 + $0x20] sm:$0xff] %vm536_vm2, %v6449_v7  ;;  %v7333_v19 = vld [vmem:[%s7261_s30 + $0x6] sm:$0x1]  ;;  %v7336_v20 = vld [vmem:[%s7261_s30 + $0x7] sm:$0x1]  ;;  %v991_v24 = vcombine.low %v7318_v13, %v7321_v14  ;;  %v999_v45 = vrot.slane %v989_v15, %v7326_v16 }
  0x14   : > { %542 = vst.msk [vmem:[#allocation8 + $0x28] sm:$0xff] %vm536_vm2, %v6449_v7  ;;  %543 = vst.msk [vmem:[#allocation8 + $0x30] sm:$0xff] %vm536_vm2, %v6449_v7  ;;  %v942_v21 = vsub.f32 1.0, %v7270_v10  ;;  %v943_v22 = vsub.f32 1.0, %v7273_v11  ;;  %v944_v25 = vsub.f32 1.0, %v7315_v12  ;;  %v945_v26 = vsub.f32 1.0, %v7318_v13 }
  0x15   : > { %544 = vst.msk [vmem:[#allocation8 + $0x38] sm:$0xff] %vm536_vm2, %v6449_v7  ;;  %545 = vst.msk [vmem:[#allocation8 + $0x40] sm:$0xff] %vm536_vm2, %v6449_v7  ;;  %v946_v27 = vsub.f32 1.0, %v7321_v14  ;;  %v947_v28 = vsub.f32 1.0, %v7333_v19  ;;  %v7349_v29 = vld [vmem:[%s7312_s17] sm:$0xff]  ;;  %v7352_v30 = vld [vmem:[%s7312_s17 + $0x8] sm:$0xff]  ;;  %v992_v34 = vcombine.low %v7333_v19, %v7336_v20  ;;  %v1006_v46 = vrot.slane %v990_v23, %v7326_v16 }
  0x16   : > { %546 = vst.msk [vmem:[#allocation8 + $0x48] sm:$0xff] %vm536_vm2, %v6449_v7  ;;  %547 = vst.msk [vmem:[#allocation8 + $0x50] sm:$0xff] %vm536_vm2, %v6449_v7  ;;  %v948_v31 = vsub.f32 1.0, %v7336_v20  ;;  %v7355_v32 = vmul.f32 200.0, %v942_v21  ;;  %v7357_v33 = vmul.f32 200.0, %v943_v22  ;;  %v7362_v35 = vld [vmem:[%s7312_s17 + $0x10] sm:$0xff]  ;;  %v1013_v47 = vrot.slane %v991_v24, %v7326_v16 }
  0x17   : > { %548 = vst.msk [vmem:[#allocation8 + $0x58] sm:$0xff] %vm536_vm2, %v6449_v7  ;;  %549 = vst.msk [vmem:[#allocation8 + $0x60] sm:$0xff] %vm536_vm2, %v6449_v7  ;;  %v7365_v36 = vld [vmem:[%s7312_s17 + $0x18] sm:$0xff]  ;;  %v7368_v37 = vld [vmem:[%s7312_s17 + $0x20] sm:$0xff]  ;;  %v7378_v38 = vmul.f32 200.0, %v944_v25  ;;  %v7380_v39 = vmul.f32 200.0, %v945_v26  ;;  %v1020_v51 = vrot.slane %v992_v34, %v7326_v16  ;;  %v6549_v55 = vpack.c.bf16 %v7349_v29, %v7349_v29 }
  0x18   : > { %550 = vst.msk [vmem:[#allocation8 + $0x68] sm:$0xff] %vm536_vm2, %v6449_v7  ;;  %551 = vst.msk [vmem:[#allocation8 + $0x70] sm:$0xff] %vm536_vm2, %v6449_v7  ;;  %v7382_v40 = vmul.f32 200.0, %v946_v27  ;;  %v7384_v41 = vmul.f32 200.0, %v947_v28  ;;  %v7387_v42 = vld [vmem:[%s7312_s17 + $0x28] sm:$0xff]  ;;  %v7390_v43 = vld [vmem:[%s7312_s17 + $0x30] sm:$0xff]  ;;  %v6550_v56 = vpack.c.bf16 %v7352_v30, %v7352_v30  ;;  %v6551_v57 = vpack.c.bf16 %v7362_v35, %v7362_v35 }
  0x19   : > { %552 = vst.msk [vmem:[#allocation8 + $0x78] sm:$0xff] %vm536_vm2, %v6449_v7  ;;  %556 = vst.msk [vmem:[#allocation9] sm:$0xff] %vm536_vm2, %v6450_v8  ;;  %v7404_v44 = vmul.f32 200.0, %v948_v31  ;;  %v7410_v48 = vld [vmem:[%s7312_s17 + $0x38] sm:$0xff]  ;;  %v7413_v49 = vld [vmem:[%s7312_s17 + $0x40] sm:$0xff]  ;;  %577 = vbcast.lane.b32.xlu1 %v575_v17, 256  ;;  %v1021_v58 = vcombine.low %v999_v45, %v1006_v46  ;;  %v6552_v62 = vpack.c.bf16 %v7365_v36, %v7365_v36 }
  0x1a   : > { %557 = vst.msk [vmem:[#allocation9 + $0x8] sm:$0xff] %vm536_vm2, %v6450_v8  ;;  %558 = vst.msk [vmem:[#allocation9 + $0x10] sm:$0xff] %vm536_vm2, %v6450_v8  ;;  %v7416_v50 = vld [vmem:[%s7312_s17 + $0x48] sm:$0xff]  ;;  %v7428_v52 = vld [vmem:[%s7312_s17 + $0x50] sm:$0xff]  ;;  %v6553_v63 = vpack.c.bf16 %v7368_v37, %v7368_v37  ;;  %v6554_v0 = vpack.c.bf16 %v7387_v42, %v7387_v42  ;;  %v1022_v2 = vcombine.low %v1013_v47, %v1020_v51  ;;  %v941_v27 = vsub.f32 1.0, %v7267_v9  ;;  %s6448_s22 = sshll.u32 %s11019_s21, 3 }
  0x1b   : > { %559 = vst.msk [vmem:[#allocation9 + $0x18] sm:$0xff] %vm536_vm2, %v6450_v8  ;;  %560 = vst.msk [vmem:[#allocation9 + $0x20] sm:$0xff] %vm536_vm2, %v6450_v8  ;;  %v7431_v53 = vld [vmem:[%s7312_s17 + $0x58] sm:$0xff]  ;;  %v7434_v54 = vld [vmem:[%s7312_s17 + $0x60] sm:$0xff]  ;;  %v6555_v3 = vpack.c.bf16 %v7390_v43, %v7390_v43  ;;  %v6556_v5 = vpack.c.bf16 %v7410_v48, %v7410_v48  ;;  %v6557_v7 = vpack.c.bf16 %v7413_v49, %v7413_v49  ;;  %s7651_s27 = scalar_lea.vmem %s10578_s13, %s6448_s22 }
  0x1c   : > { %561 = vst.msk [vmem:[#allocation9 + $0x28] sm:$0xff] %vm536_vm2, %v6450_v8  ;;  %562 = vst.msk [vmem:[#allocation9 + $0x30] sm:$0xff] %vm536_vm2, %v6450_v8  ;;  %v7455_v59 = vld [vmem:[%s7312_s17 + $0x68] sm:$0xff]  ;;  %v7458_v60 = vld [vmem:[%s7312_s17 + $0x70] sm:$0xff]  ;;  %v6558_v15 = vpack.c.bf16 %v7416_v50, %v7416_v50  ;;  %v6559_v17 = vpack.c.bf16 %v7428_v52, %v7428_v52  ;;  %v6560_v21 = vpack.c.bf16 %v7431_v53, %v7431_v53 }
  0x1d   : > { %563 = vst.msk [vmem:[#allocation9 + $0x38] sm:$0xff] %vm536_vm2, %v6450_v8  ;;  %564 = vst.msk [vmem:[#allocation9 + $0x40] sm:$0xff] %vm536_vm2, %v6450_v8  ;;  %v7461_v61 = vld [vmem:[%s7312_s17 + $0x78] sm:$0xff]  ;;  %v1036_v22 = vrot.slane %v1022_v2, %v7326_v16  ;;  %v6561_v23 = vpack.c.bf16 %v7434_v54, %v7434_v54  ;;  %v6562_v24 = vpack.c.bf16 %v7455_v59, %v7455_v59  ;;  %584 = vbcast.lane.b32.xlu1 %v582_v18, 256  ;;  %v507_v31 = vld [vmem:[%s7261_s30 + $0x8] sm:$0x1] }
  0x1e   : > { %565 = vst.msk [vmem:[#allocation9 + $0x48] sm:$0xff] %vm536_vm2, %v6450_v8  ;;  %566 = vst.msk [vmem:[#allocation9 + $0x50] sm:$0xff] %vm536_vm2, %v6450_v8  ;;  %v6563_v25 = vpack.c.bf16 %v7458_v60, %v7458_v60  ;;  %v6564_v26 = vpack.c.bf16 %v7461_v61, %v7461_v61  ;;  %v7535_v18 = vmul.f32 200.0, %v941_v27  ;;  %v7540_v34 = vld [vmem:[%s7261_s30 + $0x9] sm:$0x1]  ;;  %v949_v9 = vsub.f32 1.0, %v507_v31 }
  0x1f   : > { %567 = vst.msk [vmem:[#allocation9 + $0x58] sm:$0xff] %vm536_vm2, %v6450_v8  ;;  %568 = vst.msk [vmem:[#allocation9 + $0x60] sm:$0xff] %vm536_vm2, %v6450_v8  ;;  %v509_v45 = vld [vmem:[%s7261_s30 + $0xa] sm:$0x1]  ;;  %v7544_v46 = vld [vmem:[%s7261_s30 + $0xb] sm:$0x1] }
  0x20   : > { %569 = vst.msk [vmem:[#allocation9 + $0x68] sm:$0xff] %vm536_vm2, %v6450_v8  ;;  %570 = vst.msk [vmem:[#allocation9 + $0x70] sm:$0xff] %vm536_vm2, %v6450_v8  ;;  %v950_v47 = vsub.f32 1.0, %v7540_v34  ;;  %v511_v51 = vld [vmem:[%s7261_s30 + $0xc] sm:$0x1] }
  0x21   : > { %571 = vst.msk [vmem:[#allocation9 + $0x78] sm:$0xff] %vm536_vm2, %v6450_v8  ;;  %10678 = vst [vmem:[#allocation13_spill] sm:$0xff] %v7326_v16  ;;  %v1029_v8 = vrot.slane %v1021_v58, %v7326_v16  ;;  %v513_v58 = vld [vmem:[%s7261_s30 + $0xe] sm:$0x1] }
  0x22   : > { %10679 = vst [vmem:[#allocation14_spill] sm:$0xff] %v7355_v32  ;;  %10680 = vst [vmem:[#allocation15_spill] sm:$0xff] %v7357_v33  ;;  %v955_v2 = vsub.f32 1.0, %v513_v58 }
  0x23   : > { %1100 = vst.msk [vmem:[#allocation2] sm:$0xff] %vm536_vm2, %v7349_v29  ;;  %1101 = vst.msk [vmem:[#allocation2 + $0x8] sm:$0xff] %vm536_vm2, %v7352_v30  ;;  %v1037_v10 = vcombine.low %v1029_v8, %v1036_v22 }
  0x24   : > { %1116 = vst.msk [vmem:[#allocation3] sm:$0xff] %vm536_vm2, %v7349_v29  ;;  %1117 = vst.msk [vmem:[#allocation3 + $0x8] sm:$0xff] %vm536_vm2, %v7352_v30  ;;  %v7570_v22 = vmul.f32 200.0, %v955_v2 }
  0x25   : > { %10681 = vst [vmem:[#allocation16_spill] sm:$0xff] %v7378_v38  ;;  %10682 = vst [vmem:[#allocation17_spill] sm:$0xff] %v7380_v39  ;;  %v1090_v28 = vsel %vm1089_vm4, %v1037_v10, 0.0  ;;  %v596_v10 = vrot.slane %v7315_v12, %v7255_v4  ;;  %v610_v12 = vrot.slane %v7321_v14, %v7255_v4  ;;  %v645_v14 = vrot.slane %v509_v45, %v7255_v4 }
  0x26   : > { %10683 = vst [vmem:[#allocation18_spill] sm:$0xff] %v7382_v40  ;;  %10684 = vst [vmem:[#allocation19_spill] sm:$0xff] %v7384_v41  ;;  %1091 = vadd.xlane.f32.xlu0 %v1090_v28 }
  0x27   : > { %1102 = vst.msk [vmem:[#allocation2 + $0x10] sm:$0xff] %vm536_vm2, %v7362_v35  ;;  %1103 = vst.msk [vmem:[#allocation2 + $0x18] sm:$0xff] %vm536_vm2, %v7365_v36  ;;  %598 = vbcast.lane.b32.xlu1 %v596_v10, 256  ;;  %v659_v10 = vrot.slane %v511_v51, %v7255_v4 }
  0x28   : > { %1104 = vst.msk [vmem:[#allocation2 + $0x20] sm:$0xff] %vm536_vm2, %v7368_v37  ;;  %1118 = vst.msk [vmem:[#allocation3 + $0x10] sm:$0xff] %vm536_vm2, %v7362_v35 }
  0x29   : > { %1119 = vst.msk [vmem:[#allocation3 + $0x18] sm:$0xff] %vm536_vm2, %v7365_v36  ;;  %1120 = vst.msk [vmem:[#allocation3 + $0x20] sm:$0xff] %vm536_vm2, %v7368_v37 }
  0x2a   : > { %10685 = vst [vmem:[#allocation20_spill] sm:$0xff] %v7404_v44  ;;  %1105 = vst.msk [vmem:[#allocation2 + $0x28] sm:$0xff] %vm536_vm2, %v7387_v42 }
  0x2b   : > { %1106 = vst.msk [vmem:[#allocation2 + $0x30] sm:$0xff] %vm536_vm2, %v7390_v43  ;;  %1121 = vst.msk [vmem:[#allocation3 + $0x28] sm:$0xff] %vm536_vm2, %v7387_v42 }
  0x2c   : > { %1122 = vst.msk [vmem:[#allocation3 + $0x30] sm:$0xff] %vm536_vm2, %v7390_v43  ;;  %1107 = vst.msk [vmem:[#allocation2 + $0x38] sm:$0xff] %vm536_vm2, %v7410_v48 }
  0x2d   : > { %1108 = vst.msk [vmem:[#allocation2 + $0x40] sm:$0xff] %vm536_vm2, %v7413_v49  ;;  %1109 = vst.msk [vmem:[#allocation2 + $0x48] sm:$0xff] %vm536_vm2, %v7416_v50 }
  0x2e   : > { %1123 = vst.msk [vmem:[#allocation3 + $0x38] sm:$0xff] %vm536_vm2, %v7410_v48  ;;  %1124 = vst.msk [vmem:[#allocation3 + $0x40] sm:$0xff] %vm536_vm2, %v7413_v49 }
  0x2f   : > { %1125 = vst.msk [vmem:[#allocation3 + $0x48] sm:$0xff] %vm536_vm2, %v7416_v50  ;;  %1110 = vst.msk [vmem:[#allocation2 + $0x50] sm:$0xff] %vm536_vm2, %v7428_v52 }
  0x30   : > { %1111 = vst.msk [vmem:[#allocation2 + $0x58] sm:$0xff] %vm536_vm2, %v7431_v53  ;;  %1112 = vst.msk [vmem:[#allocation2 + $0x60] sm:$0xff] %vm536_vm2, %v7434_v54 }
  0x31   : > { %1126 = vst.msk [vmem:[#allocation3 + $0x50] sm:$0xff] %vm536_vm2, %v7428_v52  ;;  %1127 = vst.msk [vmem:[#allocation3 + $0x58] sm:$0xff] %vm536_vm2, %v7431_v53 }
  0x32   : > { %1128 = vst.msk [vmem:[#allocation3 + $0x60] sm:$0xff] %vm536_vm2, %v7434_v54  ;;  %1113 = vst.msk [vmem:[#allocation2 + $0x68] sm:$0xff] %vm536_vm2, %v7455_v59 }
  0x33   : > { %925 = vst.msk [vmem:[#allocation10] sm:$0xf] %vm924_vm3, %v6549_v55  ;;  %926 = vst.msk [vmem:[#allocation10 + $0x4] sm:$0xf] %vm924_vm3, %v6550_v56  ;;  %v7549_v55 = vld [vmem:[%s7261_s30 + $0xd] sm:$0x1] }
  0x34   : > { %927 = vst.msk [vmem:[#allocation10 + $0x8] sm:$0xf] %vm924_vm3, %v6551_v57  ;;  %928 = vst.msk [vmem:[#allocation10 + $0xc] sm:$0xf] %vm924_vm3, %v6552_v62  ;;  %v951_v56 = vsub.f32 1.0, %v509_v45  ;;  %v952_v57 = vsub.f32 1.0, %v7544_v46 }
  0x35   : > { %1114 = vst.msk [vmem:[#allocation2 + $0x70] sm:$0xff] %vm536_vm2, %v7458_v60  ;;  %1115 = vst.msk [vmem:[#allocation2 + $0x78] sm:$0xff] %vm536_vm2, %v7461_v61  ;;  %v7554_v62 = vld [vmem:[%s7261_s30 + $0xf] sm:$0x1] }
  0x36   : > { %1129 = vst.msk [vmem:[#allocation3 + $0x68] sm:$0xff] %vm536_vm2, %v7455_v59  ;;  %1130 = vst.msk [vmem:[#allocation3 + $0x70] sm:$0xff] %vm536_vm2, %v7458_v60  ;;  %v7562_v8 = vmul.f32 200.0, %v951_v56  ;;  %v1041_v27 = vcombine.low %v513_v58, %v7554_v62 }
  0x37   : > { %1131 = vst.msk [vmem:[#allocation3 + $0x78] sm:$0xff] %vm536_vm2, %v7461_v61  ;;  %10686 = vst [vmem:[#allocation21_spill] sm:$0xff] %v7535_v18 }
  0x38   : > { %929 = vst.msk [vmem:[#allocation10 + $0x10] sm:$0xf] %vm924_vm3, %v6553_v63  ;;  %930 = vst.msk [vmem:[#allocation10 + $0x14] sm:$0xf] %vm924_vm3, %v6554_v0  ;;  %v953_v63 = vsub.f32 1.0, %v511_v51  ;;  %v954_v0 = vsub.f32 1.0, %v7549_v55  ;;  %v1069_v56 = vrot.slane %v1041_v27, %v7326_v16  ;;  %v631_v27 = vrot.slane %v507_v31, %v7255_v4 }
  0x39   : > { %931 = vst.msk [vmem:[#allocation10 + $0x18] sm:$0xf] %vm924_vm3, %v6555_v3  ;;  %932 = vst.msk [vmem:[#allocation10 + $0x1c] sm:$0xf] %vm924_vm3, %v6556_v5  ;;  %v956_v3 = vsub.f32 1.0, %v7554_v62  ;;  %v7558_v5 = vmul.f32 200.0, %v949_v9 }
  0x3a   : > { %933 = vst.msk [vmem:[#allocation10 + $0x20] sm:$0xf] %vm924_vm3, %v6557_v7  ;;  %934 = vst.msk [vmem:[#allocation10 + $0x24] sm:$0xf] %vm924_vm3, %v6558_v15  ;;  %v7560_v7 = vmul.f32 200.0, %v950_v47  ;;  %v7564_v15 = vmul.f32 200.0, %v952_v57  ;;  %v603_v57 = vrot.slane %v7318_v13, %v7255_v4  ;;  %v624_v13 = vrot.slane %v7336_v20, %v7255_v4 }
  0x3b   : > { %935 = vst.msk [vmem:[#allocation10 + $0x28] sm:$0xf] %vm924_vm3, %v6559_v17  ;;  %936 = vst.msk [vmem:[#allocation10 + $0x2c] sm:$0xf] %vm924_vm3, %v6560_v21  ;;  %v7566_v17 = vmul.f32 200.0, %v953_v63  ;;  %v7568_v21 = vmul.f32 200.0, %v954_v0 }
  0x3c   : > { %937 = vst.msk [vmem:[#allocation10 + $0x30] sm:$0xf] %vm924_vm3, %v6561_v23  ;;  %938 = vst.msk [vmem:[#allocation10 + $0x34] sm:$0xf] %vm924_vm3, %v6562_v24  ;;  %v7572_v23 = vmul.f32 200.0, %v956_v3  ;;  %v1038_v24 = vcombine.low %v507_v31, %v7540_v34  ;;  %605 = vbcast.lane.b32.xlu1 %v603_v57, 256  ;;  %v589_v31 = vrot.slane %v7273_v11, %v7255_v4 }
  0x3d   : > { %939 = vst.msk [vmem:[#allocation10 + $0x38] sm:$0xf] %vm924_vm3, %v6563_v25  ;;  %940 = vst.msk [vmem:[#allocation10 + $0x3c] sm:$0xf] %vm924_vm3, %v6564_v26  ;;  %v1039_v25 = vcombine.low %v509_v45, %v7544_v46  ;;  %v1040_v26 = vcombine.low %v511_v51, %v7549_v55  ;;  %v519_v57 = vld [vmem:[%s7600_s20 + $0x4] sm:$0x1]  ;;  %v638_v45 = vrot.slane %v7540_v34, %v7255_v4 }
  0x3e   : > { %10687 = vst [vmem:[#allocation22_spill] sm:$0xff] %v7558_v5  ;;  %10688 = vst [vmem:[#allocation23_spill] sm:$0xff] %v7560_v7  ;;  %v1048_v28 = vrot.slane %v1038_v24, %v7326_v16  ;;  %v652_v11 = vrot.slane %v7544_v46, %v7255_v4  ;;  %v523_v34 = vld [vmem:[%s7600_s20 + $0x8] sm:$0x1] }
  0x3f   : > { %10689 = vst [vmem:[#allocation24_spill] sm:$0xff] %v7562_v8  ;;  %10690 = vst [vmem:[#allocation25_spill] sm:$0xff] %v7564_v15  ;;  %v1055_v9 = vrot.slane %v1039_v25, %v7326_v16  ;;  %v1062_v47 = vrot.slane %v1040_v26, %v7326_v16  ;;  %v617_v26 = vrot.slane %v7333_v19, %v7255_v4  ;;  %v515_v19 = vld [vmem:[%s7600_s20] sm:$0x1]  ;;  %v708_v46 = vsub.f32 1.0, %v523_v34 }
  0x40   : > { %10691 = vst [vmem:[#allocation26_spill] sm:$0xff] %v7566_v17  ;;  %10692 = vst [vmem:[#allocation27_spill] sm:$0xff] %v7568_v21  ;;  %612 = vbcast.lane.b32.xlu1 %v610_v12, 256  ;;  %v700_v20 = vsub.f32 1.0, %v515_v19  ;;  %v525_v19 = vld [vmem:[%s7600_s20 + $0xa] sm:$0x1] }
  0x41   : > { %10693 = vst [vmem:[#allocation28_spill] sm:$0xff] %v7570_v22  ;;  %10694 = vst [vmem:[#allocation29_spill] sm:$0xff] %v7572_v23  ;;  %v1070_v63 = vcombine.low %v1048_v28, %v1055_v9  ;;  %v1071_v0 = vcombine.low %v1062_v47, %v1069_v56  ;;  %v517_v28 = vld [vmem:[%s7600_s20 + $0x2] sm:$0x1]  ;;  %v673_v9 = vrot.slane %v513_v58, %v7255_v4  ;;  %v516_v58 = vld [vmem:[%s7600_s20 + $0x1] sm:$0x1] }
  0x42   : > { %v716_v47 = vmul.f32 200.0, %v700_v20  ;;  %v702_v56 = vsub.f32 1.0, %v517_v28 }
  0x43   : > { %v1078_v2 = vrot.slane %v1070_v63, %v7326_v16  ;;  %v1085_v3 = vrot.slane %v1071_v0, %v7326_v16  ;;  %v704_v0 = vsub.f32 1.0, %v519_v57 }
  0x44   : > { %619 = vbcast.lane.b32.xlu1 %v617_v26, 256  ;;  %v735_v51 = vrot.slane %v716_v47, %v7255_v4  ;;  %v718_v63 = vmul.f32 200.0, %v702_v56  ;;  %v701_v26 = vsub.f32 1.0, %v516_v58  ;;  %v710_v47 = vsub.f32 1.0, %v525_v19  ;;  %v527_v56 = vld [vmem:[%s7600_s20 + $0xc] sm:$0x1] }
  0x45   : > { %v1086_v24 = vcombine.low %v1078_v2, %v1085_v3  ;;  %v521_v2 = vld [vmem:[%s7600_s20 + $0x6] sm:$0x1]  ;;  %v720_v12 = vmul.f32 200.0, %v704_v0 }
  0x46   : > { %v749_v3 = vrot.slane %v718_v63, %v7255_v4  ;;  %v717_v20 = vmul.f32 200.0, %v701_v26  ;;  %v522_v63 = vld [vmem:[%s7600_s20 + $0x7] sm:$0x1]  ;;  %v726_v0 = vmul.f32 200.0, %v710_v47 }
  0x47   : > { %v1093_v25 = vsel %vm1089_vm4, %v1086_v24, 0.0  ;;  %v706_v24 = vsub.f32 1.0, %v521_v2  ;;  %v712_v2 = vsub.f32 1.0, %v527_v56 }
  0x48   : > { %1094 = vadd.xlane.f32.xlu0 %v1093_v25  ;;  %626 = vbcast.lane.b32.xlu1 %v624_v13, 256  ;;  %v666_v25 = vrot.slane %v7549_v55, %v7255_v4  ;;  %v518_v13 = vld [vmem:[%s7600_s20 + $0x3] sm:$0x1]  ;;  %v742_v57 = vrot.slane %v717_v20, %v7255_v4  ;;  %v805_v34 = vrot.slane %v726_v0, %v7255_v4 }
  0x49   : > { %v703_v28 = vsub.f32 1.0, %v518_v13 }
  0x4c   : > { %633 = vbcast.lane.b32.xlu1 %v631_v27, 256  ;;  %v763_v27 = vrot.slane %v720_v12, %v7255_v4  ;;  %v707_v12 = vsub.f32 1.0, %v522_v63 }
  0x50   : > { %647 = vbcast.lane.b32.xlu1 %v645_v14, 256  ;;  %v722_v14 = vmul.f32 200.0, %v706_v24  ;;  %v524_v24 = vld [vmem:[%s7600_s20 + $0x9] sm:$0x1] }
  0x52   : > { %v777_v55 = vrot.slane %v722_v14, %v7255_v4  ;;  %v709_v14 = vsub.f32 1.0, %v524_v24  ;;  %v1146_v24 = vsel %vm536_vm2, %v7362_v35, 0.0  ;;  %v1181_v35 = vsel %vm536_vm2, %v7410_v48, 0.0 }
  0x54   : > { %661 = vbcast.lane.b32.xlu1 %v659_v10, 256  ;;  %v680_v10 = vrot.slane %v7554_v62, %v7255_v4 }
  0x58   : > { %675 = vbcast.lane.b32.xlu1 %v673_v9, 256  ;;  %v724_v9 = vmul.f32 200.0, %v708_v46  ;;  %v526_v46 = vld [vmem:[%s7600_s20 + $0xb] sm:$0x1] }
  0x5a   : > { %v791_v62 = vrot.slane %v724_v9, %v7255_v4 }
  0x5c   : > { %737 = vbcast.lane.b32.xlu1 %v735_v51, 256 }
  0x5e   : > { %591 = vbcast.lane.b32.xlu0 %v589_v31, 256  ;;  %v520_v31 = vld [vmem:[%s7600_s20 + $0x5] sm:$0x1] }
  0x5f   : > { %v705_v51 = vsub.f32 1.0, %v520_v31  ;;  %v711_v31 = vsub.f32 1.0, %v526_v46 }
  0x60   : > { %751 = vbcast.lane.b32.xlu1 %v749_v3, 256 }
  0x61   : > { %v721_v3 = vmul.f32 200.0, %v705_v51  ;;  %v727_v56 = vmul.f32 200.0, %v711_v31 }
  0x62   : > { %640 = vbcast.lane.b32.xlu0 %v638_v45, 256  ;;  %v719_v45 = vmul.f32 200.0, %v703_v28  ;;  %v725_v28 = vmul.f32 200.0, %v709_v14  ;;  %v1147_v14 = vrot.slane %v1146_v24, 4 }
  0x63   : > { %v770_v13 = vrot.slane %v721_v3, %v7255_v4  ;;  %v812_v51 = vrot.slane %v727_v56, %v7255_v4 }
  0x64   : > { %765 = vbcast.lane.b32.xlu1 %v763_v27, 256  ;;  %v756_v58 = vrot.slane %v719_v45, %v7255_v4  ;;  %v723_v27 = vmul.f32 200.0, %v707_v12  ;;  %v798_v47 = vrot.slane %v725_v28, %v7255_v4  ;;  %v530_v45 = vld [vmem:[%s7600_s20 + $0xf] sm:$0x1]  ;;  %v1139_v12 = vsel %vm536_vm2, %v7352_v30, 0.0 }
  0x65   : > { %v1174_v30 = vsel %vm536_vm2, %v7390_v43, 0.0  ;;  %v1148_v31 = vadd.f32 %v1147_v14, %v1146_v24 }
  0x66   : > { %654 = vbcast.lane.b32.xlu0 %v652_v11, 256  ;;  %v529_v11 = vld [vmem:[%s7600_s20 + $0xe] sm:$0x1]  ;;  %v784_v20 = vrot.slane %v723_v27, %v7255_v4  ;;  %v1140_v27 = vrot.slane %v1139_v12, 4 }
  0x67   : > { %v714_v26 = vsub.f32 1.0, %v529_v11 }
  0x68   : > { %779 = vbcast.lane.b32.xlu1 %v777_v55, 256  ;;  %v528_v55 = vld [vmem:[%s7600_s20 + $0xd] sm:$0x1]  ;;  %v1141_v28 = vadd.f32 %v1140_v27, %v1139_v12 }
  0x6a   : > { %668 = vbcast.lane.b32.xlu0 %v666_v25, 256  ;;  %v728_v25 = vmul.f32 200.0, %v712_v2 }
  0x6c   : > { %793 = vbcast.lane.b32.xlu1 %v791_v62, 256  ;;  %v819_v19 = vrot.slane %v728_v25, %v7255_v4  ;;  %v715_v62 = vsub.f32 1.0, %v530_v45  ;;  %v1132_v25 = vsel %vm536_vm2, %v7349_v29, 0.0  ;;  %v1182_v29 = vrot.slane %v1181_v35, 4 }
  0x6d   : > { %v1142_v45 = vrot.slane %v1141_v28, 2 }
  0x6e   : > { %682 = vbcast.lane.b32.xlu0 %v680_v10, 256  ;;  %v730_v10 = vmul.f32 200.0, %v714_v26  ;;  %v731_v2 = vmul.f32 200.0, %v715_v62  ;;  %v1160_v26 = vsel %vm536_vm2, %v7368_v37, 0.0  ;;  %v1183_v56 = vadd.f32 %v1182_v29, %v1181_v35 }
  0x70   : > { %807 = vbcast.lane.b32.xlu1 %v805_v34, 256  ;;  %v833_v9 = vrot.slane %v730_v10, %v7255_v4  ;;  %v1153_v34 = vsel %vm536_vm2, %v7365_v36, 0.0  ;;  %v1161_v36 = vrot.slane %v1160_v26, 4 }
  0x71   : > { %v1154_v46 = vrot.slane %v1153_v34, 4 }
  0x72   : > { %744 = vbcast.lane.b32.xlu0 %v742_v57, 256  ;;  %v713_v57 = vsub.f32 1.0, %v528_v55 }
  0x73   : > { %v1155_v37 = vadd.f32 %v1154_v46, %v1153_v34 }
  0x74   : > { %821 = vbcast.lane.b32.xlu1 %v819_v19, 256  ;;  %v729_v63 = vmul.f32 200.0, %v713_v57  ;;  %v1133_v19 = vrot.slane %v1132_v25, 4 }
  0x75   : > { %v1156_v43 = vrot.slane %v1155_v37, 2 }
  0x76   : > { %758 = vbcast.lane.b32.xlu0 %v756_v58, 256  ;;  %v826_v0 = vrot.slane %v729_v63, %v7255_v4  ;;  %v840_v58 = vrot.slane %v731_v2, %v7255_v4  ;;  %v1134_v55 = vadd.f32 %v1133_v19, %v1132_v25  ;;  %v1184_v2 = vrot.slane %v1183_v56, 2 }
  0x78   : > { %835 = vbcast.lane.b32.xlu1 %v833_v9, 256  ;;  %v1162_v9 = vadd.f32 %v1161_v36, %v1160_v26  ;;  %v1135_v63 = vrot.slane %v1134_v55, 2  ;;  %v1185_v26 = vadd.f32 %v1184_v2, %v1183_v56 }
  0x7a   : > { %772 = vbcast.lane.b32.xlu0 %v770_v13, 256  ;;  %v1167_v13 = vsel %vm536_vm2, %v7387_v42, 0.0  ;;  %v1163_v48 = vrot.slane %v1162_v9, 2  ;;  %v1136_v12 = vadd.f32 %v1135_v63, %v1134_v55 }
  0x7b   : > { %v1168_v10 = vrot.slane %v1167_v13, 4 }
  0x7c   : > { %v1164_v24 = vadd.f32 %v1163_v48, %v1162_v9 }
  0x7d   : > { %v1169_v42 = vadd.f32 %v1168_v10, %v1167_v13  ;;  %v1186_v10 = vrot.slane %v1185_v26, 1 }
  0x7e   : > { %786 = vbcast.lane.b32.xlu0 %v784_v20, 256  ;;  %v1175_v20 = vrot.slane %v1174_v30, 4  ;;  %v1165_v35 = vrot.slane %v1164_v24, 1 }
  0x7f   : > { %v1170_v62 = vrot.slane %v1169_v42, 2 }
  0x80   : > { %v1166_v9 = vadd.f32 %v1165_v35, %v1164_v24 }
  0x81   : > { %v1171_v34 = vadd.f32 %v1170_v62, %v1169_v42 }
  0x82   : > { %800 = vbcast.lane.b32.xlu0 %v798_v47, 256  ;;  %v1176_v47 = vadd.f32 %v1175_v20, %v1174_v30  ;;  %v1137_v30 = vrot.slane %v1136_v12, 1 }
  0x83   : > { %v1172_v19 = vrot.slane %v1171_v34, 1 }
  0x84   : > { %v1138_v55 = vadd.f32 %v1137_v30, %v1136_v12 }
  0x85   : > { %v1173_v42 = vadd.f32 %v1172_v19, %v1171_v34 }
  0x86   : > { %814 = vbcast.lane.b32.xlu0 %v812_v51, 256  ;;  %v1149_v51 = vrot.slane %v1148_v31, 2 }
  0x8a   : > { %828 = vbcast.lane.b32.xlu0 %v826_v0, 256  ;;  %v1177_v0 = vrot.slane %v1176_v47, 2 }
  0x8b   : > { %v578_v11 = vpop.permute.xlu1 %577 }
  0x8c   : > { %684 = vst.msk [vmem:[#allocation6] sm:$0xff] %vm536_vm2, %v578_v11  ;;  %v1143_v11 = vadd.f32 %v1142_v45, %v1141_v28  ;;  %v1178_v25 = vadd.f32 %v1177_v0, %v1176_v47 }
  0x8e   : > { %842 = vbcast.lane.b32.xlu0 %v840_v58, 256  ;;  %v1150_v58 = vadd.f32 %v1149_v51, %v1148_v31  ;;  %v1144_v13 = vrot.slane %v1143_v11, 1  ;;  %v1179_v36 = vrot.slane %v1178_v25, 1 }
  0x8f   : > { %v585_v3 = vpop.permute.xlu1 %584 }
  0x90   : > { %685 = vst.msk [vmem:[#allocation6 + $0x8] sm:$0xff] %vm536_vm2, %v585_v3  ;;  %v1157_v3 = vadd.f32 %v1156_v43, %v1155_v37  ;;  %v1151_v27 = vrot.slane %v1150_v58, 1  ;;  %v1145_v20 = vadd.f32 %v1144_v13, %v1143_v11  ;;  %v1180_v51 = vadd.f32 %v1179_v36, %v1178_v25 }
  0x91   : > { %v1187_v43 = vadd.f32 %v1186_v10, %v1185_v26 }
  0x92   : > { %v1158_v14 = vrot.slane %v1157_v3, 1  ;;  %v1152_v29 = vadd.f32 %v1151_v27, %v1150_v58 }
  0x94   : > { %v1159_v28 = vadd.f32 %v1158_v14, %v1157_v3 }
  0x99   : > { %v599_v46 = vpop.permute.xlu1 %598 }
  0x9a   : > { %687 = vst.msk [vmem:[#allocation6 + $0x18] sm:$0xff] %vm536_vm2, %v599_v46 }
  0xae   : > { %v606_v31 = vpop.permute.xlu1 %605 }
  0xaf   : > { %v1092_v57 = vpop.xlane.xlu0 %1091  ;;  %688 = vst.msk [vmem:[#allocation6 + $0x20] sm:$0xff] %vm536_vm2, %v606_v31 }
  0xb0   : > { %6700 = vrcp.f32 %v1092_v57 }
  0xb2   : > { %v613_v58 = vpop.permute.xlu1 %612 }
  0xb3   : > { %689 = vst.msk [vmem:[#allocation6 + $0x28] sm:$0xff] %vm536_vm2, %v613_v58  ;;  %v1223_v58 = vsel %vm536_vm2, %v7455_v59, 0.0 }
  0xb6   : > { %v620_v46 = vpop.permute.xlu1 %619 }
  0xb7   : > { %690 = vst.msk [vmem:[#allocation6 + $0x30] sm:$0xff] %vm536_vm2, %v620_v46 }
  0xba   : > { %v627_v31 = vpop.permute.xlu1 %626 }
  0xbb   : > { %691 = vst.msk [vmem:[#allocation6 + $0x38] sm:$0xff] %vm536_vm2, %v627_v31 }
  0xbd   : > { %v7673_v37 = vpop.eup %6700 }
  0xbe   : > { %10695 = vst [vmem:[#allocation30_spill] sm:$0xff] %v7673_v37  ;;  %v7677_v47 = vrot.slane %v7673_v37, 1  ;;  %v7680_v56 = vrot.slane %v7673_v37, 2  ;;  %v7683_v57 = vrot.slane %v7673_v37, 3  ;;  %v7686_v45 = vrot.slane %v7673_v37, 4 }
  0xbf   : > { %v7689_v63 = vrot.slane %v7673_v37, 5  ;;  %v7692_v48 = vrot.slane %v7673_v37, 6  ;;  %v7695_v62 = vrot.slane %v7673_v37, 7  ;;  %v1276_v12 = vmul.f32 %v7673_v37, %v1138_v55 }
  0xc0   : > { %10696 = vst [vmem:[#allocation31_spill] sm:$0xff] %v7677_v47  ;;  %10697 = vst [vmem:[#allocation32_spill] sm:$0xff] %v7680_v56  ;;  %v1277_v0 = vmul.f32 %v7677_v47, %v1145_v20  ;;  %v1278_v2 = vmul.f32 %v7680_v56, %v1152_v29  ;;  %v1279_v11 = vmul.f32 %v7683_v57, %v1159_v28 }
  0xc1   : > { %10698 = vst [vmem:[#allocation33_spill] sm:$0xff] %v7683_v57  ;;  %10699 = vst [vmem:[#allocation34_spill] sm:$0xff] %v7686_v45  ;;  %v1280_v3 = vmul.f32 %v7686_v45, %v1166_v9  ;;  %v1281_v24 = vmul.f32 %v7689_v63, %v1173_v42  ;;  %v1282_v26 = vmul.f32 %v7692_v48, %v1180_v51  ;;  %v634_v42 = vpop.permute.xlu1 %633  ;;  %v1195_v51 = vsel %vm536_vm2, %v7416_v50, 0.0 }
  0xc2   : > { %10700 = vst [vmem:[#allocation35_spill] sm:$0xff] %v7689_v63  ;;  %10701 = vst [vmem:[#allocation36_spill] sm:$0xff] %v7692_v48  ;;  %v1308_v34 = vrot.slane %v1277_v0, 7  ;;  %v1311_v25 = vrot.slane %v1278_v2, 6  ;;  %v1283_v13 = vmul.f32 %v7695_v62, %v1187_v43  ;;  %v1314_v14 = vrot.slane %v1279_v11, 5 }
  0xc3   : > { %10702 = vst [vmem:[#allocation37_spill] sm:$0xff] %v7695_v62  ;;  %v1317_v35 = vrot.slane %v1280_v3, 4  ;;  %v1320_v36 = vrot.slane %v1281_v24, 3  ;;  %v1323_v20 = vrot.slane %v1282_v26, 2  ;;  %692 = vst.msk [vmem:[#allocation6 + $0x40] sm:$0xff] %vm536_vm2, %v634_v42  ;;  %v1202_v43 = vsel %vm536_vm2, %v7428_v52, 0.0 }
  0xc4   : > { %v1310_v27 = vsel %vm1309_vm5, %v1308_v34, %v1276_v12  ;;  %v1326_v28 = vrot.slane %v1283_v13, 1  ;;  %v1209_v0 = vsel %vm536_vm2, %v7431_v53, 0.0  ;;  %v1188_v2 = vsel %vm536_vm2, %v7413_v49, 0.0 }
  0xc5   : > { %v1313_v30 = vsel %vm1312_vm6, %v1311_v25, %v1310_v27  ;;  %v1216_v11 = vsel %vm536_vm2, %v7434_v54, 0.0  ;;  %v1196_v3 = vrot.slane %v1195_v51, 4  ;;  %v648_v12 = vpop.permute.xlu1 %647  ;;  %v1203_v50 = vrot.slane %v1202_v43, 4 }
  0xc6   : > { %v1316_v19 = vsel %vm1315_vm7, %v1314_v14, %v1313_v30  ;;  %v1210_v24 = vrot.slane %v1209_v0, 4  ;;  %v1230_v34 = vsel %vm536_vm2, %v7458_v60, 0.0  ;;  %v1237_v52 = vsel %vm536_vm2, %v7461_v61, 0.0  ;;  %694 = vst.msk [vmem:[#allocation6 + $0x50] sm:$0xff] %vm536_vm2, %v648_v12 }
  0xc7   : > { %v1319_v10 = vsel %vm1318_vm8, %v1317_v35, %v1316_v19  ;;  %v1189_v53 = vrot.slane %v1188_v2, 4  ;;  %v1217_v49 = vrot.slane %v1216_v11, 4  ;;  %v1224_v25 = vrot.slane %v1223_v58, 4 }
  0xc8   : > { %v1322_v29 = vsel %vm1321_vm9, %v1320_v36, %v1319_v10  ;;  %v1231_v26 = vrot.slane %v1230_v34, 4  ;;  %v1238_v54 = vrot.slane %v1237_v52, 4  ;;  %v1197_v27 = vadd.f32 %v1196_v3, %v1195_v51 }
  0xc9   : > { %v1325_v55 = vsel %vm1324_vm10, %v1323_v20, %v1322_v29  ;;  %v662_v13 = vpop.permute.xlu1 %661  ;;  %v1204_v59 = vadd.f32 %v1203_v50, %v1202_v43  ;;  %v1211_v14 = vadd.f32 %v1210_v24, %v1209_v0  ;;  %v1190_v46 = vadd.f32 %v1189_v53, %v1188_v2 }
  0xca   : > { %v1328_v9 = vsel %vm1327_vm11, %v1326_v28, %v1325_v55  ;;  %696 = vst.msk [vmem:[#allocation6 + $0x60] sm:$0xff] %vm536_vm2, %v662_v13  ;;  %v1218_v30 = vadd.f32 %v1217_v49, %v1216_v11  ;;  %v1225_v35 = vadd.f32 %v1224_v25, %v1223_v58  ;;  %v1232_v60 = vadd.f32 %v1231_v26, %v1230_v34 }
  0xcb   : > { %1345 = vst.msk [vmem:[#allocation4] sm:$0xff] %vm536_vm2, %v1328_v9  ;;  %1347 = vst.msk [vmem:[#allocation5] sm:$0xff] %vm536_vm2, %v1328_v9  ;;  %v1239_v19 = vadd.f32 %v1238_v54, %v1237_v52  ;;  %v1198_v10 = vrot.slane %v1197_v27, 2  ;;  %v1205_v20 = vrot.slane %v1204_v59, 2  ;;  %v1212_v29 = vrot.slane %v1211_v14, 2 }
  0xcc   : > { %v1191_v28 = vrot.slane %v1190_v46, 2  ;;  %v1219_v31 = vrot.slane %v1218_v30, 2  ;;  %v1226_v55 = vrot.slane %v1225_v35, 2  ;;  %v1233_v9 = vrot.slane %v1232_v60, 2 }
  0xcd   : > { %v676_v61 = vpop.permute.xlu1 %675  ;;  %v1240_v42 = vrot.slane %v1239_v19, 2  ;;  %v1199_v0 = vadd.f32 %v1198_v10, %v1197_v27  ;;  %v1206_v2 = vadd.f32 %v1205_v20, %v1204_v59  ;;  %v1213_v11 = vadd.f32 %v1212_v29, %v1211_v14 }
  0xce   : > { %698 = vst.msk [vmem:[#allocation6 + $0x70] sm:$0xff] %vm536_vm2, %v676_v61  ;;  %v1192_v58 = vadd.f32 %v1191_v28, %v1190_v46  ;;  %v1220_v3 = vadd.f32 %v1219_v31, %v1218_v30  ;;  %v1227_v12 = vadd.f32 %v1226_v55, %v1225_v35  ;;  %v1234_v50 = vadd.f32 %v1233_v9, %v1232_v60 }
  0xcf   : > { %v1241_v24 = vadd.f32 %v1240_v42, %v1239_v19  ;;  %v1200_v53 = vrot.slane %v1199_v0, 1  ;;  %v1207_v49 = vrot.slane %v1206_v2, 1  ;;  %v1214_v25 = vrot.slane %v1213_v11, 1 }
  0xd0   : > { %v1193_v26 = vrot.slane %v1192_v58, 1  ;;  %v1221_v54 = vrot.slane %v1220_v3, 1  ;;  %v1228_v13 = vrot.slane %v1227_v12, 1  ;;  %v1235_v27 = vrot.slane %v1234_v50, 1 }
  0xd1   : > { %v1095_v36 = vpop.xlane.xlu0 %1094  ;;  %v738_v43 = vpop.permute.xlu1 %737  ;;  %v1242_v59 = vrot.slane %v1241_v24, 1  ;;  %v1201_v30 = vadd.f32 %v1200_v53, %v1199_v0  ;;  %v1208_v35 = vadd.f32 %v1207_v49, %v1206_v2  ;;  %v1215_v60 = vadd.f32 %v1214_v25, %v1213_v11 }
  0xd2   : > { %6702 = vrcp.f32 %v1095_v36  ;;  %844 = vst.msk [vmem:[#allocation7] sm:$0xff] %vm536_vm2, %v738_v43  ;;  %v1194_v36 = vadd.f32 %v1193_v26, %v1192_v58  ;;  %v1222_v61 = vadd.f32 %v1221_v54, %v1220_v3  ;;  %v1229_v10 = vadd.f32 %v1228_v13, %v1227_v12 }
  0xd3   : > { %v1236_v55 = vadd.f32 %v1235_v27, %v1234_v50  ;;  %v1243_v9 = vadd.f32 %v1242_v59, %v1241_v24 }
  0xd5   : > { %v592_v51 = vpop.permute.xlu0 %591  ;;  %v752_v52 = vpop.permute.xlu1 %751 }
  0xd6   : > { %686 = vst.msk [vmem:[#allocation6 + $0x10] sm:$0xff] %vm536_vm2, %v592_v51  ;;  %846 = vst.msk [vmem:[#allocation7 + $0x10] sm:$0xff] %vm536_vm2, %v752_v52 }
  0xd9   : > { %v641_v34 = vpop.permute.xlu0 %640  ;;  %v766_v46 = vpop.permute.xlu1 %765 }
  0xda   : > { %693 = vst.msk [vmem:[#allocation6 + $0x48] sm:$0xff] %vm536_vm2, %v641_v34  ;;  %848 = vst.msk [vmem:[#allocation7 + $0x20] sm:$0xff] %vm536_vm2, %v766_v46 }
  0xdd   : > { %v655_v14 = vpop.permute.xlu0 %654  ;;  %v780_v0 = vpop.permute.xlu1 %779 }
  0xde   : > { %695 = vst.msk [vmem:[#allocation6 + $0x58] sm:$0xff] %vm536_vm2, %v655_v14  ;;  %850 = vst.msk [vmem:[#allocation7 + $0x30] sm:$0xff] %vm536_vm2, %v780_v0 }
  0xdf   : > { %v7743_v19 = vpop.eup %6702 }
  0xe0   : > { %10703 = vst [vmem:[#allocation38_spill] sm:$0xff] %v7743_v19  ;;  %v7746_v20 = vrot.slane %v7743_v19, 1  ;;  %v7749_v29 = vrot.slane %v7743_v19, 2  ;;  %v7752_v28 = vrot.slane %v7743_v19, 3  ;;  %v7755_v31 = vrot.slane %v7743_v19, 4 }
  0xe1   : > { %v7758_v42 = vrot.slane %v7743_v19, 5  ;;  %v7761_v51 = vrot.slane %v7743_v19, 6  ;;  %v669_v43 = vpop.permute.xlu0 %668  ;;  %v7764_v2 = vrot.slane %v7743_v19, 7  ;;  %v1284_v50 = vmul.f32 %v7743_v19, %v1194_v36  ;;  %v794_v25 = vpop.permute.xlu1 %793 }
  0xe2   : > { %10704 = vst [vmem:[#allocation39_spill] sm:$0xff] %v7746_v20  ;;  %10705 = vst [vmem:[#allocation40_spill] sm:$0xff] %v7749_v29  ;;  %v1285_v11 = vmul.f32 %v7746_v20, %v1201_v30  ;;  %v1286_v58 = vmul.f32 %v7749_v29, %v1208_v35  ;;  %v1287_v3 = vmul.f32 %v7752_v28, %v1215_v60 }
  0xe3   : > { %10706 = vst [vmem:[#allocation41_spill] sm:$0xff] %v7752_v28  ;;  %10707 = vst [vmem:[#allocation42_spill] sm:$0xff] %v7755_v31  ;;  %v1288_v12 = vmul.f32 %v7755_v31, %v1222_v61  ;;  %v1289_v24 = vmul.f32 %v7758_v42, %v1229_v10  ;;  %v1290_v53 = vmul.f32 %v7761_v51, %v1236_v55 }
  0xe4   : > { %10708 = vst [vmem:[#allocation43_spill] sm:$0xff] %v7758_v42  ;;  %10709 = vst [vmem:[#allocation44_spill] sm:$0xff] %v7761_v51  ;;  %v1329_v34 = vrot.slane %v1285_v11, 7  ;;  %v1331_v52 = vrot.slane %v1286_v58, 6  ;;  %v1291_v26 = vmul.f32 %v7764_v2, %v1243_v9  ;;  %v1333_v13 = vrot.slane %v1287_v3, 5 }
  0xe5   : > { %10710 = vst [vmem:[#allocation45_spill] sm:$0xff] %v7764_v2  ;;  %697 = vst.msk [vmem:[#allocation6 + $0x68] sm:$0xff] %vm536_vm2, %v669_v43  ;;  %v683_v49 = vpop.permute.xlu0 %682  ;;  %v1335_v59 = vrot.slane %v1288_v12, 4  ;;  %v1337_v46 = vrot.slane %v1289_v24, 3  ;;  %v1339_v35 = vrot.slane %v1290_v53, 2  ;;  %v808_v36 = vpop.permute.xlu1 %807 }
  0xe6   : > { %v1330_v54 = vsel %vm1309_vm5, %v1329_v34, %v1284_v50  ;;  %699 = vst.msk [vmem:[#allocation6 + $0x78] sm:$0xff] %vm536_vm2, %v683_v49  ;;  %852 = vst.msk [vmem:[#allocation7 + $0x40] sm:$0xff] %vm536_vm2, %v794_v25  ;;  %v1341_v10 = vrot.slane %v1291_v26, 1 }
  0xe7   : > { %v1332_v27 = vsel %vm1312_vm6, %v1331_v52, %v1330_v54  ;;  %854 = vst.msk [vmem:[#allocation7 + $0x50] sm:$0xff] %vm536_vm2, %v808_v36 }
  0xe8   : > { %v1334_v14 = vsel %vm1315_vm7, %v1333_v13, %v1332_v27 }
  0xe9   : > { %v1336_v30 = vsel %vm1318_vm8, %v1335_v59, %v1334_v14  ;;  %v745_v60 = vpop.permute.xlu0 %744  ;;  %v822_v0 = vpop.permute.xlu1 %821 }
  0xea   : > { %v1338_v61 = vsel %vm1321_vm9, %v1337_v46, %v1336_v30  ;;  %845 = vst.msk [vmem:[#allocation7 + $0x8] sm:$0xff] %vm536_vm2, %v745_v60  ;;  %856 = vst.msk [vmem:[#allocation7 + $0x60] sm:$0xff] %vm536_vm2, %v822_v0 }
  0xeb   : > { %v1340_v55 = vsel %vm1324_vm10, %v1339_v35, %v1338_v61 }
  0xec   : > { %v1342_v9 = vsel %vm1327_vm11, %v1341_v10, %v1340_v55 }
  0xed   : > { %1346 = vst.msk [vmem:[#allocation4 + $0x8] sm:$0xff] %vm536_vm2, %v1342_v9  ;;  %1348 = vst.msk [vmem:[#allocation5 + $0x8] sm:$0xff] %vm536_vm2, %v1342_v9  ;;  %v759_v43 = vpop.permute.xlu0 %758  ;;  %v836_v58 = vpop.permute.xlu1 %835 }
  0xee   : > { %847 = vst.msk [vmem:[#allocation7 + $0x18] sm:$0xff] %vm536_vm2, %v759_v43  ;;  %858 = vst.msk [vmem:[#allocation7 + $0x70] sm:$0xff] %vm536_vm2, %v836_v58 }
  0xf1   : > { %v773_v11 = vpop.permute.xlu0 %772 }
  0xf2   : > { %849 = vst.msk [vmem:[#allocation7 + $0x28] sm:$0xff] %vm536_vm2, %v773_v11 }
  0xf5   : > { %v787_v3 = vpop.permute.xlu0 %786 }
  0xf6   : > { %851 = vst.msk [vmem:[#allocation7 + $0x38] sm:$0xff] %vm536_vm2, %v787_v3 }
  0xf9   : > { %v801_v12 = vpop.permute.xlu0 %800 }
  0xfa   : > { %853 = vst.msk [vmem:[#allocation7 + $0x48] sm:$0xff] %vm536_vm2, %v801_v12 }
  0xfd   : > { %v815_v50 = vpop.permute.xlu0 %814 }
  0xfe   : > { %855 = vst.msk [vmem:[#allocation7 + $0x58] sm:$0xff] %vm536_vm2, %v815_v50 }
 0x101   : > { %v829_v24 = vpop.permute.xlu0 %828 }
 0x102   : > { %857 = vst.msk [vmem:[#allocation7 + $0x68] sm:$0xff] %vm536_vm2, %v829_v24 }
 0x105   : > { %v843_v34 = vpop.permute.xlu0 %842 }
 0x106   : > { %859 = vst.msk [vmem:[#allocation7 + $0x78] sm:$0xff] %vm536_vm2, %v843_v34 }
 0x107 LB: >> { %v10711_v16 = vld [vmem:[#allocation13_spill] sm:$0xff]  ;;  %v7161_v52 = vmov 0   ;;  %v6706_v53 = vld [vmem:[%s10570_s5 + $0x8] sm:$0xff]   ;;  %v7806_v49 = vld [vmem:[#allocation2] sm:$0xff]  ;;  %v10581_v13 = vmov 0.0   ;;  %vm7163_vm12 = vmmov 0   ;;  %s7157_s26 = sphi %s7798_s26, %s1354_s26  }
 0x108   : >> { %6705 = vset.pattern.permute.xlu1 %v7161_v52  ;;  %6704 = vset.pattern.permute.xlu0 %v7161_v52  ;;  %10712 = vst [vmem:[#allocation46_spill] sm:$0xff] %v7806_v49  ;;  %v7808_v25 = vld [vmem:[#allocation2 + $0x8] sm:$0xff]  ;;  %v10714_v33 = vld [vmem:[#allocation15_spill] sm:$0xff]  ;;  %v10715_v18 = vld [vmem:[#allocation21_spill] sm:$0xff]  ;;  %v1392_v54 = vsel %vm536_vm2, %v7806_v49, 0.0  ;;  %v3029_v60 = vrot.slane %v7806_v49, 1 }
 0x109   : >> { %10713 = vst [vmem:[#allocation47_spill] sm:$0xff] %v7808_v25  ;;  %1814 = vperm.xlu1 %6705, %v10714_v33   ;;  %1796 = vperm.xlu0 %6704, %v10715_v18   ;;  %v1399_v26 = vsel %vm536_vm2, %v7808_v25, 0.0  ;;  %v1393_v59 = vrot.slane %v1392_v54, 4  ;;  %v6707_v14 = vld [vmem:[%s10571_s6 + $0x8] sm:$0xff]   ;;  %v6708_v46 = vld [vmem:[%s10570_s5] sm:$0xff]   ;;  %v3030_v36 = vrot.slane %v7808_v25, 1  ;;  %v7849_v50 = vpack.c.bf16 %v7808_v25, %v7806_v49 }
 0x10a   : >> { %6587 = vmatprep.subr.bf16.mxu0 %v10581_v13  ;;  %v1400_v27 = vrot.slane %v1399_v26, 4  ;;  %6595 = vmatprep.subr.bf16.mxu1 %v10581_v13  ;;  %v3013_v30 = vld [vmem:[#allocation9] sm:$0xff]  ;;  %v3014_v35 = vld [vmem:[#allocation9 + $0x8] sm:$0xff]  ;;  %v10717_v32 = vld [vmem:[#allocation14_spill] sm:$0xff]  ;;  %s7164_s20 = smov 32   ;;  %s7165_s21 = smov 64  }
 0x10b   : >> { %6588 = vmatpush3.bf16.msra.mxu0 %v6706_v53  ;;  %6591 = vmatprep.mubr.msk.bf16.mxu0 %vm7163_vm12, %v10581_v13  ;;  %v1394_v10 = vadd.f32 %v1393_v59, %v1392_v54  ;;  %v10716_v38 = vld [vmem:[#allocation16_spill] sm:$0xff]  ;;  %v7831_v55 = vmul.f32 %v3029_v60, %v3013_v30  ;;  %v7833_v9 = vmul.f32 %v3030_v36, %v3014_v35  ;;  %v6710_v43 = vld [vmem:[%s10571_s6] sm:$0xff]   ;;  %v7845_v58 = vld [vmem:[#allocation2 + $0x10] sm:$0xff]  ;;  %s7166_s22 = smov 96   ;;  %vm3473_vm13 = vcmask 523264   ;;  %s1354_s26 = sadd.s32 1, %s7157_s26  }
 0x10c   : >> { %v1401_v61 = vadd.f32 %v1400_v27, %v1399_v26  ;;  %6596 = vmatpush3.bf16.msra.mxu1 %v6707_v14  ;;  %6589 = vmatprep.subr.bf16.mxu0 %v10581_v13  ;;  %v7839_v0 = vld [vmem:[#allocation4] sm:$0xff]  ;;  %v7841_v11 = vld [vmem:[#allocation4 + $0x8] sm:$0xff]  ;;  %10719 = vst [vmem:[#allocation49_spill] sm:$0xff] %v7845_v58  ;;  %10720 = vst [vmem:[#allocation50_spill] sm:$0xff] %v7849_v50  ;;  %v1406_v52 = vsel %vm536_vm2, %v7845_v58, 0.0  ;;  %v3031_v54 = vrot.slane %v7845_v58, 1 }
 0x10d   : >> { %1823 = vperm.xlu1 %6705, %v10716_v38   ;;  %1805 = vperm.xlu0 %6704, %v10717_v32   ;;  %10718 = vst [vmem:[#allocation48_spill] sm:$0xff] %v7841_v11  ;;  %v1395_v3 = vrot.slane %v1394_v10, 2  ;;  %v1391_v24 = vpack.c.bf16 %v7841_v11, %v7839_v0  ;;  %v7853_v34 = vld [vmem:[#allocation2 + $0x18] sm:$0xff]  ;;  %v3015_v53 = vld [vmem:[#allocation9 + $0x10] sm:$0xff]  ;;  %v1407_v59 = vrot.slane %v1406_v52, 4  ;;  %v7863_v30 = vld [vmem:[#allocation2 + $0x20] sm:$0xff] }
 0x10e   : >> { %6597 = vmatprep.subr.bf16.mxu1 %v10581_v13  ;;  %6599 = vmatprep.mubr.msk.bf16.mxu1 %vm7163_vm12, %v10581_v13  ;;  %v1402_v12 = vrot.slane %v1401_v61, 2  ;;  %10721 = vst [vmem:[#allocation51_spill] sm:$0xff] %v7853_v34  ;;  %v3016_v26 = vld [vmem:[#allocation9 + $0x18] sm:$0xff]  ;;  %v1413_v14 = vsel %vm536_vm2, %v7853_v34, 0.0  ;;  %v7865_v35 = vld [vmem:[#allocation2 + $0x28] sm:$0xff]  ;;  %v10723_v39 = vld [vmem:[#allocation17_spill] sm:$0xff]  ;;  %v7869_v36 = vmul.f32 %v3031_v54, %v3015_v53  ;;  %v7882_v38 = vpack.c.bf16 %v7853_v34, %v7845_v58 }
 0x10f   : >> { %6590 = vmatpush3.bf16.msra.mxu0 %v6708_v46  ;;  %v3032_v46 = vrot.slane %v7853_v34, 1  ;;  %v10722_v40 = vld [vmem:[#allocation18_spill] sm:$0xff]  ;;  %v1414_v60 = vrot.slane %v1413_v14, 4  ;;  %v7871_v6 = vld [vmem:[#allocation2 + $0x30] sm:$0xff]  ;;  %v1408_v18 = vadd.f32 %v1407_v59, %v1406_v52  ;;  %v1420_v32 = vsel %vm536_vm2, %v7863_v30, 0.0  ;;  %v7886_v54 = vld [vmem:[#allocation2 + $0x40] sm:$0xff] }
 0x110   : >> { %6598 = vmatpush3.bf16.msra.mxu1 %v6710_v43  ;;  %v1396_v43 = vadd.f32 %v1395_v3, %v1394_v10  ;;  %v1403_v13 = vadd.f32 %v1402_v12, %v1401_v61  ;;  %v1427_v33 = vsel %vm536_vm2, %v7865_v35, 0.0  ;;  %10724 = vst [vmem:[#allocation52_spill] sm:$0xff] %v7882_v38  ;;  %v7884_v53 = vld [vmem:[#allocation2 + $0x38] sm:$0xff]  ;;  %v1421_v3 = vrot.slane %v1420_v32, 4  ;;  %v10725_v44 = vld [vmem:[#allocation20_spill] sm:$0xff]  ;;  %v10726_v41 = vld [vmem:[#allocation19_spill] sm:$0xff] }
 0x111   : >> { %1841 = vperm.xlu1 %6705, %v10722_v40   ;;  %1832 = vperm.xlu0 %6704, %v10723_v39   ;;  %v7874_v27 = vmul.f32 %v3032_v46, %v3016_v26  ;;  %v1415_v10 = vadd.f32 %v1414_v60, %v1413_v14  ;;  %v1428_v52 = vrot.slane %v1427_v33, 4  ;;  %v1434_v26 = vsel %vm536_vm2, %v7871_v6, 0.0  ;;  %v7894_v46 = vld [vmem:[#allocation2 + $0x48] sm:$0xff]  ;;  %v10727_v5 = vld [vmem:[#allocation22_spill] sm:$0xff]  ;;  %v10733_v7 = vld [vmem:[#allocation23_spill] sm:$0xff]  ;;  %p1351_p5 = scmp.ge.s32.totalorder %s1354_s26, 9  }
 0x112   : >> { %6592 = vmatmul.mubr.msk.bf16.vlgmr.msra.gmra.mxu0 %vm536_vm2, %v1391_v24  ;;  %v1397_v61 = vrot.slane %v1396_v43, 1  ;;  %v1404_v12 = vrot.slane %v1403_v13, 1  ;;  %v1409_v24 = vrot.slane %v1408_v18, 2  ;;  %v1422_v14 = vadd.f32 %v1421_v3, %v1420_v32  ;;  %v6709_v32 = vld [vmem:[#allocation10] sm:$0xff]   ;;  %v10732_v37 = vld [vmem:[#allocation30_spill] sm:$0xff]  ;;  %v10735_v56 = vld [vmem:[#allocation32_spill] sm:$0xff] }
 0x113   : >> { %v1416_v40 = vrot.slane %v1415_v10, 2  ;;  %v1429_v1 = vadd.f32 %v1428_v52, %v1427_v33  ;;  %v1435_v34 = vrot.slane %v1434_v26, 4  ;;  %v1441_v58 = vsel %vm536_vm2, %v7884_v53, 0.0  ;;  %v7905_v33 = vld [vmem:[#allocation2 + $0x50] sm:$0xff]  ;;  %v7911_v52 = vld [vmem:[#allocation2 + $0x58] sm:$0xff]  ;;  %v10734_v47 = vld [vmem:[#allocation31_spill] sm:$0xff] }
 0x114   : >> { %v7896_v39 = vadd.f32 %v1397_v61, %v1396_v43  ;;  %v1410_v60 = vadd.f32 %v1409_v24, %v1408_v18  ;;  %v1423_v49 = vrot.slane %v1422_v14, 2  ;;  %10728 = vst [vmem:[#allocation53_spill] sm:$0xff] %v7905_v33  ;;  %v1455_v61 = vsel %vm536_vm2, %v7894_v46, 0.0  ;;  %10729 = vst [vmem:[#allocation54_spill] sm:$0xff] %v7911_v52  ;;  %v10736_v57 = vld [vmem:[#allocation33_spill] sm:$0xff]  ;;  %v10737_v45 = vld [vmem:[#allocation34_spill] sm:$0xff] }
 0x115   : >> { %1859 = vperm.xlu1 %6705, %v10725_v44   ;;  %1850 = vperm.xlu0 %6704, %v10726_v41   ;;  %v1417_v25 = vadd.f32 %v1416_v40, %v1415_v10  ;;  %v1442_v44 = vrot.slane %v1441_v58, 4  ;;  %v1448_v41 = vsel %vm536_vm2, %v7886_v54, 0.0  ;;  %v1430_v59 = vrot.slane %v1429_v1, 2  ;;  %v10738_v63 = vld [vmem:[#allocation35_spill] sm:$0xff]  ;;  %v10739_v48 = vld [vmem:[#allocation36_spill] sm:$0xff]  ;;  %v10740_v62 = vld [vmem:[#allocation37_spill] sm:$0xff] }
 0x116   : >> { %v1411_v23 = vrot.slane %v1410_v60, 1  ;;  %v1436_v21 = vadd.f32 %v1435_v34, %v1434_v26  ;;  %v1449_v22 = vrot.slane %v1448_v41, 4  ;;  %v1424_v40 = vadd.f32 %v1423_v49, %v1422_v14  ;;  %v10741_v20 = vld [vmem:[#allocation39_spill] sm:$0xff]  ;;  %v10742_v29 = vld [vmem:[#allocation40_spill] sm:$0xff]  ;;  %v10743_v28 = vld [vmem:[#allocation41_spill] sm:$0xff] }
 0x117   : >> { %v1418_v18 = vrot.slane %v1417_v25, 1  ;;  %v1443_v43 = vadd.f32 %v1442_v44, %v1441_v58  ;;  %v7909_v10 = vadd.f32 %v1404_v12, %v1403_v13  ;;  %v1431_v3 = vadd.f32 %v1430_v59, %v1429_v1  ;;  %v7928_v58 = vld [vmem:[#allocation2 + $0x70] sm:$0xff]  ;;  %v10744_v19 = vld [vmem:[#allocation38_spill] sm:$0xff]  ;;  %v10746_v42 = vld [vmem:[#allocation43_spill] sm:$0xff] }
 0x118   : >> { %v1437_v34 = vrot.slane %v1436_v21, 2  ;;  %v1450_v24 = vadd.f32 %v1449_v22, %v1448_v41  ;;  %v7913_v26 = vadd.f32 %v1411_v23, %v1410_v60  ;;  %v1456_v17 = vrot.slane %v1455_v61, 4  ;;  %v7922_v41 = vld [vmem:[#allocation2 + $0x60] sm:$0xff]  ;;  %v7924_v22 = vld [vmem:[#allocation2 + $0x68] sm:$0xff]  ;;  %v10745_v31 = vld [vmem:[#allocation42_spill] sm:$0xff] }
 0x119   : >> { %1868 = vperm.xlu0 %6704, %v10727_v5   ;;  %3353 = vrot.lane.b32.xlu1 %v7849_v50, %s7164_s20  ;;  %v1425_v5 = vrot.slane %v1424_v40, 1  ;;  %v1444_v15 = vrot.slane %v1443_v43, 2  ;;  %v1432_v11 = vrot.slane %v1431_v3, 1  ;;  %v1462_v44 = vsel %vm536_vm2, %v7905_v33, 0.0  ;;  %v10747_v51 = vld [vmem:[#allocation44_spill] sm:$0xff]  ;;  %v10748_v2 = vld [vmem:[#allocation45_spill] sm:$0xff] }
 0x11a   : >> { %v1438_v4 = vadd.f32 %v1437_v34, %v1436_v21  ;;  %v1451_v50 = vrot.slane %v1450_v24, 2  ;;  %v10730_v1 = vpack.c.bf16 %v7833_v9, %v7831_v55  ;;  %v7926_v23 = vadd.f32 %v1418_v18, %v1417_v25  ;;  %v7932_v9 = vld [vmem:[#allocation2 + $0x78] sm:$0xff] }
 0x11b   : >> { %v1445_v21 = vadd.f32 %v1444_v15, %v1443_v43  ;;  %v1457_v49 = vadd.f32 %v1456_v17, %v1455_v61  ;;  %v1463_v13 = vrot.slane %v1462_v44, 4  ;;  %v1426_v12 = vadd.f32 %v1425_v5, %v1424_v40  ;;  %v6711_v5 = vld [vmem:[#allocation10 + $0x8] sm:$0xff]  }
 0x11c   : >> { %v1439_v59 = vrot.slane %v1438_v4, 1  ;;  %v1452_v14 = vadd.f32 %v1451_v50, %v1450_v24  ;;  %v1469_v55 = vsel %vm536_vm2, %v7911_v52, 0.0  ;;  %v1433_v33 = vadd.f32 %v1432_v11, %v1431_v3 }
 0x11d   : >> { %3377 = vrot.lane.b32.xlu0 %v10730_v1, %s7165_s21  ;;  %3433 = vrot.lane.b32.xlu1 %v6709_v32, %s7166_s22  ;;  %v1446_v60 = vrot.slane %v1445_v21, 1  ;;  %v1458_v32 = vrot.slane %v1457_v49, 2  ;;  %v1464_v34 = vadd.f32 %v1463_v13, %v1462_v44  ;;  %v1470_v1 = vrot.slane %v1469_v55, 4  ;;  %v7949_v13 = vld [vmem:[%s10568_s3 + $0x70] ss:$8 sps:$4 sm:$0xff]  }
 0x11e   : >> { %v1453_v25 = vrot.slane %v1452_v14, 1  ;;  %v1476_v15 = vsel %vm536_vm2, %v7922_v41, 0.0  ;;  %v1483_v17 = vsel %vm536_vm2, %v7924_v22, 0.0  ;;  %v10731_v50 = vpack.c.bf16 %v7874_v27, %v7869_v36 }
 0x11f   : >> { %v1440_v18 = vadd.f32 %v1439_v59, %v1438_v4  ;;  %v1459_v40 = vadd.f32 %v1458_v32, %v1457_v49  ;;  %v1465_v43 = vrot.slane %v1464_v34, 2  ;;  %v1471_v11 = vadd.f32 %v1470_v1, %v1469_v55  ;;  %v6720_v4 = vld [vmem:[%s10568_s3 + $0x74] ss:$8 sps:$4 sm:$0xff]   ;;  %v7959_v55 = vld [vmem:[%s10568_s3 + $0x64] ss:$8 sps:$4 sm:$0xff]  }
 0x120   : >> { %v1447_v61 = vadd.f32 %v1446_v60, %v1445_v21  ;;  %v1477_v3 = vrot.slane %v1476_v15, 4  ;;  %v1484_v24 = vrot.slane %v1483_v17, 4  ;;  %v1490_v44 = vsel %vm536_vm2, %v7928_v58, 0.0  ;;  %3671 = vmatprep.subr.bf16.mxu0 %v6720_v4  ;;  %6655 = vmatprep.subr.bf16.mxu1 %v6720_v4 }
 0x121   : >> { %3355 = vrot.lane.b32.xlu0 %v7882_v38, %s7164_s20  ;;  %3379 = vrot.lane.b32.xlu1 %v10731_v50, %s7165_s21  ;;  %v1460_v38 = vrot.slane %v1459_v40, 1  ;;  %v1466_v52 = vadd.f32 %v1465_v43, %v1464_v34  ;;  %v1472_v8 = vrot.slane %v1471_v11, 2  ;;  %v1491_v27 = vrot.slane %v1490_v44, 4 }
 0x122   : >> { %v1454_v36 = vadd.f32 %v1453_v25, %v1452_v14  ;;  %v1478_v21 = vadd.f32 %v1477_v3, %v1476_v15  ;;  %v1485_v49 = vadd.f32 %v1484_v24, %v1483_v17  ;;  %v1497_v59 = vsel %vm536_vm2, %v7932_v9, 0.0  ;;  %3672 = vmatpush1.bf16.msra.mxu0 %v7949_v13 }
 0x123   : >> { %v1467_v60 = vrot.slane %v1466_v52, 1  ;;  %v1473_v32 = vadd.f32 %v1472_v8, %v1471_v11  ;;  %v1492_v34 = vadd.f32 %v1491_v27, %v1490_v44  ;;  %v1504_v1 = vmul.f32 %v10732_v37, %v7896_v39  ;;  %v7971_v39 = vld [vmem:[%s10568_s3 + $0x60] ss:$8 sps:$4 sm:$0xff]   ;;  %3673 = vmatprep.subr.bf16.mxu0 %v7959_v55 }
 0x124   : >> { %v1461_v14 = vadd.f32 %v1460_v38, %v1459_v40  ;;  %v1479_v25 = vrot.slane %v1478_v21, 2  ;;  %v1486_v15 = vrot.slane %v1485_v49, 2  ;;  %v1498_v17 = vrot.slane %v1497_v59, 4 }
 0x125   : >> { %3435 = vrot.lane.b32.xlu0 %v6711_v5, %s7166_s22  ;;  %1877 = vperm.xlu1 %6705, %v10733_v7   ;;  %v1468_v50 = vadd.f32 %v1467_v60, %v1466_v52  ;;  %v1474_v43 = vrot.slane %v1473_v32, 1  ;;  %v1493_v3 = vrot.slane %v1492_v34, 2  ;;  %v1505_v8 = vmul.f32 %v7909_v10, %v10734_v47  ;;  %v7979_v52 = vld [vmem:[%s10568_s3 + $0x54] ss:$8 sps:$4 sm:$0xff]  }
 0x126   : >> { %v1480_v5 = vadd.f32 %v1479_v25, %v1478_v21  ;;  %v1487_v38 = vadd.f32 %v1486_v15, %v1485_v49  ;;  %v1499_v40 = vadd.f32 %v1498_v17, %v1497_v59  ;;  %v1506_v11 = vmul.f32 %v7913_v26, %v10735_v56  ;;  %3674 = vmatpush1.bf16.msra.mxu0 %v7971_v39 }
 0x127   : >> { %v1475_v10 = vadd.f32 %v1474_v43, %v1473_v32  ;;  %v1494_v24 = vadd.f32 %v1493_v3, %v1492_v34  ;;  %v1507_v44 = vmul.f32 %v7926_v23, %v10736_v57  ;;  %v1508_v27 = vmul.f32 %v1426_v12, %v10737_v45  ;;  %v7994_v23 = vld [vmem:[%s10568_s3 + $0x50] ss:$8 sps:$4 sm:$0xff]   ;;  %3675 = vmatprep.subr.bf16.mxu0 %v7979_v52  ;;  %v8359_v45 = vld [vmem:[#allocation3 + $0x60] sm:$0xff] }
 0x128   : >> { %v1481_v4 = vrot.slane %v1480_v5, 1  ;;  %v1488_v21 = vrot.slane %v1487_v38, 1  ;;  %v1500_v49 = vrot.slane %v1499_v40, 2  ;;  %v1509_v59 = vmul.f32 %v1433_v33, %v10738_v63  ;;  %v8357_v63 = vld [vmem:[#allocation3 + $0x58] sm:$0xff] }
 0x129   : >> { %v1495_v26 = vrot.slane %v1494_v24, 1  ;;  %v1510_v60 = vmul.f32 %v1440_v18, %v10739_v48  ;;  %v7987_v25 = vmul.f32 %v1447_v61, %v10740_v62  ;;  %v1513_v15 = vmul.f32 %v1461_v14, %v10741_v20  ;;  %v8001_v18 = vld [vmem:[%s10568_s3 + $0x44] ss:$8 sps:$4 sm:$0xff]   ;;  %v8339_v62 = vld [vmem:[#allocation3 + $0x50] sm:$0xff] }
 0x12a   : >> { %v1482_v12 = vadd.f32 %v1481_v4, %v1480_v5  ;;  %v1489_v32 = vadd.f32 %v1488_v21, %v1487_v38  ;;  %v1501_v34 = vadd.f32 %v1500_v49, %v1499_v40  ;;  %v1514_v33 = vmul.f32 %v1468_v50, %v10742_v29  ;;  %3676 = vmatpush1.bf16.msra.mxu0 %v7994_v23 }
 0x12b   : >> { %v1496_v61 = vadd.f32 %v1495_v26, %v1494_v24  ;;  %v1515_v14 = vmul.f32 %v1475_v10, %v10743_v28  ;;  %v1596_v17 = vrot.slane %v1505_v8, 7  ;;  %v1598_v43 = vrot.slane %v1506_v11, 6  ;;  %v8012_v10 = vld [vmem:[%s10568_s3 + $0x40] ss:$8 sps:$4 sm:$0xff]   ;;  %3677 = vmatprep.subr.bf16.mxu0 %v8001_v18 }
 0x12c   : >> { %v1502_v3 = vrot.slane %v1501_v34, 1  ;;  %v1512_v7 = vmul.f32 %v10744_v19, %v1454_v36  ;;  %v1516_v5 = vmul.f32 %v1482_v12, %v10745_v31  ;;  %v1600_v38 = vrot.slane %v1507_v44, 5  ;;  %v8337_v19 = vld [vmem:[#allocation3 + $0x48] sm:$0xff] }
 0x12d   : >> { %v1517_v50 = vmul.f32 %v1489_v32, %v10746_v42  ;;  %v1597_v40 = vsel %vm1309_vm5, %v1596_v17, %v1504_v1  ;;  %v1602_v4 = vrot.slane %v1508_v27, 4  ;;  %v1604_v21 = vrot.slane %v1509_v59, 3  ;;  %v8020_v1 = vld [vmem:[%s10568_s3 + $0x34] ss:$8 sps:$4 sm:$0xff]   ;;  %v8326_v42 = vld [vmem:[#allocation8 + $0x40] sm:$0xff] }
 0x12e   : >> { %v1503_v8 = vadd.f32 %v1502_v3, %v1501_v34  ;;  %v1518_v11 = vmul.f32 %v1496_v61, %v10747_v51  ;;  %v1599_v36 = vsel %vm1312_vm6, %v1598_v43, %v1597_v40  ;;  %v1606_v24 = vrot.slane %v1510_v60, 2  ;;  %v3017_v3 = vld [vmem:[#allocation9 + $0x20] sm:$0xff]  ;;  %3678 = vmatpush1.bf16.msra.mxu0 %v8012_v10 }
 0x12f   : >> { %v1601_v44 = vsel %vm1315_vm7, %v1600_v38, %v1599_v36  ;;  %v1610_v27 = vrot.slane %v1513_v15, 7  ;;  %v1612_v49 = vrot.slane %v1514_v33, 6  ;;  %v1614_v59 = vrot.slane %v1515_v14, 5  ;;  %v8036_v15 = vld [vmem:[%s10568_s3 + $0x30] ss:$8 sps:$4 sm:$0xff]   ;;  %3679 = vmatprep.subr.bf16.mxu0 %v8020_v1 }
 0x130   : >> { %v1519_v26 = vmul.f32 %v1503_v8, %v10748_v2  ;;  %v1603_v12 = vsel %vm1318_vm8, %v1602_v4, %v1601_v44  ;;  %v1608_v32 = vrot.slane %v7987_v25, 1  ;;  %v1616_v34 = vrot.slane %v1516_v5, 4  ;;  %v8040_v5 = vld [vmem:[#allocation9 + $0x28] sm:$0xff]  ;;  %v3019_v8 = vld [vmem:[#allocation9 + $0x30] sm:$0xff]  ;;  %v8188_v2 = vld [vmem:[#allocation9 + $0x58] sm:$0xff] }
 0x131   : >> { %v1605_v60 = vsel %vm1321_vm9, %v1604_v21, %v1603_v12  ;;  %v1611_v61 = vsel %vm1309_vm5, %v1610_v27, %v1512_v7  ;;  %v1618_v17 = vrot.slane %v1517_v50, 3  ;;  %v8030_v43 = vpack.c.bf16 %v7865_v35, %v7863_v30  ;;  %v8047_v38 = vld [vmem:[%s10568_s3 + $0x24] ss:$8 sps:$4 sm:$0xff]   ;;  %v6712_v21 = vld [vmem:[#allocation10 + $0x10] sm:$0xff]  }
 0x132   : >> { %v1607_v25 = vsel %vm1324_vm10, %v1606_v24, %v1605_v60  ;;  %v1613_v33 = vsel %vm1312_vm6, %v1612_v49, %v1611_v61  ;;  %v1620_v14 = vrot.slane %v1518_v11, 2  ;;  %v3033_v7 = vrot.slane %v7863_v30, 1  ;;  %v8053_v11 = vld [vmem:[#allocation9 + $0x38] sm:$0xff]  ;;  %3680 = vmatpush1.bf16.msra.mxu0 %v8036_v15 }
 0x133   : >> { %v1615_v50 = vsel %vm1315_vm7, %v1614_v59, %v1613_v33  ;;  %v1622_v40 = vrot.slane %v1519_v26, 1  ;;  %3357 = vrot.lane.b32.xlu0 %v8030_v43, %s7164_s20  ;;  %v3034_v4 = vrot.slane %v7865_v35, 1  ;;  %v3035_v44 = vrot.slane %v7871_v6, 1  ;;  %3681 = vmatprep.subr.bf16.mxu0 %v8047_v38 }
 0x134   : >> { %v1617_v36 = vsel %vm1318_vm8, %v1616_v34, %v1615_v50  ;;  %v3049_v24 = vmul.f32 %v3033_v7, %v3017_v3  ;;  %v3036_v27 = vrot.slane %v7884_v53, 1  ;;  %v1609_v49 = vsel %vm1327_vm11, %v1608_v32, %v1607_v25  ;;  %v8067_v34 = vld [vmem:[%s10568_s3 + $0x20] ss:$8 sps:$4 sm:$0xff]  }
 0x135   : >> { %v1619_v59 = vsel %vm1321_vm9, %v1618_v17, %v1617_v36  ;;  %v3050_v26 = vmul.f32 %v3034_v4, %v8040_v5  ;;  %v3051_v60 = vmul.f32 %v3035_v44, %v3019_v8  ;;  %v8075_v33 = vpack.c.bf16 %v7884_v53, %v7871_v6  ;;  %v8092_v6 = vld [vmem:[%s10568_s3 + $0x10] ss:$8 sps:$4 sm:$0xff]   ;;  %v3025_v53 = vld [vmem:[#allocation9 + $0x60] sm:$0xff]  ;;  %v3026_v4 = vld [vmem:[#allocation9 + $0x68] sm:$0xff] }
 0x136   : >> { %v1621_v12 = vsel %vm1324_vm10, %v1620_v14, %v1619_v59  ;;  %v3052_v61 = vmul.f32 %v3036_v27, %v8053_v11  ;;  %3682 = vmatpush1.bf16.msra.mxu0 %v8067_v34  ;;  %v8082_v14 = vld [vmem:[%s10568_s3 + $0x14] ss:$8 sps:$4 sm:$0xff]   ;;  %v10749_v7 = vmov 0.0   ;;  %v3041_v50 = vrot.slane %v7922_v41, 1  ;;  %v8105_v44 = vld [vmem:[#allocation9 + $0x40] sm:$0xff]  ;;  %v8107_v27 = vld [vmem:[#allocation9 + $0x48] sm:$0xff] }
 0x137   : >> { %v1623_v32 = vsel %vm1327_vm11, %v1622_v40, %v1621_v12  ;;  %v3315_v3 = vpack.c.bf16 %v3050_v26, %v3049_v24  ;;  %3437 = vrot.lane.b32.xlu0 %v6712_v21, %s7166_s22  ;;  %v3042_v40 = vrot.slane %v7924_v22, 1  ;;  %v8098_v21 = vld [vmem:[%s10568_s3 + $0x4] ss:$8 sps:$4 sm:$0xff]   ;;  %v6713_v8 = vld [vmem:[#allocation10 + $0x18] sm:$0xff]   ;;  %v3037_v36 = vrot.slane %v7886_v54, 1  ;;  %10750 = vst [vmem:[#allocation55_spill] sm:$0xff] %v8105_v44  ;;  %3683 = vmatprep.subr.bf16.mxu0 %v8082_v14 }
 0x138   : >> { %v1626_v17 = vpack.c.bf16 %v1623_v32, %v1609_v49  ;;  %v3316_v25 = vpack.c.bf16 %v3052_v61, %v3051_v60  ;;  %v3038_v24 = vrot.slane %v7894_v46, 1  ;;  %10751 = vst [vmem:[#allocation56_spill] sm:$0xff] %v8107_v27  ;;  %v10752_v49 = vld [vmem:[#allocation24_spill] sm:$0xff]  ;;  %v8115_v59 = vpack.c.bf16 %v7924_v22, %v7922_v41 }
 0x139   : >> { %3381 = vrot.lane.b32.xlu1 %v3315_v3, %s7165_s21  ;;  %v3057_v26 = vmul.f32 %v3041_v50, %v3025_v53  ;;  %v3058_v12 = vmul.f32 %v3042_v40, %v3026_v4  ;;  %v8129_v32 = vpack.c.bf16 %v7894_v46, %v7886_v54  ;;  %v3053_v3 = vmul.f32 %v3037_v36, %v8105_v44  ;;  %v8151_v46 = vld [vmem:[%s10568_s3 + $0x90] ss:$8 sps:$4 sm:$0xff]   ;;  %v10754_v53 = vld [vmem:[#allocation12_spill] sm:$0xff] }
 0x13a   : >> { %6600 = vmatmul.mubr.msk.bf16.vlgmr.msra.gmra.mxu1 %vm536_vm2, %v1626_v17  ;;  %3684 = vmatpush1.bf16.msra.mxu0 %v8092_v6  ;;  %v10753_v17 = vld [vmem:[#allocation50_spill] sm:$0xff]  ;;  %v3070_v20 = vrot.slane %v8337_v19, 7  ;;  %vm3490_vm14 = vcmask 785408   ;;  %vm7167_vm15 = vmmov (%p1351_p5), 0  }
 0x13b   : >> { %6603 = vmatprep.mubr.msk.bf16.mxu1 %vm7163_vm12, %v10749_v7  ;;  %3383 = vrot.lane.b32.xlu0 %v3316_v25, %s7165_s21  ;;  %v8139_v25 = vld [vmem:[%s10568_s3 + $0x94] ss:$8 sps:$4 sm:$0xff]   ;;  %v3319_v54 = vpack.c.bf16 %v3058_v12, %v3057_v26  ;;  %v3043_v26 = vrot.slane %v7928_v58, 1 }
 0x13c   : >> { %6665 = vmatpush1.bf16.msra.mxu1 %v7949_v13  ;;  %v3134_v13 = vrot.slane %v7839_v0, %v10711_v16  ;;  %3685 = vmatprep.subr.bf16.mxu0 %v8098_v21  ;;  %v3027_v12 = vld [vmem:[#allocation9 + $0x70] sm:$0xff] }
 0x13d   : >> { %3359 = vrot.lane.b32.xlu1 %v8075_v33, %s7164_s20  ;;  %6656 = vmatprep.subr.bf16.mxu1 %v7959_v55  ;;  %v8122_v55 = vld [vmem:[%s10568_s3] ss:$8 sps:$4 sm:$0xff]  }
 0x13e   : >> { %v3142_v60 = vcombine.high %v3134_v13, %v3134_v13  ;;  %v3150_v61 = vrot.slane %v3134_v13, %v10711_v16  ;;  %3686 = vmatpush1.bf16.msra.mxu0 %v8122_v55 }
 0x13f   : >> { %1886 = vperm.xlu0 %6704, %v10752_v49   ;;  %3699 = vmatprep.subr.bf16.mxu0 %v8139_v25  ;;  %v6715_v49 = vld [vmem:[#allocation10 + $0x30] sm:$0xff]  }
 0x140   : >> { %6666 = vmatpush1.bf16.msra.mxu1 %v7971_v39  ;;  %v3054_v39 = vmul.f32 %v3038_v24, %v8107_v27  ;;  %v3164_v50 = vrot.slane %v3142_v60, %v10711_v16  ;;  %v3172_v40 = vcombine.high %v3150_v61, %v3150_v61  ;;  %v3228_v36 = vrot.slane %v3150_v61, %v10754_v53  ;;  %v8171_v60 = vld [vmem:[#allocation9 + $0x78] sm:$0xff]  ;;  %v6745_v61 = vld [vmem:[%s10568_s3 + $0x80] ss:$8 sps:$4 sm:$0xff]  }
 0x141   : >> { %3439 = vrot.lane.b32.xlu1 %v6713_v8, %s7166_s22  ;;  %6657 = vmatprep.subr.bf16.mxu1 %v7979_v52  ;;  %10755 = vst [vmem:[#allocation50_spill] sm:$0xff] %v8171_v60  ;;  %v8402_v27 = vld [vmem:[#allocation8 + $0x78] sm:$0xff] }
 0x142   : >> { %6604 = vmatmul.mubr.msk.bf16.gmra.mxu1 %vm536_vm2, %v10753_v17  ;;  %v3174_v52 = vcombine.high %v3164_v50, %v3164_v50  ;;  %v8154_v4 = vrot.slane %v3172_v40, %v10754_v53  ;;  %v3317_v8 = vpack.c.bf16 %v3054_v39, %v3053_v3  ;;  %v3232_v24 = vrot.slane %v3164_v50, %v10754_v53  ;;  %v6714_v39 = vld [vmem:[#allocation10 + $0x20] sm:$0xff]   ;;  %v10756_v17 = vld [vmem:[#allocation53_spill] sm:$0xff]  ;;  %v10757_v40 = vld [vmem:[#allocation54_spill] sm:$0xff] }
 0x143   : >> { %6607 = vmatprep.mubr.msk.bf16.mxu1 %vm7163_vm12, %v10749_v7  ;;  %3365 = vrot.lane.b32.xlu0 %v8115_v59, %s7164_s20  ;;  %v3039_v50 = vrot.slane %v10756_v17, 1  ;;  %10760 = vst [vmem:[#allocation54_spill] sm:$0xff] %v8188_v2  ;;  %v3059_v3 = vmul.f32 %v3043_v26, %v3027_v12  ;;  %v10764_v26 = vld [vmem:[#allocation28_spill] sm:$0xff]  ;;  %v10765_v12 = vld [vmem:[#allocation27_spill] sm:$0xff] }
 0x144   : >> { %6667 = vmatpush1.bf16.msra.mxu1 %v7994_v23  ;;  %v6747_v23 = vld [vmem:[%s10568_s3 + $0x84] ss:$8 sps:$4 sm:$0xff]   ;;  %v8166_v13 = vrot.slane %v3174_v52, %v10754_v53  ;;  %3700 = vmatpush2.bf16.msra.mxu0 %v8151_v46  ;;  %v3337_v51 = vpack.c.bf16 %v3232_v24, %v3228_v36 }
 0x145   : >> { %3361 = vrot.lane.b32.xlu1 %v8129_v32, %s7164_s20  ;;  %6658 = vmatprep.subr.bf16.mxu1 %v8001_v18  ;;  %v3044_v18 = vrot.slane %v7932_v9, 1  ;;  %v10758_v52 = vld [vmem:[#allocation52_spill] sm:$0xff] }
 0x146   : >> { %3701 = vmatprep.subr.bf16.mxu0 %v6747_v23  ;;  %6513 = vmatprep.mubr.msk.bf16.mxu0 %vm536_vm2, %v3337_v51  ;;  %v6717_v51 = vld [vmem:[#allocation10 + $0x38] sm:$0xff]  }
 0x147   : >> { %3389 = vrot.lane.b32.xlu0 %v3319_v54, %s7165_s21  ;;  %v3040_v54 = vrot.slane %v10757_v40, 1 }
 0x148   : >> { %6668 = vmatpush1.bf16.msra.mxu1 %v8012_v10  ;;  %v8186_v10 = vld [vmem:[#allocation9 + $0x50] sm:$0xff]  ;;  %3702 = vmatpush2.bf16.msra.mxu0 %v6745_v61 }
 0x149   : >> { %3385 = vrot.lane.b32.xlu1 %v3317_v8, %s7165_s21  ;;  %6659 = vmatprep.subr.bf16.mxu1 %v8020_v1  ;;  %10759 = vst [vmem:[#allocation53_spill] sm:$0xff] %v8186_v10  ;;  %v1634_v8 = vpack.c.bf16 %v7932_v9, %v7928_v58  ;;  %v3060_v1 = vmul.f32 %v3044_v18, %v8171_v60 }
 0x14a   : >> { %6608 = vmatmul.mubr.msk.bf16.gmra.mxu1 %vm536_vm2, %v10758_v52  ;;  %v1632_v52 = vpack.c.bf16 %v10757_v40, %v10756_v17  ;;  %v3055_v36 = vmul.f32 %v3039_v50, %v8186_v10  ;;  %v3056_v24 = vmul.f32 %v3040_v54, %v8188_v2  ;;  %v8260_v50 = vld [vmem:[#allocation3] sm:$0xff]  ;;  %v8396_v10 = vld [vmem:[#allocation3 + $0x78] sm:$0xff] }
 0x14b   : >> { %6611 = vmatprep.mubr.msk.bf16.mxu1 %vm7163_vm12, %v10749_v7  ;;  %3445 = vrot.lane.b32.xlu0 %v6715_v49, %s7166_s22  ;;  %v3320_v58 = vpack.c.bf16 %v3060_v1, %v3059_v3  ;;  %v10766_v3 = vld [vmem:[#allocation29_spill] sm:$0xff]  ;;  %v3061_v40 = vrot.slane %v8260_v50, 7  ;;  %v2965_v54 = vld [vmem:[#allocation8] sm:$0xff]  ;;  %v3076_v44 = vrot.slane %v8396_v10, 7 }
 0x14c   : >> { %6669 = vmatpush1.bf16.msra.mxu1 %v8036_v15  ;;  %v3318_v9 = vpack.c.bf16 %v3056_v24, %v3055_v36  ;;  %v10761_v15 = vld [vmem:[#allocation48_spill] sm:$0xff] }
 0x14d   : >> { %3441 = vrot.lane.b32.xlu1 %v6714_v39, %s7166_s22  ;;  %6660 = vmatprep.subr.bf16.mxu1 %v8047_v38  ;;  %v3176_v49 = vcombine.high %v10761_v15, %v10761_v15  ;;  %v6716_v38 = vld [vmem:[#allocation10 + $0x28] sm:$0xff]   ;;  %v3077_v1 = vmul.f32 %v3061_v40, %v2965_v54  ;;  %v8275_v15 = vld [vmem:[#allocation3 + $0x18] sm:$0xff] }
 0x14e   : >> { %v2966_v24 = vld [vmem:[#allocation8 + $0x8] sm:$0xff] }
 0x14f   : >> { %3367 = vrot.lane.b32.xlu0 %v1634_v8, %s7164_s20 }
 0x150   : >> { %6670 = vmatpush1.bf16.msra.mxu1 %v8067_v34  ;;  %v3190_v34 = vrot.slane %v3176_v49, %v10711_v16  ;;  %v8277_v49 = vld [vmem:[#allocation3 + $0x20] sm:$0xff] }
 0x151   : >> { %3363 = vrot.lane.b32.xlu1 %v1632_v52, %s7164_s20  ;;  %6661 = vmatprep.subr.bf16.mxu1 %v8082_v14  ;;  %v10762_v14 = vld [vmem:[#allocation26_spill] sm:$0xff] }
 0x152   : >> { %6612 = vmatmul.mubr.msk.bf16.gmra.mxu1 %vm536_vm2, %v8030_v43  ;;  %v3192_v43 = vcombine.high %v3190_v34, %v3190_v34 }
 0x153   : >> { %6615 = vmatprep.mubr.msk.bf16.mxu1 %vm7163_vm12, %v10749_v7  ;;  %3391 = vrot.lane.b32.xlu0 %v3320_v58, %s7165_s21  ;;  %v8272_v58 = vld [vmem:[#allocation8 + $0x10] sm:$0xff] }
 0x154   : >> { %6671 = vmatpush1.bf16.msra.mxu1 %v8092_v6  ;;  %v10763_v6 = vld [vmem:[#allocation25_spill] sm:$0xff] }
 0x155   : >> { %3387 = vrot.lane.b32.xlu1 %v3318_v9, %s7165_s21  ;;  %6662 = vmatprep.subr.bf16.mxu1 %v8098_v21  ;;  %v3206_v21 = vrot.slane %v3190_v34, %v10711_v16  ;;  %v3064_v34 = vrot.slane %v8275_v15, 7 }
 0x157   : >> { %3447 = vrot.lane.b32.xlu0 %v6717_v51, %s7166_s22 }
 0x158   : >> { %6672 = vmatpush1.bf16.msra.mxu1 %v8122_v55  ;;  %v3220_v55 = vrot.slane %v3192_v43, %v10711_v16  ;;  %v3065_v43 = vrot.slane %v8277_v49, 7 }
 0x159   : >> { %3443 = vrot.lane.b32.xlu1 %v6716_v38, %s7166_s22  ;;  %6663 = vmatprep.subr.bf16.mxu1 %v8139_v25  ;;  %v3222_v25 = vcombine.high %v3206_v21, %v3206_v21 }
 0x15a   : >> { %6616 = vmatmul.mubr.msk.bf16.gmra.mxu1 %vm536_vm2, %v8075_v33  ;;  %v3224_v18 = vcombine.high %v3220_v55, %v3220_v55  ;;  %v6482_v33 = vld [vmem:[%s10573_s8] ss:$0 sm:$0xff]  ;;  %v3280_v39 = vrot.slane %v3220_v55, %v10754_v53 }
 0x15b   : >> { %6619 = vmatprep.mubr.msk.bf16.mxu1 %vm7163_vm12, %v10749_v7  ;;  %1904 = vperm.xlu0 %6704, %v10762_v14   ;;  %v2968_v14 = vld [vmem:[#allocation8 + $0x18] sm:$0xff] }
 0x15c   : >> { %6673 = vmatpush2.bf16.msra.mxu1 %v8151_v46  ;;  %v8238_v46 = vrot.slane %v3222_v25, %v10754_v53  ;;  %v8292_v25 = vld [vmem:[#allocation3 + $0x30] sm:$0xff] }
 0x15d   : >> { %1895 = vperm.xlu1 %6705, %v10763_v6   ;;  %6664 = vmatprep.subr.bf16.mxu1 %v6747_v23  ;;  %v8241_v23 = vrot.slane %v3224_v18, %v10754_v53  ;;  %v8287_v6 = vld [vmem:[#allocation8 + $0x20] sm:$0xff] }
 0x15e   : >> { %v3081_v55 = vmul.f32 %v3065_v43, %v8287_v6  ;;  %v3127_v43 = vcombine.high %v7839_v0, %v7839_v0 }
 0x15f   : >> { %1922 = vperm.xlu0 %6704, %v10764_v26   ;;  %v8290_v26 = vld [vmem:[#allocation3 + $0x28] sm:$0xff] }
 0x160   : >> { %6674 = vmatpush2.bf16.msra.mxu1 %v6745_v61  ;;  %v8324_v61 = vld [vmem:[#allocation8 + $0x38] sm:$0xff] }
 0x161   : >> { %1913 = vperm.xlu1 %6705, %v10765_v12   ;;  %v3066_v12 = vrot.slane %v8290_v26, 7 }
 0x162   : >> { %6620 = vmatmul.mubr.msk.bf16.gmra.mxu1 %vm536_vm2, %v8129_v32  ;;  %v3276_v32 = vrot.slane %v3206_v21, %v10754_v53  ;;  %v3080_v21 = vmul.f32 %v3064_v34, %v2968_v14 }
 0x163   : >> { %6623 = vmatprep.mubr.msk.bf16.mxu1 %vm7163_vm12, %v10749_v7  ;;  %2936 = vrot.lane.b32.xlu0 %v6482_v33, %s7164_s20 }
 0x164   : >> { %v3343_v17 = vpack.c.bf16 %v3280_v39, %v3276_v32  ;;  %v8302_v32 = vld [vmem:[#allocation8 + $0x28] sm:$0xff]  ;;  %v8304_v39 = vld [vmem:[#allocation8 + $0x30] sm:$0xff] }
 0x165   : >> { %1931 = vperm.xlu1 %6705, %v10766_v3   ;;  %v3067_v3 = vrot.slane %v8292_v25, 7 }
 0x169   : >> { %4808 = vrot.lane.b32.xlu1 %v3077_v1, %s7164_s20  ;;  %v10768_v1 = vld [vmem:[#allocation47_spill] sm:$0xff] }
 0x16a   : >> { %6624 = vmatmul.mubr.msk.bf16.gmra.mxu1 %vm536_vm2, %v1632_v52  ;;  %v8265_v52 = vld [vmem:[#allocation3 + $0x8] sm:$0xff] }
 0x16b   : >> { %6627 = vmatprep.mubr.msk.bf16.mxu1 %vm7163_vm12, %v10749_v7 }
 0x172   : >> { %6628 = vmatmul.mubr.msk.bf16.gmra.mxu1 %vm536_vm2, %v8115_v59  ;;  %v8267_v59 = vld [vmem:[#allocation3 + $0x10] sm:$0xff] }
 0x173   : >> { %6631 = vmatprep.mubr.msk.bf16.mxu1 %vm7163_vm12, %v10749_v7  ;;  %v3062_v7 = vrot.slane %v8265_v52, 7  ;;  %v3063_v36 = vrot.slane %v8267_v59, 7 }
 0x175   : >> { %v3079_v9 = vmul.f32 %v3063_v36, %v8272_v58  ;;  %v3082_v36 = vmul.f32 %v3066_v12, %v8302_v32 }
 0x177   : >> { %4812 = vrot.lane.b32.xlu1 %v3079_v9, %s7164_s20 }
 0x17a   : >> { %6632 = vmatmul.mubr.msk.bf16.gmra.mxu1 %vm536_vm2, %v1634_v8  ;;  %v3078_v8 = vmul.f32 %v3062_v7, %v2966_v24  ;;  %v2982_v7 = vrot.slane %v10768_v1, 7 }
 0x17b   : >> { %6519 = vmatprep.mubr.msk.bf16.mxu1 %vm536_vm2, %v3343_v17  ;;  %4816 = vrot.lane.b32.xlu1 %v3081_v55, %s7164_s20  ;;  %v10767_v17 = vld [vmem:[#allocation46_spill] sm:$0xff]  ;;  %v8320_v55 = vld [vmem:[#allocation3 + $0x40] sm:$0xff] }
 0x17c   : >> { %4810 = vrot.lane.b32.xlu0 %v3078_v8, %s7164_s20  ;;  %v2981_v40 = vrot.slane %v10767_v17, 7  ;;  %v3083_v8 = vmul.f32 %v3067_v3, %v8304_v39  ;;  %v2998_v1 = vmul.f32 %v2982_v7, %v2966_v24  ;;  %v3069_v3 = vrot.slane %v8320_v55, 7 }
 0x17e   : >> { %v2997_v17 = vmul.f32 %v2981_v40, %v2965_v54  ;;  %v3085_v28 = vmul.f32 %v3069_v3, %v8326_v42  ;;  %v10769_v54 = vld [vmem:[#allocation49_spill] sm:$0xff]  ;;  %v10770_v40 = vld [vmem:[#allocation51_spill] sm:$0xff] }
 0x17f   : >> { %4820 = vrot.lane.b32.xlu1 %v3083_v8, %s7164_s20  ;;  %v2983_v24 = vrot.slane %v10769_v54, 7  ;;  %v2984_v7 = vrot.slane %v10770_v40, 7  ;;  %v8347_v3 = vld [vmem:[#allocation8 + $0x50] sm:$0xff] }
 0x180   : >> { %4814 = vrot.lane.b32.xlu0 %v3080_v21, %s7164_s20  ;;  %v8318_v21 = vld [vmem:[#allocation3 + $0x38] sm:$0xff]  ;;  %v3305_v29 = vpack.c.bf16 %v2998_v1, %v2997_v17 }
 0x181   : >> { %v3068_v12 = vrot.slane %v8318_v21, 7  ;;  %v2999_v1 = vmul.f32 %v2983_v24, %v8272_v58  ;;  %v3072_v58 = vrot.slane %v8357_v63, 7  ;;  %v8366_v24 = vld [vmem:[#allocation8 + $0x60] sm:$0xff] }
 0x183   : >> { %v3084_v8 = vmul.f32 %v3068_v12, %v8324_v61  ;;  %4824 = vrot.lane.b32.xlu1 %v3085_v28, %s7164_s20  ;;  %v8345_v12 = vld [vmem:[#allocation8 + $0x48] sm:$0xff] }
 0x184   : >> { %v8279_v51 = vpop.permute.xlu1 %1814  ;;  %v8281_v38 = vpop.permute.xlu0 %1796  ;;  %4818 = vrot.lane.b32.xlu0 %v3082_v36, %s7164_s20  ;;  %v3141_v36 = vrot.slane %v3127_v43, %v10711_v16  ;;  %v3071_v43 = vrot.slane %v8339_v62, 7  ;;  %v3086_v37 = vmul.f32 %v3070_v20, %v8345_v12 }
 0x186   : >> { %v3143_v48 = vcombine.high %v3141_v36, %v3141_v36  ;;  %v3087_v17 = vmul.f32 %v3071_v43, %v8347_v3  ;;  %v3157_v20 = vrot.slane %v3141_v36, %v10711_v16  ;;  %v8373_v36 = vld [vmem:[#allocation3 + $0x68] sm:$0xff] }
 0x188   : >> { %v8294_v18 = vpop.permute.xlu1 %1823  ;;  %v8296_v33 = vpop.permute.xlu0 %1805  ;;  %4822 = vrot.lane.b32.xlu0 %v3084_v8, %s7164_s20  ;;  %v3000_v8 = vmul.f32 %v2984_v7, %v2968_v14  ;;  %4828 = vrot.lane.b32.xlu1 %v3087_v17, %s7164_s20  ;;  %v3171_v43 = vrot.slane %v3143_v48, %v10711_v16  ;;  %v8368_v7 = vld [vmem:[#allocation8 + $0x58] sm:$0xff]  ;;  %v8375_v48 = vld [vmem:[#allocation3 + $0x70] sm:$0xff] }
 0x189   : >> { %v3088_v17 = vmul.f32 %v3072_v58, %v8368_v7 }
 0x18c   : >> { %v8310_v9 = vpop.permute.xlu1 %1841  ;;  %v8312_v34 = vpop.permute.xlu0 %1832  ;;  %4826 = vrot.lane.b32.xlu0 %v3086_v37, %s7164_s20  ;;  %v3306_v37 = vpack.c.bf16 %v3000_v8, %v2999_v1  ;;  %v3244_v1 = vrot.slane %v3157_v20, %v10754_v53  ;;  %v3248_v8 = vrot.slane %v3171_v43, %v10754_v53 }
 0x190   : >> { %v8328_v31 = vpop.permute.xlu1 %1859  ;;  %v8330_v0 = vpop.permute.xlu0 %1850  ;;  %4830 = vrot.lane.b32.xlu0 %v3088_v17, %s7164_s20  ;;  %v2986_v17 = vrot.slane %v7865_v35, 7 }
 0x194   : >> { %v8349_v54 = vpop.permute.xlu0 %1868  ;;  %v3354_v40 = vpop.permute.xlu1 %3353 }
 0x195   : >> { %v3451_v28 = vsel %vm536_vm2, %v3305_v29, %v3354_v40  ;;  %v3073_v29 = vrot.slane %v8359_v45, 7 }
 0x197   : >> { %v3089_v47 = vmul.f32 %v3073_v29, %v8366_v24 }
 0x198   : >> { %v3378_v57 = vpop.permute.xlu0 %3377  ;;  %v3434_v56 = vpop.permute.xlu1 %3433 }
 0x199   : >> { %v3475_v14 = vsel %vm3473_vm13, %v3451_v28, %v3378_v57  ;;  %v10771_v57 = vpack.c.bf16 %v8166_v13, %v8154_v4  ;;  %v3075_v28 = vrot.slane %v8375_v48, 7  ;;  %4832 = vrot.lane.b32.xlu1 %v3089_v47, %s7164_s20 }
 0x19a   : >> { %v3492_v40 = vsel %vm3490_vm14, %v3475_v14, %v3434_v56  ;;  %v3074_v56 = vrot.slane %v8373_v36, 7  ;;  %v8387_v14 = vld [vmem:[#allocation8 + $0x68] sm:$0xff] }
 0x19b   : >> { %3704 = vmatmul.mubr.bf16.vlgmr.msra.gmra.mxu0 %v3492_v40  ;;  %v8389_v40 = vld [vmem:[#allocation8 + $0x70] sm:$0xff] }
 0x19c   : >> { %v3356_v60 = vpop.permute.xlu0 %3355  ;;  %6514 = vmatprep.mubr.msk.bf16.mxu0 %vm536_vm2, %v10771_v57  ;;  %v3380_v29 = vpop.permute.xlu1 %3379  ;;  %v3090_v4 = vmul.f32 %v3074_v56, %v8387_v14  ;;  %v3091_v13 = vmul.f32 %v3075_v28, %v8389_v40  ;;  %v2985_v57 = vrot.slane %v7863_v30, 7  ;;  %v3092_v30 = vmul.f32 %v3076_v44, %v8402_v27  ;;  %v7142_v28 = vld.sshfl [vmem:[#allocation4 + $0x8] sm:$0xff pattern:$0x75316420] }
 0x19d   : >> { %v3454_v58 = vsel %vm536_vm2, %v3306_v37, %v3356_v60  ;;  %v3339_v37 = vpack.c.bf16 %v3248_v8, %v3244_v1  ;;  %v3002_v56 = vmul.f32 %v2986_v17, %v8302_v32  ;;  %v3173_v1 = vcombine.high %v3157_v20, %v3157_v20 }
 0x19e   : >> { %v3477_v2 = vsel %vm3473_vm13, %v3454_v58, %v3380_v29  ;;  %4834 = vrot.lane.b32.xlu0 %v3090_v4, %s7164_s20  ;;  %4836 = vrot.lane.b32.xlu1 %v3091_v13, %s7164_s20  ;;  %v3001_v35 = vmul.f32 %v2985_v57, %v8287_v6  ;;  %v3175_v8 = vcombine.high %v3171_v43, %v3171_v43  ;;  %v7092_v29 = vld [vmem:[#allocation2 + $0x38] sm:$0xff] }
 0x19f   : >> { %v2988_v4 = vrot.slane %v7092_v29, 7  ;;  %v3252_v32 = vrot.slane %v3173_v1, %v10754_v53  ;;  %v3191_v43 = vcombine.high %v7142_v28, %v7142_v28 }
 0x1a0   : >> { %v3436_v60 = vpop.permute.xlu0 %3435  ;;  %v8412_v44 = vpop.permute.xlu1 %1877  ;;  %v3307_v13 = vpack.c.bf16 %v3002_v56, %v3001_v35  ;;  %v3256_v20 = vrot.slane %v3175_v8, %v10754_v53  ;;  %v3199_v35 = vrot.slane %v7142_v28, %v10711_v16  ;;  %v7093_v8 = vld [vmem:[#allocation2 + $0x40] sm:$0xff] }
 0x1a1   : >> { %v3495_v47 = vsel %vm3490_vm14, %v3477_v2, %v3436_v60  ;;  %v7091_v2 = vld [vmem:[#allocation2 + $0x30] sm:$0xff]  ;;  %v3004_v17 = vmul.f32 %v2988_v4, %v8324_v61  ;;  %v3213_v56 = vrot.slane %v3191_v43, %v10711_v16 }
 0x1a2   : >> { %4838 = vrot.lane.b32.xlu0 %v3092_v30, %s7164_s20  ;;  %4888 = vrot.lane.b32.xlu1 %v8260_v50, %s7165_s21  ;;  %v2987_v58 = vrot.slane %v7091_v2, 7  ;;  %v3340_v30 = vpack.c.bf16 %v3256_v20, %v3252_v32  ;;  %v2989_v2 = vrot.slane %v7093_v8, 7 }
 0x1a3   : >> { %3714 = vmatmul.mubr.bf16.gmra.mxu0 %v3495_v47 }
 0x1a4   : >> { %6515 = vmatprep.mubr.msk.bf16.mxu0 %vm536_vm2, %v3339_v37  ;;  %v3003_v57 = vmul.f32 %v2987_v58, %v8304_v39  ;;  %v7094_v58 = vld [vmem:[#allocation2 + $0x48] sm:$0xff]  ;;  %v3005_v43 = vmul.f32 %v2989_v2, %v8326_v42 }
 0x1a5   : >> { %v3358_v6 = vpop.permute.xlu0 %3357  ;;  %v2990_v29 = vrot.slane %v7094_v58, 7 }
 0x1a6   : >> { %4890 = vrot.lane.b32.xlu0 %v8265_v52, %s7165_s21  ;;  %4892 = vrot.lane.b32.xlu1 %v8267_v59, %s7165_s21  ;;  %v3457_v60 = vsel %vm536_vm2, %v3307_v13, %v3358_v6  ;;  %v3308_v39 = vpack.c.bf16 %v3004_v17, %v3003_v57  ;;  %v3260_v13 = vrot.slane %v3199_v35, %v10754_v53 }
 0x1a7   : >> { %v3264_v6 = vrot.slane %v3213_v56, %v10754_v53  ;;  %v3006_v57 = vmul.f32 %v2990_v29, %v8345_v12  ;;  %v2993_v12 = vrot.slane %v7922_v41, 7 }
 0x1a9   : >> { %v3438_v37 = vpop.permute.xlu0 %3437  ;;  %v3009_v41 = vmul.f32 %v2993_v12, %v8366_v24 }
 0x1aa   : >> { %4894 = vrot.lane.b32.xlu0 %v8275_v15, %s7165_s21  ;;  %4896 = vrot.lane.b32.xlu1 %v8277_v49, %s7165_s21 }
 0x1ab   : >> { %v3382_v47 = vpop.permute.xlu1 %3381 }
 0x1ac   : >> { %v3479_v1 = vsel %vm3473_vm13, %v3457_v60, %v3382_v47  ;;  %v3341_v60 = vpack.c.bf16 %v3264_v6, %v3260_v13  ;;  %v3309_v47 = vpack.c.bf16 %v3006_v57, %v3005_v43 }
 0x1ad   : >> { %v3498_v61 = vsel %vm3490_vm14, %v3479_v1, %v3438_v37  ;;  %v3384_v28 = vpop.permute.xlu0 %3383  ;;  %v3223_v1 = vcombine.high %v3213_v56, %v3213_v56  ;;  %v7096_v56 = vld [vmem:[#allocation2 + $0x58] sm:$0xff] }
 0x1ae   : >> { %3724 = vmatmul.mubr.bf16.gmra.mxu0 %v3498_v61  ;;  %4898 = vrot.lane.b32.xlu0 %v8290_v26, %s7165_s21  ;;  %v7095_v61 = vld [vmem:[#allocation2 + $0x50] sm:$0xff]  ;;  %v2992_v58 = vrot.slane %v7096_v56, 7 }
 0x1af   : >> { %v3360_v4 = vpop.permute.xlu1 %3359  ;;  %6516 = vmatprep.mubr.msk.bf16.mxu0 %vm536_vm2, %v3340_v30  ;;  %4900 = vrot.lane.b32.xlu1 %v8292_v25, %s7165_s21  ;;  %v3221_v30 = vcombine.high %v3199_v35, %v3199_v35  ;;  %v2991_v8 = vrot.slane %v7095_v61, 7 }
 0x1b0   : >> { %v3460_v32 = vsel %vm536_vm2, %v3308_v39, %v3360_v4  ;;  %v2994_v39 = vrot.slane %v7924_v22, 7  ;;  %v3272_v4 = vrot.slane %v3223_v1, %v10754_v53 }
 0x1b1   : >> { %v3481_v20 = vsel %vm3473_vm13, %v3460_v32, %v3384_v28  ;;  %v3268_v29 = vrot.slane %v3221_v30, %v10754_v53  ;;  %v3007_v32 = vmul.f32 %v2991_v8, %v8347_v3 }
 0x1b2   : >> { %4902 = vrot.lane.b32.xlu0 %v8318_v21, %s7165_s21  ;;  %v3010_v22 = vmul.f32 %v2994_v39, %v8387_v14 }
 0x1b3   : >> { %v3440_v17 = vpop.permute.xlu1 %3439  ;;  %4904 = vrot.lane.b32.xlu1 %v8320_v55, %s7165_s21  ;;  %v3342_v43 = vpack.c.bf16 %v3272_v4, %v3268_v29  ;;  %v10772_v4 = vpack.c.bf16 %v8241_v23, %v8238_v46  ;;  %v6481_v46 = vld [vmem:[%s10572_s7] ss:$0 sm:$0xff] }
 0x1b4   : >> { %v3501_v37 = vsel %vm3490_vm14, %v3481_v20, %v3440_v17  ;;  %v3008_v20 = vmul.f32 %v2992_v58, %v8368_v7  ;;  %v3311_v24 = vpack.c.bf16 %v3010_v22, %v3009_v41 }
 0x1b6   : >> { %3734 = vmatmul.mubr.bf16.gmra.mxu0 %v3501_v37  ;;  %4906 = vrot.lane.b32.xlu0 %v8337_v19, %s7165_s21  ;;  %v7098_v37 = vld [vmem:[#allocation2 + $0x78] sm:$0xff]  ;;  %v3310_v3 = vpack.c.bf16 %v3008_v20, %v3007_v32 }
 0x1b7   : >> { %v3362_v42 = vpop.permute.xlu1 %3361  ;;  %6517 = vmatprep.mubr.msk.bf16.mxu0 %vm536_vm2, %v3341_v60  ;;  %4908 = vrot.lane.b32.xlu1 %v8339_v62, %s7165_s21  ;;  %v7097_v60 = vld [vmem:[#allocation2 + $0x70] sm:$0xff] }
 0x1b8   : >> { %v3463_v35 = vsel %vm536_vm2, %v3309_v47, %v3362_v42  ;;  %v2995_v14 = vrot.slane %v7097_v60, 7  ;;  %v2996_v47 = vrot.slane %v7098_v37, 7  ;;  %v1856_v60 = vrot.slane %v8330_v0, %v10754_v53 }
 0x1b9   : >> { %v1829_v37 = vrot.slane %v8294_v18, %v10754_v53 }
 0x1ba   : >> { %v8454_v2 = vpop.permute.xlu0 %1886  ;;  %4910 = vrot.lane.b32.xlu0 %v8357_v63, %s7165_s21  ;;  %v3011_v42 = vmul.f32 %v2995_v14, %v8389_v40  ;;  %v3012_v12 = vmul.f32 %v2996_v47, %v8402_v27  ;;  %v1820_v14 = vrot.slane %v8279_v51, %v10754_v53  ;;  %v1811_v47 = vrot.slane %v8296_v33, %v10754_v53 }
 0x1bb   : >> { %v3386_v28 = vpop.permute.xlu1 %3385  ;;  %4912 = vrot.lane.b32.xlu1 %v8359_v45, %s7165_s21 }
 0x1bc   : >> { %v3483_v13 = vsel %vm3473_vm13, %v3463_v35, %v3386_v28  ;;  %v3312_v58 = vpack.c.bf16 %v3012_v12, %v3011_v42  ;;  %v1955_v0 = vcombine.low %v1820_v14, %v1829_v37 }
 0x1be   : >> { %v3366_v6 = vpop.permute.xlu0 %3365  ;;  %4914 = vrot.lane.b32.xlu0 %v8373_v36, %s7165_s21  ;;  %v1971_v18 = vrot.slane %v1955_v0, %v10711_v16 }
 0x1bf   : >> { %v3442_v57 = vpop.permute.xlu1 %3441  ;;  %4916 = vrot.lane.b32.xlu1 %v8375_v48, %s7165_s21  ;;  %v3469_v1 = vsel %vm536_vm2, %v3311_v24, %v3366_v6  ;;  %v1865_v24 = vrot.slane %v8328_v31, %v10754_v53  ;;  %v1802_v31 = vrot.slane %v8281_v38, %v10754_v53 }
 0x1c0   : >> { %v3504_v17 = vsel %vm3490_vm14, %v3483_v13, %v3442_v57 }
 0x1c1   : >> { %3744 = vmatmul.mubr.bf16.gmra.mxu0 %v3504_v17 }
 0x1c2   : >> { %v3390_v30 = vpop.permute.xlu0 %3389  ;;  %6518 = vmatprep.mubr.msk.bf16.mxu0 %vm536_vm2, %v3342_v43  ;;  %4918 = vrot.lane.b32.xlu0 %v8396_v10, %s7165_s21 }
 0x1c3   : >> { %v3364_v7 = vpop.permute.xlu1 %3363  ;;  %v3487_v39 = vsel %vm3473_vm13, %v3469_v1, %v3390_v30  ;;  %v1847_v30 = vrot.slane %v8310_v9, %v10754_v53  ;;  %v1954_v1 = vcombine.low %v1802_v31, %v1811_v47  ;;  %v3093_v31 = vrot.slane %v8260_v50, 1  ;;  %v7101_v50 = vld [vmem:[#allocation9 + $0x18] sm:$0xff] }
 0x1c4   : >> { %v3466_v8 = vsel %vm536_vm2, %v3310_v3, %v3364_v7  ;;  %v1838_v3 = vrot.slane %v8312_v34, %v10754_v53  ;;  %v1957_v7 = vcombine.low %v1856_v60, %v1865_v24  ;;  %v1883_v34 = vrot.slane %v8412_v44, %v10754_v53 }
 0x1c5   : >> { %v1964_v12 = vrot.slane %v1954_v1, %v10711_v16  ;;  %v3094_v44 = vrot.slane %v8265_v52, 1 }
 0x1c6   : >> { %v3446_v61 = vpop.permute.xlu0 %3445  ;;  %v1956_v42 = vcombine.low %v1838_v3, %v1847_v30  ;;  %v1985_v51 = vrot.slane %v1957_v7, %v10711_v16  ;;  %v3096_v7 = vrot.slane %v8275_v15, 1 }
 0x1c7   : >> { %v3510_v35 = vsel %vm3490_vm14, %v3487_v39, %v3446_v61  ;;  %v3388_v56 = vpop.permute.xlu1 %3387 }
 0x1c8   : >> { %3764 = vmatmul.mubr.bf16.vlgmr.msra.gmra.mxu1 %v3510_v35  ;;  %v3485_v29 = vsel %vm3473_vm13, %v3466_v8, %v3388_v56  ;;  %v1978_v33 = vrot.slane %v1956_v42, %v10711_v16  ;;  %v1986_v8 = vcombine.low %v1964_v12, %v1971_v18  ;;  %v1874_v35 = vrot.slane %v8349_v54, %v10754_v53  ;;  %v7099_v54 = vld [vmem:[#allocation9 + $0x8] sm:$0xff] }
 0x1c9   : >> { %6520 = vmatprep.mubr.msk.bf16.mxu1 %vm536_vm2, %v10772_v4 }
 0x1ca   : >> { %v3368_v40 = vpop.permute.xlu0 %3367  ;;  %v1987_v61 = vcombine.low %v1978_v33, %v1985_v51  ;;  %v8532_v4 = vcombine.low %v1874_v35, %v1883_v34  ;;  %v3112_v34 = vmul.f32 %v7101_v50, %v3096_v7 }
 0x1cb   : >> { %v3444_v28 = vpop.permute.xlu1 %3443  ;;  %v3472_v41 = vsel %vm536_vm2, %v3312_v58, %v3368_v40 }
 0x1cc   : >> { %v3507_v27 = vsel %vm3490_vm14, %v3485_v29, %v3444_v28  ;;  %v2001_v29 = vrot.slane %v1987_v61, %v10711_v16 }
 0x1cd   : >> { %3754 = vmatmul.mubr.bf16.gmra.mxu0 %v3507_v27 }
 0x1ce   : >> { %v3392_v22 = vpop.permute.xlu0 %3391 }
 0x1cf   : >> { %v3489_v13 = vsel %vm3473_vm13, %v3472_v41, %v3392_v22  ;;  %v1994_v41 = vrot.slane %v1986_v8, %v10711_v16  ;;  %v3110_v22 = vmul.f32 %v7099_v54, %v3094_v44  ;;  %v3098_v44 = vrot.slane %v8290_v26, 1 }
 0x1d1   : >> { %5050 = vrot.lane.b32.xlu1 %v3110_v22, %s7166_s22 }
 0x1d2   : >> { %v1573_v6 = vpop.f32.mrf.mxu0  ;;  %v3448_v32 = vpop.permute.xlu0 %3447 }
 0x1d3   : >> { %v3513_v43 = vsel %vm3490_vm14, %v3489_v13, %v3448_v32  ;;  %v8519_v9 = vadd.f32 %v6481_v46, %v1573_v6 }
 0x1d4   : >> { %v6593_v20 = vpop.f32.mrf.mxu0  ;;  %3774 = vmatmul.mubr.bf16.gmra.mxu1 %v3513_v43  ;;  %v1892_v43 = vrot.slane %v8454_v2, %v10754_v53 }
 0x1d5   : >> { %v2065_v38 = vrot.slane %v8519_v9, %v10711_v16  ;;  %v2058_v58 = vcombine.high %v8519_v9, %v8519_v9  ;;  %v2013_v20 = vrot.slane %v8532_v4, %v10711_v16  ;;  %5054 = vrot.lane.b32.xlu1 %v3112_v34, %s7166_s22 }
 0x1d6   : >> { %v8494_v23 = vpop.f32.mrf.mxu0  ;;  %v8527_v56 = vpop.permute.xlu0 %1904 }
 0x1d7   : >> { %v8497_v57 = vadd.f32 %v6481_v46, %v8494_v23  ;;  %v8538_v28 = vrot.slane %v2065_v38, %v10711_v16  ;;  %v2073_v27 = vcombine.high %v2065_v38, %v2065_v38  ;;  %v2072_v32 = vrot.slane %v2058_v58, %v10711_v16 }
 0x1d8   : >> { %v6594_v17 = vpop.f32.mrf.mxu0  ;;  %v1896_v39 = vpop.permute.xlu1 %1895  ;;  %v8549_v46 = vcombine.low %v1994_v41, %v2001_v29  ;;  %v3095_v29 = vrot.slane %v8267_v59, 1 }
 0x1d9   : >> { %v2114_v13 = vrot.slane %v8497_v57, %v10711_v16  ;;  %v1901_v52 = vrot.slane %v1896_v39, %v10754_v53  ;;  %v1910_v17 = vrot.slane %v8527_v56, %v10754_v53  ;;  %v2107_v60 = vcombine.high %v8497_v57, %v8497_v57  ;;  %v7100_v39 = vld [vmem:[#allocation9] sm:$0xff] }
 0x1da   : >> { %v1923_v24 = vpop.permute.xlu0 %1922  ;;  %v2159_v14 = vrot.slane %v8538_v28, %v10754_v53  ;;  %v8559_v37 = vrot.slane %v2073_v27, %v10711_v16  ;;  %v2103_v30 = vcombine.high %v8538_v28, %v8538_v28  ;;  %v2074_v3 = vcombine.high %v2072_v32, %v2072_v32 }
 0x1db   : >> { %v8571_v1 = vrot.slane %v2072_v32, %v10711_v16  ;;  %v8574_v42 = vrot.slane %v2114_v13, %v10711_v16  ;;  %v2122_v51 = vcombine.high %v2114_v13, %v2114_v13  ;;  %v2004_v18 = vcombine.low %v1892_v43, %v1901_v52 }
 0x1dc   : >> { %v8534_v40 = vpop.permute.xlu1 %1913  ;;  %v2105_v33 = vcombine.high %v8559_v37, %v8559_v37  ;;  %v3109_v61 = vmul.f32 %v7100_v39, %v3093_v31  ;;  %v1928_v15 = vrot.slane %v1923_v24, %v10754_v53  ;;  %v2163_v38 = vrot.slane %v8559_v37, %v10754_v53 }
 0x1dd   : >> { %v8583_v8 = vrot.slane %v2107_v60, %v10711_v16  ;;  %v8586_v56 = vrot.slane %v2103_v30, %v10754_v53  ;;  %v8589_v58 = vrot.slane %v2074_v3, %v10711_v16  ;;  %v1919_v28 = vrot.slane %v8534_v40, %v10754_v53  ;;  %v7102_v40 = vld [vmem:[#allocation9 + $0x10] sm:$0xff]  ;;  %v2252_v60 = vld [vmem:[#allocation7] sm:$0xff] }
 0x1de   : >> { %5048 = vrot.lane.b32.xlu0 %v3109_v61, %s7166_s22  ;;  %v2104_v54 = vcombine.high %v8571_v1, %v8571_v1  ;;  %v2020_v22 = vrot.slane %v2004_v18, %v10711_v16  ;;  %v8607_v32 = vrot.slane %v2105_v33, %v10754_v53  ;;  %v2175_v59 = vrot.slane %v8571_v1, %v10754_v53  ;;  %v7103_v33 = vld [vmem:[#allocation9 + $0x20] sm:$0xff]  ;;  %v2253_v61 = vld [vmem:[#allocation7 + $0x8] sm:$0xff] }
 0x1df   : >> { %v8612_v26 = vrot.slane %v2122_v51, %v10711_v16  ;;  %v3111_v43 = vmul.f32 %v7102_v40, %v3095_v29  ;;  %v3114_v52 = vmul.f32 %v3098_v44, %v8040_v5  ;;  %v2179_v37 = vrot.slane %v8589_v58, %v10754_v53  ;;  %v7106_v1 = vld [vmem:[#allocation9 + $0x60] sm:$0xff] }
 0x1e0   : >> { %v1932_v2 = vpop.permute.xlu1 %1931  ;;  %v3097_v30 = vrot.slane %v8277_v49, 1  ;;  %v3100_v3 = vrot.slane %v8318_v21, 1  ;;  %v2005_v31 = vcombine.low %v1910_v17, %v1919_v28  ;;  %v8624_v51 = vrot.slane %v2104_v54, %v10754_v53 }
 0x1e1   : >> { %5058 = vrot.lane.b32.xlu1 %v3114_v52, %s7166_s22  ;;  %v8631_v5 = vcombine.low %v2013_v20, %v2020_v22  ;;  %v2106_v49 = vcombine.high %v8589_v58, %v8589_v58  ;;  %v2195_v21 = vrot.slane %v8612_v26, %v10754_v53  ;;  %v2154_v17 = vcombine.high %v8612_v26, %v8612_v26  ;;  %v7107_v58 = vld [vmem:[#allocation9 + $0x70] sm:$0xff] }
 0x1e2   : >> { %5052 = vrot.lane.b32.xlu0 %v3111_v43, %s7166_s22  ;;  %v3113_v39 = vmul.f32 %v7103_v33, %v3097_v30  ;;  %v3116_v4 = vmul.f32 %v3100_v3, %v8053_v11  ;;  %v8648_v34 = vrot.slane %v8583_v8, %v10711_v16  ;;  %v2123_v11 = vcombine.high %v8583_v8, %v8583_v8  ;;  %v10777_v33 = vld [vmem:[#allocation54_spill] sm:$0xff] }
 0x1e3   : >> { %v8660_v22 = vrot.slane %v2106_v49, %v10754_v53  ;;  %v2043_v40 = vrot.slane %v8631_v5, %v10711_v16  ;;  %v8668_v8 = vrot.slane %v2154_v17, %v10754_v53  ;;  %v3101_v30 = vrot.slane %v8320_v55, 1 }
 0x1e4   : >> { %v3104_v3 = vrot.slane %v8357_v63, 1  ;;  %v8678_v5 = vrot.slane %v2123_v11, %v10711_v16  ;;  %v3106_v11 = vrot.slane %v8373_v36, 1  ;;  %v10778_v36 = vld [vmem:[#allocation53_spill] sm:$0xff] }
 0x1e5   : >> { %5062 = vrot.lane.b32.xlu1 %v3116_v4, %s7166_s22 }
 0x1e6   : >> { %5056 = vrot.lane.b32.xlu0 %v3113_v39, %s7166_s22  ;;  %v3120_v39 = vmul.f32 %v3104_v3, %v10777_v33 }
 0x1fa   : >> { %v8561_v47 = vpop.f32.mrf.mxu1 }
 0x1fb   : >> { %v8568_v0 = vadd.f32 %v8561_v47, %v1573_v6  ;;  %v1937_v6 = vrot.slane %v1932_v2, %v10754_v53  ;;  %v2152_v2 = vcombine.high %v8574_v42, %v8574_v42 }
 0x1fc   : >> { %v6601_v12 = vpop.f32.mrf.mxu1 }
 0x1fd   : >> { %10773 = vst [vmem:[#allocation52_spill] sm:$0xff] %v8568_v0  ;;  %v8644_v50 = vrot.slane %v2152_v2, %v10754_v53  ;;  %v2207_v2 = vrot.slane %v8648_v34, %v10754_v53  ;;  %v7120_v0 = vld [vmem:[#allocation3 + $0x60] sm:$0xff] }
 0x1fe   : >> { %v1715_v35 = vpop.f32.mrf.mxu1 }
 0x1ff   : >> { %v8598_v27 = vadd.f32 %v8497_v57, %v1715_v35  ;;  %v8601_v41 = vadd.f32 %v1715_v35, %v8494_v23  ;;  %v2006_v57 = vcombine.low %v1928_v15, %v1937_v6  ;;  %v2191_v23 = vrot.slane %v8574_v42, %v10754_v53 }
 0x200   : >> { %v6602_v13 = vpop.f32.mrf.mxu1  ;;  %v3099_v15 = vrot.slane %v8292_v25, 1  ;;  %v3102_v6 = vrot.slane %v8337_v19, 1  ;;  %v2027_v35 = vrot.slane %v2005_v31, %v10711_v16  ;;  %v7104_v25 = vld [vmem:[#allocation9 + $0x30] sm:$0xff] }
 0x201   : >> { %10774 = vst [vmem:[#allocation48_spill] sm:$0xff] %v8601_v41  ;;  %v10775_v13 = vld [vmem:[#allocation56_spill] sm:$0xff] }
 0x202   : >> { %v1720_v24 = vpop.f32.mrf.mxu1  ;;  %v3115_v19 = vmul.f32 %v7104_v25, %v3099_v15 }
 0x203   : >> { %v2236_v7 = vadd.f32 %v2159_v14, %v1720_v24  ;;  %v2034_v14 = vrot.slane %v2006_v57, %v10711_v16  ;;  %v3118_v57 = vmul.f32 %v3102_v6, %v10775_v13 }
 0x204   : >> { %v6605_v18 = vpop.f32.mrf.mxu1  ;;  %5060 = vrot.lane.b32.xlu0 %v3115_v19, %s7166_s22 }
 0x205   : >> { %v8640_v12 = vadd.f32 %v2252_v60, %v2236_v7  ;;  %v2254_v60 = vld [vmem:[#allocation7 + $0x10] sm:$0xff]  ;;  %v2153_v18 = vcombine.high %v8648_v34, %v8648_v34  ;;  %5066 = vrot.lane.b32.xlu1 %v3118_v57, %s7166_s22 }
 0x206   : >> { %v1723_v20 = vpop.f32.mrf.mxu1 }
 0x207   : >> { %v2284_v29 = vsel %vm536_vm2, %v8640_v12, -inf  ;;  %v2237_v44 = vadd.f32 %v2163_v38, %v1723_v20  ;;  %v2036_v38 = vcombine.low %v2027_v35, %v2034_v14  ;;  %v10776_v14 = vld [vmem:[#allocation55_spill] sm:$0xff] }
 0x208   : >> { %v2285_v28 = vrot.slane %v2284_v29, 4  ;;  %v6606_v54 = vpop.f32.mrf.mxu1  ;;  %v3117_v63 = vmul.f32 %v3101_v30, %v10776_v14 }
 0x209   : >> { %v8665_v43 = vadd.f32 %v2253_v61, %v2237_v44  ;;  %v2050_v4 = vrot.slane %v2036_v38, %v10711_v16  ;;  %v2155_v61 = vcombine.high %v8678_v5, %v8678_v5  ;;  %v3103_v44 = vrot.slane %v8339_v62, 1  ;;  %5070 = vrot.lane.b32.xlu1 %v3120_v39, %s7166_s22 }
 0x20a   : >> { %v2286_v52 = vmax.f32 %v2284_v29, %v2285_v28  ;;  %v1728_v24 = vpop.f32.mrf.mxu1  ;;  %v2255_v29 = vld [vmem:[#allocation7 + $0x18] sm:$0xff]  ;;  %5064 = vrot.lane.b32.xlu0 %v3117_v63, %s7166_s22 }
 0x20b   : >> { %v2291_v31 = vsel %vm536_vm2, %v8665_v43, -inf  ;;  %v2238_v7 = vadd.f32 %v8586_v56, %v1728_v24  ;;  %v1792_v56 = vadd.f32 %v8519_v9, %v8561_v47  ;;  %v2211_v9 = vrot.slane %v8678_v5, %v10754_v53  ;;  %v7105_v24 = vld [vmem:[#allocation9 + $0x68] sm:$0xff] }
 0x20c   : >> { %v2287_v49 = vrot.slane %v2286_v52, 2  ;;  %v2292_v17 = vrot.slane %v2291_v31, 4  ;;  %v6609_v55 = vpop.f32.mrf.mxu1  ;;  %v8701_v47 = vrot.slane %v2153_v18, %v10754_v53  ;;  %v3119_v57 = vmul.f32 %v3103_v44, %v10778_v36  ;;  %v2256_v18 = vld [vmem:[#allocation7 + $0x20] sm:$0xff] }
 0x20d   : >> { %v8689_v20 = vadd.f32 %v2254_v60, %v2238_v7  ;;  %v8707_v38 = vadd.f32 %v8549_v46, %v1792_v56  ;;  %v3122_v60 = vmul.f32 %v7105_v24, %v3106_v11  ;;  %v3108_v55 = vrot.slane %v8396_v10, 1  ;;  %v2257_v11 = vld [vmem:[#allocation7 + $0x28] sm:$0xff] }
 0x20e   : >> { %v2288_v15 = vmax.f32 %v2286_v52, %v2287_v49  ;;  %v2293_v6 = vmax.f32 %v2291_v31, %v2292_v17  ;;  %v1731_v35 = vpop.f32.mrf.mxu1  ;;  %v8714_v49 = vrot.slane %v2155_v61, %v10754_v53  ;;  %5068 = vrot.lane.b32.xlu0 %v3119_v57, %s7166_s22 }
 0x20f   : >> { %v2298_v28 = vsel %vm536_vm2, %v8689_v20, -inf  ;;  %v2239_v54 = vadd.f32 %v8607_v32, %v1731_v35  ;;  %v8709_v32 = vcombine.low %v2043_v40, %v2050_v4  ;;  %5074 = vrot.lane.b32.xlu1 %v3122_v60, %s7166_s22  ;;  %v3105_v40 = vrot.slane %v8359_v45, 1 }
 0x210   : >> { %v2289_v25 = vrot.slane %v2288_v15, 1  ;;  %v2294_v19 = vrot.slane %v2293_v6, 2  ;;  %v2299_v62 = vrot.slane %v2298_v28, 4  ;;  %v6610_v13 = vpop.f32.mrf.mxu1  ;;  %v2398_v56 = vrot.slane %v8707_v38, 1 }
 0x211   : >> { %v8711_v52 = vadd.f32 %v2255_v29, %v2239_v54  ;;  %v2400_v60 = vrot.slane %v8707_v38, 3 }
 0x212   : >> { %v2290_v30 = vmax.f32 %v2288_v15, %v2289_v25  ;;  %v2295_v3 = vmax.f32 %v2293_v6, %v2294_v19  ;;  %v2300_v31 = vmax.f32 %v2298_v28, %v2299_v62  ;;  %v1736_v7 = vpop.f32.mrf.mxu1  ;;  %v10779_v15 = vld [vmem:[#allocation50_spill] sm:$0xff]  ;;  %v2399_v28 = vrot.slane %v8707_v38, 2 }
 0x213   : >> { %v2305_v17 = vsel %vm536_vm2, %v8711_v52, -inf  ;;  %v2240_v46 = vadd.f32 %v2175_v59, %v1736_v7  ;;  %v3121_v59 = vmul.f32 %v7106_v1, %v3105_v40  ;;  %v3124_v6 = vmul.f32 %v3108_v55, %v10779_v15 }
 0x214   : >> { %v8726_v14 = vmax.f32 %v2290_v30, %v8707_v38  ;;  %v2296_v63 = vrot.slane %v2295_v3, 1  ;;  %v2301_v33 = vrot.slane %v2300_v31, 2  ;;  %v2306_v39 = vrot.slane %v2305_v17, 4  ;;  %v6613_v4 = vpop.f32.mrf.mxu1 }
 0x215   : >> { %v8729_v61 = vadd.f32 %v2256_v18, %v2240_v46  ;;  %5072 = vrot.lane.b32.xlu0 %v3121_v59, %s7166_s22  ;;  %5078 = vrot.lane.b32.xlu1 %v3124_v6, %s7166_s22  ;;  %v3107_v19 = vrot.slane %v8375_v48, 1  ;;  %v2258_v46 = vld [vmem:[#allocation7 + $0x30] sm:$0xff] }
 0x216   : >> { %v2499_v45 = vrot.slane %v8726_v14, %v10754_v53  ;;  %v2297_v35 = vmax.f32 %v2295_v3, %v2296_v63  ;;  %v2302_v10 = vmax.f32 %v2300_v31, %v2301_v33  ;;  %v2307_v29 = vmax.f32 %v2305_v17, %v2306_v39  ;;  %v1739_v44 = vpop.f32.mrf.mxu1  ;;  %v5468_v31 = vld [vmem:[%s7312_s17] sm:$0xff] }
 0x217   : >> { %v2312_v54 = vsel %vm536_vm2, %v8729_v61, -inf  ;;  %v2241_v25 = vadd.f32 %v2179_v37, %v1739_v44  ;;  %v3123_v37 = vmul.f32 %v7107_v58, %v3107_v19  ;;  %v2403_v44 = vrot.slane %v8707_v38, 6 }
 0x218   : >> { %v2560_v62 = vsub.f32 %v8640_v12, %v2499_v45  ;;  %v8744_v13 = vmax.f32 %v2297_v35, %v2398_v56  ;;  %v2303_v36 = vrot.slane %v2302_v10, 1  ;;  %v2308_v57 = vrot.slane %v2307_v29, 2  ;;  %v6614_v24 = vpop.f32.mrf.mxu1  ;;  %v5469_v35 = vld [vmem:[%s7312_s17 + $0x8] sm:$0xff] }
 0x219   : >> { %v2313_v30 = vrot.slane %v2312_v54, 4  ;;  %v8747_v3 = vadd.f32 %v2257_v11, %v2241_v25  ;;  %v2401_v12 = vrot.slane %v8707_v38, 4  ;;  %5076 = vrot.lane.b32.xlu0 %v3123_v37, %s7166_s22  ;;  %5500 = vrot.lane.b32.xlu1 %v5468_v31, %s7164_s20  ;;  %v2402_v56 = vrot.slane %v8707_v38, 5  ;;  %v2259_v37 = vld [vmem:[#allocation7 + $0x38] sm:$0xff] }
 0x21a   : >> { %v2576_v7 = vmul.f32 1.442695, %v2560_v62  ;;  %v2503_v18 = vrot.slane %v8744_v13, %v10754_v53  ;;  %v2304_v48 = vmax.f32 %v2302_v10, %v2303_v36  ;;  %v1744_v17 = vpop.f32.mrf.mxu1  ;;  %v2309_v40 = vmax.f32 %v2307_v29, %v2308_v57  ;;  %v5470_v10 = vld [vmem:[%s7312_s17 + $0x10] sm:$0xff]  ;;  %v5471_v31 = vld [vmem:[%s7312_s17 + $0x18] sm:$0xff] }
 0x21b   : >> { %v2314_v55 = vmax.f32 %v2312_v54, %v2313_v30  ;;  %v2319_v63 = vsel %vm536_vm2, %v8747_v3, -inf  ;;  %v2242_v33 = vadd.f32 %v8624_v51, %v1744_v17  ;;  %v8768_v51 = vadd.f32 %v8709_v32, %v8598_v27 }
 0x21c   : >> { %6750 = vpow2.f32 %v2576_v7  ;;  %v2561_v39 = vsub.f32 %v8665_v43, %v2503_v18  ;;  %v8759_v4 = vmax.f32 %v2304_v48, %v2399_v28  ;;  %v6617_v1 = vpop.f32.mrf.mxu1  ;;  %v2310_v59 = vrot.slane %v2309_v40, 1  ;;  %v5472_v7 = vld [vmem:[%s7312_s17 + $0x20] sm:$0xff] }
 0x21d   : >> { %v2315_v15 = vrot.slane %v2314_v55, 2  ;;  %v2320_v6 = vrot.slane %v2319_v63, 4  ;;  %v8762_v45 = vadd.f32 %v2258_v46, %v2242_v33  ;;  %5502 = vrot.lane.b32.xlu0 %v5469_v35, %s7164_s20  ;;  %5504 = vrot.lane.b32.xlu1 %v5470_v10, %s7164_s20  ;;  %v2404_v62 = vrot.slane %v8707_v38, 7  ;;  %v5473_v35 = vld [vmem:[%s7312_s17 + $0x28] sm:$0xff]  ;;  %v5474_v10 = vld [vmem:[%s7312_s17 + $0x30] sm:$0xff] }
 0x21e   : >> { %v2578_v29 = vmul.f32 1.442695, %v2561_v39  ;;  %v2507_v43 = vrot.slane %v8759_v4, %v10754_v53  ;;  %v1747_v11 = vpop.f32.mrf.mxu1  ;;  %v2311_v28 = vmax.f32 %v2309_v40, %v2310_v59  ;;  %v2405_v46 = vrot.slane %v8768_v51, 1 }
 0x21f   : >> { %v2316_v54 = vmax.f32 %v2314_v55, %v2315_v15  ;;  %v2321_v25 = vmax.f32 %v2319_v63, %v2320_v6  ;;  %v2326_v19 = vsel %vm536_vm2, %v8762_v45, -inf  ;;  %v2243_v58 = vadd.f32 %v8660_v22, %v1747_v11 }
 0x220   : >> { %6752 = vpow2.f32 %v2578_v29  ;;  %v2562_v27 = vsub.f32 %v8689_v20, %v2507_v43  ;;  %v2327_v32 = vrot.slane %v2326_v19, 4  ;;  %v6618_v36 = vpop.f32.mrf.mxu1  ;;  %v8779_v57 = vmax.f32 %v2311_v28, %v2400_v60 }
 0x221   : >> { %v2317_v24 = vrot.slane %v2316_v54, 1  ;;  %v2322_v30 = vrot.slane %v2321_v25, 2  ;;  %v2406_v20 = vrot.slane %v8768_v51, 2  ;;  %v2460_v40 = vrot.slane %v8744_v13, 7  ;;  %5506 = vrot.lane.b32.xlu0 %v5471_v31, %s7164_s20  ;;  %5508 = vrot.lane.b32.xlu1 %v5472_v7, %s7164_s20  ;;  %v5476_v31 = vld [vmem:[%s7312_s17 + $0x40] sm:$0xff] }
 0x222   : >> { %v2580_v18 = vmul.f32 1.442695, %v2562_v27  ;;  %v2328_v48 = vmax.f32 %v2326_v19, %v2327_v32  ;;  %v1752_v17 = vpop.f32.mrf.mxu1  ;;  %v2511_v60 = vrot.slane %v8779_v57, %v10754_v53  ;;  %v8791_v33 = vadd.f32 %v2259_v37, %v2243_v58  ;;  %v2260_v32 = vld [vmem:[#allocation7 + $0x40] sm:$0xff] }
 0x223   : >> { %v2318_v55 = vmax.f32 %v2316_v54, %v2317_v24  ;;  %v2323_v63 = vmax.f32 %v2321_v25, %v2322_v30  ;;  %v2244_v39 = vadd.f32 %v2191_v23, %v1752_v17  ;;  %v2461_v23 = vsel %vm1309_vm5, %v2460_v40, %v8726_v14 }
 0x224   : >> { %6754 = vpow2.f32 %v2580_v18  ;;  %v2329_v22 = vrot.slane %v2328_v48, 2  ;;  %v6621_v1 = vpop.f32.mrf.mxu1  ;;  %v2563_v13 = vsub.f32 %v8711_v52, %v2511_v60  ;;  %v2333_v43 = vsel %vm536_vm2, %v8791_v33, -inf  ;;  %v7108_v18 = vld [vmem:[#allocation3] sm:$0xff] }
 0x225   : >> { %v8797_v59 = vmax.f32 %v2318_v55, %v2401_v12  ;;  %v2324_v15 = vrot.slane %v2323_v63, 1  ;;  %5510 = vrot.lane.b32.xlu0 %v5473_v35, %s7164_s20  ;;  %5512 = vrot.lane.b32.xlu1 %v5474_v10, %s7164_s20  ;;  %v2462_v25 = vrot.slane %v8759_v4, 6  ;;  %v2334_v27 = vrot.slane %v2333_v43, 4  ;;  %v5475_v4 = vld [vmem:[%s7312_s17 + $0x38] sm:$0xff]  ;;  %v5477_v10 = vld [vmem:[%s7312_s17 + $0x48] sm:$0xff] }
 0x226   : >> { %v2330_v29 = vmax.f32 %v2328_v48, %v2329_v22  ;;  %v1755_v11 = vpop.f32.mrf.mxu1  ;;  %v2582_v52 = vmul.f32 1.442695, %v2563_v13  ;;  %v2464_v30 = vrot.slane %v8779_v57, 5  ;;  %v8831_v60 = vadd.f32 %v2260_v32, %v2244_v39 }
 0x227   : >> { %v2515_v12 = vrot.slane %v8797_v59, %v10754_v53  ;;  %v2325_v54 = vmax.f32 %v2323_v63, %v2324_v15  ;;  %v8816_v14 = vadd.f32 %v2195_v21, %v1755_v11  ;;  %v2335_v21 = vmax.f32 %v2333_v43, %v2334_v27  ;;  %v7109_v11 = vld [vmem:[#allocation3 + $0x8] sm:$0xff] }
 0x228   : >> { %v2331_v19 = vrot.slane %v2330_v29, 1  ;;  %v6622_v36 = vpop.f32.mrf.mxu1  ;;  %6756 = vpow2.f32 %v2582_v52  ;;  %v2466_v55 = vrot.slane %v8797_v59, 4  ;;  %v2463_v39 = vsel %vm1312_vm6, %v2462_v25, %v2461_v23 }
 0x229   : >> { %v6751_v24 = vpop.eup %6750  ;;  %v2564_v58 = vsub.f32 %v8729_v61, %v2515_v12  ;;  %v8822_v37 = vmax.f32 %v2325_v54, %v2402_v56  ;;  %5514 = vrot.lane.b32.xlu0 %v5475_v4, %s7164_s20  ;;  %5516 = vrot.lane.b32.xlu1 %v5476_v31, %s7164_s20  ;;  %v2336_v22 = vrot.slane %v2335_v21, 2  ;;  %v2465_v59 = vsel %vm1315_vm7, %v2464_v30, %v2463_v39 }
 0x22a   : >> { %v2608_v7 = vsel %vm536_vm2, %v6751_v24, 0.0  ;;  %v2756_v48 = vmul.f32 %v7108_v18, %v6751_v24  ;;  %v2332_v26 = vmax.f32 %v2330_v29, %v2331_v19  ;;  %v8827_v17 = vpop.f32.mrf.mxu1  ;;  %v5478_v29 = vld [vmem:[%s7312_s17 + $0x50] sm:$0xff]  ;;  %v8853_v23 = vsel %vm536_vm2, %v8831_v60, -inf  ;;  %v5479_v18 = vld [vmem:[%s7312_s17 + $0x58] sm:$0xff] }
 0x22b   : >> { %v2609_v40 = vrot.slane %v2608_v7, 4  ;;  %v2584_v57 = vmul.f32 1.442695, %v2564_v58  ;;  %v2519_v61 = vrot.slane %v8822_v37, %v10754_v53  ;;  %v2337_v36 = vmax.f32 %v2335_v21, %v2336_v22 }
 0x22c   : >> { %v2772_v56 = vsel %vm536_vm2, %v2756_v48, 0.0  ;;  %v8839_v63 = vmax.f32 %v2332_v26, %v2403_v44  ;;  %v6625_v1 = vpop.f32.mrf.mxu1  ;;  %v7110_v26 = vld [vmem:[#allocation3 + $0x10] sm:$0xff]  ;;  %v2468_v21 = vrot.slane %v8822_v37, 3  ;;  %v2341_v22 = vrot.slane %v8853_v23, 4 }
 0x22d   : >> { %v6753_v13 = vpop.eup %6752  ;;  %v2610_v15 = vadd.f32 %v2609_v40, %v2608_v7  ;;  %v2773_v35 = vrot.slane %v2772_v56, 4  ;;  %6758 = vpow2.f32 %v2584_v57  ;;  %v2565_v12 = vsub.f32 %v8747_v3, %v2519_v61  ;;  %5518 = vrot.lane.b32.xlu0 %v5477_v10, %s7164_s20  ;;  %5520 = vrot.lane.b32.xlu1 %v5478_v29, %s7164_s20 }
 0x22e   : >> { %v2615_v43 = vsel %vm536_vm2, %v6753_v13, 0.0  ;;  %v2757_v52 = vmul.f32 %v7109_v11, %v6753_v13  ;;  %v8847_v44 = vpop.f32.mrf.mxu1  ;;  %v2523_v27 = vrot.slane %v8839_v63, %v10754_v53  ;;  %v2467_v3 = vsel %vm1318_vm8, %v2466_v55, %v2465_v59 }
 0x22f   : >> { %v2774_v54 = vadd.f32 %v2773_v35, %v2772_v56  ;;  %v2616_v19 = vrot.slane %v2615_v43, 4  ;;  %v2586_v32 = vmul.f32 1.442695, %v2565_v12  ;;  %v2611_v58 = vrot.slane %v2610_v15, 2 }
 0x230   : >> { %v2779_v25 = vsel %vm536_vm2, %v2757_v52, 0.0  ;;  %v6626_v24 = vpop.f32.mrf.mxu1  ;;  %v2566_v57 = vsub.f32 %v8762_v45, %v2523_v27  ;;  %v2338_v39 = vrot.slane %v2337_v36, 1 }
 0x231   : >> { %v6755_v30 = vpop.eup %6754  ;;  %v2775_v4 = vrot.slane %v2774_v54, 2  ;;  %v2617_v31 = vadd.f32 %v2616_v19, %v2615_v43  ;;  %v2780_v7 = vrot.slane %v2779_v25, 4  ;;  %6760 = vpow2.f32 %v2586_v32  ;;  %5522 = vrot.lane.b32.xlu0 %v5479_v18, %s7164_s20 }
 0x232   : >> { %v2622_v48 = vsel %vm536_vm2, %v6755_v30, 0.0  ;;  %v2758_v40 = vmul.f32 %v7110_v26, %v6755_v30  ;;  %v8862_v61 = vpop.f32.mrf.mxu1  ;;  %v2588_v35 = vmul.f32 1.442695, %v2566_v57  ;;  %v2612_v29 = vadd.f32 %v2611_v58, %v2610_v15  ;;  %v7111_v15 = vld [vmem:[#allocation3 + $0x18] sm:$0xff] }
 0x233   : >> { %v2618_v56 = vrot.slane %v2617_v31, 2  ;;  %v2781_v55 = vadd.f32 %v2780_v7, %v2779_v25  ;;  %v2623_v1 = vrot.slane %v2622_v48, 4  ;;  %v2776_v43 = vadd.f32 %v2775_v4, %v2774_v54 }
 0x234   : >> { %v2786_v13 = vsel %vm536_vm2, %v2758_v40, 0.0  ;;  %v6629_v10 = vpop.f32.mrf.mxu1  ;;  %6762 = vpow2.f32 %v2588_v35  ;;  %v2339_v19 = vmax.f32 %v2337_v36, %v2338_v39  ;;  %v2470_v24 = vrot.slane %v8839_v63, 2 }
 0x235   : >> { %v2619_v11 = vadd.f32 %v2618_v56, %v2617_v31  ;;  %v2782_v45 = vrot.slane %v2781_v55, 2  ;;  %v6757_v52 = vpop.eup %6756  ;;  %v2624_v59 = vadd.f32 %v2623_v1, %v2622_v48  ;;  %v2787_v12 = vrot.slane %v2786_v13, 4 }
 0x236   : >> { %v8868_v37 = vpop.f32.mrf.mxu1  ;;  %v2629_v32 = vsel %vm536_vm2, %v6757_v52, 0.0  ;;  %v2759_v54 = vmul.f32 %v7111_v15, %v6757_v52  ;;  %v2613_v4 = vrot.slane %v2612_v29, 1  ;;  %v2777_v31 = vrot.slane %v2776_v43, 1 }
 0x237   : >> { %v2620_v27 = vrot.slane %v2619_v11, 1  ;;  %v2783_v25 = vadd.f32 %v2782_v45, %v2781_v55  ;;  %v2625_v30 = vrot.slane %v2624_v59, 2  ;;  %v2788_v7 = vadd.f32 %v2787_v12, %v2786_v13 }
 0x238   : >> { %v2630_v18 = vrot.slane %v2629_v32, 4  ;;  %v6630_v58 = vpop.f32.mrf.mxu1  ;;  %v8874_v36 = vmax.f32 %v2339_v19, %v2404_v62  ;;  %v2793_v55 = vsel %vm536_vm2, %v2759_v54, 0.0  ;;  %v2469_v39 = vsel %vm1321_vm9, %v2468_v21, %v2467_v3 }
 0x239   : >> { %v2784_v48 = vrot.slane %v2783_v25, 1  ;;  %v2626_v40 = vadd.f32 %v2625_v30, %v2624_v59  ;;  %v2789_v57 = vrot.slane %v2788_v7, 2  ;;  %v2621_v1 = vadd.f32 %v2620_v27, %v2619_v11  ;;  %v7112_v59 = vld [vmem:[#allocation3 + $0x20] sm:$0xff] }
 0x23a   : >> { %v6759_v26 = vpop.eup %6758  ;;  %v2631_v56 = vadd.f32 %v2630_v18, %v2629_v32  ;;  %v8877_v63 = vpop.f32.mrf.mxu1  ;;  %v2794_v13 = vrot.slane %v2793_v55, 4  ;;  %v2614_v19 = vadd.f32 %v2613_v4, %v2612_v29  ;;  %v2471_v32 = vsel %vm1324_vm10, %v2470_v24, %v2469_v39 }
 0x23b   : >> { %v2636_v35 = vsel %vm536_vm2, %v6759_v26, 0.0  ;;  %v2785_v10 = vadd.f32 %v2784_v48, %v2783_v25  ;;  %v2627_v45 = vrot.slane %v2626_v40, 1  ;;  %v2760_v30 = vmul.f32 %v7112_v59, %v6759_v26 }
 0x23c   : >> { %v2632_v52 = vrot.slane %v2631_v56, 2  ;;  %v2637_v12 = vrot.slane %v2636_v35, 4  ;;  %v6633_v62 = vpop.f32.mrf.mxu1  ;;  %v2795_v15 = vadd.f32 %v2794_v13, %v2793_v55  ;;  %v2778_v18 = vadd.f32 %v2777_v31, %v2776_v43  ;;  %v7113_v55 = vld [vmem:[#allocation3 + $0x28] sm:$0xff] }
 0x23d   : >> { %v2790_v54 = vadd.f32 %v2789_v57, %v2788_v7  ;;  %v2472_v11 = vrot.slane %v8874_v36, 1  ;;  %v2800_v25 = vsel %vm536_vm2, %v2760_v30, 0.0  ;;  %v2342_v48 = vmax.f32 %v8853_v23, %v2341_v22  ;;  %v7114_v30 = vld [vmem:[#allocation3 + $0x30] sm:$0xff] }
 0x23e   : >> { %v2638_v58 = vadd.f32 %v2637_v12, %v2636_v35  ;;  %v8883_v27 = vpop.f32.mrf.mxu1  ;;  %v6761_v42 = vpop.eup %6760  ;;  %v2633_v3 = vadd.f32 %v2632_v52, %v2631_v56  ;;  %v2796_v21 = vrot.slane %v2795_v15, 2  ;;  %v2736_v29 = vsel %vm1309_vm5, %v2621_v1, %v2614_v19 }
 0x23f   : >> { %v2900_v4 = vsel %vm1309_vm5, %v2785_v10, %v2778_v18  ;;  %v2628_v26 = vadd.f32 %v2627_v45, %v2626_v40  ;;  %v2801_v31 = vrot.slane %v2800_v25, 4  ;;  %v2643_v57 = vsel %vm536_vm2, %v6761_v42, 0.0 }
 0x240   : >> { %v2639_v24 = vrot.slane %v2638_v58, 2  ;;  %v6634_v43 = vpop.f32.mrf.mxu1  ;;  %v2797_v7 = vadd.f32 %v2796_v21, %v2795_v15  ;;  %v2761_v13 = vmul.f32 %v7113_v55, %v6761_v42  ;;  %v2791_v35 = vrot.slane %v2790_v54, 1  ;;  %v2261_v55 = vld [vmem:[#allocation7 + $0x48] sm:$0xff] }
 0x241   : >> { %v2644_v39 = vrot.slane %v2643_v57, 4  ;;  %v2473_v52 = vsel %vm1327_vm11, %v2472_v11, %v2471_v32  ;;  %v6763_v12 = vpop.eup %6762  ;;  %v2634_v23 = vrot.slane %v2633_v3, 1  ;;  %v2802_v22 = vadd.f32 %v2801_v31, %v2800_v25 }
 0x242   : >> { %v2640_v56 = vadd.f32 %v2639_v24, %v2638_v58  ;;  %v2807_v1 = vsel %vm536_vm2, %v2761_v13, 0.0  ;;  %v2527_v40 = vrot.slane %v8874_v36, %v10754_v53  ;;  %v2737_v10 = vsel %vm1312_vm6, %v2628_v26, %v2736_v29 }
 0x243   : >> { %v2798_v45 = vrot.slane %v2797_v7, 1  ;;  %v2645_v62 = vadd.f32 %v2644_v39, %v2643_v57  ;;  %v2808_v19 = vrot.slane %v2807_v1, 4  ;;  %v2803_v42 = vrot.slane %v2802_v22, 2 }
 0x244   : >> { %v2641_v15 = vrot.slane %v2640_v56, 1  ;;  %v2650_v59 = vsel %vm536_vm2, %v6763_v12, 0.0  ;;  %v2762_v18 = vmul.f32 %v7114_v30, %v6763_v12  ;;  %v2490_v21 = vsub.f32 %v8707_v38, %v2473_v52  ;;  %v8899_v38 = vpop.permute.xlu0 %2936 }
 0x245   : >> { %v2646_v32 = vrot.slane %v2645_v62, 2  ;;  %v2809_v58 = vadd.f32 %v2808_v19, %v2807_v1  ;;  %v2651_v11 = vrot.slane %v2650_v59, 4  ;;  %v2792_v25 = vadd.f32 %v2791_v35, %v2790_v54  ;;  %10780 = vst [vmem:[#allocation46_spill] sm:$0xff] %v8899_v38 }
 0x246   : >> { %v2635_v24 = vadd.f32 %v2634_v23, %v2633_v3  ;;  %v2804_v43 = vadd.f32 %v2803_v42, %v2802_v22  ;;  %v2814_v36 = vsel %vm536_vm2, %v2762_v18, 0.0  ;;  %v2799_v29 = vadd.f32 %v2798_v45, %v2797_v7 }
 0x247   : >> { %v2647_v26 = vadd.f32 %v2646_v32, %v2645_v62  ;;  %v2810_v31 = vrot.slane %v2809_v58, 2  ;;  %v2652_v57 = vadd.f32 %v2651_v11, %v2650_v59  ;;  %v2642_v13 = vadd.f32 %v2641_v15, %v2640_v56  ;;  %v2262_v15 = vld [vmem:[#allocation7 + $0x50] sm:$0xff]  ;;  %v2264_v32 = vld [vmem:[#allocation7 + $0x60] sm:$0xff] }
 0x248   : >> { %v2805_v39 = vrot.slane %v2804_v43, 1  ;;  %v2815_v28 = vrot.slane %v2814_v36, 4  ;;  %v2567_v12 = vsub.f32 %v8791_v33, %v2527_v40  ;;  %v2492_v19 = vmul.f32 1.442695, %v2490_v21  ;;  %v8908_v33 = vpop.permute.xlu1 %4808  ;;  %v8914_v42 = vpop.permute.xlu0 %4810 }
 0x249   : >> { %v2648_v30 = vrot.slane %v2647_v26, 1  ;;  %v2653_v1 = vrot.slane %v2652_v57, 2  ;;  %v2343_v6 = vrot.slane %v2342_v48, 2  ;;  %v2901_v54 = vsel %vm1312_vm6, %v2792_v25, %v2900_v4  ;;  %10781 = vst [vmem:[#allocation47_spill] sm:$0xff] %v8908_v33  ;;  %10782 = vst [vmem:[#allocation49_spill] sm:$0xff] %v8914_v42  ;;  %v9261_v33 = vld [vmem:[#allocation5 + $0x8] sm:$0xff] }
 0x24a   : >> { %v2816_v3 = vadd.f32 %v2815_v28, %v2814_v36  ;;  %v2590_v35 = vmul.f32 1.442695, %v2567_v12  ;;  %v8903_v7 = vadd.f32 %v2261_v55, %v8816_v14  ;;  %v2738_v52 = vsel %vm1315_vm7, %v2635_v24, %v2737_v10  ;;  %v2263_v10 = vld [vmem:[#allocation7 + $0x58] sm:$0xff] }
 0x24b   : >> { %v2806_v56 = vadd.f32 %v2805_v39, %v2804_v43  ;;  %v8906_v23 = vadd.f32 %v2810_v31, %v2809_v58  ;;  %v2344_v22 = vmax.f32 %v2342_v48, %v2343_v6  ;;  %v2902_v40 = vsel %vm1315_vm7, %v2799_v29, %v2901_v54 }
 0x24c   : >> { %v2654_v45 = vadd.f32 %v2653_v1, %v2652_v57  ;;  %6764 = vpow2.f32 %v2590_v35  ;;  %v2347_v4 = vsel %vm536_vm2, %v8903_v7, -inf  ;;  %v2739_v28 = vsel %vm1318_vm8, %v2642_v13, %v2738_v52  ;;  %v8940_v34 = vpop.permute.xlu1 %4812  ;;  %v2266_v52 = vld [vmem:[#allocation7 + $0x70] sm:$0xff] }
 0x24d   : >> { %v2649_v62 = vadd.f32 %v2648_v30, %v2647_v26  ;;  %6766 = vpow2.f32 %v2492_v19  ;;  %v2345_v14 = vrot.slane %v2344_v22, 1  ;;  %v2817_v59 = vrot.slane %v2816_v3, 2  ;;  %v2265_v26 = vld [vmem:[#allocation7 + $0x68] sm:$0xff]  ;;  %10783 = vst [vmem:[#allocation51_spill] sm:$0xff] %v8940_v34 }
 0x24e   : >> { %v2348_v6 = vrot.slane %v2347_v4, 4  ;;  %v2246_v48 = vadd.f32 %v8644_v50, %v8827_v17  ;;  %v2247_v18 = vadd.f32 %v8668_v8, %v8847_v44  ;;  %v8921_v58 = vsel %vm1318_vm8, %v2806_v56, %v2902_v40 }
 0x24f   : >> { %v2812_v11 = vrot.slane %v8906_v23, 1  ;;  %v2346_v21 = vmax.f32 %v2344_v22, %v2345_v14  ;;  %v2248_v25 = vadd.f32 %v2207_v2, %v8862_v61  ;;  %v2655_v24 = vrot.slane %v2654_v45, 1 }
 0x250   : >> { %v2349_v43 = vmax.f32 %v2347_v4, %v2348_v6  ;;  %v8928_v36 = vadd.f32 %v2262_v15, %v2246_v48  ;;  %v8930_v50 = vadd.f32 %v2263_v10, %v2247_v18  ;;  %v2740_v8 = vsel %vm1321_vm9, %v2649_v62, %v2739_v28  ;;  %v8961_v15 = vpop.permute.xlu1 %4816 }
 0x251   : >> { %v2436_v17 = vmax.f32 %v2346_v21, %v8768_v51  ;;  %v8934_v44 = vadd.f32 %v2264_v32, %v2248_v25  ;;  %v2249_v29 = vadd.f32 %v2211_v9, %v8868_v37  ;;  %v8942_v2 = vadd.f32 %v2817_v59, %v2816_v3  ;;  %v8951_v9 = vpop.permute.xlu0 %4814  ;;  %10785 = vst [vmem:[#allocation55_spill] sm:$0xff] %v8961_v15 }
 0x252   : >> { %v2350_v61 = vrot.slane %v2349_v43, 2  ;;  %v2354_v31 = vsel %vm536_vm2, %v8928_v36, -inf  ;;  %v2361_v57 = vsel %vm536_vm2, %v8930_v50, -inf  ;;  %10784 = vst [vmem:[#allocation56_spill] sm:$0xff] %v8951_v9  ;;  %v2656_v37 = vadd.f32 %v2655_v24, %v2654_v45  ;;  %v7115_v24 = vld [vmem:[#allocation3 + $0x38] sm:$0xff] }
 0x253   : >> { %v2531_v55 = vrot.slane %v2436_v17, %v10754_v53  ;;  %v2355_v13 = vrot.slane %v2354_v31, 4  ;;  %v2362_v39 = vrot.slane %v2361_v57, 4  ;;  %v2368_v5 = vsel %vm536_vm2, %v8934_v44, -inf }
 0x254   : >> { %v2351_v12 = vmax.f32 %v2349_v43, %v2350_v61  ;;  %v2369_v30 = vrot.slane %v2368_v5, 4  ;;  %v8953_v1 = vadd.f32 %v2265_v26, %v2249_v29  ;;  %v2250_v35 = vadd.f32 %v8701_v47, %v8877_v63 }
 0x255   : >> { %v2568_v19 = vsub.f32 %v8831_v60, %v2531_v55  ;;  %v2356_v54 = vmax.f32 %v2354_v31, %v2355_v13  ;;  %v2363_v3 = vmax.f32 %v2361_v57, %v2362_v39  ;;  %v2819_v56 = vrot.slane %v8942_v2, 1  ;;  %v8968_v32 = vpop.permute.xlu0 %4818 }
 0x256   : >> { %v2352_v22 = vrot.slane %v2351_v12, 1  ;;  %v2370_v40 = vmax.f32 %v2368_v5, %v2369_v30  ;;  %v2375_v4 = vsel %vm536_vm2, %v8953_v1, -inf  ;;  %v8964_v60 = vsel %vm1324_vm10, %v2656_v37, %v2740_v8  ;;  %10786 = vst [vmem:[#allocation54_spill] sm:$0xff] %v8968_v32 }
 0x257   : >> { %v2592_v45 = vmul.f32 1.442695, %v2568_v19  ;;  %v2357_v28 = vrot.slane %v2356_v54, 2  ;;  %v2364_v62 = vrot.slane %v2363_v3, 2  ;;  %v2376_v14 = vrot.slane %v2375_v4, 4 }
 0x258   : >> { %v2353_v10 = vmax.f32 %v2351_v12, %v2352_v22  ;;  %v2371_v59 = vrot.slane %v2370_v40, 2  ;;  %v8966_v47 = vadd.f32 %v2266_v52, %v2250_v35 }
 0x259   : >> { %v6765_v63 = vpop.eup %6764  ;;  %6768 = vpow2.f32 %v2592_v45  ;;  %v2358_v6 = vmax.f32 %v2356_v54, %v2357_v28  ;;  %v2365_v48 = vmax.f32 %v2363_v3, %v2364_v62  ;;  %v2377_v18 = vmax.f32 %v2375_v4, %v2376_v14  ;;  %v8977_v54 = vpop.permute.xlu1 %4820 }
 0x25a   : >> { %v8970_v21 = vpop.eup %6766  ;;  %v2657_v25 = vsel %vm536_vm2, %v6765_v63, 0.0  ;;  %v2763_v43 = vmul.f32 %v7115_v24, %v6765_v63  ;;  %v2437_v8 = vmax.f32 %v2353_v10, %v2405_v46  ;;  %v2372_v29 = vmax.f32 %v2370_v40, %v2371_v59  ;;  %10787 = vst [vmem:[#allocation53_spill] sm:$0xff] %v8977_v54  ;;  %v8985_v62 = vpop.permute.xlu0 %4822 }
 0x25b   : >> { %v2658_v26 = vrot.slane %v2657_v25, 4  ;;  %v2359_v61 = vrot.slane %v2358_v6, 1  ;;  %v2366_v31 = vrot.slane %v2365_v48, 1  ;;  %v2378_v57 = vrot.slane %v2377_v18, 2  ;;  %10789 = vst [vmem:[#allocation50_spill] sm:$0xff] %v8985_v62 }
 0x25c   : >> { %v2821_v55 = vsel %vm536_vm2, %v2763_v43, 0.0  ;;  %v2474_v13 = vrot.slane %v2437_v8, 7  ;;  %v2535_v39 = vrot.slane %v2437_v8, %v10754_v53  ;;  %v2373_v5 = vrot.slane %v2372_v29, 1 }
 0x25d   : >> { %v2659_v37 = vadd.f32 %v2658_v26, %v2657_v25  ;;  %v2822_v12 = vrot.slane %v2821_v55, 4  ;;  %v2360_v30 = vmax.f32 %v2358_v6, %v2359_v61  ;;  %v2367_v19 = vmax.f32 %v2365_v48, %v2366_v31  ;;  %v8995_v61 = vpop.permute.xlu1 %4824 }
 0x25e   : >> { %v2475_v3 = vsel %vm1309_vm5, %v2474_v13, %v2436_v17  ;;  %v2569_v46 = vsub.f32 %v8903_v7, %v2535_v39  ;;  %v2374_v35 = vmax.f32 %v2372_v29, %v2373_v5  ;;  %v2379_v52 = vmax.f32 %v2377_v18, %v2378_v57  ;;  %10791 = vst [vmem:[#allocation57_spill] sm:$0xff] %v8995_v61 }
 0x25f   : >> { %v2660_v22 = vrot.slane %v2659_v37, 2  ;;  %v2823_v40 = vadd.f32 %v2822_v12, %v2821_v55  ;;  %v2438_v4 = vmax.f32 %v2360_v30, %v2406_v20  ;;  %v10788_v45 = vrot.slane %v8768_v51, 3  ;;  %v9003_v30 = vpop.permute.xlu0 %4826 }
 0x260   : >> { %v2594_v14 = vmul.f32 1.442695, %v2569_v46  ;;  %v10790_v10 = vrot.slane %v8768_v51, 4  ;;  %v2380_v63 = vrot.slane %v2379_v52, 1  ;;  %v2382_v7 = vsel %vm536_vm2, %v8966_v47, -inf  ;;  %10792 = vst [vmem:[#allocation58_spill] sm:$0xff] %v9003_v30 }
 0x261   : >> { %v2439_v28 = vmax.f32 %v2367_v19, %v10788_v45  ;;  %v2661_v17 = vadd.f32 %v2660_v22, %v2659_v37  ;;  %v2824_v6 = vrot.slane %v2823_v40, 2  ;;  %v2476_v48 = vrot.slane %v2438_v4, 6  ;;  %v7123_v30 = vld [vmem:[#allocation3 + $0x78] sm:$0xff] }
 0x262   : >> { %v2440_v59 = vmax.f32 %v2374_v35, %v10790_v10  ;;  %v2539_v18 = vrot.slane %v2438_v4, %v10754_v53  ;;  %6770 = vpow2.f32 %v2594_v14  ;;  %v2381_v13 = vmax.f32 %v2379_v52, %v2380_v63  ;;  %v9018_v63 = vpop.permute.xlu1 %4828 }
 0x263   : >> { %v2478_v20 = vrot.slane %v2439_v28, 5  ;;  %v2543_v25 = vrot.slane %v2439_v28, %v10754_v53  ;;  %v2662_v43 = vrot.slane %v2661_v17, 1  ;;  %v2825_v8 = vadd.f32 %v2824_v6, %v2823_v40  ;;  %v7116_v40 = vld [vmem:[#allocation3 + $0x40] sm:$0xff]  ;;  %10794 = vst [vmem:[#allocation59_spill] sm:$0xff] %v9018_v63 }
 0x264   : >> { %v2480_v24 = vrot.slane %v2440_v59, 4  ;;  %v2477_v29 = vsel %vm1312_vm6, %v2476_v48, %v2475_v3  ;;  %v2570_v26 = vsub.f32 %v8928_v36, %v2539_v18  ;;  %v2547_v55 = vrot.slane %v2440_v59, %v10754_v53  ;;  %v3705_v59 = vpop.f32.mrf.mxu0 }
 0x265   : >> { %v2479_v31 = vsel %vm1315_vm7, %v2478_v20, %v2477_v29  ;;  %v2571_v57 = vsub.f32 %v8930_v50, %v2543_v25  ;;  %v2663_v39 = vadd.f32 %v2662_v43, %v2661_v17  ;;  %v2251_v12 = vadd.f32 %v8714_v49, %v8883_v27  ;;  %v9033_v25 = vpop.permute.xlu0 %4830 }
 0x266   : >> { %v2596_v5 = vmul.f32 1.442695, %v2570_v26  ;;  %v2481_v37 = vsel %vm1318_vm8, %v2480_v24, %v2479_v31  ;;  %v6769_v19 = vpop.eup %6768  ;;  %v2826_v36 = vrot.slane %v2825_v8, 1  ;;  %v2572_v46 = vsub.f32 %v8934_v44, %v2547_v55  ;;  %10795 = vst [vmem:[#allocation60_spill] sm:$0xff] %v9033_v25  ;;  %v9044_v55 = vpop.f32.mrf.mxu0 }
 0x267   : >> { %v2598_v3 = vmul.f32 1.442695, %v2571_v57  ;;  %v10793_v35 = vrot.slane %v8768_v51, 5  ;;  %v2742_v52 = vsel %vm1327_vm11, %v2663_v39, %v8964_v60  ;;  %v2664_v22 = vsel %vm536_vm2, %v6769_v19, 0.0  ;;  %v2267_v60 = vld [vmem:[#allocation7 + $0x78] sm:$0xff] }
 0x268   : >> { %v2764_v4 = vmul.f32 %v7116_v40, %v6769_v19  ;;  %v2383_v45 = vrot.slane %v2382_v7, 4  ;;  %v9012_v49 = vadd.f32 %v8970_v21, %v2742_v52  ;;  %v2665_v27 = vrot.slane %v2664_v22, 4 }
 0x269   : >> { %v2441_v50 = vmax.f32 %v2381_v13, %v10793_v35  ;;  %6772 = vpow2.f32 %v2596_v5  ;;  %v2600_v28 = vmul.f32 1.442695, %v2572_v46  ;;  %v2813_v44 = vadd.f32 %v2812_v11, %v8906_v23  ;;  %v9027_v23 = vld [vmem:[%s10569_s4] sm:$0x3] }
 0x26a   : >> { %v2828_v14 = vsel %vm536_vm2, %v2764_v4, 0.0  ;;  %6774 = vpow2.f32 %v2598_v3  ;;  %v2820_v17 = vadd.f32 %v2819_v56, %v8942_v2  ;;  %v2666_v6 = vadd.f32 %v2665_v27, %v2664_v22  ;;  %v9060_v27 = vpop.permute.xlu0 %4834 }
 0x26b   : >> { %v2482_v10 = vrot.slane %v2441_v50, 3  ;;  %6776 = vrcp.f32 %v9012_v49  ;;  %v2829_v48 = vrot.slane %v2828_v14, 4  ;;  %v2551_v18 = vrot.slane %v2441_v50, %v10754_v53  ;;  %v7117_v50 = vld [vmem:[#allocation3 + $0x48] sm:$0xff]  ;;  %10798 = vst [vmem:[#allocation63_spill] sm:$0xff] %v9060_v27 }
 0x26c   : >> { %6778 = vpow2.f32 %v2600_v28  ;;  %v2384_v20 = vmax.f32 %v2382_v7, %v2383_v45  ;;  %v2827_v24 = vadd.f32 %v2826_v36, %v2825_v8  ;;  %v2667_v2 = vrot.slane %v2666_v6, 2  ;;  %v9054_v36 = vpop.permute.xlu1 %4832  ;;  %v3709_v45 = vpop.f32.mrf.mxu0 }
 0x26d   : >> { %v9030_v11 = vsel %vm1321_vm9, %v2482_v10, %v2481_v37  ;;  %v2830_v56 = vadd.f32 %v2829_v48, %v2828_v14  ;;  %v9035_v43 = vadd.f32 %v2267_v60, %v2251_v12  ;;  %v2904_v29 = vsel %vm1321_vm9, %v2813_v44, %v8921_v58  ;;  %v9049_v37 = vld [vmem:[#allocation5] sm:$0xff]  ;;  %10797 = vst [vmem:[#allocation62_spill] sm:$0xff] %v9054_v36 }
 0x26e   : >> { %v2573_v26 = vsub.f32 %v8953_v1, %v2551_v18  ;;  %v2385_v31 = vrot.slane %v2384_v20, 2  ;;  %v9042_v57 = vrot.slane %v9027_v23, %v10754_v53  ;;  %v2905_v7 = vsel %vm1324_vm10, %v2820_v17, %v2904_v29 }
 0x26f   : >> { %v2668_v13 = vadd.f32 %v2667_v2, %v2666_v6  ;;  %v2831_v8 = vrot.slane %v2830_v56, 2  ;;  %v2389_v39 = vsel %vm536_vm2, %v9035_v43, -inf  ;;  %v6771_v5 = vpop.eup %6770  ;;  %v2906_v3 = vsel %vm1327_vm11, %v2827_v24, %v2905_v7 }
 0x270   : >> { %v2602_v58 = vmul.f32 1.442695, %v2573_v26  ;;  %v2386_v12 = vmax.f32 %v2384_v20, %v2385_v31  ;;  %v2390_v1 = vrot.slane %v2389_v39, 4  ;;  %v9052_v19 = vadd.f32 %v3705_v59, %v9042_v57 }
 0x271   : >> { %v2832_v46 = vadd.f32 %v2831_v8, %v2830_v56  ;;  %v2671_v35 = vsel %vm536_vm2, %v6771_v5, 0.0  ;;  %v2765_v52 = vmul.f32 %v7117_v50, %v6771_v5  ;;  %v2669_v22 = vrot.slane %v2668_v13, 1  ;;  %v7118_v8 = vld [vmem:[#allocation3 + $0x50] sm:$0xff]  ;;  %v9082_v50 = vpop.permute.xlu0 %4838 }
 0x272   : >> { %10796 = vst [vmem:[#allocation61_spill] sm:$0xff] %v9052_v19  ;;  %v2672_v40 = vrot.slane %v2671_v35, 4  ;;  %6780 = vpow2.f32 %v2602_v58  ;;  %v2387_v4 = vrot.slane %v2386_v12, 1  ;;  %3896 = vrot.lane.b32.xlu1 %v9052_v19, %s7166_s22  ;;  %v2754_v28 = vmul.f32 %v8970_v21, %v9049_v37  ;;  %v9073_v21 = vpop.permute.xlu1 %4836  ;;  %v9077_v58 = vpop.f32.mrf.mxu0  ;;  %10801 = vst [vmem:[#allocation66_spill] sm:$0xff] %v9082_v50 }
 0x273   : >> { %v2833_v44 = vrot.slane %v2832_v46, 1  ;;  %v2835_v14 = vsel %vm536_vm2, %v2765_v52, 0.0  ;;  %v9065_v10 = vmax.f32 %v2389_v39, %v2390_v1  ;;  %v2410_v6 = vrot.slane %v8768_v51, 6  ;;  %10800 = vst [vmem:[#allocation65_spill] sm:$0xff] %v9073_v21 }
 0x274   : >> { %v2673_v60 = vadd.f32 %v2672_v40, %v2671_v35  ;;  %v2836_v59 = vrot.slane %v2835_v14, 4  ;;  %v2388_v17 = vmax.f32 %v2386_v12, %v2387_v4  ;;  %v2916_v48 = vadd.f32 %v2906_v3, %v2754_v28  ;;  %v7119_v4 = vld [vmem:[#allocation3 + $0x58] sm:$0xff] }
 0x275   : >> { %v9069_v18 = vadd.f32 %v3709_v45, %v9042_v57  ;;  %v2670_v24 = vadd.f32 %v2669_v22, %v2668_v13  ;;  %v2834_v31 = vadd.f32 %v2833_v44, %v2832_v46  ;;  %v2392_v5 = vrot.slane %v9065_v10, 2 }
 0x276   : >> { %v6773_v20 = vpop.eup %6772  ;;  %v2674_v2 = vrot.slane %v2673_v60, 2  ;;  %v2837_v56 = vadd.f32 %v2836_v59, %v2835_v14  ;;  %v9071_v29 = vmax.f32 %v2388_v17, %v2410_v6 }
 0x277   : >> { %10799 = vst [vmem:[#allocation64_spill] sm:$0xff] %v9069_v18  ;;  %v6775_v26 = vpop.eup %6774  ;;  %v2678_v7 = vsel %vm536_vm2, %v6773_v20, 0.0  ;;  %v2766_v39 = vmul.f32 %v7118_v8, %v6773_v20  ;;  %3898 = vrot.lane.b32.xlu0 %v9069_v18, %s7166_s22 }
 0x278   : >> { %v6777_v13 = vpop.eup %6776  ;;  %v2675_v12 = vadd.f32 %v2674_v2, %v2673_v60  ;;  %v2838_v1 = vrot.slane %v2837_v56, 2  ;;  %v2679_v3 = vrot.slane %v2678_v7, 4  ;;  %v2685_v35 = vsel %vm536_vm2, %v6775_v26, 0.0  ;;  %v9088_v2 = vpop.f32.mrf.mxu0 }
 0x279   : >> { %v6779_v46 = vpop.eup %6778  ;;  %v2920_v52 = vmul.f32 %v6777_v13, %v9012_v49  ;;  %v2842_v22 = vsel %vm536_vm2, %v2766_v39, 0.0  ;;  %v2686_v40 = vrot.slane %v2685_v35, 4  ;;  %v2767_v45 = vmul.f32 %v7119_v4, %v6775_v26  ;;  %v9090_v39 = vpop.permute.xlu1 %4888 }
 0x27a   : >> { %v2676_v28 = vrot.slane %v2675_v12, 1  ;;  %v2839_v44 = vadd.f32 %v2838_v1, %v2837_v56  ;;  %v2680_v14 = vadd.f32 %v2679_v3, %v2678_v7  ;;  %v2843_v59 = vrot.slane %v2842_v22, 4 }
 0x27b   : >> { %v2922_v17 = vsub.f32 2.0, %v2920_v52  ;;  %v2687_v60 = vadd.f32 %v2686_v40, %v2685_v35  ;;  %v2849_v6 = vsel %vm536_vm2, %v2767_v45, 0.0  ;;  %v2692_v20 = vsel %vm536_vm2, %v6779_v46, 0.0  ;;  %v9093_v52 = vpop.permute.xlu0 %4890 }
 0x27c   : >> { %v2677_v8 = vadd.f32 %v2676_v28, %v2675_v12  ;;  %v2840_v25 = vrot.slane %v2839_v44, 1  ;;  %v2681_v49 = vrot.slane %v2680_v14, 2  ;;  %v2844_v63 = vadd.f32 %v2843_v59, %v2842_v22  ;;  %v9097_v22 = vpop.f32.mrf.mxu0 }
 0x27d   : >> { %v2924_v41 = vmul.f32 %v6777_v13, %v2922_v17  ;;  %v2688_v26 = vrot.slane %v2687_v60, 2  ;;  %v2850_v4 = vrot.slane %v2849_v6, 4  ;;  %v2693_v56 = vrot.slane %v2692_v20, 4 }
 0x27e   : >> { %v2743_v7 = vsel %vm1309_vm5, %v2677_v8, %v2670_v24  ;;  %v2841_v1 = vadd.f32 %v2840_v25, %v2839_v44  ;;  %v2682_v3 = vadd.f32 %v2681_v49, %v2680_v14  ;;  %v2845_v35 = vrot.slane %v2844_v63, 2 }
 0x27f   : >> { %v6781_v40 = vpop.eup %6780  ;;  %v9095_v45 = vmul.f32 %v2924_v41, %v2916_v48  ;;  %v2689_v12 = vadd.f32 %v2688_v26, %v2687_v60  ;;  %v2851_v28 = vadd.f32 %v2850_v4, %v2849_v6  ;;  %v2694_v38 = vadd.f32 %v2693_v56, %v2692_v20  ;;  %v9105_v20 = vpop.permute.xlu1 %4892  ;;  %v7121_v56 = vld [vmem:[#allocation3 + $0x68] sm:$0xff] }
 0x280   : >> { %v2907_v13 = vsel %vm1309_vm5, %v2841_v1, %v2834_v31  ;;  %v2683_v59 = vrot.slane %v2682_v3, 1  ;;  %v2846_v17 = vadd.f32 %v2845_v35, %v2844_v63  ;;  %v2768_v27 = vmul.f32 %v7120_v0, %v6779_v46  ;;  %10802 = vst [vmem:[#allocation67_spill] sm:$0xff] %v9105_v20  ;;  %v9107_v46 = vpop.f32.mrf.mxu0 }
 0x281   : >> { %5910 = vst.msk [vmem:[#allocation5] sm:$0xff] %vm536_vm2, %v9095_v45  ;;  %v2690_v25 = vrot.slane %v2689_v12, 1  ;;  %v2852_v24 = vrot.slane %v2851_v28, 2  ;;  %v2695_v44 = vrot.slane %v2694_v38, 2  ;;  %v2393_v41 = vmax.f32 %v9065_v10, %v2392_v5  ;;  %v9110_v5 = vpop.permute.xlu0 %4894 }
 0x282   : >> { %v2684_v48 = vadd.f32 %v2683_v59, %v2682_v3  ;;  %v2847_v14 = vrot.slane %v2846_v17, 1  ;;  %v2856_v60 = vsel %vm536_vm2, %v2768_v27, 0.0  ;;  %v2699_v6 = vsel %vm536_vm2, %v6781_v40, 0.0  ;;  %10803 = vst [vmem:[#allocation68_spill] sm:$0xff] %v9110_v5 }
 0x283   : >> { %v2691_v31 = vadd.f32 %v2690_v25, %v2689_v12  ;;  %v2853_v63 = vadd.f32 %v2852_v24, %v2851_v28  ;;  %v2696_v8 = vadd.f32 %v2695_v44, %v2694_v38  ;;  %v2857_v0 = vrot.slane %v2856_v60, 4  ;;  %v9116_v44 = vpop.f32.mrf.mxu0 }
 0x284   : >> { %v2744_v49 = vsel %vm1312_vm6, %v2684_v48, %v2743_v7  ;;  %v2848_v26 = vadd.f32 %v2847_v14, %v2846_v17  ;;  %v2700_v4 = vrot.slane %v2699_v6, 4  ;;  %v2769_v10 = vmul.f32 %v7121_v56, %v6781_v40 }
 0x285   : >> { %v2745_v27 = vsel %vm1315_vm7, %v2691_v31, %v2744_v49  ;;  %v2854_v1 = vrot.slane %v2853_v63, 1  ;;  %v2697_v3 = vrot.slane %v2696_v8, 1  ;;  %v2858_v35 = vadd.f32 %v2857_v0, %v2856_v60 }
 0x286   : >> { %v2908_v12 = vsel %vm1312_vm6, %v2848_v26, %v2907_v13  ;;  %v2701_v28 = vadd.f32 %v2700_v4, %v2699_v6  ;;  %v2863_v38 = vsel %vm536_vm2, %v2769_v10, 0.0  ;;  %v2484_v59 = vrot.slane %v9071_v29, 2  ;;  %v9122_v6 = vpop.permute.xlu1 %4896 }
 0x287   : >> { %v2855_v25 = vadd.f32 %v2854_v1, %v2853_v63  ;;  %v2698_v7 = vadd.f32 %v2697_v3, %v2696_v8  ;;  %v2859_v17 = vrot.slane %v2858_v35, 2  ;;  %v2864_v24 = vrot.slane %v2863_v38, 4  ;;  %10804 = vst [vmem:[#allocation69_spill] sm:$0xff] %v9122_v6  ;;  %v9130_v1 = vpop.f32.mrf.mxu0 }
 0x288   : >> { %v2702_v40 = vrot.slane %v2701_v28, 2  ;;  %v2485_v48 = vsel %vm1324_vm10, %v2484_v59, %v9030_v11  ;;  %v2555_v14 = vrot.slane %v9071_v29, %v10754_v53  ;;  %v2394_v60 = vrot.slane %v2393_v41, 1  ;;  %v3765_v13 = vpop.f32.mrf.mxu1  ;;  %v9128_v11 = vpop.permute.xlu0 %4898 }
 0x289   : >> { %v2909_v31 = vsel %vm1315_vm7, %v2855_v25, %v2908_v12  ;;  %v2746_v63 = vsel %vm1318_vm8, %v2698_v7, %v2745_v27  ;;  %v2860_v8 = vadd.f32 %v2859_v17, %v2858_v35  ;;  %v2865_v0 = vadd.f32 %v2864_v24, %v2863_v38  ;;  %10805 = vst [vmem:[#allocation70_spill] sm:$0xff] %v9128_v11  ;;  %v10806_v35 = vld [vmem:[#allocation11_spill] sm:$0xff] }
 0x28a   : >> { %v2703_v49 = vadd.f32 %v2702_v40, %v2701_v28  ;;  %v2574_v26 = vsub.f32 %v8966_v47, %v2555_v14  ;;  %v2395_v4 = vmax.f32 %v2393_v41, %v2394_v60  ;;  %v2411_v56 = vrot.slane %v8768_v51, 7  ;;  %v3767_v3 = vpop.f32.mrf.mxu1  ;;  %v9134_v7 = vpop.permute.xlu1 %4900 }
 0x28b   : >> { %v2861_v10 = vrot.slane %v2860_v8, 1  ;;  %v2866_v29 = vrot.slane %v2865_v0, 2  ;;  %v3543_v38 = vsub.s32 1, %v10806_v35  ;;  %10807 = vst [vmem:[#allocation71_spill] sm:$0xff] %v9134_v7  ;;  %v9137_v40 = vpop.f32.mrf.mxu0 }
 0x28c   : >> { %v2704_v59 = vrot.slane %v2703_v49, 1  ;;  %v2604_v36 = vmul.f32 1.442695, %v2574_v26  ;;  %v2443_v12 = vmax.f32 %v2395_v4, %v2411_v56  ;;  %v3769_v14 = vpop.f32.mrf.mxu1 }
 0x28d   : >> { %v2862_v25 = vadd.f32 %v2861_v10, %v2860_v8  ;;  %v2867_v27 = vadd.f32 %v2866_v29, %v2865_v0  ;;  %v9148_v4 = vrot.slane %v9027_v23, %v3543_v38  ;;  %v9154_v10 = vadd.f32 %v3769_v14, %v9042_v57 }
 0x28e   : >> { %v2705_v28 = vadd.f32 %v2704_v59, %v2703_v49  ;;  %6782 = vpow2.f32 %v2604_v36  ;;  %v2486_v47 = vrot.slane %v2443_v12, 1  ;;  %v2559_v41 = vrot.slane %v2443_v12, %v10754_v53  ;;  %v9144_v49 = vpop.permute.xlu0 %4902  ;;  %v9169_v23 = vpop.permute.xlu1 %4904 }
 0x28f   : >> { %v2910_v17 = vsel %vm1318_vm8, %v2862_v25, %v2909_v31  ;;  %v2868_v24 = vrot.slane %v2867_v27, 1  ;;  %10808 = vst [vmem:[#allocation72_spill] sm:$0xff] %v9144_v49  ;;  %v9151_v31 = vadd.f32 %v3765_v13, %v9042_v57  ;;  %10810 = vst [vmem:[#allocation74_spill] sm:$0xff] %v9154_v10  ;;  %3922 = vrot.lane.b32.xlu0 %v9154_v10, %s7166_s22 }
 0x290   : >> { %v9140_v60 = vsel %vm1321_vm9, %v2705_v28, %v2746_v63  ;;  %v2487_v8 = vsel %vm1327_vm11, %v2486_v47, %v2485_v48  ;;  %v2575_v0 = vsub.f32 %v9035_v43, %v2559_v41  ;;  %v9159_v48 = vpop.f32.mrf.mxu0  ;;  %v3771_v43 = vpop.f32.mrf.mxu1  ;;  %10811 = vst [vmem:[#allocation75_spill] sm:$0xff] %v9169_v23  ;;  %v9173_v29 = vadd.f32 %v9077_v58, %v9148_v4  ;;  %v7122_v47 = vld [vmem:[#allocation3 + $0x70] sm:$0xff] }
 0x291   : >> { %v2869_v36 = vadd.f32 %v2868_v24, %v2867_v27  ;;  %v2491_v26 = vsub.f32 %v8768_v51, %v2487_v8  ;;  %10809 = vst [vmem:[#allocation73_spill] sm:$0xff] %v9151_v31  ;;  %3920 = vrot.lane.b32.xlu1 %v9151_v31, %s7166_s22  ;;  %v9167_v51 = vadd.f32 %v9044_v55, %v9148_v4 }
 0x292   : >> { %v2606_v56 = vmul.f32 1.442695, %v2575_v0  ;;  %v9175_v59 = vpop.permute.xlu0 %4906  ;;  %v9177_v12 = vpop.f32.mrf.mxu0  ;;  %v9184_v55 = vadd.f32 %v3767_v3, %v9148_v4  ;;  %v9187_v27 = vadd.f32 %v3771_v43, %v9148_v4  ;;  %v9202_v14 = vadd.f32 %v9088_v2, %v9042_v57 }
 0x293   : >> { %v9157_v63 = vsel %vm1321_vm9, %v2869_v36, %v2910_v17  ;;  %10812 = vst [vmem:[#allocation76_spill] sm:$0xff] %v9175_v59  ;;  %3978 = vrot.lane.b32.xlu0 %v9173_v29, %s7166_s22  ;;  %v9193_v38 = vpop.permute.xlu1 %4908  ;;  %v2494_v17 = vmul.f32 1.442695, %v2491_v26  ;;  %v9207_v36 = vadd.f32 %v9107_v46, %v9042_v57 }
 0x294   : >> { %6784 = vpow2.f32 %v2606_v56  ;;  %v3775_v13 = vpop.f32.mrf.mxu1  ;;  %10813 = vst [vmem:[#allocation77_spill] sm:$0xff] %v9184_v55  ;;  %10814 = vst [vmem:[#allocation78_spill] sm:$0xff] %v9187_v27  ;;  %v9189_v58 = vpop.f32.mrf.mxu0 }
 0x295   : >> { %3976 = vrot.lane.b32.xlu1 %v9167_v51, %s7166_s22  ;;  %10815 = vst [vmem:[#allocation79_spill] sm:$0xff] %v9193_v38  ;;  %10817 = vst [vmem:[#allocation81_spill] sm:$0xff] %v9202_v14  ;;  %6786 = vpow2.f32 %v2494_v17 }
 0x296   : >> { %v3777_v25 = vpop.f32.mrf.mxu1  ;;  %v9198_v3 = vpop.permute.xlu0 %4910  ;;  %10818 = vst [vmem:[#allocation82_spill] sm:$0xff] %v9207_v36  ;;  %6788 = vtanh.f32 %v9095_v45  ;;  %v9301_v45 = vadd.f32 %v9189_v58, %v9042_v57 }
 0x297   : >> { %4002 = vrot.lane.b32.xlu0 %v9187_v27, %s7166_s22  ;;  %10816 = vst [vmem:[#allocation80_spill] sm:$0xff] %v9198_v3  ;;  %v9209_v26 = vpop.f32.mrf.mxu0  ;;  %v9240_v50 = vadd.f32 %v3777_v25, %v9148_v4 }
 0x298   : >> { %v3779_v8 = vpop.f32.mrf.mxu1 }
 0x299   : >> { %4000 = vrot.lane.b32.xlu1 %v9184_v55, %s7166_s22  ;;  %v9219_v2 = vadd.f32 %v3779_v8, %v9042_v57  ;;  %v3739_v32 = vpop.f32.mrf.mxu0  ;;  %10825 = vst [vmem:[#allocation89_spill] sm:$0xff] %v9240_v50 }
 0x29a   : >> { %v9224_v62 = vpop.permute.xlu0 %4914 }
 0x29b   : >> { %v6783_v35 = vpop.eup %6782  ;;  %3902 = vrot.lane.b32.xlu0 %v9207_v36, %s7166_s22  ;;  %10820 = vst [vmem:[#allocation84_spill] sm:$0xff] %v9219_v2  ;;  %10822 = vst [vmem:[#allocation86_spill] sm:$0xff] %v9224_v62  ;;  %v3741_v34 = vpop.f32.mrf.mxu0 }
 0x29c   : >> { %v2706_v28 = vsel %vm536_vm2, %v6783_v35, 0.0  ;;  %v2770_v41 = vmul.f32 %v7122_v47, %v6783_v35  ;;  %v9214_v35 = vadd.f32 %v3775_v13, %v9042_v57  ;;  %v9317_v58 = vadd.f32 %v3741_v34, %v9148_v4 }
 0x29d   : >> { %v2707_v24 = vrot.slane %v2706_v28, 4  ;;  %3900 = vrot.lane.b32.xlu1 %v9202_v14, %s7166_s22 }
 0x29e   : >> { %v2870_v0 = vsel %vm536_vm2, %v2770_v41, 0.0  ;;  %10819 = vst [vmem:[#allocation83_spill] sm:$0xff] %v9214_v35 }
 0x29f   : >> { %v2708_v56 = vadd.f32 %v2707_v24, %v2706_v28  ;;  %v2871_v43 = vrot.slane %v2870_v0, 4  ;;  %v9221_v28 = vpop.permute.xlu1 %4912  ;;  %3926 = vrot.lane.b32.xlu0 %v9219_v2, %s7166_s22 }
 0x2a0   : >> { %10821 = vst [vmem:[#allocation85_spill] sm:$0xff] %v9221_v28 }
 0x2a1   : >> { %v6785_v47 = vpop.eup %6784  ;;  %v2709_v46 = vrot.slane %v2708_v56, 2  ;;  %v2872_v41 = vadd.f32 %v2871_v43, %v2870_v0  ;;  %3924 = vrot.lane.b32.xlu1 %v9214_v35, %s7166_s22  ;;  %v9231_v0 = vadd.f32 %v9097_v22, %v9148_v4 }
 0x2a2   : >> { %v2713_v24 = vsel %vm536_vm2, %v6785_v47, 0.0  ;;  %v2771_v61 = vmul.f32 %v7123_v30, %v6785_v47 }
 0x2a3   : >> { %v2710_v13 = vadd.f32 %v2709_v46, %v2708_v56  ;;  %v2873_v54 = vrot.slane %v2872_v41, 2  ;;  %v2714_v17 = vrot.slane %v2713_v24, 4  ;;  %10823 = vst [vmem:[#allocation87_spill] sm:$0xff] %v9231_v0  ;;  %v3781_v56 = vpop.f32.mrf.mxu1  ;;  %v9237_v46 = vadd.f32 %v9116_v44, %v9148_v4  ;;  %v9242_v42 = vpop.permute.xlu1 %4916 }
 0x2a4   : >> { %v2877_v8 = vsel %vm536_vm2, %v2771_v61, 0.0  ;;  %10826 = vst [vmem:[#allocation90_spill] sm:$0xff] %v9242_v42  ;;  %v9251_v44 = vadd.f32 %v3781_v56, %v9148_v4  ;;  %v6787_v56 = vpop.eup %6786 }
 0x2a5   : >> { %v2711_v43 = vrot.slane %v2710_v13, 1  ;;  %v2874_v30 = vadd.f32 %v2873_v54, %v2872_v41  ;;  %v2715_v47 = vadd.f32 %v2714_v17, %v2713_v24  ;;  %v2878_v15 = vrot.slane %v2877_v8, 4  ;;  %10824 = vst [vmem:[#allocation88_spill] sm:$0xff] %v9237_v46  ;;  %3980 = vrot.lane.b32.xlu1 %v9231_v0, %s7166_s22  ;;  %v9246_v54 = vpop.permute.xlu0 %4918  ;;  %3982 = vrot.lane.b32.xlu0 %v9237_v46, %s7166_s22 }
 0x2a6   : >> { %10827 = vst [vmem:[#allocation91_spill] sm:$0xff] %v9246_v54  ;;  %10828 = vst [vmem:[#allocation92_spill] sm:$0xff] %v9251_v44 }
 0x2a7   : >> { %v2712_v61 = vadd.f32 %v2711_v43, %v2710_v13  ;;  %v2875_v21 = vrot.slane %v2874_v30, 1  ;;  %v2716_v9 = vrot.slane %v2715_v47, 2  ;;  %v2879_v22 = vadd.f32 %v2878_v15, %v2877_v8  ;;  %v3745_v13 = vpop.f32.mrf.mxu0 }
 0x2a8   : >> { %v9331_v38 = vadd.f32 %v3745_v13, %v9042_v57 }
 0x2a9   : >> { %v2748_v25 = vsel %vm1324_vm10, %v2712_v61, %v9140_v60  ;;  %v2876_v41 = vadd.f32 %v2875_v21, %v2874_v30  ;;  %v2717_v24 = vadd.f32 %v2716_v9, %v2715_v47  ;;  %v2880_v15 = vrot.slane %v2879_v22, 2  ;;  %4004 = vrot.lane.b32.xlu1 %v9240_v50, %s7166_s22  ;;  %4006 = vrot.lane.b32.xlu0 %v9251_v44, %s7166_s22  ;;  %v9267_v21 = vpop.permute.xlu1 %5050  ;;  %v9273_v47 = vpop.permute.xlu0 %5048 }
 0x2aa   : >> { %v9265_v9 = vadd.f32 %v9130_v1, %v9042_v57  ;;  %10829 = vst [vmem:[#allocation93_spill] sm:$0xff] %v9267_v21  ;;  %v9271_v30 = vadd.f32 %v9159_v48, %v9042_v57  ;;  %10830 = vst [vmem:[#allocation94_spill] sm:$0xff] %v9273_v47  ;;  %v9285_v48 = vadd.f32 %v9137_v40, %v9148_v4 }
 0x2ab   : >> { %v2912_v17 = vsel %vm1324_vm10, %v2876_v41, %v9157_v63  ;;  %v2718_v8 = vrot.slane %v2717_v24, 1  ;;  %v2881_v43 = vadd.f32 %v2880_v15, %v2879_v22  ;;  %v3747_v63 = vpop.f32.mrf.mxu0 }
 0x2ac   : >> { %v9342_v7 = vadd.f32 %v3747_v63, %v9148_v4 }
 0x2ad   : >> { %v2719_v3 = vadd.f32 %v2718_v8, %v2717_v24  ;;  %v2882_v60 = vrot.slane %v2881_v43, 1  ;;  %3904 = vrot.lane.b32.xlu1 %v9265_v9, %s7166_s22  ;;  %v2755_v24 = vmul.f32 %v6787_v56, %v9261_v33  ;;  %3906 = vrot.lane.b32.xlu0 %v9271_v30, %s7166_s22  ;;  %v3749_v15 = vpop.f32.mrf.mxu0  ;;  %v9291_v8 = vpop.permute.xlu1 %5054 }
 0x2ae   : >> { %10831 = vst [vmem:[#allocation95_spill] sm:$0xff] %v9291_v8 }
 0x2af   : >> { %v2749_v61 = vsel %vm1327_vm11, %v2719_v3, %v2748_v25  ;;  %v2883_v22 = vadd.f32 %v2882_v60, %v2881_v43  ;;  %v9289_v25 = vadd.f32 %v9177_v12, %v9148_v4  ;;  %v9295_v43 = vpop.permute.xlu0 %5052  ;;  %v3751_v40 = vpop.f32.mrf.mxu0  ;;  %v9312_v12 = vadd.f32 %v9209_v26, %v9148_v4 }
 0x2b0   : >> { %v2753_v41 = vadd.f32 %v6787_v56, %v2749_v61  ;;  %10832 = vst [vmem:[#allocation96_spill] sm:$0xff] %v9295_v43  ;;  %v6789_v26 = vpop.eup %6788  ;;  %v9337_v23 = vadd.f32 %v3751_v40, %v9148_v4 }
 0x2b1   : >> { %v2913_v1 = vsel %vm1327_vm11, %v2883_v22, %v2912_v17  ;;  %3984 = vrot.lane.b32.xlu1 %v9285_v48, %s7166_s22  ;;  %3986 = vrot.lane.b32.xlu0 %v9289_v25, %s7166_s22  ;;  %v9304_v17 = vadd.f32 %v3739_v32, %v9042_v57  ;;  %v9314_v56 = vpop.permute.xlu1 %5058  ;;  %v3755_v60 = vpop.f32.mrf.mxu0  ;;  %v9326_v32 = vadd.f32 %v3749_v15, %v9042_v57 }
 0x2b2   : >> { %v2917_v3 = vadd.f32 %v2913_v1, %v2755_v24  ;;  %6790 = vrcp.f32 %v2753_v41  ;;  %10833 = vst [vmem:[#allocation97_spill] sm:$0xff] %v9314_v56 }
 0x2b3   : >> { %v9319_v61 = vpop.permute.xlu0 %5056  ;;  %v3757_v22 = vpop.f32.mrf.mxu0 }
 0x2b4   : >> { %10834 = vst [vmem:[#allocation98_spill] sm:$0xff] %v9319_v61 }
 0x2b5   : >> { %3908 = vrot.lane.b32.xlu1 %v9301_v45, %s7166_s22  ;;  %3910 = vrot.lane.b32.xlu0 %v9304_v17, %s7166_s22  ;;  %v9328_v1 = vpop.permute.xlu1 %5062  ;;  %v3759_v15 = vpop.f32.mrf.mxu0 }
 0x2b6   : >> { %10835 = vst [vmem:[#allocation99_spill] sm:$0xff] %v9328_v1 }
 0x2b7   : >> { %v9334_v59 = vpop.permute.xlu0 %5060 }
 0x2b8   : >> { %10836 = vst [vmem:[#allocation100_spill] sm:$0xff] %v9334_v59 }
 0x2b9   : >> { %3988 = vrot.lane.b32.xlu1 %v9312_v12, %s7166_s22  ;;  %3990 = vrot.lane.b32.xlu0 %v9317_v58, %s7166_s22  ;;  %v9351_v40 = vpop.permute.xlu1 %5066 }
 0x2ba   : >> { %10838 = vst [vmem:[#allocation102_spill] sm:$0xff] %v9351_v40 }
 0x2bb   : >> { %v9353_v59 = vpop.permute.xlu0 %5064 }
 0x2bc   : >> { %10839 = vst [vmem:[#allocation103_spill] sm:$0xff] %v9353_v59 }
 0x2bd   : >> { %2957 = vrot.lane.b32.xlu1 %v6789_v26, %s7164_s20  ;;  %3914 = vrot.lane.b32.xlu0 %v9326_v32, %s7166_s22  ;;  %v3761_v26 = vpop.f32.mrf.mxu0  ;;  %v9366_v63 = vpop.permute.xlu1 %5070 }
 0x2be   : >> { %10842 = vst [vmem:[#allocation106_spill] sm:$0xff] %v9366_v63 }
 0x2bf   : >> { %v6791_v24 = vpop.eup %6790 }
 0x2c0   : >> { %v2921_v34 = vmul.f32 %v6791_v24, %v2753_v41  ;;  %v9349_v41 = vadd.f32 %v3759_v15, %v9042_v57 }
 0x2c1   : >> { %3912 = vrot.lane.b32.xlu1 %v9331_v38, %s7166_s22  ;;  %3994 = vrot.lane.b32.xlu0 %v9337_v23, %s7166_s22 }
 0x2c2   : >> { %v2923_v49 = vsub.f32 2.0, %v2921_v34  ;;  %10837 = vst [vmem:[#allocation101_spill] sm:$0xff] %v9349_v41  ;;  %v9356_v34 = vadd.f32 %v3755_v60, %v9042_v57  ;;  %v9373_v57 = vpop.permute.xlu0 %5068  ;;  %v9379_v60 = vpop.permute.xlu1 %5074 }
 0x2c3   : >> { %10844 = vst [vmem:[#allocation108_spill] sm:$0xff] %v9373_v57  ;;  %10845 = vst [vmem:[#allocation109_spill] sm:$0xff] %v9379_v60 }
 0x2c4   : >> { %v2925_v13 = vmul.f32 %v6791_v24, %v2923_v49  ;;  %10840 = vst [vmem:[#allocation104_spill] sm:$0xff] %v9356_v34  ;;  %v9364_v49 = vadd.f32 %v3761_v26, %v9148_v4 }
 0x2c5   : >> { %3992 = vrot.lane.b32.xlu1 %v9342_v7, %s7166_s22  ;;  %3918 = vrot.lane.b32.xlu0 %v9349_v41, %s7166_s22 }
 0x2c6   : >> { %v2927_v1 = vmul.f32 %v2925_v13, %v2917_v3  ;;  %10841 = vst [vmem:[#allocation105_spill] sm:$0xff] %v9364_v49  ;;  %v9369_v3 = vadd.f32 %v3757_v22, %v9148_v4  ;;  %v9381_v24 = vpop.permute.xlu0 %5072  ;;  %v9384_v4 = vpop.permute.xlu1 %5078 }
 0x2c7   : >> { %10846 = vst [vmem:[#allocation110_spill] sm:$0xff] %v9381_v24  ;;  %10847 = vst [vmem:[#allocation111_spill] sm:$0xff] %v9384_v4 }
 0x2c8   : >> { %6792 = vtanh.f32 %v2927_v1  ;;  %5911 = vst.msk [vmem:[#allocation5 + $0x8] sm:$0xff] %vm536_vm2, %v2927_v1  ;;  %10843 = vst [vmem:[#allocation107_spill] sm:$0xff] %v9369_v3 }
 0x2c9   : >> { %3916 = vrot.lane.b32.xlu1 %v9356_v34, %s7166_s22  ;;  %3998 = vrot.lane.b32.xlu0 %v9364_v49, %s7166_s22 }
 0x2ca   : >> { %v9386_v22 = vpop.permute.xlu0 %5076  ;;  %v9388_v15 = vpop.permute.xlu1 %5500 }
 0x2cb   : >> { %10848 = vst [vmem:[#allocation112_spill] sm:$0xff] %v9386_v22  ;;  %10849 = vst [vmem:[#allocation113_spill] sm:$0xff] %v9388_v15 }
 0x2cd   : >> { %3996 = vrot.lane.b32.xlu1 %v9369_v3, %s7166_s22 }
 0x2ce   : >> { %v9390_v13 = vpop.permute.xlu0 %5502  ;;  %v9392_v26 = vpop.permute.xlu1 %5504 }
 0x2cf   : >> { %10850 = vst [vmem:[#allocation114_spill] sm:$0xff] %v9390_v13  ;;  %10851 = vst [vmem:[#allocation115_spill] sm:$0xff] %v9392_v26 }
 0x2d2   : >> { %v9394_v63 = vpop.permute.xlu0 %5506  ;;  %v9396_v57 = vpop.permute.xlu1 %5508 }
 0x2d3   : >> { %10852 = vst [vmem:[#allocation116_spill] sm:$0xff] %v9394_v63  ;;  %10853 = vst [vmem:[#allocation117_spill] sm:$0xff] %v9396_v57 }
 0x2d5   : >> { %v6793_v1 = vpop.eup %6792 }
 0x2d6   : >> { %2959 = vrot.lane.b32.xlu0 %v6793_v1, %s7164_s20  ;;  %v9398_v40 = vpop.permute.xlu0 %5510  ;;  %v9400_v59 = vpop.permute.xlu1 %5512 }
 0x2d7   : >> { %10854 = vst [vmem:[#allocation118_spill] sm:$0xff] %v9398_v40  ;;  %10855 = vst [vmem:[#allocation119_spill] sm:$0xff] %v9400_v59 }
 0x2da   : >> { %v9402_v56 = vpop.permute.xlu0 %5514  ;;  %v9404_v1 = vpop.permute.xlu1 %5516 }
 0x2db   : >> { %10856 = vst [vmem:[#allocation120_spill] sm:$0xff] %v9402_v56  ;;  %10857 = vst [vmem:[#allocation121_spill] sm:$0xff] %v9404_v1 }
 0x2de   : >> { %v9406_v61 = vpop.permute.xlu0 %5518  ;;  %v9408_v11 = vpop.permute.xlu1 %5520 }
 0x2df   : >> { %10858 = vst [vmem:[#allocation122_spill] sm:$0xff] %v9406_v61  ;;  %10859 = vst [vmem:[#allocation123_spill] sm:$0xff] %v9408_v11 }
 0x2e2   : >> { %v9410_v15 = vpop.permute.xlu0 %5522 }
 0x2e3   : >> { %10860 = vst [vmem:[#allocation124_spill] sm:$0xff] %v9410_v15 }
 0x2e4   : >> { %v9412_v13 = vpop.permute.xlu1 %3896 }
 0x2e9   : >> { %v9414_v26 = vpop.permute.xlu0 %3898 }
 0x301   : >> { %v9418_v57 = vpop.permute.xlu0 %3922 }
 0x303   : >> { %v9416_v63 = vpop.permute.xlu1 %3920 }
 0x305   : >> { %v3979_v56 = vpop.permute.xlu0 %3978 }
 0x306   : >> { %v4025_v1 = vmax.f32 %v9069_v18, %v3979_v56 }
 0x307   : >> { %v3977_v40 = vpop.permute.xlu1 %3976 }
 0x308   : >> { %v4024_v59 = vmax.f32 %v9052_v19, %v3977_v40  ;;  %4058 = vrot.lane.b32.xlu0 %v4025_v1, %s7165_s21 }
 0x309   : >> { %v4003_v11 = vpop.permute.xlu0 %4002 }
 0x30a   : >> { %4056 = vrot.lane.b32.xlu1 %v4024_v59, %s7165_s21  ;;  %v4037_v6 = vmax.f32 %v9154_v10, %v4003_v11 }
 0x30b   : >> { %v4001_v61 = vpop.permute.xlu1 %4000 }
 0x30c   : >> { %v4036_v15 = vmax.f32 %v9151_v31, %v4001_v61  ;;  %4082 = vrot.lane.b32.xlu0 %v4037_v6, %s7165_s21 }
 0x30d   : >> { %v9430_v40 = vpop.permute.xlu0 %3902 }
 0x30e   : >> { %4080 = vrot.lane.b32.xlu1 %v4036_v15, %s7165_s21 }
 0x30f   : >> { %v9427_v4 = vpop.permute.xlu1 %3900 }
 0x311   : >> { %v9434_v56 = vpop.permute.xlu0 %3926 }
 0x313   : >> { %v9432_v22 = vpop.permute.xlu1 %3924 }
 0x317   : >> { %v3981_v59 = vpop.permute.xlu1 %3980  ;;  %v3983_v8 = vpop.permute.xlu0 %3982 }
 0x318   : >> { %v4026_v1 = vmax.f32 %v9202_v14, %v3981_v59  ;;  %v4027_v61 = vmax.f32 %v9207_v36, %v3983_v8 }
 0x31a   : >> { %4060 = vrot.lane.b32.xlu1 %v4026_v1, %s7165_s21  ;;  %4062 = vrot.lane.b32.xlu0 %v4027_v61, %s7165_s21 }
 0x31b   : >> { %v4005_v11 = vpop.permute.xlu1 %4004  ;;  %v4007_v6 = vpop.permute.xlu0 %4006 }
 0x31c   : >> { %v4038_v15 = vmax.f32 %v9214_v35, %v4005_v11  ;;  %v4039_v43 = vmax.f32 %v9219_v2, %v4007_v6 }
 0x31e   : >> { %4084 = vrot.lane.b32.xlu1 %v4038_v15, %s7165_s21  ;;  %4086 = vrot.lane.b32.xlu0 %v4039_v43, %s7165_s21 }
 0x31f   : >> { %v9443_v54 = vpop.permute.xlu1 %3904  ;;  %v9446_v59 = vpop.permute.xlu0 %3906 }
 0x323   : >> { %v3985_v42 = vpop.permute.xlu1 %3984  ;;  %v3987_v1 = vpop.permute.xlu0 %3986 }
 0x324   : >> { %v4028_v8 = vmax.f32 %v9265_v9, %v3985_v42  ;;  %v4029_v5 = vmax.f32 %v9271_v30, %v3987_v1 }
 0x326   : >> { %4064 = vrot.lane.b32.xlu1 %v4028_v8, %s7165_s21  ;;  %4066 = vrot.lane.b32.xlu0 %v4029_v5, %s7165_s21 }
 0x327   : >> { %v9451_v61 = vpop.permute.xlu1 %3908  ;;  %v9454_v11 = vpop.permute.xlu0 %3910 }
 0x32b   : >> { %v3989_v15 = vpop.permute.xlu1 %3988  ;;  %v3991_v43 = vpop.permute.xlu0 %3990 }
 0x32c   : >> { %v4030_v6 = vmax.f32 %v9301_v45, %v3989_v15  ;;  %v4031_v20 = vmax.f32 %v9304_v17, %v3991_v43 }
 0x32e   : >> { %4068 = vrot.lane.b32.xlu1 %v4030_v6, %s7165_s21  ;;  %4070 = vrot.lane.b32.xlu0 %v4031_v20, %s7165_s21 }
 0x32f   : >> { %v9459_v42 = vpop.permute.xlu1 %2957  ;;  %v9462_v1 = vpop.permute.xlu0 %3914 }
 0x330   : >> { %10861 = vst [vmem:[#allocation125_spill] sm:$0xff] %v9459_v42 }
 0x333   : >> { %v9464_v8 = vpop.permute.xlu1 %3912  ;;  %v3995_v60 = vpop.permute.xlu0 %3994 }
 0x334   : >> { %v4033_v5 = vmax.f32 %v9326_v32, %v3995_v60 }
 0x336   : >> { %4074 = vrot.lane.b32.xlu0 %v4033_v5, %s7165_s21  ;;  %v3945_v5 = vmax.f32 %v9069_v18, %v9414_v26 }
 0x337   : >> { %v3993_v24 = vpop.permute.xlu1 %3992  ;;  %v9469_v53 = vpop.permute.xlu0 %3918 }
 0x338   : >> { %v4032_v15 = vmax.f32 %v9331_v38, %v3993_v24  ;;  %v3944_v24 = vmax.f32 %v9052_v19, %v9412_v13 }
 0x33a   : >> { %4072 = vrot.lane.b32.xlu1 %v4032_v15, %s7165_s21 }
 0x33b   : >> { %v9472_v6 = vpop.permute.xlu1 %3916  ;;  %v3999_v43 = vpop.permute.xlu0 %3998 }
 0x33c   : >> { %v4035_v20 = vmax.f32 %v9349_v41, %v3999_v43  ;;  %v3956_v43 = vmax.f32 %v9151_v31, %v9416_v63 }
 0x33e   : >> { %4078 = vrot.lane.b32.xlu0 %v4035_v20, %s7165_s21 }
 0x33f   : >> { %v3997_v42 = vpop.permute.xlu1 %3996 }
 0x340   : >> { %v4034_v21 = vmax.f32 %v9356_v34, %v3997_v42 }
 0x342   : >> { %4076 = vrot.lane.b32.xlu1 %v4034_v21, %s7165_s21  ;;  %v3957_v21 = vmax.f32 %v9154_v10, %v9418_v57  ;;  %v3946_v57 = vmax.f32 %v9202_v14, %v9427_v4  ;;  %v3959_v4 = vmax.f32 %v9219_v2, %v9434_v56 }
 0x348   : >> { %v9478_v60 = vpop.permute.xlu0 %2959 }
 0x349   : >> { %10862 = vst [vmem:[#allocation126_spill] sm:$0xff] %v9478_v60 }
 0x37a   : >> { %v4059_v62 = vpop.permute.xlu0 %4058 }
 0x37b   : >> { %v4105_v28 = vmax.f32 %v3945_v5, %v4059_v62 }
 0x37c   : >> { %v4057_v15 = vpop.permute.xlu1 %4056 }
 0x37d   : >> { %v4104_v47 = vmax.f32 %v3944_v24, %v4057_v15  ;;  %v9492_v42 = vmax.f32 %v4105_v28, %v9173_v29 }
 0x37e   : >> { %v4083_v26 = vpop.permute.xlu0 %4082 }
 0x37f   : >> { %v9487_v20 = vmax.f32 %v4104_v47, %v9167_v51  ;;  %v4117_v24 = vmax.f32 %v3957_v21, %v4083_v26  ;;  %4202 = vrot.lane.b32.xlu0 %v9492_v42, %s7164_s20  ;;  %v3958_v21 = vmax.f32 %v9214_v35, %v9432_v22 }
 0x380   : >> { %v4081_v13 = vpop.permute.xlu1 %4080 }
 0x381   : >> { %v4116_v60 = vmax.f32 %v3956_v43, %v4081_v13  ;;  %4200 = vrot.lane.b32.xlu1 %v9487_v20, %s7164_s20  ;;  %v9502_v47 = vmax.f32 %v4117_v24, %v9187_v27 }
 0x383   : >> { %v9499_v62 = vmax.f32 %v4116_v60, %v9184_v55  ;;  %10864 = vst [vmem:[#allocation128_spill] sm:$0xff] %v9502_v47  ;;  %4226 = vrot.lane.b32.xlu0 %v9502_v47, %s7164_s20  ;;  %v3947_v60 = vmax.f32 %v9207_v36, %v9430_v40 }
 0x385   : >> { %10863 = vst [vmem:[#allocation127_spill] sm:$0xff] %v9499_v62  ;;  %4224 = vrot.lane.b32.xlu1 %v9499_v62, %s7164_s20 }
 0x387   : >> { %4298 = vrot.lane.b32.xlu0 %v9492_v42, %s7165_s21 }
 0x389   : >> { %4296 = vrot.lane.b32.xlu1 %v9487_v20, %s7165_s21 }
 0x38b   : >> { %4322 = vrot.lane.b32.xlu0 %v9502_v47, %s7165_s21 }
 0x38c   : >> { %v4061_v28 = vpop.permute.xlu1 %4060  ;;  %v4063_v63 = vpop.permute.xlu0 %4062 }
 0x38d   : >> { %4320 = vrot.lane.b32.xlu1 %v9499_v62, %s7165_s21  ;;  %v4106_v5 = vmax.f32 %v3946_v57, %v4061_v28  ;;  %v4107_v15 = vmax.f32 %v3947_v60, %v4063_v63  ;;  %v3948_v57 = vmax.f32 %v9265_v9, %v9443_v54 }
 0x38f   : >> { %4394 = vrot.lane.b32.xlu0 %v9492_v42, %s7166_s22  ;;  %v9533_v40 = vmax.f32 %v4106_v5, %v9231_v0  ;;  %v9536_v24 = vmax.f32 %v4107_v15, %v9237_v46  ;;  %v3949_v5 = vmax.f32 %v9271_v30, %v9446_v59 }
 0x390   : >> { %v4085_v43 = vpop.permute.xlu1 %4084  ;;  %v4087_v13 = vpop.permute.xlu0 %4086 }
 0x391   : >> { %4392 = vrot.lane.b32.xlu1 %v9487_v20, %s7166_s22  ;;  %10865 = vst [vmem:[#allocation129_spill] sm:$0xff] %v9533_v40  ;;  %v4118_v26 = vmax.f32 %v3958_v21, %v4085_v43  ;;  %10866 = vst [vmem:[#allocation130_spill] sm:$0xff] %v9536_v24  ;;  %v4119_v28 = vmax.f32 %v3959_v4, %v4087_v13  ;;  %v3950_v13 = vmax.f32 %v9301_v45, %v9451_v61 }
 0x393   : >> { %4418 = vrot.lane.b32.xlu0 %v9502_v47, %s7166_s22  ;;  %v9543_v22 = vmax.f32 %v4118_v26, %v9240_v50  ;;  %v9546_v56 = vmax.f32 %v4119_v28, %v9251_v44  ;;  %v3951_v26 = vmax.f32 %v9304_v17, %v9454_v11 }
 0x395   : >> { %4416 = vrot.lane.b32.xlu1 %v9499_v62, %s7166_s22  ;;  %10867 = vst [vmem:[#allocation131_spill] sm:$0xff] %v9543_v22  ;;  %10868 = vst [vmem:[#allocation132_spill] sm:$0xff] %v9546_v56  ;;  %v5201_v62 = vrot.slane %v9049_v37, %v10711_v16 }
 0x397   : >> { %4206 = vrot.lane.b32.xlu0 %v9536_v24, %s7164_s20 }
 0x398   : >> { %v4065_v63 = vpop.permute.xlu1 %4064  ;;  %v4067_v60 = vpop.permute.xlu0 %4066 }
 0x399   : >> { %4204 = vrot.lane.b32.xlu1 %v9533_v40, %s7164_s20  ;;  %v4108_v15 = vmax.f32 %v3948_v57, %v4065_v63  ;;  %v4109_v43 = vmax.f32 %v3949_v5, %v4067_v60  ;;  %v3952_v60 = vmax.f32 %v9331_v38, %v9464_v8 }
 0x39b   : >> { %4230 = vrot.lane.b32.xlu0 %v9546_v56, %s7164_s20  ;;  %v9573_v54 = vmax.f32 %v4108_v15, %v9285_v48  ;;  %v9576_v21 = vmax.f32 %v4109_v43, %v9289_v25  ;;  %v3953_v15 = vmax.f32 %v9326_v32, %v9462_v1 }
 0x39d   : >> { %4228 = vrot.lane.b32.xlu1 %v9543_v22, %s7164_s20  ;;  %10869 = vst [vmem:[#allocation133_spill] sm:$0xff] %v9573_v54  ;;  %10870 = vst [vmem:[#allocation134_spill] sm:$0xff] %v9576_v21 }
 0x39f   : >> { %4302 = vrot.lane.b32.xlu0 %v9536_v24, %s7165_s21 }
 0x3a0   : >> { %v4069_v59 = vpop.permute.xlu1 %4068  ;;  %v4071_v4 = vpop.permute.xlu0 %4070 }
 0x3a1   : >> { %4300 = vrot.lane.b32.xlu1 %v9533_v40, %s7165_s21  ;;  %v4110_v28 = vmax.f32 %v3950_v13, %v4069_v59  ;;  %v4111_v63 = vmax.f32 %v3951_v26, %v4071_v4  ;;  %v3954_v4 = vmax.f32 %v9356_v34, %v9472_v6 }
 0x3a3   : >> { %4326 = vrot.lane.b32.xlu0 %v9546_v56, %s7165_s21  ;;  %v9595_v61 = vmax.f32 %v4110_v28, %v9312_v12  ;;  %v9598_v57 = vmax.f32 %v4111_v63, %v9317_v58  ;;  %v3955_v28 = vmax.f32 %v9349_v41, %v9469_v53 }
 0x3a5   : >> { %4324 = vrot.lane.b32.xlu1 %v9543_v22, %s7165_s21  ;;  %10871 = vst [vmem:[#allocation135_spill] sm:$0xff] %v9595_v61  ;;  %10872 = vst [vmem:[#allocation136_spill] sm:$0xff] %v9598_v57 }
 0x3a7   : >> { %4398 = vrot.lane.b32.xlu0 %v9536_v24, %s7166_s22 }
 0x3a8   : >> { %v4075_v5 = vpop.permute.xlu0 %4074 }
 0x3a9   : >> { %4396 = vrot.lane.b32.xlu1 %v9533_v40, %s7166_s22  ;;  %v4113_v59 = vmax.f32 %v3953_v15, %v4075_v5 }
 0x3ab   : >> { %4422 = vrot.lane.b32.xlu0 %v9546_v56, %s7166_s22  ;;  %v9620_v13 = vmax.f32 %v4113_v59, %v9337_v23  ;;  %v10877_v56 = vld [vmem:[#allocation85_spill] sm:$0xff] }
 0x3ac   : >> { %v4073_v11 = vpop.permute.xlu1 %4072 }
 0x3ad   : >> { %4420 = vrot.lane.b32.xlu1 %v9543_v22, %s7166_s22  ;;  %v4112_v43 = vmax.f32 %v3952_v60, %v4073_v11  ;;  %10874 = vst [vmem:[#allocation138_spill] sm:$0xff] %v9620_v13 }
 0x3af   : >> { %4210 = vrot.lane.b32.xlu0 %v9576_v21, %s7164_s20  ;;  %v9617_v8 = vmax.f32 %v4112_v43, %v9342_v7 }
 0x3b0   : >> { %v4079_v26 = vpop.permute.xlu0 %4078 }
 0x3b1   : >> { %4208 = vrot.lane.b32.xlu1 %v9573_v54, %s7164_s20  ;;  %10873 = vst [vmem:[#allocation137_spill] sm:$0xff] %v9617_v8  ;;  %v4115_v11 = vmax.f32 %v3955_v28, %v4079_v26 }
 0x3b3   : >> { %4306 = vrot.lane.b32.xlu0 %v9576_v21, %s7165_s21  ;;  %v9642_v60 = vmax.f32 %v4115_v11, %v9364_v49 }
 0x3b4   : >> { %v4077_v1 = vpop.permute.xlu1 %4076 }
 0x3b5   : >> { %4304 = vrot.lane.b32.xlu1 %v9573_v54, %s7165_s21  ;;  %v4114_v63 = vmax.f32 %v3954_v4, %v4077_v1  ;;  %10876 = vst [vmem:[#allocation140_spill] sm:$0xff] %v9642_v60 }
 0x3b7   : >> { %4402 = vrot.lane.b32.xlu0 %v9576_v21, %s7166_s22  ;;  %v9639_v6 = vmax.f32 %v4114_v63, %v9369_v3 }
 0x3b9   : >> { %4400 = vrot.lane.b32.xlu1 %v9573_v54, %s7166_s22  ;;  %10875 = vst [vmem:[#allocation139_spill] sm:$0xff] %v9639_v6 }
 0x3bb   : >> { %4214 = vrot.lane.b32.xlu0 %v9598_v57, %s7164_s20 }
 0x3bd   : >> { %4212 = vrot.lane.b32.xlu1 %v9595_v61, %s7164_s20 }
 0x3bf   : >> { %4310 = vrot.lane.b32.xlu0 %v9598_v57, %s7165_s21 }
 0x3c1   : >> { %4308 = vrot.lane.b32.xlu1 %v9595_v61, %s7165_s21 }
 0x3c3   : >> { %4406 = vrot.lane.b32.xlu0 %v9598_v57, %s7166_s22  ;;  %v5243_v57 = vcombine.high %v9261_v33, %v9261_v33 }
 0x3c5   : >> { %4404 = vrot.lane.b32.xlu1 %v9595_v61, %s7166_s22  ;;  %v5209_v61 = vcombine.high %v5201_v62, %v5201_v62  ;;  %v5257_v49 = vrot.slane %v5243_v57, %v10711_v16  ;;  %v10880_v57 = vld [vmem:[#allocation93_spill] sm:$0xff] }
 0x3c7   : >> { %4218 = vrot.lane.b32.xlu0 %v9620_v13, %s7164_s20 }
 0x3c9   : >> { %4216 = vrot.lane.b32.xlu1 %v9617_v8, %s7164_s20 }
 0x3cb   : >> { %4314 = vrot.lane.b32.xlu0 %v9620_v13, %s7165_s21 }
 0x3cd   : >> { %4312 = vrot.lane.b32.xlu1 %v9617_v8, %s7165_s21 }
 0x3cf   : >> { %4410 = vrot.lane.b32.xlu0 %v9620_v13, %s7166_s22 }
 0x3d1   : >> { %4408 = vrot.lane.b32.xlu1 %v9617_v8, %s7166_s22 }
 0x3d3   : >> { %4222 = vrot.lane.b32.xlu0 %v9642_v60, %s7164_s20 }
 0x3d5   : >> { %4220 = vrot.lane.b32.xlu1 %v9639_v6, %s7164_s20 }
 0x3d7   : >> { %4318 = vrot.lane.b32.xlu0 %v9642_v60, %s7165_s21 }
 0x3d9   : >> { %4316 = vrot.lane.b32.xlu1 %v9639_v6, %s7165_s21 }
 0x3db   : >> { %4414 = vrot.lane.b32.xlu0 %v9642_v60, %s7166_s22 }
 0x3dd   : >> { %4412 = vrot.lane.b32.xlu1 %v9639_v6, %s7166_s22 }
 0x3f1   : >> { %v4203_v15 = vpop.permute.xlu0 %4202 }
 0x3f2   : >> { %v4249_v43 = vsub.f32 %v9069_v18, %v4203_v15 }
 0x3f3   : >> { %v4201_v53 = vpop.permute.xlu1 %4200 }
 0x3f4   : >> { %v4248_v5 = vsub.f32 %v9052_v19, %v4201_v53  ;;  %v4266_v1 = vmul.f32 1.442695, %v4249_v43 }
 0x3f5   : >> { %v4227_v28 = vpop.permute.xlu0 %4226 }
 0x3f6   : >> { %v4264_v59 = vmul.f32 1.442695, %v4248_v5  ;;  %v4261_v63 = vsub.f32 %v9154_v10, %v4227_v28 }
 0x3f7   : >> { %v4225_v4 = vpop.permute.xlu1 %4224 }
 0x3f8   : >> { %6794 = vpow2.f32 %v4264_v59  ;;  %v4260_v26 = vsub.f32 %v9151_v31, %v4225_v4  ;;  %v4290_v6 = vmul.f32 1.442695, %v4261_v63 }
 0x3f9   : >> { %6796 = vpow2.f32 %v4266_v1  ;;  %v4299_v53 = vpop.permute.xlu0 %4298 }
 0x3fa   : >> { %v4288_v11 = vmul.f32 1.442695, %v4260_v26  ;;  %v4345_v15 = vsub.f32 %v9069_v18, %v4299_v53 }
 0x3fb   : >> { %v4297_v13 = vpop.permute.xlu1 %4296 }
 0x3fc   : >> { %6798 = vpow2.f32 %v4288_v11  ;;  %v4344_v60 = vsub.f32 %v9052_v19, %v4297_v13  ;;  %v4362_v43 = vmul.f32 1.442695, %v4345_v15 }
 0x3fd   : >> { %6800 = vpow2.f32 %v4290_v6  ;;  %v4323_v4 = vpop.permute.xlu0 %4322 }
 0x3fe   : >> { %v4360_v5 = vmul.f32 1.442695, %v4344_v60  ;;  %v4357_v1 = vsub.f32 %v9154_v10, %v4323_v4 }
 0x3ff   : >> { %v4321_v8 = vpop.permute.xlu1 %4320 }
 0x400   : >> { %6802 = vpow2.f32 %v4360_v5  ;;  %v4356_v59 = vsub.f32 %v9151_v31, %v4321_v8  ;;  %v4386_v28 = vmul.f32 1.442695, %v4357_v1 }
 0x401   : >> { %6804 = vpow2.f32 %v4362_v43  ;;  %v4395_v11 = vpop.permute.xlu0 %4394 }
 0x402   : >> { %v4384_v26 = vmul.f32 1.442695, %v4356_v59  ;;  %v4441_v60 = vsub.f32 %v9173_v29, %v4395_v11 }
 0x403   : >> { %v4393_v63 = vpop.permute.xlu1 %4392 }
 0x404   : >> { %6806 = vpow2.f32 %v4384_v26  ;;  %v4440_v13 = vsub.f32 %v9167_v51, %v4393_v63  ;;  %v4458_v8 = vmul.f32 1.442695, %v4441_v60 }
 0x405   : >> { %v6795_v6 = vpop.eup %6794  ;;  %6808 = vpow2.f32 %v4386_v28  ;;  %v4419_v59 = vpop.permute.xlu0 %4418 }
 0x406   : >> { %v6797_v53 = vpop.eup %6796  ;;  %v4456_v15 = vmul.f32 1.442695, %v4440_v13  ;;  %4552 = vrot.lane.b32.xlu1 %v6795_v6, %s7166_s22  ;;  %v4453_v1 = vsub.f32 %v9187_v27, %v4419_v59  ;;  %v4936_v47 = vmul.f32 %v6795_v6, %v9090_v39 }
 0x407   : >> { %v4417_v5 = vpop.permute.xlu1 %4416  ;;  %4554 = vrot.lane.b32.xlu0 %v6797_v53, %s7166_s22  ;;  %v4937_v31 = vmul.f32 %v6797_v53, %v9093_v52  ;;  %v10878_v52 = vld [vmem:[#allocation86_spill] sm:$0xff] }
 0x408   : >> { %6810 = vpow2.f32 %v4456_v15  ;;  %v4452_v43 = vsub.f32 %v9184_v55, %v4417_v5  ;;  %v4482_v63 = vmul.f32 1.442695, %v4453_v1 }
 0x409   : >> { %v6799_v4 = vpop.eup %6798  ;;  %6812 = vpow2.f32 %v4458_v8  ;;  %v4207_v15 = vpop.permute.xlu0 %4206 }
 0x40a   : >> { %v6801_v26 = vpop.eup %6800  ;;  %v4480_v28 = vmul.f32 1.442695, %v4452_v43  ;;  %4576 = vrot.lane.b32.xlu1 %v6799_v4, %s7166_s22  ;;  %v4948_v22 = vmul.f32 %v6799_v4, %v10877_v56  ;;  %v4251_v39 = vsub.f32 %v9207_v36, %v4207_v15  ;;  %v10879_v4 = vld [vmem:[#allocation94_spill] sm:$0xff] }
 0x40b   : >> { %4578 = vrot.lane.b32.xlu0 %v6801_v26, %s7166_s22  ;;  %v4205_v60 = vpop.permute.xlu1 %4204  ;;  %v4949_v53 = vmul.f32 %v6801_v26, %v10878_v52 }
 0x40c   : >> { %6814 = vpow2.f32 %v4480_v28  ;;  %v4250_v21 = vsub.f32 %v9202_v14, %v4205_v60  ;;  %v5259_v60 = vcombine.high %v5257_v49, %v5257_v49  ;;  %v4270_v24 = vmul.f32 1.442695, %v4251_v39  ;;  %v10882_v39 = vld [vmem:[#allocation110_spill] sm:$0xff] }
 0x40d   : >> { %v6803_v13 = vpop.eup %6802  ;;  %6816 = vpow2.f32 %v4482_v63  ;;  %v4231_v1 = vpop.permute.xlu0 %4230 }
 0x40e   : >> { %v6805_v11 = vpop.eup %6804  ;;  %4632 = vrot.lane.b32.xlu1 %v6803_v13, %s7165_s21  ;;  %v4268_v3 = vmul.f32 1.442695, %v4250_v21  ;;  %v5096_v15 = vmul.f32 %v6803_v13, %v10879_v4  ;;  %v4263_v26 = vsub.f32 %v9219_v2, %v4231_v1  ;;  %v9724_v13 = vrot.slane %v5259_v60, %v10711_v16 }
 0x40f   : >> { %4634 = vrot.lane.b32.xlu0 %v6805_v11, %s7165_s21  ;;  %v4229_v43 = vpop.permute.xlu1 %4228  ;;  %v5097_v52 = vmul.f32 %v6805_v11, %v10880_v57 }
 0x410   : >> { %v4262_v56 = vsub.f32 %v9214_v35, %v4229_v43  ;;  %v9721_v43 = vrot.slane %v5257_v49, %v10711_v16  ;;  %6818 = vpow2.f32 %v4268_v3 }
 0x411   : >> { %v6807_v8 = vpop.eup %6806  ;;  %v4303_v10 = vpop.permute.xlu0 %4302  ;;  %6820 = vpow2.f32 %v4270_v24 }
 0x412   : >> { %v6809_v5 = vpop.eup %6808  ;;  %4656 = vrot.lane.b32.xlu1 %v6807_v8, %s7165_s21  ;;  %v4292_v11 = vmul.f32 1.442695, %v4262_v56  ;;  %v5108_v4 = vmul.f32 %v6807_v8, %v10882_v39  ;;  %v4347_v57 = vsub.f32 %v9207_v36, %v4303_v10 }
 0x413   : >> { %4658 = vrot.lane.b32.xlu0 %v6809_v5, %s7165_s21  ;;  %v4301_v55 = vpop.permute.xlu1 %4300 }
 0x414   : >> { %v4346_v1 = vsub.f32 %v9202_v14, %v4301_v55  ;;  %6822 = vpow2.f32 %v4292_v11  ;;  %v4366_v10 = vmul.f32 1.442695, %v4347_v57 }
 0x415   : >> { %v6811_v59 = vpop.eup %6810  ;;  %v4327_v6 = vpop.permute.xlu0 %4326 }
 0x416   : >> { %v9676_v27 = vpop.eup %6812  ;;  %4712 = vrot.lane.b32.xlu1 %v6811_v59, %s7164_s20  ;;  %v4364_v55 = vmul.f32 1.442695, %v4346_v1 }
 0x417   : >> { %4714 = vrot.lane.b32.xlu0 %v9676_v27, %s7164_s20  ;;  %v4325_v54 = vpop.permute.xlu1 %4324 }
 0x418   : >> { %v4358_v8 = vsub.f32 %v9214_v35, %v4325_v54 }
 0x419   : >> { %v9681_v28 = vpop.eup %6814 }
 0x41a   : >> { %v9683_v63 = vpop.eup %6816  ;;  %4736 = vrot.lane.b32.xlu1 %v9681_v28, %s7164_s20 }
 0x41b   : >> { %4738 = vrot.lane.b32.xlu0 %v9683_v63, %s7164_s20 }
 0x41e   : >> { %4968 = vrot.lane.b32.xlu1 %v4936_v47, %s7166_s22  ;;  %v9705_v47 = vrot.slane %v5201_v62, %v10711_v16  ;;  %v10881_v62 = vld [vmem:[#allocation12_spill] sm:$0xff] }
 0x41f   : >> { %4970 = vrot.lane.b32.xlu0 %v4937_v31, %s7166_s22  ;;  %v9708_v31 = vrot.slane %v5209_v61, %v10711_v16  ;;  %v5343_v49 = vrot.slane %v9721_v43, %v10881_v62  ;;  %v5347_v3 = vrot.slane %v9724_v13, %v10881_v62 }
 0x420   : >> { %v5295_v61 = vrot.slane %v9705_v47, %v10881_v62 }
 0x421   : >> { %v5299_v21 = vrot.slane %v9708_v31, %v10881_v62  ;;  %v5384_v1 = vmul.f32 %v9681_v28, %v5343_v49 }
 0x422   : >> { %4992 = vrot.lane.b32.xlu1 %v4948_v22, %s7166_s22  ;;  %v4397_v22 = vpop.permute.xlu1 %4396  ;;  %v5372_v60 = vmul.f32 %v6811_v59, %v5295_v61  ;;  %v5385_v61 = vmul.f32 %v9683_v63, %v5347_v3 }
 0x423   : >> { %4994 = vrot.lane.b32.xlu0 %v4949_v53, %s7166_s22  ;;  %v4399_v53 = vpop.permute.xlu0 %4398  ;;  %v4442_v11 = vsub.f32 %v9231_v0, %v4397_v22  ;;  %v6819_v22 = vpop.eup %6818 }
 0x424   : >> { %v4443_v59 = vsub.f32 %v9237_v46, %v4399_v53  ;;  %v10887_v46 = vld [vmem:[#allocation91_spill] sm:$0xff] }
 0x426   : >> { %5128 = vrot.lane.b32.xlu1 %v5096_v15, %s7165_s21  ;;  %v4294_v15 = vmul.f32 1.442695, %v4263_v26  ;;  %v4421_v24 = vpop.permute.xlu1 %4420  ;;  %v5373_v26 = vmul.f32 %v9676_v27, %v5299_v21  ;;  %v4460_v21 = vmul.f32 1.442695, %v4442_v11  ;;  %v4462_v28 = vmul.f32 1.442695, %v4443_v59 }
 0x427   : >> { %5130 = vrot.lane.b32.xlu0 %v5097_v52, %s7165_s21  ;;  %v10883_v52 = vld [vmem:[#allocation109_spill] sm:$0xff]  ;;  %v4423_v56 = vpop.permute.xlu0 %4422  ;;  %v4454_v39 = vsub.f32 %v9240_v50, %v4421_v24 }
 0x428   : >> { %v5109_v40 = vmul.f32 %v6809_v5, %v10883_v52  ;;  %6824 = vpow2.f32 %v4294_v15  ;;  %v4359_v5 = vsub.f32 %v9219_v2, %v4327_v6  ;;  %v6821_v15 = vpop.eup %6820 }
 0x429   : >> { %6826 = vpow2.f32 %v4364_v55  ;;  %v4484_v63 = vmul.f32 1.442695, %v4454_v39  ;;  %v6823_v57 = vpop.eup %6822 }
 0x42a   : >> { %5152 = vrot.lane.b32.xlu1 %v5108_v4, %s7165_s21  ;;  %6828 = vpow2.f32 %v4366_v10  ;;  %v4390_v54 = vmul.f32 1.442695, %v4359_v5  ;;  %v4209_v6 = vpop.permute.xlu1 %4208  ;;  %v4455_v4 = vsub.f32 %v9251_v44, %v4423_v56  ;;  %v10886_v44 = vld [vmem:[#allocation90_spill] sm:$0xff] }
 0x42b   : >> { %5154 = vrot.lane.b32.xlu0 %v5109_v40, %s7165_s21  ;;  %v4388_v40 = vmul.f32 1.442695, %v4358_v8  ;;  %v9746_v27 = vpop.permute.xlu0 %4210  ;;  %v4950_v50 = vmul.f32 %v6823_v57, %v10886_v44 }
 0x42c   : >> { %v4486_v52 = vmul.f32 1.442695, %v4455_v4  ;;  %v4253_v2 = vsub.f32 %v9271_v30, %v9746_v27 }
 0x42d   : >> { %6830 = vpow2.f32 %v4388_v40 }
 0x42e   : >> { %5404 = vrot.lane.b32.xlu1 %v5372_v60, %s7164_s20  ;;  %6832 = vpow2.f32 %v4390_v54  ;;  %v4305_v53 = vpop.permute.xlu1 %4304  ;;  %v4274_v27 = vmul.f32 1.442695, %v4253_v2  ;;  %v5291_v2 = vcombine.high %v9724_v13, %v9724_v13 }
 0x42f   : >> { %5406 = vrot.lane.b32.xlu0 %v5373_v26, %s7164_s20  ;;  %6834 = vpow2.f32 %v4460_v21  ;;  %v4307_v49 = vpop.permute.xlu0 %4306  ;;  %v10884_v21 = vld [vmem:[#allocation67_spill] sm:$0xff]  ;;  %v4348_v44 = vsub.f32 %v9265_v9, %v4305_v53 }
 0x430   : >> { %6836 = vpow2.f32 %v4462_v28  ;;  %v4938_v39 = vmul.f32 %v6819_v22, %v10884_v21  ;;  %v10885_v28 = vld [vmem:[#allocation68_spill] sm:$0xff] }
 0x431   : >> { %6838 = vpow2.f32 %v4484_v63  ;;  %v4939_v4 = vmul.f32 %v6821_v15, %v10885_v28  ;;  %v4252_v63 = vsub.f32 %v9265_v9, %v4209_v6  ;;  %v5241_v6 = vcombine.high %v9708_v31, %v9708_v31  ;;  %v10889_v28 = vld [vmem:[#allocation95_spill] sm:$0xff] }
 0x432   : >> { %5428 = vrot.lane.b32.xlu1 %v5384_v1, %s7164_s20  ;;  %6840 = vpow2.f32 %v4486_v52  ;;  %v4401_v24 = vpop.permute.xlu1 %4400  ;;  %v5289_v31 = vcombine.high %v9721_v43, %v9721_v43  ;;  %v4368_v53 = vmul.f32 1.442695, %v4348_v44 }
 0x433   : >> { %5430 = vrot.lane.b32.xlu0 %v5385_v61, %s7164_s20  ;;  %v4403_v60 = vpop.permute.xlu0 %4402 }
 0x435   : >> { %v6825_v3 = vpop.eup %6824 }
 0x436   : >> { %4556 = vrot.lane.b32.xlu1 %v6819_v22, %s7166_s22  ;;  %v6827_v55 = vpop.eup %6826  ;;  %v9759_v56 = vpop.permute.xlu1 %4212  ;;  %v4951_v0 = vmul.f32 %v6825_v3, %v10887_v46  ;;  %v5239_v22 = vcombine.high %v9705_v47, %v9705_v47  ;;  %v5307_v47 = vrot.slane %v5241_v6, %v10881_v62 }
 0x437   : >> { %4558 = vrot.lane.b32.xlu0 %v6821_v15, %s7166_s22  ;;  %v6829_v8 = vpop.eup %6828  ;;  %v9761_v40 = vpop.permute.xlu0 %4214  ;;  %v4272_v15 = vmul.f32 1.442695, %v4252_v63  ;;  %v4445_v63 = vsub.f32 %v9289_v25, %v4403_v60  ;;  %v5355_v60 = vrot.slane %v5291_v2, %v10881_v62 }
 0x438   : >> { %v5099_v46 = vmul.f32 %v6829_v8, %v10889_v28 }
 0x439   : >> { %6842 = vpow2.f32 %v4272_v15  ;;  %v5351_v15 = vrot.slane %v5289_v31, %v10881_v62 }
 0x43a   : >> { %4580 = vrot.lane.b32.xlu1 %v6823_v57, %s7166_s22  ;;  %v6831_v10 = vpop.eup %6830  ;;  %v9765_v59 = vpop.permute.xlu1 %4308  ;;  %v10888_v57 = vld [vmem:[#allocation96_spill] sm:$0xff]  ;;  %6844 = vpow2.f32 %v4274_v27 }
 0x43b   : >> { %4582 = vrot.lane.b32.xlu0 %v6825_v3, %s7166_s22  ;;  %v6833_v5 = vpop.eup %6832  ;;  %v9768_v61 = vpop.permute.xlu0 %4310  ;;  %v5098_v21 = vmul.f32 %v6827_v55, %v10888_v57  ;;  %v10891_v57 = vld [vmem:[#allocation111_spill] sm:$0xff]  ;;  %6846 = vpow2.f32 %v4368_v53 }
 0x43c   : >> { %v6835_v26 = vpop.eup %6834 }
 0x43d   : >> { %v6837_v11 = vpop.eup %6836 }
 0x43e   : >> { %4636 = vrot.lane.b32.xlu1 %v6827_v55, %s7165_s21  ;;  %v6839_v1 = vpop.eup %6838  ;;  %v9776_v52 = vpop.permute.xlu1 %4404  ;;  %v10890_v55 = vld [vmem:[#allocation112_spill] sm:$0xff]  ;;  %v5375_v44 = vmul.f32 %v6837_v11, %v5307_v47 }
 0x43f   : >> { %4638 = vrot.lane.b32.xlu0 %v6829_v8, %s7165_s21  ;;  %v6841_v54 = vpop.eup %6840  ;;  %v9781_v35 = vpop.permute.xlu0 %4406  ;;  %v5110_v8 = vmul.f32 %v6831_v10, %v10890_v55 }
 0x442   : >> { %4660 = vrot.lane.b32.xlu1 %v6831_v10, %s7165_s21  ;;  %v9794_v3 = vpop.permute.xlu1 %4216 }
 0x443   : >> { %4662 = vrot.lane.b32.xlu0 %v6833_v5, %s7165_s21 }
 0x446   : >> { %4716 = vrot.lane.b32.xlu1 %v6835_v26, %s7164_s20  ;;  %v9812_v6 = vpop.permute.xlu1 %4312 }
 0x447   : >> { %4718 = vrot.lane.b32.xlu0 %v6837_v11, %s7164_s20  ;;  %v5194_v11 = vcombine.high %v9049_v37, %v9049_v37 }
 0x449   : >> { %v5208_v31 = vrot.slane %v5194_v11, %v10711_v16  ;;  %v10894_v11 = vld [vmem:[#allocation98_spill] sm:$0xff] }
 0x44a   : >> { %4740 = vrot.lane.b32.xlu1 %v6839_v1, %s7164_s20  ;;  %v9820_v27 = vpop.permute.xlu1 %4408 }
 0x44b   : >> { %4742 = vrot.lane.b32.xlu0 %v6841_v54, %s7164_s20  ;;  %v5210_v37 = vcombine.high %v5208_v31, %v5208_v31 }
 0x44e   : >> { %4972 = vrot.lane.b32.xlu1 %v4938_v39, %s7166_s22  ;;  %v4349_v39 = vsub.f32 %v9271_v30, %v4307_v49  ;;  %v4444_v49 = vsub.f32 %v9285_v48, %v4401_v24  ;;  %v4466_v24 = vmul.f32 1.442695, %v4445_v63 }
 0x44f   : >> { %4974 = vrot.lane.b32.xlu0 %v4939_v4, %s7166_s22 }
 0x450   : >> { %v4370_v4 = vmul.f32 1.442695, %v4349_v39  ;;  %v4464_v43 = vmul.f32 1.442695, %v4444_v49  ;;  %v6843_v39 = vpop.eup %6842 }
 0x451   : >> { %v6845_v28 = vpop.eup %6844 }
 0x452   : >> { %4996 = vrot.lane.b32.xlu1 %v4950_v50, %s7166_s22  ;;  %v9797_v50 = vpop.permute.xlu0 %4218  ;;  %6848 = vpow2.f32 %v4370_v4 }
 0x453   : >> { %4998 = vrot.lane.b32.xlu0 %v4951_v0, %s7166_s22  ;;  %v5303_v0 = vrot.slane %v5239_v22, %v10881_v62  ;;  %v5111_v22 = vmul.f32 %v6833_v5, %v10891_v57  ;;  %6850 = vpow2.f32 %v4464_v43  ;;  %v5386_v5 = vmul.f32 %v6839_v1, %v5351_v15  ;;  %v10892_v43 = vld [vmem:[#allocation69_spill] sm:$0xff] }
 0x454   : >> { %6852 = vpow2.f32 %v4466_v24  ;;  %v4254_v1 = vsub.f32 %v9301_v45, %v9759_v56  ;;  %v4350_v56 = vsub.f32 %v9301_v45, %v9765_v59  ;;  %v9852_v57 = vrot.slane %v5208_v31, %v10711_v16 }
 0x455   : >> { %v5374_v13 = vmul.f32 %v6835_v26, %v5303_v0  ;;  %v4255_v0 = vsub.f32 %v9304_v17, %v9761_v40  ;;  %v4447_v24 = vsub.f32 %v9317_v58, %v9781_v35  ;;  %v10895_v35 = vld [vmem:[#allocation97_spill] sm:$0xff] }
 0x456   : >> { %5132 = vrot.lane.b32.xlu1 %v5098_v21, %s7165_s21  ;;  %v9815_v10 = vpop.permute.xlu0 %4314  ;;  %v5387_v21 = vmul.f32 %v6841_v54, %v5355_v60  ;;  %v9832_v54 = vpop.permute.xlu1 %4220  ;;  %v4276_v53 = vmul.f32 1.442695, %v4254_v1  ;;  %v4372_v59 = vmul.f32 1.442695, %v4350_v56 }
 0x457   : >> { %5134 = vrot.lane.b32.xlu0 %v5099_v46, %s7165_s21  ;;  %v6847_v46 = vpop.eup %6846  ;;  %v4278_v55 = vmul.f32 1.442695, %v4255_v0 }
 0x458   : >> { %6854 = vpow2.f32 %v4276_v53  ;;  %v5100_v1 = vmul.f32 %v6847_v46, %v10894_v11  ;;  %v4353_v11 = vsub.f32 %v9326_v32, %v9815_v10  ;;  %v10896_v10 = vld [vmem:[#allocation71_spill] sm:$0xff] }
 0x459   : >> { %6856 = vpow2.f32 %v4278_v55 }
 0x45a   : >> { %5156 = vrot.lane.b32.xlu1 %v5110_v8, %s7165_s21  ;;  %v9823_v26 = vpop.permute.xlu0 %4410  ;;  %v4351_v8 = vsub.f32 %v9304_v17, %v9768_v61  ;;  %v9845_v4 = vpop.permute.xlu1 %4316  ;;  %v4446_v61 = vsub.f32 %v9312_v12, %v9776_v52  ;;  %6858 = vpow2.f32 %v4372_v59  ;;  %v5311_v52 = vrot.slane %v9852_v57, %v10881_v62 }
 0x45b   : >> { %5158 = vrot.lane.b32.xlu0 %v5111_v22, %s7165_s21  ;;  %v9855_v22 = vrot.slane %v5210_v37, %v10711_v16 }
 0x45c   : >> { %v4374_v15 = vmul.f32 1.442695, %v4351_v8 }
 0x45e   : >> { %5408 = vrot.lane.b32.xlu1 %v5374_v13, %s7164_s20  ;;  %v9836_v47 = vpop.permute.xlu0 %4222  ;;  %v4940_v13 = vmul.f32 %v6843_v39, %v10892_v43  ;;  %6860 = vpow2.f32 %v4374_v15  ;;  %v4257_v43 = vsub.f32 %v9326_v32, %v9797_v50 }
 0x45f   : >> { %5410 = vrot.lane.b32.xlu0 %v5375_v44, %s7164_s20  ;;  %v6849_v2 = vpop.eup %6848  ;;  %v10893_v44 = vld [vmem:[#allocation70_spill] sm:$0xff] }
 0x460   : >> { %v6851_v49 = vpop.eup %6850  ;;  %v4941_v60 = vmul.f32 %v6845_v28, %v10893_v44  ;;  %v5101_v31 = vmul.f32 %v6849_v2, %v10895_v35  ;;  %v4352_v44 = vsub.f32 %v9331_v38, %v9812_v6  ;;  %v5242_v6 = vcombine.high %v9855_v22, %v9855_v22 }
 0x461   : >> { %v6853_v40 = vpop.eup %6852  ;;  %v4448_v35 = vsub.f32 %v9342_v7, %v9820_v27 }
 0x462   : >> { %5432 = vrot.lane.b32.xlu1 %v5386_v5, %s7164_s20  ;;  %v9848_v63 = vpop.permute.xlu0 %4318  ;;  %v4468_v5 = vmul.f32 1.442695, %v4446_v61 }
 0x463   : >> { %5434 = vrot.lane.b32.xlu0 %v5387_v21, %s7164_s20  ;;  %v9865_v21 = vpop.permute.xlu1 %4412 }
 0x464   : >> { %6862 = vpow2.f32 %v4468_v5  ;;  %v4282_v5 = vmul.f32 1.442695, %v4257_v43 }
 0x465   : >> { %v6855_v55 = vpop.eup %6854 }
 0x466   : >> { %4560 = vrot.lane.b32.xlu1 %v6843_v39, %s7166_s22  ;;  %v4470_v39 = vmul.f32 1.442695, %v4447_v24  ;;  %v9870_v0 = vpop.permute.xlu0 %4414  ;;  %v6857_v59 = vpop.eup %6856 }
 0x467   : >> { %4562 = vrot.lane.b32.xlu0 %v6845_v28, %s7166_s22  ;;  %v5315_v28 = vrot.slane %v9855_v22, %v10881_v62  ;;  %v4472_v22 = vmul.f32 1.442695, %v4448_v35 }
 0x468   : >> { %6864 = vpow2.f32 %v4470_v39  ;;  %v4376_v39 = vmul.f32 1.442695, %v4352_v44 }
 0x469   : >> { %v5377_v56 = vmul.f32 %v6853_v40, %v5315_v28  ;;  %v4942_v28 = vmul.f32 %v6855_v55, %v10896_v10 }
 0x46a   : >> { %4640 = vrot.lane.b32.xlu1 %v6847_v46, %s7165_s21  ;;  %v5376_v46 = vmul.f32 %v6851_v49, %v5311_v52  ;;  %v5240_v52 = vcombine.high %v9852_v57, %v9852_v57  ;;  %v10897_v57 = vld [vmem:[#allocation72_spill] sm:$0xff] }
 0x46b   : >> { %4642 = vrot.lane.b32.xlu0 %v6849_v2, %s7165_s21  ;;  %v4943_v43 = vmul.f32 %v6857_v59, %v10897_v57 }
 0x46e   : >> { %4720 = vrot.lane.b32.xlu1 %v6851_v49, %s7164_s20  ;;  %v4256_v49 = vsub.f32 %v9331_v38, %v9794_v3 }
 0x46f   : >> { %4722 = vrot.lane.b32.xlu0 %v6853_v40, %s7164_s20  ;;  %v6859_v40 = vpop.eup %6858 }
 0x470   : >> { %v6861_v15 = vpop.eup %6860  ;;  %v4280_v24 = vmul.f32 1.442695, %v4256_v49 }
 0x471   : >> { %v6863_v3 = vpop.eup %6862 }
 0x472   : >> { %4976 = vrot.lane.b32.xlu1 %v4940_v13, %s7166_s22  ;;  %6866 = vpow2.f32 %v4280_v24  ;;  %v10898_v24 = vld [vmem:[#allocation100_spill] sm:$0xff] }
 0x473   : >> { %4978 = vrot.lane.b32.xlu0 %v4941_v60, %s7166_s22  ;;  %6868 = vpow2.f32 %v4282_v5  ;;  %v5102_v44 = vmul.f32 %v6859_v40, %v10898_v24  ;;  %v4258_v24 = vsub.f32 %v9356_v34, %v9832_v54 }
 0x474   : >> { %6870 = vpow2.f32 %v4376_v39  ;;  %v4136_v39 = vsub.f32 %v9052_v19, %v9487_v20 }
 0x475   : >> { %v6865_v50 = vpop.eup %6864 }
 0x476   : >> { %5136 = vrot.lane.b32.xlu1 %v5100_v1, %s7165_s21 }
 0x477   : >> { %5138 = vrot.lane.b32.xlu0 %v5101_v31, %s7165_s21 }
 0x478   : >> { %v9877_v37 = vpop.permute.xlu1 %4552 }
 0x479   : >> { %v9879_v53 = vpop.permute.xlu0 %4554 }
 0x47a   : >> { %5412 = vrot.lane.b32.xlu1 %v5376_v46, %s7164_s20  ;;  %v4378_v46 = vmul.f32 1.442695, %v4353_v11 }
 0x47b   : >> { %5414 = vrot.lane.b32.xlu0 %v5377_v56, %s7164_s20  ;;  %v4449_v56 = vsub.f32 %v9337_v23, %v9823_v26  ;;  %v10899_v26 = vld [vmem:[#allocation99_spill] sm:$0xff] }
 0x47c   : >> { %v9883_v2 = vpop.permute.xlu1 %4576  ;;  %6872 = vpow2.f32 %v4378_v46  ;;  %v5103_v10 = vmul.f32 %v6861_v15, %v10899_v26 }
 0x47d   : >> { %v9885_v8 = vpop.permute.xlu0 %4578  ;;  %v4474_v5 = vmul.f32 1.442695, %v4449_v56  ;;  %6874 = vpow2.f32 %v4472_v22 }
 0x47e   : >> { %4564 = vrot.lane.b32.xlu1 %v6855_v55, %s7166_s22  ;;  %v5319_v55 = vrot.slane %v5240_v52, %v10881_v62  ;;  %v4137_v52 = vsub.f32 %v9069_v18, %v9492_v42  ;;  %v10907_v18 = vld [vmem:[#allocation75_spill] sm:$0xff] }
 0x47f   : >> { %4566 = vrot.lane.b32.xlu0 %v6857_v59, %s7166_s22  ;;  %v5323_v59 = vrot.slane %v5242_v6, %v10881_v62  ;;  %6876 = vpow2.f32 %v4474_v5  ;;  %v4152_v6 = vmul.f32 1.442695, %v4136_v39  ;;  %v6867_v56 = vpop.eup %6866  ;;  %v4259_v5 = vsub.f32 %v9349_v41, %v9836_v47 }
 0x480   : >> { %v9891_v61 = vpop.permute.xlu1 %4632  ;;  %v4154_v57 = vmul.f32 1.442695, %v4137_v52  ;;  %v6869_v22 = vpop.eup %6868  ;;  %v4355_v52 = vsub.f32 %v9349_v41, %v9848_v63  ;;  %v10929_v41 = vld [vmem:[#allocation51_spill] sm:$0xff] }
 0x481   : >> { %v9895_v13 = vpop.permute.xlu0 %4634  ;;  %6878 = vpow2.f32 %v4152_v6  ;;  %v10904_v6 = vld [vmem:[#allocation129_spill] sm:$0xff] }
 0x482   : >> { %4644 = vrot.lane.b32.xlu1 %v6859_v40, %s7165_s21  ;;  %v5378_v40 = vmul.f32 %v6863_v3, %v5319_v55  ;;  %v6871_v55 = vpop.eup %6870  ;;  %6880 = vpow2.f32 %v4154_v57  ;;  %v4138_v57 = vsub.f32 %v9202_v14, %v10904_v6  ;;  %v4382_v19 = vmul.f32 1.442695, %v4355_v52 }
 0x483   : >> { %4646 = vrot.lane.b32.xlu0 %v6861_v15, %s7165_s21  ;;  %v5379_v15 = vmul.f32 %v6865_v50, %v5323_v59  ;;  %v4354_v59 = vsub.f32 %v9356_v34, %v9845_v4 }
 0x484   : >> { %v9901_v60 = vpop.permute.xlu1 %4656 }
 0x485   : >> { %v9905_v1 = vpop.permute.xlu0 %4658 }
 0x486   : >> { %4724 = vrot.lane.b32.xlu1 %v6863_v3, %s7164_s20  ;;  %v4488_v3 = vsub.f32 %v9167_v51, %v9487_v20  ;;  %v5250_v51 = vrot.slane %v9261_v33, %v10711_v16 }
 0x487   : >> { %4726 = vrot.lane.b32.xlu0 %v6865_v50, %s7164_s20  ;;  %v4489_v50 = vsub.f32 %v9173_v29, %v9492_v42 }
 0x488   : >> { %v9915_v31 = vpop.permute.xlu1 %4712  ;;  %v4504_v29 = vmul.f32 1.442695, %v4488_v3  ;;  %v5258_v54 = vcombine.high %v5250_v51, %v5250_v51  ;;  %v10905_v3 = vld [vmem:[#allocation130_spill] sm:$0xff] }
 0x489   : >> { %v9920_v49 = vpop.permute.xlu0 %4714  ;;  %v6873_v20 = vpop.eup %6872  ;;  %v4506_v42 = vmul.f32 1.442695, %v4489_v50  ;;  %v4139_v4 = vsub.f32 %v9207_v36, %v10905_v3  ;;  %v9982_v50 = vrot.slane %v5250_v51, %v10711_v16  ;;  %v10908_v36 = vld [vmem:[#allocation105_spill] sm:$0xff]  ;;  %v10909_v51 = vld [vmem:[#allocation76_spill] sm:$0xff] }
 0x48a   : >> { %4980 = vrot.lane.b32.xlu1 %v4942_v28, %s7166_s22  ;;  %v6875_v47 = vpop.eup %6874  ;;  %6882 = vpow2.f32 %v4504_v29  ;;  %v9985_v63 = vrot.slane %v5258_v54, %v10711_v16  ;;  %v4156_v54 = vmul.f32 1.442695, %v4138_v57 }
 0x48b   : >> { %4982 = vrot.lane.b32.xlu0 %v4943_v43, %s7166_s22  ;;  %6884 = vpow2.f32 %v4506_v42  ;;  %v4944_v42 = vmul.f32 %v6867_v56, %v10907_v18 }
 0x48c   : >> { %v9925_v27 = vpop.permute.xlu1 %4736 }
 0x48d   : >> { %v9929_v11 = vpop.permute.xlu0 %4738 }
 0x48e   : >> { %5140 = vrot.lane.b32.xlu1 %v5102_v44, %s7165_s21 }
 0x48f   : >> { %5142 = vrot.lane.b32.xlu0 %v5103_v10, %s7165_s21  ;;  %v4284_v10 = vmul.f32 1.442695, %v4258_v24  ;;  %v4380_v24 = vmul.f32 1.442695, %v4354_v59 }
 0x490   : >> { %v9937_v35 = vpop.permute.xlu1 %4968 }
 0x491   : >> { %v9941_v28 = vpop.permute.xlu0 %4970  ;;  %6886 = vpow2.f32 %v4284_v10  ;;  %v10910_v10 = vld [vmem:[#allocation87_spill] sm:$0xff] }
 0x492   : >> { %5416 = vrot.lane.b32.xlu1 %v5378_v40, %s7164_s20  ;;  %v4286_v40 = vmul.f32 1.442695, %v4259_v5  ;;  %v10906_v5 = vld [vmem:[#allocation107_spill] sm:$0xff]  ;;  %v4490_v59 = vsub.f32 %v10910_v10, %v10904_v6 }
 0x493   : >> { %5418 = vrot.lane.b32.xlu0 %v5379_v15, %s7164_s20  ;;  %v6877_v15 = vpop.eup %6876  ;;  %v4450_v29 = vsub.f32 %v10906_v5, %v9865_v21  ;;  %v4158_v21 = vmul.f32 1.442695, %v4139_v4 }
 0x494   : >> { %v9945_v46 = vpop.permute.xlu1 %4992  ;;  %6888 = vpow2.f32 %v4286_v40  ;;  %v10912_v40 = vld [vmem:[#allocation103_spill] sm:$0xff]  ;;  %v10006_v16 = vpop.eup %6878 }
 0x495   : >> { %10900 = vst [vmem:[#allocation85_spill] sm:$0xff] %v9945_v46  ;;  %v9947_v43 = vpop.permute.xlu0 %4994  ;;  %6890 = vpow2.f32 %v4380_v24  ;;  %v4476_v18 = vmul.f32 1.442695, %v4450_v29  ;;  %v5104_v52 = vmul.f32 %v6871_v55, %v10912_v40  ;;  %v10013_v4 = vpop.eup %6880  ;;  %v10915_v24 = vld [vmem:[#allocation88_spill] sm:$0xff]  ;;  %v10916_v40 = vld [vmem:[#allocation131_spill] sm:$0xff] }
 0x496   : >> { %10901 = vst [vmem:[#allocation86_spill] sm:$0xff] %v9947_v43  ;;  %4568 = vrot.lane.b32.xlu1 %v6867_v56, %s7166_s22  ;;  %v4945_v43 = vmul.f32 %v6869_v22, %v10909_v51  ;;  %6892 = vpow2.f32 %v4382_v19  ;;  %v4491_v29 = vsub.f32 %v10915_v24, %v10905_v3  ;;  %v4601_v19 = vadd.f32 %v10013_v4, %v9879_v53  ;;  %v10917_v3 = vld [vmem:[#allocation83_spill] sm:$0xff] }
 0x497   : >> { %4570 = vrot.lane.b32.xlu0 %v6869_v22, %s7166_s22  ;;  %6894 = vpow2.f32 %v4156_v54 }
 0x498   : >> { %v9957_v44 = vpop.permute.xlu1 %5128  ;;  %6896 = vpow2.f32 %v4158_v21  ;;  %v4510_v24 = vmul.f32 1.442695, %v4491_v29  ;;  %v10029_v21 = vpop.eup %6882 }
 0x499   : >> { %v9961_v26 = vpop.permute.xlu0 %5130  ;;  %6898 = vpow2.f32 %v4476_v18  ;;  %v10919_v18 = vld [vmem:[#allocation84_spill] sm:$0xff] }
 0x49a   : >> { %4648 = vrot.lane.b32.xlu1 %v6871_v55, %s7165_s21  ;;  %v4600_v55 = vadd.f32 %v10006_v16, %v9877_v37  ;;  %v4681_v37 = vadd.f32 %v9895_v13, %v4601_v19 }
 0x49b   : >> { %4650 = vrot.lane.b32.xlu0 %v6873_v20, %s7165_s21 }
 0x49c   : >> { %v9969_v39 = vpop.permute.xlu1 %5152 }
 0x49d   : >> { %10902 = vst [vmem:[#allocation94_spill] sm:$0xff] %v9969_v39  ;;  %v9973_v33 = vpop.permute.xlu0 %5154 }
 0x49e   : >> { %10903 = vst [vmem:[#allocation93_spill] sm:$0xff] %v9973_v33  ;;  %4728 = vrot.lane.b32.xlu1 %v6875_v47, %s7164_s20  ;;  %v4451_v33 = vsub.f32 %v10908_v36, %v9870_v0  ;;  %v5327_v0 = vrot.slane %v9982_v50, %v10881_v62 }
 0x49f   : >> { %4730 = vrot.lane.b32.xlu0 %v6877_v15, %s7164_s20 }
 0x4a0   : >> { %v9989_v14 = vpop.permute.xlu1 %5404  ;;  %v4478_v22 = vmul.f32 1.442695, %v4451_v33  ;;  %v4680_v33 = vadd.f32 %v9891_v61, %v4600_v55  ;;  %v5380_v10 = vmul.f32 %v6875_v47, %v5327_v0  ;;  %v10033_v61 = vpop.eup %6884  ;;  %v10918_v47 = vld [vmem:[#allocation132_spill] sm:$0xff] }
 0x4a1   : >> { %v9994_v39 = vpop.permute.xlu0 %5406  ;;  %v4151_v0 = vsub.f32 %v10919_v18, %v10918_v47  ;;  %v6887_v13 = vpop.eup %6886  ;;  %v5480_v18 = vld [vmem:[%s7312_s17 + $0x60] sm:$0xff] }
 0x4a2   : >> { %4984 = vrot.lane.b32.xlu1 %v4944_v42, %s7166_s22  ;;  %v10914_v42 = vld [vmem:[#allocation102_spill] sm:$0xff]  ;;  %6900 = vpow2.f32 %v4478_v22  ;;  %v4760_v53 = vadd.f32 %v9915_v31, %v4680_v33  ;;  %v6889_v31 = vpop.eup %6888 }
 0x4a3   : >> { %4986 = vrot.lane.b32.xlu0 %v4945_v43, %s7166_s22  ;;  %v5105_v6 = vmul.f32 %v6873_v20, %v10914_v42  ;;  %v5331_v43 = vrot.slane %v9985_v63, %v10881_v62  ;;  %v4508_v20 = vmul.f32 1.442695, %v4490_v59  ;;  %v4150_v42 = vsub.f32 %v10917_v3, %v10916_v40  ;;  %v6891_v19 = vpop.eup %6890 }
 0x4a4   : >> { %v10001_v56 = vpop.permute.xlu1 %5428  ;;  %v4761_v59 = vadd.f32 %v9920_v49, %v4681_v37  ;;  %v4182_v29 = vmul.f32 1.442695, %v4151_v0  ;;  %v6893_v33 = vpop.eup %6892 }
 0x4a5   : >> { %10911 = vst [vmem:[#allocation110_spill] sm:$0xff] %v10001_v56  ;;  %v10008_v57 = vpop.permute.xlu0 %5430  ;;  %v5381_v54 = vmul.f32 %v6877_v15, %v5331_v43  ;;  %6902 = vpow2.f32 %v4508_v20  ;;  %v4180_v15 = vmul.f32 1.442695, %v4150_v42  ;;  %v10042_v43 = vadd.f32 %v10029_v21, %v4760_v53  ;;  %v5481_v56 = vld [vmem:[%s7312_s17 + $0x68] sm:$0xff] }
 0x4a6   : >> { %10913 = vst [vmem:[#allocation109_spill] sm:$0xff] %v10008_v57  ;;  %5144 = vrot.lane.b32.xlu1 %v5104_v52, %s7165_s21  ;;  %6904 = vpow2.f32 %v4510_v24  ;;  %v10046_v49 = vadd.f32 %v10033_v61, %v4761_v59 }
 0x4a7   : >> { %5146 = vrot.lane.b32.xlu0 %v5105_v6, %s7165_s21  ;;  %6906 = vpow2.f32 %v4180_v15 }
 0x4a8   : >> { %v4557_v51 = vpop.permute.xlu1 %4556  ;;  %6908 = vrcp.f32 %v10042_v43 }
 0x4a9   : >> { %v4559_v52 = vpop.permute.xlu0 %4558  ;;  %6910 = vrcp.f32 %v10046_v49 }
 0x4aa   : >> { %5420 = vrot.lane.b32.xlu1 %v5380_v10, %s7164_s20  ;;  %v6895_v10 = vpop.eup %6894  ;;  %6912 = vpow2.f32 %v4182_v29 }
 0x4ab   : >> { %5422 = vrot.lane.b32.xlu0 %v5381_v54, %s7164_s20  ;;  %v6897_v42 = vpop.eup %6896  ;;  %v4602_v24 = vadd.f32 %v6895_v10, %v4557_v51  ;;  %v4858_v34 = vmul.f32 %v6895_v10, %v10929_v41 }
 0x4ac   : >> { %v10037_v22 = vpop.permute.xlu1 %4580  ;;  %v6899_v54 = vpop.eup %6898  ;;  %v4603_v0 = vadd.f32 %v6897_v42, %v4559_v52 }
 0x4ad   : >> { %v10039_v6 = vpop.permute.xlu0 %4582 }
 0x4ae   : >> { %10920 = vst [vmem:[#allocation67_spill] sm:$0xff] %v10039_v6  ;;  %4572 = vrot.lane.b32.xlu1 %v6887_v13, %s7166_s22 }
 0x4af   : >> { %4574 = vrot.lane.b32.xlu0 %v6889_v31, %s7166_s22  ;;  %v6901_v59 = vpop.eup %6900 }
 0x4b0   : >> { %v4637_v55 = vpop.permute.xlu1 %4636 }
 0x4b1   : >> { %v4639_v20 = vpop.permute.xlu0 %4638  ;;  %v4682_v15 = vadd.f32 %v4637_v55, %v4602_v24  ;;  %v10924_v24 = vld [vmem:[#allocation79_spill] sm:$0xff] }
 0x4b2   : >> { %4652 = vrot.lane.b32.xlu1 %v6891_v19, %s7165_s21  ;;  %v4683_v3 = vadd.f32 %v4639_v20, %v4603_v0  ;;  %v10061_v29 = vpop.eup %6902  ;;  %v5288_v0 = vcombine.high %v9982_v50, %v9982_v50  ;;  %v10928_v50 = vld [vmem:[#allocation49_spill] sm:$0xff] }
 0x4b3   : >> { %4654 = vrot.lane.b32.xlu0 %v6893_v33, %s7165_s21  ;;  %v10064_v46 = vpop.eup %6904 }
 0x4b4   : >> { %v10053_v37 = vpop.permute.xlu1 %4660 }
 0x4b5   : >> { %10921 = vst [vmem:[#allocation68_spill] sm:$0xff] %v10053_v37  ;;  %v10055_v53 = vpop.permute.xlu0 %4662 }
 0x4b6   : >> { %10922 = vst [vmem:[#allocation90_spill] sm:$0xff] %v10055_v53  ;;  %4732 = vrot.lane.b32.xlu1 %v6899_v54, %s7164_s20  ;;  %v10931_v53 = vld [vmem:[#allocation56_spill] sm:$0xff] }
 0x4b7   : >> { %4734 = vrot.lane.b32.xlu0 %v6901_v59, %s7164_s20 }
 0x4b8   : >> { %v4717_v57 = vpop.permute.xlu1 %4716 }
 0x4b9   : >> { %v4762_v36 = vadd.f32 %v4717_v57, %v4682_v15  ;;  %v4719_v5 = vpop.permute.xlu0 %4718  ;;  %v4946_v57 = vmul.f32 %v6887_v13, %v10924_v24  ;;  %v10927_v15 = vld [vmem:[#allocation47_spill] sm:$0xff]  ;;  %v4857_v24 = vmul.f32 %v10013_v4, %v10928_v50  ;;  %v10932_v50 = vld [vmem:[#allocation106_spill] sm:$0xff] }
 0x4ba   : >> { %5524 = vrot.lane.b32.xlu1 %v5480_v18, %s7164_s20  ;;  %v4763_v51 = vadd.f32 %v4719_v5, %v4683_v3  ;;  %v10926_v3 = vld [vmem:[#allocation80_spill] sm:$0xff]  ;;  %v5107_v41 = vmul.f32 %v6893_v33, %v10932_v50 }
 0x4bb   : >> { %v10067_v52 = vadd.f32 %v10061_v29, %v4762_v36  ;;  %5526 = vrot.lane.b32.xlu0 %v5481_v56, %s7164_s20  ;;  %v4947_v18 = vmul.f32 %v6889_v31, %v10926_v3  ;;  %v5290_v36 = vcombine.high %v9985_v63, %v9985_v63  ;;  %v10084_v56 = vpop.eup %6906 }
 0x4bc   : >> { %v10071_v55 = vadd.f32 %v10064_v46, %v4763_v51  ;;  %v10073_v20 = vpop.permute.xlu1 %4740  ;;  %v4856_v51 = vmul.f32 %v10006_v16, %v10927_v15  ;;  %v6909_v13 = vpop.eup %6908  ;;  %v4859_v16 = vmul.f32 %v6897_v42, %v10931_v53  ;;  %v5335_v15 = vrot.slane %v5288_v0, %v10881_v62  ;;  %v10933_v0 = vld [vmem:[#allocation65_spill] sm:$0xff] }
 0x4bd   : >> { %10923 = vst [vmem:[#allocation91_spill] sm:$0xff] %v10073_v20  ;;  %6914 = vrcp.f32 %v10067_v52  ;;  %v10079_v5 = vpop.permute.xlu0 %4742  ;;  %v6911_v31 = vpop.eup %6910  ;;  %v5339_v10 = vrot.slane %v5290_v36, %v10881_v62  ;;  %v10935_v36 = vld [vmem:[#allocation66_spill] sm:$0xff] }
 0x4be   : >> { %10925 = vst [vmem:[#allocation96_spill] sm:$0xff] %v10079_v5  ;;  %6916 = vrcp.f32 %v10071_v55  ;;  %4988 = vrot.lane.b32.xlu1 %v4946_v57, %s7166_s22  ;;  %v5016_v63 = vadd.f32 %v9937_v35, %v4856_v51  ;;  %v10930_v5 = vld [vmem:[#allocation108_spill] sm:$0xff]  ;;  %v10098_v37 = vpop.eup %6912  ;;  %v5017_v57 = vadd.f32 %v9941_v28, %v4857_v24  ;;  %v5597_v42 = vmul.f32 %v6911_v31, %v10046_v49  ;;  %v10936_v51 = vld [vmem:[#allocation134_spill] sm:$0xff] }
 0x4bf   : >> { %4990 = vrot.lane.b32.xlu0 %v4947_v18, %s7166_s22  ;;  %v5106_v20 = vmul.f32 %v6891_v19, %v10930_v5  ;;  %v5596_v18 = vmul.f32 %v6909_v13, %v10042_v43  ;;  %v4870_v28 = vmul.f32 %v10084_v56, %v10933_v0  ;;  %v4141_v49 = vsub.f32 %v9271_v30, %v10936_v51 }
 0x4c0   : >> { %v4973_v3 = vpop.permute.xlu1 %4972  ;;  %v5176_v35 = vadd.f32 %v9957_v44, %v5016_v63  ;;  %v5177_v53 = vadd.f32 %v9961_v26, %v5017_v57  ;;  %v5382_v44 = vmul.f32 %v6899_v54, %v5335_v15  ;;  %v10937_v57 = vld [vmem:[#allocation113_spill] sm:$0xff]  ;;  %v5613_v54 = vsub.f32 2.0, %v5597_v42  ;;  %v10938_v15 = vld [vmem:[#allocation114_spill] sm:$0xff] }
 0x4c1   : >> { %v5018_v6 = vadd.f32 %v4973_v3, %v4858_v34  ;;  %v4975_v4 = vpop.permute.xlu0 %4974  ;;  %v10934_v34 = vld [vmem:[#allocation133_spill] sm:$0xff]  ;;  %v5383_v3 = vmul.f32 %v6901_v59, %v5339_v10  ;;  %v5549_v50 = vmul.f32 %v10033_v61, %v10938_v15 }
 0x4c2   : >> { %5148 = vrot.lane.b32.xlu1 %v5106_v20, %s7165_s21  ;;  %v5019_v19 = vadd.f32 %v4975_v4, %v4859_v16  ;;  %v4140_v33 = vsub.f32 %v9265_v9, %v10934_v34  ;;  %v5452_v5 = vadd.f32 %v9989_v14, %v5176_v35  ;;  %v4871_v20 = vmul.f32 %v10098_v37, %v10935_v36 }
 0x4c3   : >> { %5150 = vrot.lane.b32.xlu0 %v5107_v41, %s7165_s21  ;;  %v5453_v26 = vadd.f32 %v9994_v39, %v5177_v53  ;;  %v5612_v16 = vsub.f32 2.0, %v5596_v18  ;;  %v5548_v4 = vmul.f32 %v10029_v21, %v10937_v57  ;;  %v5482_v41 = vld [vmem:[%s7312_s17 + $0x70] sm:$0xff]  ;;  %v5483_v53 = vld [vmem:[%s7312_s17 + $0x78] sm:$0xff]  ;;  %v5629_v36 = vmul.f32 %v6911_v31, %v5613_v54 }
 0x4c4   : >> { %v4997_v43 = vpop.permute.xlu1 %4996  ;;  %v4160_v35 = vmul.f32 1.442695, %v4140_v33  ;;  %v4493_v31 = vsub.f32 %v9289_v25, %v10936_v51 }
 0x4c5   : >> { %v5030_v24 = vadd.f32 %v4997_v43, %v4870_v28  ;;  %v4999_v63 = vpop.permute.xlu0 %4998  ;;  %v5564_v0 = vadd.f32 %v5548_v4, %v5452_v5  ;;  %v4162_v28 = vmul.f32 1.442695, %v4141_v49  ;;  %v5565_v59 = vadd.f32 %v5549_v50, %v5453_v26  ;;  %v10940_v4 = vld [vmem:[#allocation116_spill] sm:$0xff] }
 0x4c6   : >> { %5424 = vrot.lane.b32.xlu1 %v5382_v44, %s7164_s20  ;;  %v5031_v14 = vadd.f32 %v4999_v63, %v4871_v20  ;;  %v5628_v21 = vmul.f32 %v6909_v13, %v5612_v16  ;;  %6918 = vpow2.f32 %v4160_v35  ;;  %v10939_v16 = vld [vmem:[#allocation115_spill] sm:$0xff]  ;;  %v4514_v57 = vmul.f32 1.442695, %v4493_v31 }
 0x4c7   : >> { %5426 = vrot.lane.b32.xlu0 %v5383_v3, %s7164_s20  ;;  %6920 = vpow2.f32 %v4162_v28  ;;  %v10135_v13 = vmul.f32 %v5629_v36, %v5565_v59  ;;  %v5551_v25 = vmul.f32 %v10064_v46, %v10940_v4  ;;  %v10942_v36 = vld [vmem:[#allocation136_spill] sm:$0xff]  ;;  %v10944_v4 = vld [vmem:[#allocation54_spill] sm:$0xff] }
 0x4c8   : >> { %v5133_v39 = vpop.permute.xlu1 %5132  ;;  %v10130_v33 = vmul.f32 %v5628_v21, %v5564_v0  ;;  %v10941_v21 = vld [vmem:[#allocation135_spill] sm:$0xff] }
 0x4c9   : >> { %v5178_v10 = vadd.f32 %v5133_v39, %v5018_v6  ;;  %v5135_v18 = vpop.permute.xlu0 %5134  ;;  %v4492_v6 = vsub.f32 %v9285_v48, %v10934_v34  ;;  %v5550_v48 = vmul.f32 %v10061_v29, %v10939_v16 }
 0x4ca   : >> { %v6915_v43 = vpop.eup %6914  ;;  %5528 = vrot.lane.b32.xlu1 %v5482_v41, %s7164_s20  ;;  %v5179_v44 = vadd.f32 %v5135_v18, %v5019_v19 }
 0x4cb   : >> { %v6917_v42 = vpop.eup %6916  ;;  %v5598_v61 = vmul.f32 %v6915_v43, %v10067_v52  ;;  %5530 = vrot.lane.b32.xlu0 %v5483_v53, %s7164_s20  ;;  %v4512_v3 = vmul.f32 1.442695, %v4492_v6 }
 0x4cc   : >> { %v5599_v5 = vmul.f32 %v6917_v42, %v10071_v55  ;;  %v5157_v20 = vpop.permute.xlu1 %5156 }
 0x4cd   : >> { %v5190_v49 = vadd.f32 %v5157_v20, %v5030_v24  ;;  %v5159_v19 = vpop.permute.xlu0 %5158  ;;  %v5614_v26 = vsub.f32 2.0, %v5598_v61  ;;  %6922 = vpow2.f32 %v4512_v3  ;;  %v4143_v61 = vsub.f32 %v9304_v17, %v10942_v36 }
 0x4ce   : >> { %5820 = vrot.lane.b32.xlu1 %v10130_v33, %s7166_s22  ;;  %v5191_v52 = vadd.f32 %v5159_v19, %v5031_v14  ;;  %v5615_v55 = vsub.f32 2.0, %v5599_v5  ;;  %6924 = vpow2.f32 %v4514_v57 }
 0x4cf   : >> { %5822 = vrot.lane.b32.xlu0 %v10135_v13, %s7166_s22  ;;  %v5630_v54 = vmul.f32 %v6915_v43, %v5614_v26  ;;  %v4166_v31 = vmul.f32 1.442695, %v4143_v61 }
 0x4d0   : >> { %v5409_v63 = vpop.permute.xlu1 %5408  ;;  %v5631_v14 = vmul.f32 %v6917_v42, %v5615_v55 }
 0x4d1   : >> { %v5454_v34 = vadd.f32 %v5409_v63, %v5178_v10  ;;  %v5411_v24 = vpop.permute.xlu0 %5410 }
 0x4d2   : >> { %v5455_v51 = vadd.f32 %v5411_v24, %v5179_v44  ;;  %v4142_v44 = vsub.f32 %v9301_v45, %v10941_v21 }
 0x4d3   : >> { %v5566_v15 = vadd.f32 %v5550_v48, %v5454_v34  ;;  %v6919_v28 = vpop.eup %6918  ;;  %v10943_v48 = vld [vmem:[#allocation55_spill] sm:$0xff] }
 0x4d4   : >> { %v5567_v50 = vadd.f32 %v5551_v25, %v5455_v51  ;;  %v5433_v41 = vpop.permute.xlu1 %5432  ;;  %v6921_v46 = vpop.eup %6920  ;;  %v4860_v34 = vmul.f32 %v6919_v28, %v10943_v48  ;;  %v4494_v51 = vsub.f32 %v9312_v12, %v10941_v21  ;;  %v10946_v12 = vld [vmem:[#allocation118_spill] sm:$0xff]  ;;  %v10947_v48 = vld [vmem:[#allocation127_spill] sm:$0xff] }
 0x4d5   : >> { %v10147_v35 = vmul.f32 %v5630_v54, %v5566_v15  ;;  %v10149_v0 = vadd.f32 %v5433_v41, %v5190_v49  ;;  %v5435_v39 = vpop.permute.xlu0 %5434  ;;  %v4164_v49 = vmul.f32 1.442695, %v4142_v44  ;;  %v4861_v25 = vmul.f32 %v6921_v46, %v10944_v4  ;;  %v10949_v4 = vld [vmem:[#allocation128_spill] sm:$0xff] }
 0x4d6   : >> { %v10151_v53 = vmul.f32 %v5631_v14, %v5567_v50  ;;  %v10153_v29 = vadd.f32 %v5435_v39, %v5191_v52  ;;  %v4495_v14 = vsub.f32 %v9317_v58, %v10942_v36  ;;  %v4516_v39 = vmul.f32 1.442695, %v4494_v51 }
 0x4d7   : >> { %6926 = vpow2.f32 %v4164_v49 }
 0x4d8   : >> { %v4561_v59 = vpop.permute.xlu1 %4560  ;;  %6928 = vpow2.f32 %v4166_v31 }
 0x4d9   : >> { %v4604_v10 = vadd.f32 %v6919_v28, %v4561_v59  ;;  %v4563_v18 = vpop.permute.xlu0 %4562 }
 0x4da   : >> { %v4605_v43 = vadd.f32 %v6921_v46, %v4563_v18  ;;  %v6923_v55 = vpop.eup %6922  ;;  %v10945_v46 = vld [vmem:[#allocation117_spill] sm:$0xff] }
 0x4db   : >> { %v6925_v3 = vpop.eup %6924  ;;  %v5552_v44 = vmul.f32 %v6923_v55, %v10945_v46 }
 0x4dc   : >> { %v4641_v42 = vpop.permute.xlu1 %4640  ;;  %v5553_v21 = vmul.f32 %v6925_v3, %v10946_v12 }
 0x4dd   : >> { %v4684_v5 = vadd.f32 %v4641_v42, %v4604_v10  ;;  %v4643_v20 = vpop.permute.xlu0 %4642  ;;  %v4518_v10 = vmul.f32 1.442695, %v4495_v14 }
 0x4de   : >> { %v4685_v6 = vadd.f32 %v4643_v20, %v4605_v43 }
 0x4e0   : >> { %v4721_v19 = vpop.permute.xlu1 %4720 }
 0x4e1   : >> { %v4764_v52 = vadd.f32 %v4721_v19, %v4684_v5  ;;  %v4723_v26 = vpop.permute.xlu0 %4722 }
 0x4e2   : >> { %v4765_v63 = vadd.f32 %v4723_v26, %v4685_v6 }
 0x4e3   : >> { %v4780_v16 = vadd.f32 %v6923_v55, %v4764_v52 }
 0x4e4   : >> { %v4781_v24 = vadd.f32 %v6925_v3, %v4765_v63  ;;  %v4977_v57 = vpop.permute.xlu1 %4976  ;;  %v6927_v58 = vpop.eup %6926 }
 0x4e5   : >> { %6930 = vrcp.f32 %v4780_v16  ;;  %v5020_v54 = vadd.f32 %v4977_v57, %v4860_v34  ;;  %v4979_v15 = vpop.permute.xlu0 %4978  ;;  %v6929_v49 = vpop.eup %6928  ;;  %v10948_v34 = vld [vmem:[#allocation73_spill] sm:$0xff] }
 0x4e6   : >> { %6932 = vrcp.f32 %v4781_v24  ;;  %v5021_v50 = vadd.f32 %v4979_v15, %v4861_v25  ;;  %v4148_v55 = vsub.f32 %v10948_v34, %v10947_v48  ;;  %v10950_v25 = vld [vmem:[#allocation74_spill] sm:$0xff] }
 0x4e7   : >> { %6934 = vpow2.f32 %v4516_v39  ;;  %v4149_v51 = vsub.f32 %v10950_v25, %v10949_v4 }
 0x4e8   : >> { %v5137_v41 = vpop.permute.xlu1 %5136  ;;  %6936 = vpow2.f32 %v4518_v10  ;;  %v10951_v10 = vld [vmem:[#allocation137_spill] sm:$0xff] }
 0x4e9   : >> { %v5180_v28 = vadd.f32 %v5137_v41, %v5020_v54  ;;  %v5139_v59 = vpop.permute.xlu0 %5138 }
 0x4ea   : >> { %v5181_v18 = vadd.f32 %v5139_v59, %v5021_v50 }
 0x4ec   : >> { %v5413_v43 = vpop.permute.xlu1 %5412 }
 0x4ed   : >> { %v5456_v42 = vadd.f32 %v5413_v43, %v5180_v28  ;;  %v5415_v61 = vpop.permute.xlu0 %5414  ;;  %v4176_v28 = vmul.f32 1.442695, %v4148_v55  ;;  %v4178_v43 = vmul.f32 1.442695, %v4149_v51 }
 0x4ee   : >> { %v5457_v5 = vadd.f32 %v5415_v61, %v5181_v18  ;;  %v4144_v18 = vsub.f32 %v9331_v38, %v10951_v10 }
 0x4ef   : >> { %v5568_v20 = vadd.f32 %v5552_v44, %v5456_v42  ;;  %v10952_v42 = vld [vmem:[#allocation138_spill] sm:$0xff]  ;;  %6938 = vpow2.f32 %v4176_v28 }
 0x4f0   : >> { %v5569_v36 = vadd.f32 %v5553_v21, %v5457_v5  ;;  %v4565_v6 = vpop.permute.xlu1 %4564  ;;  %v10953_v5 = vld [vmem:[#allocation77_spill] sm:$0xff]  ;;  %6940 = vpow2.f32 %v4178_v43 }
 0x4f1   : >> { %v4606_v19 = vadd.f32 %v6927_v58, %v4565_v6  ;;  %v4567_v31 = vpop.permute.xlu0 %4566  ;;  %v4500_v6 = vsub.f32 %v10953_v5, %v10947_v48  ;;  %v4496_v48 = vsub.f32 %v9342_v7, %v10951_v10  ;;  %v10957_v10 = vld [vmem:[#allocation119_spill] sm:$0xff] }
 0x4f2   : >> { %v6931_v52 = vpop.eup %6930  ;;  %v4607_v26 = vadd.f32 %v6929_v49, %v4567_v31 }
 0x4f3   : >> { %v6933_v63 = vpop.eup %6932  ;;  %v5600_v57 = vmul.f32 %v6931_v52, %v4780_v16  ;;  %v4145_v16 = vsub.f32 %v9326_v32, %v10952_v42  ;;  %v4528_v28 = vmul.f32 1.442695, %v4500_v6 }
 0x4f4   : >> { %v5601_v3 = vmul.f32 %v6933_v63, %v4781_v24  ;;  %v4645_v54 = vpop.permute.xlu1 %4644  ;;  %v6935_v21 = vpop.eup %6934 }
 0x4f5   : >> { %v5616_v15 = vsub.f32 2.0, %v5600_v57  ;;  %v4686_v14 = vadd.f32 %v4645_v54, %v4606_v19  ;;  %v4647_v50 = vpop.permute.xlu0 %4646  ;;  %v10954_v19 = vld [vmem:[#allocation78_spill] sm:$0xff]  ;;  %v6937_v55 = vpop.eup %6936  ;;  %v10955_v57 = vld [vmem:[#allocation53_spill] sm:$0xff] }
 0x4f6   : >> { %v5617_v41 = vsub.f32 2.0, %v5601_v3  ;;  %v4687_v39 = vadd.f32 %v4647_v50, %v4607_v26  ;;  %v4501_v31 = vsub.f32 %v10954_v19, %v10949_v4  ;;  %v4862_v51 = vmul.f32 %v6927_v58, %v10955_v57 }
 0x4f7   : >> { %v5632_v59 = vmul.f32 %v6931_v52, %v5616_v15  ;;  %v4168_v3 = vmul.f32 1.442695, %v4144_v18  ;;  %v10956_v15 = vld [vmem:[#allocation50_spill] sm:$0xff]  ;;  %v4170_v50 = vmul.f32 1.442695, %v4145_v16  ;;  %v5554_v16 = vmul.f32 %v6935_v21, %v10957_v10 }
 0x4f8   : >> { %v5633_v46 = vmul.f32 %v6933_v63, %v5617_v41  ;;  %v4725_v44 = vpop.permute.xlu1 %4724  ;;  %v4497_v41 = vsub.f32 %v9337_v23, %v10952_v42  ;;  %v4530_v58 = vmul.f32 1.442695, %v4501_v31  ;;  %v4520_v18 = vmul.f32 1.442695, %v4496_v48  ;;  %v10958_v23 = vld [vmem:[#allocation120_spill] sm:$0xff] }
 0x4f9   : >> { %v10175_v61 = vmul.f32 %v5632_v59, %v5568_v20  ;;  %v4766_v24 = vadd.f32 %v4725_v44, %v4686_v14  ;;  %v4727_v12 = vpop.permute.xlu0 %4726  ;;  %v4863_v14 = vmul.f32 %v6929_v49, %v10956_v15  ;;  %v5555_v42 = vmul.f32 %v6937_v55, %v10958_v23  ;;  %v10959_v15 = vld [vmem:[#allocation89_spill] sm:$0xff]  ;;  %v10960_v48 = vld [vmem:[#allocation92_spill] sm:$0xff] }
 0x4fa   : >> { %v10181_v52 = vmul.f32 %v5633_v46, %v5569_v36  ;;  %v4767_v26 = vadd.f32 %v4727_v12, %v4687_v39  ;;  %v4522_v46 = vmul.f32 1.442695, %v4497_v41 }
 0x4fb   : >> { %v4782_v63 = vadd.f32 %v6935_v21, %v4766_v24  ;;  %v4502_v21 = vsub.f32 %v10959_v15, %v10916_v40  ;;  %v10961_v15 = vld [vmem:[#allocation57_spill] sm:$0xff] }
 0x4fc   : >> { %v4783_v20 = vadd.f32 %v6937_v55, %v4767_v26  ;;  %v4981_v54 = vpop.permute.xlu1 %4980  ;;  %v10191_v19 = vpop.eup %6938 }
 0x4fd   : >> { %6942 = vrcp.f32 %v4782_v63  ;;  %v5022_v4 = vadd.f32 %v4981_v54, %v4862_v51  ;;  %v4983_v36 = vpop.permute.xlu0 %4982  ;;  %v10193_v57 = vpop.eup %6940 }
 0x4fe   : >> { %6944 = vrcp.f32 %v4783_v20  ;;  %v5023_v39 = vadd.f32 %v4983_v36, %v4863_v14  ;;  %v4612_v14 = vadd.f32 %v10191_v19, %v9883_v2  ;;  %v4613_v36 = vadd.f32 %v10193_v57, %v9885_v8 }
 0x4ff   : >> { %6946 = vpow2.f32 %v4168_v3 }
 0x500   : >> { %v5141_v59 = vpop.permute.xlu1 %5140  ;;  %6948 = vpow2.f32 %v4170_v50  ;;  %v4693_v40 = vadd.f32 %v9905_v1, %v4613_v36 }
 0x501   : >> { %v5182_v43 = vadd.f32 %v5141_v59, %v5022_v4  ;;  %v5143_v49 = vpop.permute.xlu0 %5142  ;;  %6950 = vpow2.f32 %v4528_v28  ;;  %v4503_v4 = vsub.f32 %v10960_v48, %v10918_v47 }
 0x502   : >> { %v5183_v44 = vadd.f32 %v5143_v49, %v5023_v39  ;;  %6952 = vpow2.f32 %v4530_v58  ;;  %v4692_v58 = vadd.f32 %v9901_v60, %v4612_v14 }
 0x503   : >> { %6954 = vpow2.f32 %v4520_v18  ;;  %v4534_v8 = vmul.f32 1.442695, %v4503_v4 }
 0x504   : >> { %v5417_v7 = vpop.permute.xlu1 %5416  ;;  %6956 = vpow2.f32 %v4522_v46  ;;  %v4772_v46 = vadd.f32 %v9925_v27, %v4692_v58 }
 0x505   : >> { %v5458_v24 = vadd.f32 %v5417_v7, %v5182_v43  ;;  %v5419_v12 = vpop.permute.xlu0 %5418 }
 0x506   : >> { %v5459_v5 = vadd.f32 %v5419_v12, %v5183_v44 }
 0x507   : >> { %v5570_v6 = vadd.f32 %v5554_v16, %v5458_v24 }
 0x508   : >> { %v5571_v31 = vadd.f32 %v5555_v42, %v5459_v5  ;;  %v4569_v26 = vpop.permute.xlu1 %4568 }
 0x509   : >> { %v4571_v51 = vpop.permute.xlu0 %4570 }
 0x50a   : >> { %v6943_v3 = vpop.eup %6942 }
 0x50b   : >> { %v6945_v54 = vpop.eup %6944  ;;  %v5602_v50 = vmul.f32 %v6943_v3, %v4782_v63  ;;  %v4532_v63 = vmul.f32 1.442695, %v4502_v21 }
 0x50c   : >> { %v6947_v55 = vpop.eup %6946  ;;  %v5603_v41 = vmul.f32 %v6945_v54, %v4783_v20  ;;  %v4649_v39 = vpop.permute.xlu1 %4648  ;;  %v4773_v20 = vadd.f32 %v9929_v11, %v4693_v40  ;;  %v10964_v40 = vld [vmem:[#allocation68_spill] sm:$0xff] }
 0x50d   : >> { %v6949_v28 = vpop.eup %6948  ;;  %v5618_v59 = vsub.f32 2.0, %v5602_v50  ;;  %v4608_v18 = vadd.f32 %v6947_v55, %v4569_v26  ;;  %v4651_v43 = vpop.permute.xlu0 %4650  ;;  %6958 = vpow2.f32 %v4532_v63  ;;  %v4864_v11 = vmul.f32 %v6947_v55, %v10961_v15 }
 0x50e   : >> { %v5619_v49 = vsub.f32 2.0, %v5603_v41  ;;  %v4609_v2 = vadd.f32 %v6949_v28, %v4571_v51  ;;  %v10206_v7 = vpop.eup %6950  ;;  %6960 = vpow2.f32 %v4534_v8  ;;  %v4614_v55 = vadd.f32 %v10084_v56, %v10037_v22  ;;  %v10967_v8 = vld [vmem:[#allocation122_spill] sm:$0xff]  ;;  %v10969_v22 = vld [vmem:[#allocation96_spill] sm:$0xff] }
 0x50f   : >> { %v5634_v44 = vmul.f32 %v6943_v3, %v5618_v59  ;;  %v4688_v47 = vadd.f32 %v4649_v39, %v4608_v18  ;;  %v10209_v24 = vpop.eup %6952  ;;  %v4788_v51 = vadd.f32 %v10206_v7, %v4772_v46  ;;  %v10963_v59 = vld [vmem:[#allocation67_spill] sm:$0xff] }
 0x510   : >> { %v5635_v10 = vmul.f32 %v6945_v54, %v5619_v49  ;;  %v4689_v16 = vadd.f32 %v4651_v43, %v4609_v2  ;;  %v4729_v60 = vpop.permute.xlu1 %4728  ;;  %v6955_v42 = vpop.eup %6954  ;;  %v4789_v54 = vadd.f32 %v10209_v24, %v4773_v20  ;;  %v4615_v18 = vadd.f32 %v10098_v37, %v10963_v59  ;;  %v10965_v49 = vld [vmem:[#allocation121_spill] sm:$0xff] }
 0x511   : >> { %v10211_v12 = vmul.f32 %v5634_v44, %v5570_v6  ;;  %v4768_v1 = vadd.f32 %v4729_v60, %v4688_v47  ;;  %v4731_v23 = vpop.permute.xlu0 %4730  ;;  %v6957_v26 = vpop.eup %6956  ;;  %v10962_v6 = vld [vmem:[#allocation58_spill] sm:$0xff]  ;;  %v5556_v2 = vmul.f32 %v6955_v42, %v10965_v49 }
 0x512   : >> { %v10213_v5 = vmul.f32 %v5635_v10, %v5571_v31  ;;  %v4769_v27 = vadd.f32 %v4731_v23, %v4689_v16  ;;  %v4865_v50 = vmul.f32 %v6949_v28, %v10962_v6  ;;  %v4694_v28 = vadd.f32 %v10964_v40, %v4614_v55  ;;  %v10966_v44 = vld [vmem:[#allocation90_spill] sm:$0xff]  ;;  %v10968_v16 = vld [vmem:[#allocation91_spill] sm:$0xff] }
 0x513   : >> { %v4784_v3 = vadd.f32 %v6955_v42, %v4768_v1  ;;  %v4695_v47 = vadd.f32 %v10966_v44, %v4615_v18  ;;  %v5557_v20 = vmul.f32 %v6957_v26, %v10967_v8 }
 0x514   : >> { %v4785_v21 = vadd.f32 %v6957_v26, %v4769_v27  ;;  %v4985_v14 = vpop.permute.xlu1 %4984  ;;  %v4774_v60 = vadd.f32 %v10968_v16, %v4694_v28  ;;  %v10974_v28 = vld [vmem:[#allocation62_spill] sm:$0xff]  ;;  %v10976_v16 = vld [vmem:[#allocation85_spill] sm:$0xff] }
 0x515   : >> { %6962 = vrcp.f32 %v4784_v3  ;;  %v5024_v48 = vadd.f32 %v4985_v14, %v4864_v11  ;;  %v4987_v4 = vpop.permute.xlu0 %4986  ;;  %v4775_v56 = vadd.f32 %v10969_v22, %v4695_v47  ;;  %v4868_v49 = vmul.f32 %v10191_v19, %v10974_v28 }
 0x516   : >> { %6964 = vrcp.f32 %v4785_v21  ;;  %v5025_v31 = vadd.f32 %v4987_v4, %v4865_v50  ;;  %v10970_v50 = vld [vmem:[#allocation139_spill] sm:$0xff] }
 0x517   : >> { %6966 = vrcp.f32 %v4788_v51 }
 0x518   : >> { %6968 = vrcp.f32 %v4789_v54  ;;  %v5145_v36 = vpop.permute.xlu1 %5144 }
 0x519   : >> { %v5184_v41 = vadd.f32 %v5145_v36, %v5024_v48  ;;  %v5147_v39 = vpop.permute.xlu0 %5146  ;;  %v10971_v48 = vld [vmem:[#allocation104_spill] sm:$0xff] }
 0x51a   : >> { %v5185_v58 = vadd.f32 %v5147_v39, %v5025_v31  ;;  %v10228_v23 = vpop.eup %6958  ;;  %v4146_v4 = vsub.f32 %v10971_v48, %v10970_v50  ;;  %v10972_v39 = vld [vmem:[#allocation140_spill] sm:$0xff] }
 0x51b   : >> { %v10233_v15 = vpop.eup %6960  ;;  %v4790_v6 = vadd.f32 %v10228_v23, %v4774_v60  ;;  %v5028_v60 = vadd.f32 %v10976_v16, %v4868_v49 }
 0x51c   : >> { %v5421_v43 = vpop.permute.xlu1 %5420  ;;  %v4791_v36 = vadd.f32 %v10233_v15, %v4775_v56 }
 0x51d   : >> { %v5460_v63 = vadd.f32 %v5421_v43, %v5184_v41  ;;  %v5423_v46 = vpop.permute.xlu0 %5422  ;;  %6970 = vrcp.f32 %v4790_v6 }
 0x51e   : >> { %v5461_v10 = vadd.f32 %v5423_v46, %v5185_v58  ;;  %v10973_v58 = vld [vmem:[#allocation101_spill] sm:$0xff]  ;;  %6972 = vrcp.f32 %v4791_v36 }
 0x51f   : >> { %v5572_v1 = vadd.f32 %v5556_v2, %v5460_v63  ;;  %v4147_v55 = vsub.f32 %v10973_v58, %v10972_v39 }
 0x520   : >> { %v5573_v37 = vadd.f32 %v5557_v20, %v5461_v10  ;;  %v10231_v27 = vpop.permute.xlu1 %4572 }
 0x521   : >> { %v10235_v42 = vpop.permute.xlu0 %4574  ;;  %v4174_v20 = vmul.f32 1.442695, %v4147_v55 }
 0x522   : >> { %v6963_v11 = vpop.eup %6962 }
 0x523   : >> { %v6965_v14 = vpop.eup %6964  ;;  %v5604_v26 = vmul.f32 %v6963_v11, %v4784_v3  ;;  %v10975_v3 = vld [vmem:[#allocation63_spill] sm:$0xff] }
 0x524   : >> { %v6967_v31 = vpop.eup %6966  ;;  %v5605_v41 = vmul.f32 %v6965_v14, %v4785_v21  ;;  %v10243_v59 = vpop.permute.xlu1 %4652  ;;  %v4869_v2 = vmul.f32 %v10193_v57, %v10975_v3  ;;  %v4172_v21 = vmul.f32 1.442695, %v4146_v4  ;;  %v10978_v57 = vld [vmem:[#allocation107_spill] sm:$0xff]  ;;  %v10982_v3 = vld [vmem:[#allocation110_spill] sm:$0xff] }
 0x525   : >> { %v6969_v18 = vpop.eup %6968  ;;  %v5620_v43 = vsub.f32 2.0, %v5604_v26  ;;  %v10245_v40 = vpop.permute.xlu0 %4654  ;;  %v5608_v46 = vmul.f32 %v6967_v31, %v4788_v51  ;;  %v10977_v26 = vld [vmem:[#allocation86_spill] sm:$0xff]  ;;  %v4498_v51 = vsub.f32 %v10978_v57, %v10970_v50 }
 0x526   : >> { %v5621_v63 = vsub.f32 2.0, %v5605_v41  ;;  %v5609_v47 = vmul.f32 %v6969_v18, %v4789_v54  ;;  %v5029_v19 = vadd.f32 %v10977_v26, %v4869_v2  ;;  %6974 = vpow2.f32 %v4172_v21  ;;  %v10980_v54 = vld [vmem:[#allocation105_spill] sm:$0xff] }
 0x527   : >> { %v5636_v44 = vmul.f32 %v6963_v11, %v5620_v43  ;;  %v5624_v41 = vsub.f32 2.0, %v5608_v46  ;;  %v10979_v11 = vld [vmem:[#allocation94_spill] sm:$0xff]  ;;  %v10981_v43 = vld [vmem:[#allocation93_spill] sm:$0xff]  ;;  %6976 = vpow2.f32 %v4174_v20  ;;  %v4524_v46 = vmul.f32 1.442695, %v4498_v51 }
 0x528   : >> { %v5637_v8 = vmul.f32 %v6965_v14, %v5621_v63  ;;  %v4733_v10 = vpop.permute.xlu1 %4732  ;;  %v5188_v4 = vadd.f32 %v10979_v11, %v5028_v60  ;;  %v4499_v14 = vsub.f32 %v10980_v54, %v10972_v39  ;;  %v5625_v55 = vsub.f32 2.0, %v5609_v47 }
 0x529   : >> { %v10252_v22 = vmul.f32 %v5636_v44, %v5572_v1  ;;  %v4735_v56 = vpop.permute.xlu0 %4734  ;;  %v5189_v49 = vadd.f32 %v10981_v43, %v5029_v19  ;;  %v10983_v44 = vld [vmem:[#allocation109_spill] sm:$0xff]  ;;  %v5640_v16 = vmul.f32 %v6967_v31, %v5624_v41  ;;  %6978 = vpow2.f32 %v4524_v46 }
 0x52a   : >> { %v10255_v28 = vmul.f32 %v5637_v8, %v5573_v37  ;;  %v5464_v63 = vadd.f32 %v10982_v3, %v5188_v4  ;;  %v4526_v60 = vmul.f32 1.442695, %v4499_v14  ;;  %v5641_v26 = vmul.f32 %v6969_v18, %v5625_v55 }
 0x52b   : >> { %v5465_v8 = vadd.f32 %v10983_v44, %v5189_v49 }
 0x52c   : >> { %v5525_v1 = vpop.permute.xlu1 %5524  ;;  %6980 = vpow2.f32 %v4526_v60 }
 0x52d   : >> { %v5560_v37 = vmul.f32 %v10206_v7, %v5525_v1  ;;  %v5527_v2 = vpop.permute.xlu0 %5526  ;;  %v6971_v7 = vpop.eup %6970  ;;  %6982 = vtanh.f32 %v10130_v33 }
 0x52e   : >> { %v5561_v50 = vmul.f32 %v10209_v24, %v5527_v2  ;;  %v6973_v24 = vpop.eup %6972  ;;  %v5610_v18 = vmul.f32 %v6971_v7, %v4790_v6  ;;  %6984 = vtanh.f32 %v10135_v13  ;;  %v10299_v13 = vld [vmem:[#allocation6] sm:$0xff] }
 0x52f   : >> { %v5576_v21 = vadd.f32 %v5560_v37, %v5464_v63  ;;  %v5611_v41 = vmul.f32 %v6973_v24, %v4791_v36 }
 0x530   : >> { %v5577_v39 = vadd.f32 %v5561_v50, %v5465_v8  ;;  %v10267_v47 = vpop.permute.xlu1 %4988  ;;  %v5626_v36 = vsub.f32 2.0, %v5610_v18  ;;  %v10302_v8 = vld [vmem:[#allocation6 + $0x8] sm:$0xff] }
 0x531   : >> { %v5656_v19 = vmul.f32 %v5640_v16, %v5576_v21  ;;  %v10269_v20 = vpop.permute.xlu0 %4990  ;;  %v5627_v49 = vsub.f32 2.0, %v5611_v41 }
 0x532   : >> { %v5657_v57 = vmul.f32 %v5641_v26, %v5577_v39  ;;  %v5642_v44 = vmul.f32 %v6971_v7, %v5626_v36 }
 0x533   : >> { %5844 = vrot.lane.b32.xlu1 %v5656_v19, %s7166_s22  ;;  %v10279_v51 = vpop.eup %6974  ;;  %6986 = vtanh.f32 %v5656_v19  ;;  %v10984_v19 = vld [vmem:[#allocation52_spill] sm:$0xff] }
 0x534   : >> { %v10272_v11 = vpop.permute.xlu1 %5148  ;;  %5846 = vrot.lane.b32.xlu0 %v5657_v57, %s7166_s22  ;;  %v10285_v54 = vpop.eup %6976  ;;  %v4610_v14 = vadd.f32 %v10279_v51, %v10231_v27  ;;  %6988 = vtanh.f32 %v5657_v57  ;;  %v10985_v57 = vld [vmem:[#allocation46_spill] sm:$0xff] }
 0x535   : >> { %v10275_v31 = vpop.permute.xlu0 %5150  ;;  %v4611_v6 = vadd.f32 %v10285_v54, %v10235_v42  ;;  %6990 = vtanh.f32 %v10147_v35  ;;  %v2939_v7 = vadd.f32 %v10985_v57, %v10984_v19  ;;  %v10991_v19 = vld [vmem:[#allocation125_spill] sm:$0xff] }
 0x536   : >> { %v4690_v43 = vadd.f32 %v10243_v59, %v4610_v14  ;;  %v10304_v59 = vpop.eup %6978  ;;  %6992 = vtanh.f32 %v10151_v53 }
 0x537   : >> { %5824 = vrot.lane.b32.xlu1 %v10147_v35, %s7166_s22  ;;  %v4691_v1 = vadd.f32 %v10245_v40, %v4611_v6  ;;  %v5643_v40 = vmul.f32 %v6973_v24, %v5627_v49  ;;  %v6483_v18 = vmul.f32 -1.442695, %v2939_v7  ;;  %v10992_v7 = vld [vmem:[#allocation126_spill] sm:$0xff] }
 0x538   : >> { %v10281_v4 = vpop.permute.xlu1 %5424  ;;  %5826 = vrot.lane.b32.xlu0 %v10151_v53, %s7166_s22  ;;  %v4770_v63 = vadd.f32 %v4733_v10, %v4690_v43  ;;  %v10986_v53 = vld [vmem:[#allocation48_spill] sm:$0xff] }
 0x539   : >> { %v10290_v55 = vpop.permute.xlu0 %5426  ;;  %v4771_v27 = vadd.f32 %v4735_v56, %v4691_v1  ;;  %v10307_v46 = vpop.eup %6980  ;;  %v2940_v24 = vadd.f32 %v10985_v57, %v10986_v53  ;;  %v10987_v1 = vld [vmem:[#allocation59_spill] sm:$0xff] }
 0x53b   : >> { %v4787_v21 = vadd.f32 %v10307_v46, %v4771_v27  ;;  %v6484_v14 = vmul.f32 -1.442695, %v2940_v24  ;;  %v10993_v24 = vld [vmem:[#allocation61_spill] sm:$0xff] }
 0x53c   : >> { %v5529_v3 = vpop.permute.xlu1 %5528 }
 0x53d   : >> { %v5562_v33 = vmul.f32 %v10228_v23, %v5529_v3  ;;  %v5531_v37 = vpop.permute.xlu0 %5530  ;;  %v4786_v23 = vadd.f32 %v10304_v59, %v4770_v63  ;;  %v4866_v3 = vmul.f32 %v10279_v51, %v10987_v1  ;;  %v10996_v1 = vld [vmem:[#allocation82_spill] sm:$0xff] }
 0x53e   : >> { %v5563_v2 = vmul.f32 %v10233_v15, %v5531_v37  ;;  %v10988_v37 = vld [vmem:[#allocation60_spill] sm:$0xff] }
 0x53f   : >> { %v5578_v42 = vadd.f32 %v5562_v33, %v10149_v0  ;;  %6994 = vrcp.f32 %v4786_v23  ;;  %v4867_v27 = vmul.f32 %v10285_v54, %v10988_v37  ;;  %v10997_v37 = vld [vmem:[#allocation83_spill] sm:$0xff] }
 0x540   : >> { %v5579_v10 = vadd.f32 %v5563_v2, %v10153_v29  ;;  %v5821_v50 = vpop.permute.xlu1 %5820  ;;  %v6983_v29 = vpop.eup %6982  ;;  %6996 = vrcp.f32 %v4787_v21  ;;  %v5026_v2 = vadd.f32 %v10267_v47, %v4866_v3  ;;  %v6524_v3 = vmul.f32 -1.442695, %v10996_v1 }
 0x541   : >> { %v5658_v56 = vmul.f32 %v5642_v44, %v5578_v42  ;;  %v5868_v15 = vmul.f32 %v5821_v50, %v10299_v13  ;;  %v5823_v16 = vpop.permute.xlu0 %5822  ;;  %v6985_v26 = vpop.eup %6984  ;;  %v6530_v1 = vmul.f32 -1.442695, %v9326_v32 }
 0x542   : >> { %v5659_v60 = vmul.f32 %v5643_v40, %v5579_v10  ;;  %v5869_v0 = vmul.f32 %v5823_v16, %v10302_v8  ;;  %v6987_v35 = vpop.eup %6986  ;;  %v5186_v42 = vadd.f32 %v10272_v11, %v5026_v2 }
 0x543   : >> { %5884 = vst.msk [vmem:[#allocation3] sm:$0xff] %vm536_vm2, %v5868_v15  ;;  %5848 = vrot.lane.b32.xlu1 %v5658_v56, %s7166_s22  ;;  %6998 = vtanh.f32 %v5658_v56  ;;  %v6989_v39 = vpop.eup %6988 }
 0x544   : >> { %5885 = vst.msk [vmem:[#allocation3 + $0x8] sm:$0xff] %vm536_vm2, %v5869_v0  ;;  %5850 = vrot.lane.b32.xlu0 %v5659_v60, %s7166_s22  ;;  %7000 = vtanh.f32 %v5659_v60  ;;  %v6991_v41 = vpop.eup %6990  ;;  %v5462_v54 = vadd.f32 %v10281_v4, %v5186_v42 }
 0x545   : >> { %v6993_v6 = vpop.eup %6992  ;;  %7002 = vtanh.f32 %v10175_v61 }
 0x546   : >> { %7004 = vtanh.f32 %v10181_v52 }
 0x547   : >> { %5692 = vrot.lane.b32.xlu1 %v6983_v29, %s7166_s22  ;;  %7006 = vpow2.f32 %v6483_v18  ;;  %v6521_v18 = vmul.f32 -1.442695, %v10993_v24 }
 0x548   : >> { %5694 = vrot.lane.b32.xlu0 %v6985_v26, %s7166_s22  ;;  %7008 = vpow2.f32 %v6484_v14 }
 0x549   : >> { %7010 = vtanh.f32 %v10211_v12 }
 0x54a   : >> { %7012 = vtanh.f32 %v10213_v5 }
 0x54b   : >> { %5716 = vrot.lane.b32.xlu1 %v6987_v35, %s7166_s22  ;;  %7014 = vtanh.f32 %v10252_v22 }
 0x54c   : >> { %5718 = vrot.lane.b32.xlu0 %v6989_v39, %s7166_s22  ;;  %v6995_v36 = vpop.eup %6994  ;;  %7016 = vtanh.f32 %v10255_v28 }
 0x54d   : >> { %v6997_v43 = vpop.eup %6996  ;;  %v5606_v49 = vmul.f32 %v6995_v36, %v4786_v23  ;;  %v10990_v23 = vld [vmem:[#allocation124_spill] sm:$0xff] }
 0x54e   : >> { %v5607_v33 = vmul.f32 %v6997_v43, %v4787_v21  ;;  %v5559_v56 = vmul.f32 %v10307_v46, %v10990_v23 }
 0x54f   : >> { %5828 = vrot.lane.b32.xlu1 %v10175_v61, %s7166_s22  ;;  %v5622_v44 = vsub.f32 2.0, %v5606_v49 }
 0x550   : >> { %5830 = vrot.lane.b32.xlu0 %v10181_v52, %s7166_s22  ;;  %v6999_v63 = vpop.eup %6998  ;;  %v5027_v52 = vadd.f32 %v10269_v20, %v4867_v27  ;;  %v5623_v51 = vsub.f32 2.0, %v5607_v33  ;;  %v10989_v20 = vld [vmem:[#allocation123_spill] sm:$0xff]  ;;  %v10385_v33 = vld [vmem:[#allocation6 + $0x68] sm:$0xff]  ;;  %v6535_v27 = vmul.f32 -1.442695, %v10997_v37 }
 0x551   : >> { %v7001_v61 = vpop.eup %7000  ;;  %v5558_v10 = vmul.f32 %v10304_v59, %v10989_v20  ;;  %v5638_v50 = vmul.f32 %v6995_v36, %v5622_v44  ;;  %v6534_v36 = vmul.f32 -1.442695, %v10950_v25 }
 0x552   : >> { %v5187_v40 = vadd.f32 %v10275_v31, %v5027_v52  ;;  %v7003_v11 = vpop.eup %7002  ;;  %v5639_v15 = vmul.f32 %v6997_v43, %v5623_v51  ;;  %v10995_v43 = vld [vmem:[#allocation81_spill] sm:$0xff] }
 0x553   : >> { %5696 = vrot.lane.b32.xlu1 %v6991_v41, %s7166_s22  ;;  %v7005_v31 = vpop.eup %7004  ;;  %v5574_v16 = vadd.f32 %v5558_v10, %v5462_v54  ;;  %v10994_v41 = vld [vmem:[#allocation64_spill] sm:$0xff]  ;;  %v6523_v49 = vmul.f32 -1.442695, %v10995_v43  ;;  %v10394_v54 = vld [vmem:[#allocation6 + $0x18] sm:$0xff] }
 0x554   : >> { %5698 = vrot.lane.b32.xlu0 %v6993_v6, %s7166_s22  ;;  %v5463_v47 = vadd.f32 %v10290_v55, %v5187_v40  ;;  %v7007_v4 = vpop.eup %7006  ;;  %v6522_v14 = vmul.f32 -1.442695, %v10994_v41  ;;  %v6533_v6 = vmul.f32 -1.442695, %v10948_v34  ;;  %v10998_v34 = vld [vmem:[#allocation84_spill] sm:$0xff]  ;;  %v10391_v40 = vld [vmem:[#allocation6 + $0x10] sm:$0xff] }
 0x555   : >> { %v7009_v55 = vpop.eup %7008  ;;  %v2947_v21 = vadd.f32 1.0, %v7007_v4  ;;  %v6536_v52 = vmul.f32 -1.442695, %v10998_v34 }
 0x556   : >> { %v2948_v46 = vadd.f32 1.0, %v7009_v55  ;;  %v7011_v60 = vpop.eup %7010 }
 0x557   : >> { %5720 = vrot.lane.b32.xlu1 %v6999_v63, %s7166_s22  ;;  %v7013_v0 = vpop.eup %7012  ;;  %v10383_v63 = vld [vmem:[#allocation6 + $0x60] sm:$0xff] }
 0x558   : >> { %5722 = vrot.lane.b32.xlu0 %v7001_v61, %s7166_s22  ;;  %v7015_v29 = vpop.eup %7014 }
 0x55b   : >> { %5832 = vrot.lane.b32.xlu1 %v10211_v12, %s7166_s22  ;;  %v5575_v12 = vadd.f32 %v5559_v56, %v5463_v47 }
 0x55c   : >> { %5834 = vrot.lane.b32.xlu0 %v10213_v5, %s7166_s22  ;;  %v5654_v5 = vmul.f32 %v5638_v50, %v5574_v16  ;;  %v6526_v16 = vmul.f32 -1.442695, %v9271_v30  ;;  %v6528_v30 = vmul.f32 -1.442695, %v9304_v17 }
 0x55d   : >> { %v5655_v59 = vmul.f32 %v5639_v15, %v5575_v12  ;;  %v6525_v15 = vmul.f32 -1.442695, %v9265_v9  ;;  %v6527_v9 = vmul.f32 -1.442695, %v9301_v45 }
 0x55e   : >> { %7018 = vtanh.f32 %v5654_v5 }
 0x55f   : >> { %5700 = vrot.lane.b32.xlu1 %v7003_v11, %s7166_s22  ;;  %7020 = vtanh.f32 %v5655_v59 }
 0x560   : >> { %5702 = vrot.lane.b32.xlu0 %v7005_v31, %s7166_s22  ;;  %7022 = vrcp.f32 %v2947_v21  ;;  %v10407_v21 = vld [vmem:[#allocation6 + $0x78] sm:$0xff] }
 0x561   : >> { %7024 = vrcp.f32 %v2948_v46 }
 0x562   : >> { %7026 = vpow2.f32 %v6521_v18 }
 0x563   : >> { %5836 = vrot.lane.b32.xlu1 %v10252_v22, %s7166_s22  ;;  %v7017_v22 = vpop.eup %7016  ;;  %7028 = vpow2.f32 %v6522_v14 }
 0x564   : >> { %5838 = vrot.lane.b32.xlu0 %v10255_v28, %s7166_s22  ;;  %7030 = vpow2.f32 %v6533_v6  ;;  %v6529_v6 = vmul.f32 -1.442695, %v9331_v38 }
 0x565   : >> { %7032 = vpow2.f32 %v6534_v36 }
 0x566   : >> { %7034 = vpow2.f32 %v6523_v49 }
 0x567   : >> { %5704 = vrot.lane.b32.xlu1 %v7011_v60, %s7166_s22  ;;  %7036 = vpow2.f32 %v6524_v3 }
 0x568   : >> { %5706 = vrot.lane.b32.xlu0 %v7013_v0, %s7166_s22  ;;  %7038 = vpow2.f32 %v6535_v27 }
 0x569   : >> { %7040 = vpow2.f32 %v6536_v52  ;;  %v10422_v52 = vld [vmem:[#allocation6 + $0x28] sm:$0xff] }
 0x56b   : >> { %5840 = vrot.lane.b32.xlu1 %v5654_v5, %s7166_s22  ;;  %v7019_v28 = vpop.eup %7018 }
 0x56c   : >> { %5842 = vrot.lane.b32.xlu0 %v5655_v59, %s7166_s22  ;;  %v7021_v26 = vpop.eup %7020  ;;  %v10404_v59 = vld [vmem:[#allocation6 + $0x70] sm:$0xff] }
 0x56d   : >> { %v7023_v35 = vpop.eup %7022 }
 0x56e   : >> { %v7025_v39 = vpop.eup %7024  ;;  %v2963_v57 = vmul.f32 %v7023_v35, %v10991_v19 }
 0x56f   : >> { %5708 = vrot.lane.b32.xlu1 %v7015_v29, %s7166_s22  ;;  %v2964_v53 = vmul.f32 %v7025_v39, %v10992_v7  ;;  %v7027_v61 = vpop.eup %7026 }
 0x570   : >> { %5710 = vrot.lane.b32.xlu0 %v7017_v22, %s7166_s22  ;;  %v7029_v44 = vpop.eup %7028  ;;  %v3832_v47 = vadd.f32 1.0, %v7027_v61 }
 0x571   : >> { %v7031_v20 = vpop.eup %7030  ;;  %v3833_v50 = vadd.f32 1.0, %v7029_v44 }
 0x572   : >> { %v7033_v11 = vpop.eup %7032  ;;  %7042 = vrcp.f32 %v3832_v47  ;;  %v3844_v4 = vadd.f32 1.0, %v7031_v20 }
 0x573   : >> { %5712 = vrot.lane.b32.xlu1 %v7019_v28, %s7166_s22  ;;  %7044 = vrcp.f32 %v3833_v50  ;;  %v3845_v12 = vadd.f32 1.0, %v7033_v11  ;;  %v7035_v55 = vpop.eup %7034 }
 0x574   : >> { %5714 = vrot.lane.b32.xlu0 %v7021_v26, %s7166_s22  ;;  %7046 = vpow2.f32 %v6525_v15  ;;  %v7037_v5 = vpop.eup %7036  ;;  %v3834_v46 = vadd.f32 1.0, %v7035_v55 }
 0x575   : >> { %7048 = vpow2.f32 %v6526_v16  ;;  %v7039_v60 = vpop.eup %7038  ;;  %v3835_v29 = vadd.f32 1.0, %v7037_v5 }
 0x576   : >> { %7050 = vrcp.f32 %v3844_v4  ;;  %v7041_v22 = vpop.eup %7040  ;;  %v3846_v45 = vadd.f32 1.0, %v7039_v60  ;;  %v5763_v60 = vld [vmem:[#allocation6 + $0x38] sm:$0xff] }
 0x577   : >> { %5902 = vrot.lane.b32.xlu1 %v2963_v57, %s7166_s22  ;;  %7052 = vrcp.f32 %v3845_v12  ;;  %v3847_v19 = vadd.f32 1.0, %v7041_v22 }
 0x578   : >> { %5904 = vrot.lane.b32.xlu0 %v2964_v53, %s7166_s22  ;;  %7054 = vpow2.f32 %v6527_v9 }
 0x579   : >> { %7056 = vpow2.f32 %v6528_v30  ;;  %v5762_v30 = vld [vmem:[#allocation6 + $0x30] sm:$0xff] }
 0x57a   : >> { %7058 = vrcp.f32 %v3834_v46 }
 0x57b   : >> { %7060 = vrcp.f32 %v3835_v29 }
 0x57c   : >> { %7062 = vrcp.f32 %v3846_v45 }
 0x57d   : >> { %7064 = vrcp.f32 %v3847_v19 }
 0x57e   : >> { %7066 = vpow2.f32 %v6529_v6 }
 0x57f   : >> { %v7043_v39 = vpop.eup %7042  ;;  %7068 = vpow2.f32 %v6530_v1 }
 0x580   : >> { %v7045_v57 = vpop.eup %7044 }
 0x581   : >> { %v7047_v24 = vpop.eup %7046 }
 0x582   : >> { %v7049_v41 = vpop.eup %7048  ;;  %v3836_v61 = vadd.f32 1.0, %v7047_v24  ;;  %v5764_v24 = vld [vmem:[#allocation6 + $0x40] sm:$0xff] }
 0x583   : >> { %v7051_v36 = vpop.eup %7050  ;;  %v3837_v34 = vadd.f32 1.0, %v7049_v41  ;;  %v5765_v41 = vld [vmem:[#allocation6 + $0x48] sm:$0xff] }
 0x584   : >> { %v7053_v3 = vpop.eup %7052  ;;  %7070 = vrcp.f32 %v3836_v61 }
 0x585   : >> { %v7055_v47 = vpop.eup %7054  ;;  %7072 = vrcp.f32 %v3837_v34 }
 0x586   : >> { %v7057_v20 = vpop.eup %7056 }
 0x587   : >> { %v3839_v4 = vadd.f32 1.0, %v7057_v20 }
 0x5a5   : >> { %v5845_v2 = vpop.permute.xlu1 %5844 }
 0x5a6   : >> { %v5880_v25 = vmul.f32 %v5845_v2, %v10383_v63  ;;  %v5847_v42 = vpop.permute.xlu0 %5846 }
 0x5a7   : >> { %v5881_v51 = vmul.f32 %v5847_v42, %v10385_v33 }
 0x5a8   : >> { %5896 = vst.msk [vmem:[#allocation3 + $0x60] sm:$0xff] %vm536_vm2, %v5880_v25  ;;  %v6532_v25 = vmul.f32 -1.442695, %v10973_v58 }
 0x5a9   : >> { %5897 = vst.msk [vmem:[#allocation3 + $0x68] sm:$0xff] %vm536_vm2, %v5881_v51  ;;  %v5825_v10 = vpop.permute.xlu1 %5824 }
 0x5aa   : >> { %v5870_v23 = vmul.f32 %v5825_v10, %v10391_v40  ;;  %v5827_v56 = vpop.permute.xlu0 %5826 }
 0x5ab   : >> { %v5871_v31 = vmul.f32 %v5827_v56, %v10394_v54  ;;  %v3838_v56 = vadd.f32 1.0, %v7055_v47 }
 0x5ac   : >> { %5886 = vst.msk [vmem:[#allocation3 + $0x10] sm:$0xff] %vm536_vm2, %v5870_v23 }
 0x5ad   : >> { %5887 = vst.msk [vmem:[#allocation3 + $0x18] sm:$0xff] %vm536_vm2, %v5871_v31 }
 0x5b5   : >> { %v5849_v0 = vpop.permute.xlu1 %5848 }
 0x5b6   : >> { %v5882_v28 = vmul.f32 %v5849_v0, %v10404_v59  ;;  %v5851_v26 = vpop.permute.xlu0 %5850 }
 0x5b7   : >> { %v5883_v35 = vmul.f32 %v5851_v26, %v10407_v21 }
 0x5b8   : >> { %5898 = vst.msk [vmem:[#allocation3 + $0x70] sm:$0xff] %vm536_vm2, %v5882_v28 }
 0x5b9   : >> { %5899 = vst.msk [vmem:[#allocation3 + $0x78] sm:$0xff] %vm536_vm2, %v5883_v35  ;;  %v5693_v17 = vpop.permute.xlu1 %5692 }
 0x5ba   : >> { %v5740_v7 = vmul.f32 %v7043_v39, %v5693_v17  ;;  %v5695_v53 = vpop.permute.xlu0 %5694 }
 0x5bb   : >> { %v5741_v18 = vmul.f32 %v7045_v57, %v5695_v53 }
 0x5bc   : >> { %v5772_v14 = vmul.f32 %v10299_v13, %v5740_v7  ;;  %v10419_v13 = vld [vmem:[#allocation6 + $0x20] sm:$0xff] }
 0x5bd   : >> { %v5773_v43 = vmul.f32 %v10302_v8, %v5741_v18  ;;  %v5717_v49 = vpop.permute.xlu1 %5716  ;;  %v6531_v8 = vmul.f32 -1.442695, %v10971_v48  ;;  %v7059_v48 = vpop.eup %7058 }
 0x5be   : >> { %5788 = vst.msk [vmem:[#allocation2] sm:$0xff] %vm536_vm2, %v5772_v14  ;;  %v5752_v37 = vmul.f32 %v7051_v36, %v5717_v49  ;;  %v5719_v27 = vpop.permute.xlu0 %5718 }
 0x5bf   : >> { %5789 = vst.msk [vmem:[#allocation2 + $0x8] sm:$0xff] %vm536_vm2, %v5773_v43  ;;  %v5753_v2 = vmul.f32 %v7053_v3, %v5719_v27  ;;  %7074 = vpow2.f32 %v6531_v8  ;;  %v5767_v8 = vld [vmem:[#allocation6 + $0x58] sm:$0xff] }
 0x5c0   : >> { %v5784_v38 = vmul.f32 %v10383_v63, %v5752_v37  ;;  %7076 = vpow2.f32 %v6532_v25 }
 0x5c1   : >> { %v5785_v32 = vmul.f32 %v10385_v33, %v5753_v2  ;;  %v5829_v44 = vpop.permute.xlu1 %5828  ;;  %v7061_v33 = vpop.eup %7060  ;;  %7078 = vrcp.f32 %v3838_v56 }
 0x5c2   : >> { %5800 = vst.msk [vmem:[#allocation2 + $0x60] sm:$0xff] %vm536_vm2, %v5784_v38  ;;  %v5872_v42 = vmul.f32 %v5829_v44, %v10419_v13  ;;  %v5831_v51 = vpop.permute.xlu0 %5830  ;;  %v7063_v15 = vpop.eup %7062  ;;  %7080 = vrcp.f32 %v3839_v4  ;;  %v5766_v38 = vld [vmem:[#allocation6 + $0x50] sm:$0xff] }
 0x5c3   : >> { %5801 = vst.msk [vmem:[#allocation2 + $0x68] sm:$0xff] %vm536_vm2, %v5785_v32  ;;  %v5873_v63 = vmul.f32 %v5831_v51, %v10422_v52  ;;  %v7065_v12 = vpop.eup %7064 }
 0x5c4   : >> { %5888 = vst.msk [vmem:[#allocation3 + $0x20] sm:$0xff] %vm536_vm2, %v5872_v42 }
 0x5c5   : >> { %5889 = vst.msk [vmem:[#allocation3 + $0x28] sm:$0xff] %vm536_vm2, %v5873_v63  ;;  %v5697_v58 = vpop.permute.xlu1 %5696 }
 0x5c6   : >> { %v5742_v10 = vmul.f32 %v7059_v48, %v5697_v58  ;;  %v5699_v50 = vpop.permute.xlu0 %5698 }
 0x5c7   : >> { %v5743_v11 = vmul.f32 %v7061_v33, %v5699_v50 }
 0x5c8   : >> { %v5774_v23 = vmul.f32 %v10391_v40, %v5742_v10  ;;  %v7067_v40 = vpop.eup %7066 }
 0x5c9   : >> { %v5775_v31 = vmul.f32 %v10394_v54, %v5743_v11  ;;  %v5721_v16 = vpop.permute.xlu1 %5720  ;;  %v7069_v54 = vpop.eup %7068 }
 0x5ca   : >> { %5790 = vst.msk [vmem:[#allocation2 + $0x10] sm:$0xff] %vm536_vm2, %v5774_v23  ;;  %v5754_v55 = vmul.f32 %v7063_v15, %v5721_v16  ;;  %v5723_v5 = vpop.permute.xlu0 %5722  ;;  %v7071_v26 = vpop.eup %7070 }
 0x5cb   : >> { %5791 = vst.msk [vmem:[#allocation2 + $0x18] sm:$0xff] %vm536_vm2, %v5775_v31  ;;  %v5755_v9 = vmul.f32 %v7065_v12, %v5723_v5  ;;  %v7073_v45 = vpop.eup %7072 }
 0x5cc   : >> { %v5786_v46 = vmul.f32 %v10404_v59, %v5754_v55  ;;  %v3840_v59 = vadd.f32 1.0, %v7067_v40  ;;  %v7075_v39 = vpop.eup %7074  ;;  %v5913_v40 = vld [vmem:[#allocation2 + $0x8] sm:$0xff] (%p1351_p5) }
 0x5cd   : >> { %v5787_v0 = vmul.f32 %v10407_v21, %v5755_v9  ;;  %v5833_v29 = vpop.permute.xlu1 %5832  ;;  %v3841_v21 = vadd.f32 1.0, %v7069_v54  ;;  %v7077_v19 = vpop.eup %7076  ;;  %v3842_v14 = vadd.f32 1.0, %v7075_v39  ;;  %v10999_v9 = vmov (%p1351_p5), 0.0  }
 0x5ce   : >> { %5802 = vst.msk [vmem:[#allocation2 + $0x70] sm:$0xff] %vm536_vm2, %v5786_v46  ;;  %v5874_v22 = vmul.f32 %v5833_v29, %v5762_v30  ;;  %v5835_v28 = vpop.permute.xlu0 %5834  ;;  %7082 = vrcp.f32 %v3840_v59  ;;  %v3843_v43 = vadd.f32 1.0, %v7077_v19  ;;  %v7079_v37 = vpop.eup %7078  ;;  %6635 = vmatprep.subr.bf16.mxu0 (%p1351_p5), %v10999_v9  ;;  %6643 = vmatprep.subr.bf16.mxu1 (%p1351_p5), %v10999_v9  ;;  %v7125_v46 = vld [vmem:[%s10574_s9] sm:$0xff] (%p1351_p5)  }
 0x5cf   : >> { %5803 = vst.msk [vmem:[#allocation2 + $0x78] sm:$0xff] %vm536_vm2, %v5787_v0  ;;  %v5875_v35 = vmul.f32 %v5835_v28, %v5763_v60  ;;  %7084 = vrcp.f32 %v3841_v21  ;;  %v7081_v61 = vpop.eup %7080  ;;  %6639 = vmatprep.mubr.msk.bf16.mxu0 (%p1351_p5), %vm7167_vm15, %v10999_v9  ;;  %6651 = vmatprep.mubr.msk.bf16.mxu1 (%p1351_p5), %vm7167_vm15, %v10999_v9  ;;  %v5935_v28 = vsel (%p1351_p5), %vm536_vm2, %v5913_v40, 0.0  ;;  %v5925_v40 = vld [vmem:[#allocation2 + $0x68] sm:$0xff] (%p1351_p5) }
 0x5d0   : >> { %5890 = vst.msk [vmem:[#allocation3 + $0x30] sm:$0xff] %vm536_vm2, %v5874_v22  ;;  %7086 = vrcp.f32 %v3842_v14  ;;  %v5936_v39 = vrot.slane (%p1351_p5), %v5935_v28, 4 }
 0x5d1   : >> { %5891 = vst.msk [vmem:[#allocation3 + $0x38] sm:$0xff] %vm536_vm2, %v5875_v35  ;;  %v5701_v17 = vpop.permute.xlu1 %5700  ;;  %7088 = vrcp.f32 %v3843_v43  ;;  %v5914_v62 = vld [vmem:[#allocation2 + $0x10] sm:$0xff] (%p1351_p5) }
 0x5d2   : >> { %v5744_v57 = vmul.f32 %v7071_v26, %v5701_v17  ;;  %v5703_v7 = vpop.permute.xlu0 %5702  ;;  %v5915_v0 = vld [vmem:[#allocation2 + $0x18] sm:$0xff] (%p1351_p5)  ;;  %v5942_v26 = vsel (%p1351_p5), %vm536_vm2, %v5914_v62, 0.0 }
 0x5d3   : >> { %v5745_v53 = vmul.f32 %v7073_v45, %v5703_v7  ;;  %v5943_v17 = vrot.slane (%p1351_p5), %v5942_v26, 4  ;;  %v5949_v21 = vsel (%p1351_p5), %vm536_vm2, %v5915_v0, 0.0 }
 0x5d4   : >> { %v5776_v18 = vmul.f32 %v10419_v13, %v5744_v57 }
 0x5d5   : >> { %v5777_v6 = vmul.f32 %v10422_v52, %v5745_v53  ;;  %v5837_v36 = vpop.permute.xlu1 %5836  ;;  %v5937_v53 = vadd.f32 (%p1351_p5), %v5936_v39, %v5935_v28 }
 0x5d6   : >> { %5792 = vst.msk [vmem:[#allocation2 + $0x20] sm:$0xff] %vm536_vm2, %v5776_v18  ;;  %v5876_v49 = vmul.f32 %v5837_v36, %v5764_v24  ;;  %v5839_v1 = vpop.permute.xlu0 %5838  ;;  %v5950_v18 = vrot.slane (%p1351_p5), %v5949_v21, 4  ;;  %v5927_v28 = vld [vmem:[#allocation2 + $0x78] sm:$0xff] (%p1351_p5) }
 0x5d7   : >> { %5793 = vst.msk [vmem:[#allocation2 + $0x28] sm:$0xff] %vm536_vm2, %v5777_v6  ;;  %v5877_v3 = vmul.f32 %v5839_v1, %v5765_v41 }
 0x5d8   : >> { %5892 = vst.msk [vmem:[#allocation3 + $0x40] sm:$0xff] %vm536_vm2, %v5876_v49  ;;  %v5938_v49 = vrot.slane (%p1351_p5), %v5937_v53, 2 }
 0x5d9   : >> { %5893 = vst.msk [vmem:[#allocation3 + $0x48] sm:$0xff] %vm536_vm2, %v5877_v3  ;;  %v5705_v27 = vpop.permute.xlu1 %5704  ;;  %v5951_v3 = vadd.f32 (%p1351_p5), %v5950_v18, %v5949_v21 }
 0x5da   : >> { %v5746_v2 = vmul.f32 %v7079_v37, %v5705_v27  ;;  %v5707_v13 = vpop.permute.xlu0 %5706 }
 0x5db   : >> { %v5747_v34 = vmul.f32 %v7081_v61, %v5707_v13  ;;  %v7083_v47 = vpop.eup %7082 }
 0x5dc   : >> { %v5778_v52 = vmul.f32 %v5762_v30, %v5746_v2  ;;  %v7085_v20 = vpop.eup %7084  ;;  %v7124_v30 = vld [vmem:[%s10574_s9 + $0x8] sm:$0xff] (%p1351_p5)  }
 0x5dd   : >> { %v5779_v32 = vmul.f32 %v5763_v60, %v5747_v34  ;;  %v5841_v44 = vpop.permute.xlu1 %5840  ;;  %v7087_v50 = vpop.eup %7086  ;;  %6636 = vmatpush3.bf16.msra.mxu0 (%p1351_p5), %v7124_v30  ;;  %v5912_v60 = vld [vmem:[#allocation2] sm:$0xff] (%p1351_p5)  ;;  %v5939_v34 = vadd.f32 (%p1351_p5), %v5938_v49, %v5937_v53 }
 0x5de   : >> { %5794 = vst.msk [vmem:[#allocation2 + $0x30] sm:$0xff] %vm536_vm2, %v5778_v52  ;;  %v5878_v25 = vmul.f32 %v5841_v44, %v5766_v38  ;;  %v5843_v42 = vpop.permute.xlu0 %5842  ;;  %v7089_v56 = vpop.eup %7088  ;;  %6637 = vmatprep.subr.bf16.mxu0 (%p1351_p5), %v10999_v9  ;;  %v5916_v29 = vld [vmem:[#allocation2 + $0x20] sm:$0xff] (%p1351_p5)  ;;  %v5917_v54 = vld [vmem:[#allocation2 + $0x28] sm:$0xff] (%p1351_p5)  ;;  %v5928_v22 = vsel (%p1351_p5), %vm536_vm2, %v5912_v60, 0.0  ;;  %v5952_v52 = vrot.slane (%p1351_p5), %v5951_v3, 2 }
 0x5df   : >> { %5795 = vst.msk [vmem:[#allocation2 + $0x38] sm:$0xff] %vm536_vm2, %v5779_v32  ;;  %v5879_v51 = vmul.f32 %v5843_v42, %v5767_v8  ;;  %v5929_v59 = vrot.slane (%p1351_p5), %v5928_v22, 4  ;;  %v5956_v19 = vsel (%p1351_p5), %vm536_vm2, %v5916_v29, 0.0  ;;  %v5963_v57 = vsel (%p1351_p5), %vm536_vm2, %v5917_v54, 0.0 }
 0x5e0   : >> { %5894 = vst.msk [vmem:[#allocation3 + $0x50] sm:$0xff] %vm536_vm2, %v5878_v25  ;;  %v5964_v14 = vrot.slane (%p1351_p5), %v5963_v57, 4 }
 0x5e1   : >> { %5895 = vst.msk [vmem:[#allocation3 + $0x58] sm:$0xff] %vm536_vm2, %v5879_v51  ;;  %v5709_v63 = vpop.permute.xlu1 %5708  ;;  %6638 = vmatpush3.bf16.msra.mxu0 (%p1351_p5), %v7125_v46  ;;  %v5930_v7 = vadd.f32 (%p1351_p5), %v5929_v59, %v5928_v22  ;;  %v5926_v22 = vld [vmem:[#allocation2 + $0x70] sm:$0xff] (%p1351_p5) }
 0x5e2   : >> { %v5748_v48 = vmul.f32 %v7083_v47, %v5709_v63  ;;  %v5711_v58 = vpop.permute.xlu0 %5710  ;;  %v5965_v27 = vadd.f32 (%p1351_p5), %v5964_v14, %v5963_v57  ;;  %v5940_v47 = vrot.slane (%p1351_p5), %v5939_v34, 1  ;;  %v6026_v14 = vsel (%p1351_p5), %vm536_vm2, %v5926_v22, 0.0 }
 0x5e3   : >> { %v5749_v33 = vmul.f32 %v7085_v20, %v5711_v58  ;;  %v5931_v43 = vrot.slane (%p1351_p5), %v5930_v7, 2  ;;  %v5953_v20 = vadd.f32 (%p1351_p5), %v5952_v52, %v5951_v3 }
 0x5e4   : >> { %v5780_v10 = vmul.f32 %v5764_v24, %v5748_v48  ;;  %v5944_v24 = vadd.f32 (%p1351_p5), %v5943_v17, %v5942_v26  ;;  %v5966_v32 = vrot.slane (%p1351_p5), %v5965_v27, 2 }
 0x5e5   : >> { %v5781_v11 = vmul.f32 %v5765_v41, %v5749_v33  ;;  %v5713_v23 = vpop.permute.xlu1 %5712  ;;  %v5918_v35 = vld [vmem:[#allocation2 + $0x30] sm:$0xff] (%p1351_p5)  ;;  %v5957_v41 = vrot.slane (%p1351_p5), %v5956_v19, 4  ;;  %v5932_v13 = vadd.f32 (%p1351_p5), %v5931_v43, %v5930_v7 }
 0x5e6   : >> { %5796 = vst.msk [vmem:[#allocation2 + $0x40] sm:$0xff] %vm536_vm2, %v5780_v10  ;;  %v5750_v15 = vmul.f32 %v7087_v50, %v5713_v23  ;;  %v5715_v31 = vpop.permute.xlu0 %5714  ;;  %v5919_v45 = vld [vmem:[#allocation2 + $0x38] sm:$0xff] (%p1351_p5)  ;;  %v5970_v6 = vsel (%p1351_p5), %vm536_vm2, %v5918_v35, 0.0  ;;  %v5945_v1 = vrot.slane (%p1351_p5), %v5944_v24, 2  ;;  %v5967_v10 = vadd.f32 (%p1351_p5), %v5966_v32, %v5965_v27 }
 0x5e7   : >> { %5797 = vst.msk [vmem:[#allocation2 + $0x48] sm:$0xff] %vm536_vm2, %v5781_v11  ;;  %v5751_v16 = vmul.f32 %v7089_v56, %v5715_v31  ;;  %1353 = sbr.rel (!%p1351_p5) target bundleno = 263 (0x107), region = 115  ;;  %v5977_v36 = vsel (%p1351_p5), %vm536_vm2, %v5919_v45, 0.0  ;;  %v5958_v37 = vadd.f32 (%p1351_p5), %v5957_v41, %v5956_v19  ;;  %v5971_v61 = vrot.slane (%p1351_p5), %v5970_v6, 4 }
 0x5e8   : >> { %v5782_v4 = vmul.f32 %v5766_v38, %v5750_v15  ;;  %v5978_v2 = vrot.slane (%p1351_p5), %v5977_v36, 4  ;;  %v5946_v38 = vadd.f32 (%p1351_p5), %v5945_v1, %v5944_v24  ;;  %v5933_v51 = vrot.slane (%p1351_p5), %v5932_v13, 1 }
 0x5e9   : >> { %v5783_v12 = vmul.f32 %v5767_v8, %v5751_v16  ;;  %v5903_v55 = vpop.permute.xlu1 %5902  ;;  %v5959_v8 = vrot.slane (%p1351_p5), %v5958_v37, 2  ;;  %v5972_v44 = vadd.f32 (%p1351_p5), %v5971_v61, %v5970_v6  ;;  %v5954_v56 = vrot.slane (%p1351_p5), %v5953_v20, 1 }
 0x5ea   : >> { %5798 = vst.msk [vmem:[#allocation2 + $0x50] sm:$0xff] %vm536_vm2, %v5782_v4  ;;  %5908 = vst.msk [vmem:[#allocation4] sm:$0xff] %vm536_vm2, %v5903_v55  ;;  %v5905_v5 = vpop.permute.xlu0 %5904  ;;  %v5979_v25 = vadd.f32 (%p1351_p5), %v5978_v2, %v5977_v36  ;;  %v5947_v63 = vrot.slane (%p1351_p5), %v5946_v38, 1  ;;  %v10481_v23 = vadd.f32 (%p1351_p5), %v5933_v51, %v5932_v13  ;;  %v5968_v16 = vrot.slane (%p1351_p5), %v5967_v10, 1  ;;  %v5924_v55 = vld [vmem:[#allocation2 + $0x60] sm:$0xff] (%p1351_p5) }
 0x5eb   : >> { %5799 = vst.msk [vmem:[#allocation2 + $0x58] sm:$0xff] %vm536_vm2, %v5783_v12  ;;  %5909 = vst.msk [vmem:[#allocation4 + $0x8] sm:$0xff] %vm536_vm2, %v5905_v5  ;;  %v5960_v33 = vadd.f32 (%p1351_p5), %v5959_v8, %v5958_v37  ;;  %v5973_v50 = vrot.slane (%p1351_p5), %v5972_v44, 2  ;;  %v10483_v5 = vadd.f32 (%p1351_p5), %v5940_v47, %v5939_v34  ;;  %v10490_v0 = vadd.f32 (%p1351_p5), %v5954_v56, %v5953_v20 }
 0x5ec   : > { %v5980_v11 = vrot.slane %v5979_v25, 2  ;;  %v10488_v62 = vadd.f32 %v5947_v63, %v5946_v38  ;;  %v10494_v54 = vadd.f32 %v5968_v16, %v5967_v10  ;;  %v6012_v19 = vsel %vm536_vm2, %v5924_v55, 0.0 }
 0x5ed   : > { %v5920_v42 = vld [vmem:[#allocation2 + $0x40] sm:$0xff]  ;;  %v5961_v31 = vrot.slane %v5960_v33, 1  ;;  %v5974_v4 = vadd.f32 %v5973_v50, %v5972_v44  ;;  %v6013_v24 = vrot.slane %v6012_v19, 4  ;;  %v6019_v41 = vsel %vm536_vm2, %v5925_v40, 0.0 }
 0x5ee   : > { %v5921_v48 = vld [vmem:[#allocation2 + $0x48] sm:$0xff]  ;;  %v5981_v12 = vadd.f32 %v5980_v11, %v5979_v25  ;;  %v5984_v30 = vsel %vm536_vm2, %v5920_v42, 0.0  ;;  %v6033_v6 = vsel %vm536_vm2, %v5927_v28, 0.0  ;;  %v6020_v37 = vrot.slane %v6019_v41, 4 }
 0x5ef   : > { %v5991_v46 = vsel %vm536_vm2, %v5921_v48, 0.0  ;;  %v10492_v29 = vadd.f32 %v5961_v31, %v5960_v33  ;;  %v5985_v26 = vrot.slane %v5984_v30, 4  ;;  %v5975_v39 = vrot.slane %v5974_v4, 1 }
 0x5f0   : > { %v5992_v35 = vrot.slane %v5991_v46, 4  ;;  %v5982_v17 = vrot.slane %v5981_v12, 1  ;;  %v6014_v1 = vadd.f32 %v6013_v24, %v6012_v19  ;;  %v6027_v27 = vrot.slane %v6026_v14, 4 }
 0x5f1   : > { %v5922_v58 = vld [vmem:[#allocation2 + $0x50] sm:$0xff]  ;;  %v5986_v57 = vadd.f32 %v5985_v26, %v5984_v30  ;;  %v6034_v61 = vrot.slane %v6033_v6, 4  ;;  %v6021_v8 = vadd.f32 %v6020_v37, %v6019_v41  ;;  %v6040_v33 = vld [vmem:[#allocation4] sm:$0xff]  ;;  %v5976_v10 = vadd.f32 %v5975_v39, %v5974_v4 }
 0x5f2   : > { %v5923_v15 = vld [vmem:[#allocation2 + $0x58] sm:$0xff]  ;;  %v5998_v60 = vsel %vm536_vm2, %v5922_v58, 0.0  ;;  %v5993_v7 = vadd.f32 %v5992_v35, %v5991_v46  ;;  %v6015_v38 = vrot.slane %v6014_v1, 2  ;;  %v6028_v32 = vadd.f32 %v6027_v27, %v6026_v14  ;;  %v6041_v40 = vld [vmem:[#allocation4 + $0x8] sm:$0xff] }
 0x5f3   : > { %v5999_v45 = vrot.slane %v5998_v60, 4  ;;  %v6005_v59 = vsel %vm536_vm2, %v5923_v15, 0.0  ;;  %v5987_v36 = vrot.slane %v5986_v57, 2  ;;  %v6035_v44 = vadd.f32 %v6034_v61, %v6033_v6 }
 0x5f4   : > { %v6006_v21 = vrot.slane %v6005_v59, 4  ;;  %v5994_v43 = vrot.slane %v5993_v7, 2  ;;  %v6016_v47 = vadd.f32 %v6015_v38, %v6014_v1  ;;  %v6022_v20 = vrot.slane %v6021_v8, 2 }
 0x5f5   : > { %v6000_v53 = vadd.f32 %v5999_v45, %v5998_v60  ;;  %v5988_v2 = vadd.f32 %v5987_v36, %v5986_v57  ;;  %v6029_v48 = vrot.slane %v6028_v32, 2  ;;  %v6036_v58 = vrot.slane %v6035_v44, 2 }
 0x5f6   : > { %v6007_v18 = vadd.f32 %v6006_v21, %v6005_v59  ;;  %v5995_v13 = vadd.f32 %v5994_v43, %v5993_v7  ;;  %v5983_v50 = vadd.f32 %v5982_v17, %v5981_v12  ;;  %v6017_v56 = vrot.slane %v6016_v47, 1 }
 0x5f7   : > { %v6001_v49 = vrot.slane %v6000_v53, 2  ;;  %v5989_v25 = vrot.slane %v5988_v2, 1  ;;  %v6023_v31 = vadd.f32 %v6022_v20, %v6021_v8  ;;  %v6030_v16 = vadd.f32 %v6029_v48, %v6028_v32  ;;  %v11000_v32 = vld [vmem:[#allocation31_spill] sm:$0xff]  ;;  %v11006_v48 = vld [vmem:[#allocation36_spill] sm:$0xff] }
 0x5f8   : > { %v6008_v3 = vrot.slane %v6007_v18, 2  ;;  %v5996_v42 = vrot.slane %v5995_v13, 1  ;;  %v6037_v55 = vadd.f32 %v6036_v58, %v6035_v44  ;;  %v6018_v60 = vadd.f32 %v6017_v56, %v6016_v47  ;;  %v11001_v44 = vld [vmem:[#allocation32_spill] sm:$0xff]  ;;  %v11004_v47 = vld [vmem:[#allocation35_spill] sm:$0xff]  ;;  %v11009_v56 = vld [vmem:[#allocation37_spill] sm:$0xff] }
 0x5f9   : > { %v6002_v34 = vadd.f32 %v6001_v49, %v6000_v53  ;;  %v5990_v11 = vadd.f32 %v5989_v25, %v5988_v2  ;;  %v6044_v22 = vrot.slane %v6040_v33, 1  ;;  %v6024_v28 = vrot.slane %v6023_v31, 1 }
 0x5fa   : > { %v6009_v52 = vadd.f32 %v6008_v3, %v6007_v18  ;;  %v5997_v15 = vadd.f32 %v5996_v42, %v5995_v13  ;;  %v6031_v26 = vrot.slane %v6030_v16, 1  ;;  %v6038_v35 = vrot.slane %v6037_v55, 1  ;;  %v11002_v42 = vld [vmem:[#allocation33_spill] sm:$0xff] }
 0x5fb   : > { %v6003_v51 = vrot.slane %v6002_v34, 1  ;;  %v6045_v45 = vrot.slane %v6040_v33, 2  ;;  %v6046_v59 = vrot.slane %v6040_v33, 3  ;;  %v6047_v21 = vrot.slane %v6040_v33, 4 }
 0x5fc   : > { %v6010_v63 = vrot.slane %v6009_v52, 1  ;;  %v6048_v19 = vrot.slane %v6040_v33, 5  ;;  %v6049_v4 = vrot.slane %v6040_v33, 6  ;;  %v6025_v12 = vadd.f32 %v6024_v28, %v6023_v31  ;;  %v11010_v31 = vld [vmem:[#allocation38_spill] sm:$0xff]  ;;  %v11014_v28 = vld [vmem:[#allocation44_spill] sm:$0xff] }
 0x5fd   : > { %v6004_v30 = vadd.f32 %v6003_v51, %v6002_v34  ;;  %v6050_v39 = vrot.slane %v6040_v33, 7  ;;  %v6051_v17 = vrot.slane %v6041_v40, 1  ;;  %v6052_v57 = vrot.slane %v6041_v40, 2  ;;  %v11003_v51 = vld [vmem:[#allocation34_spill] sm:$0xff] }
 0x5fe   : > { %v6011_v46 = vadd.f32 %v6010_v63, %v6009_v52  ;;  %v6032_v7 = vadd.f32 %v6031_v26, %v6030_v16  ;;  %v6039_v53 = vadd.f32 %v6038_v35, %v6037_v55  ;;  %v6053_v24 = vrot.slane %v6041_v40, 3  ;;  %v11005_v63 = vld [vmem:[#allocation30_spill] sm:$0xff]  ;;  %v11011_v55 = vld [vmem:[#allocation41_spill] sm:$0xff] }
 0x5ff   : > { %v6054_v18 = vrot.slane %v6041_v40, 4  ;;  %v6055_v41 = vrot.slane %v6041_v40, 5  ;;  %v6056_v14 = vrot.slane %v6041_v40, 6  ;;  %v6075_v6 = vadd.f32 %v6044_v22, %v10483_v5 }
 0x600   : > { %v6076_v36 = vadd.f32 %v6045_v45, %v10488_v62  ;;  %v6057_v43 = vrot.slane %v6041_v40, 7  ;;  %v6077_v49 = vadd.f32 %v6046_v59, %v10490_v0  ;;  %v6078_v1 = vadd.f32 %v6047_v21, %v10492_v29  ;;  %v11015_v59 = vld [vmem:[#allocation45_spill] sm:$0xff] }
 0x601   : > { %v6079_v3 = vadd.f32 %v6048_v19, %v10494_v54  ;;  %v6074_v37 = vadd.f32 %v6040_v33, %v10481_v23  ;;  %v6080_v27 = vadd.f32 %v6049_v4, %v5976_v10  ;;  %v6083_v61 = vadd.f32 %v6051_v17, %v5997_v15  ;;  %v11007_v33 = vld [vmem:[#allocation39_spill] sm:$0xff] }
 0x602   : > { %v6084_v2 = vadd.f32 %v6052_v57, %v6004_v30  ;;  %v6081_v13 = vadd.f32 %v6050_v39, %v5983_v50  ;;  %v6082_v34 = vadd.f32 %v6041_v40, %v5990_v11  ;;  %v6085_v38 = vadd.f32 %v6053_v24, %v6011_v46  ;;  %v11008_v50 = vld [vmem:[#allocation40_spill] sm:$0xff]  ;;  %v11012_v46 = vld [vmem:[#allocation42_spill] sm:$0xff]  ;;  %v11013_v40 = vld [vmem:[#allocation43_spill] sm:$0xff] }
 0x603   : > { %v6086_v52 = vadd.f32 %v6054_v18, %v6018_v60  ;;  %v6087_v8 = vadd.f32 %v6055_v41, %v6025_v12  ;;  %v6088_v5 = vadd.f32 %v6056_v14, %v6032_v7  ;;  %v6091_v62 = vmul.f32 %v6075_v6, %v11000_v32 }
 0x604   : > { %v6092_v25 = vmul.f32 %v6076_v36, %v11001_v44  ;;  %v6089_v0 = vadd.f32 %v6057_v43, %v6039_v53  ;;  %v6093_v29 = vmul.f32 %v6077_v49, %v11002_v42  ;;  %v6094_v54 = vmul.f32 %v6078_v1, %v11003_v51 }
 0x605   : > { %v6095_v23 = vmul.f32 %v6079_v3, %v11004_v47  ;;  %v6090_v20 = vmul.f32 %v11005_v63, %v6074_v37  ;;  %v6096_v58 = vmul.f32 %v6080_v27, %v11006_v48  ;;  %v6099_v10 = vmul.f32 %v6083_v61, %v11007_v33 }
 0x606   : > { %v6100_v11 = vmul.f32 %v6084_v2, %v11008_v50  ;;  %v6097_v15 = vmul.f32 %v6081_v13, %v11009_v56  ;;  %v6098_v16 = vmul.f32 %v11010_v31, %v6082_v34  ;;  %v6101_v30 = vmul.f32 %v6085_v38, %v11011_v55 }
 0x607   : > { %v6102_v60 = vmul.f32 %v6086_v52, %v11012_v46  ;;  %v6103_v22 = vmul.f32 %v6087_v8, %v11013_v40  ;;  %v6104_v26 = vmul.f32 %v6088_v5, %v11014_v28  ;;  %v6107_v35 = vpack.c.bf16 %v6091_v62, %v6091_v62 }
 0x608   : > { %v6108_v45 = vpack.c.bf16 %v6092_v25, %v6092_v25  ;;  %v6105_v21 = vmul.f32 %v6089_v0, %v11015_v59  ;;  %v6109_v19 = vpack.c.bf16 %v6093_v29, %v6093_v29  ;;  %v6110_v4 = vpack.c.bf16 %v6094_v54, %v6094_v54  ;;  %v7128_v59 = vld [vmem:[%s10576_s11 + $0x8] sm:$0xff]  }
 0x609   : > { %v6111_v12 = vpack.c.bf16 %v6095_v23, %v6095_v23  ;;  %v6106_v39 = vpack.c.bf16 %v6090_v20, %v6090_v20  ;;  %v6112_v17 = vpack.c.bf16 %v6096_v58, %v6096_v58  ;;  %v6115_v57 = vpack.c.bf16 %v6099_v10, %v6099_v10 }
 0x60a   : > { %v6116_v7 = vpack.c.bf16 %v6100_v11, %v6100_v11  ;;  %v6113_v53 = vpack.c.bf16 %v6097_v15, %v6097_v15  ;;  %v6114_v24 = vpack.c.bf16 %v6098_v16, %v6098_v16  ;;  %v6117_v18 = vpack.c.bf16 %v6101_v30, %v6101_v30 }
 0x60b   : > { %v6118_v41 = vpack.c.bf16 %v6102_v60, %v6102_v60  ;;  %v6119_v14 = vpack.c.bf16 %v6103_v22, %v6103_v22  ;;  %v6120_v6 = vpack.c.bf16 %v6104_v26, %v6104_v26  ;;  %v6150_v36 = vunpack.c.l.b16 %v6107_v35  ;;  %v7126_v35 = vld [vmem:[%s10576_s11 + $0x18] sm:$0xff]  }
 0x60c   : > { %v6151_v43 = vunpack.c.l.b16 %v6108_v45  ;;  %v6121_v49 = vpack.c.bf16 %v6105_v21, %v6105_v21  ;;  %v6152_v1 = vunpack.c.l.b16 %v6109_v19  ;;  %v6153_v3 = vunpack.c.l.b16 %v6110_v4  ;;  %6644 = vmatpush3.bf16.msra.mxu1 %v7126_v35  ;;  %v7127_v45 = vld [vmem:[%s10576_s11 + $0x10] sm:$0xff]   ;;  %v7129_v21 = vld [vmem:[%s10576_s11] sm:$0xff]  }
 0x60d   : > { %v6154_v37 = vunpack.c.l.b16 %v6111_v12  ;;  %v6149_v27 = vunpack.c.l.b16 %v6106_v39  ;;  %v6155_v61 = vunpack.c.l.b16 %v6112_v17  ;;  %v6158_v2 = vunpack.c.l.b16 %v6115_v57  ;;  %6645 = vmatprep.subr.bf16.mxu1 %v10999_v9  ;;  %v6537_v19 = vld [vmem:[%s10575_s10] ss:$0 sm:$0xff] }
 0x60e   : > { %v6159_v13 = vunpack.c.l.b16 %v6116_v7  ;;  %v6156_v34 = vunpack.c.l.b16 %v6113_v53  ;;  %v6157_v38 = vunpack.c.l.b16 %v6114_v24  ;;  %v6160_v52 = vunpack.c.l.b16 %v6117_v18 }
 0x60f   : > { %v6161_v8 = vunpack.c.l.b16 %v6118_v41  ;;  %v6162_v5 = vunpack.c.l.b16 %v6119_v14  ;;  %v6165_v32 = vrot.slane %v6150_v36, 7  ;;  %v6167_v62 = vrot.slane %v6151_v43, 6 }
 0x610   : > { %v6169_v44 = vrot.slane %v6152_v1, 5  ;;  %v6163_v25 = vunpack.c.l.b16 %v6120_v6  ;;  %v6164_v0 = vunpack.c.l.b16 %v6121_v49  ;;  %v6171_v42 = vrot.slane %v6153_v3, 4  ;;  %6646 = vmatpush3.bf16.msra.mxu1 %v7127_v45 }
 0x611   : > { %v6173_v29 = vrot.slane %v6154_v37, 3  ;;  %v6166_v51 = vsel %vm1309_vm5, %v6165_v32, %v6149_v27  ;;  %v6179_v54 = vrot.slane %v6158_v2, 7  ;;  %v6181_v47 = vrot.slane %v6159_v13, 6  ;;  %6647 = vmatprep.subr.bf16.mxu1 %v10999_v9 }
 0x612   : > { %v6183_v23 = vrot.slane %v6160_v52, 5  ;;  %v6168_v63 = vsel %vm1312_vm6, %v6167_v62, %v6166_v51  ;;  %v6175_v20 = vrot.slane %v6155_v61, 2  ;;  %v6185_v48 = vrot.slane %v6161_v8, 4 }
 0x613   : > { %v6170_v58 = vsel %vm1315_vm7, %v6169_v44, %v6168_v63  ;;  %v6177_v33 = vrot.slane %v6156_v34, 1  ;;  %v6180_v10 = vsel %vm1309_vm5, %v6179_v54, %v6157_v38  ;;  %v6187_v50 = vrot.slane %v6162_v5, 3 }
 0x614   : > { %v6172_v11 = vsel %vm1318_vm8, %v6171_v42, %v6170_v58  ;;  %v6182_v56 = vsel %vm1312_vm6, %v6181_v47, %v6180_v10  ;;  %v6189_v15 = vrot.slane %v6163_v25, 2  ;;  %v6191_v55 = vrot.slane %v6164_v0, 1  ;;  %6648 = vmatpush3.bf16.msra.mxu1 %v7128_v59 }
 0x615   : > { %v6174_v31 = vsel %vm1321_vm9, %v6173_v29, %v6172_v11  ;;  %v6184_v16 = vsel %vm1315_vm7, %v6183_v23, %v6182_v56  ;;  %6649 = vmatprep.subr.bf16.mxu1 %v10999_v9  ;;  %v6541_v9 = vld [vmem:[%s10577_s12] ss:$0 sm:$0xff] }
 0x616   : > { %v6176_v30 = vsel %vm1324_vm10, %v6175_v20, %v6174_v31  ;;  %v6186_v46 = vsel %vm1318_vm8, %v6185_v48, %v6184_v16 }
 0x617   : > { %v6178_v60 = vsel %vm1327_vm11, %v6177_v33, %v6176_v30  ;;  %v6188_v40 = vsel %vm1321_vm9, %v6187_v50, %v6186_v46 }
 0x618   : > { %v6190_v22 = vsel %vm1324_vm10, %v6189_v15, %v6188_v40  ;;  %6650 = vmatpush3.bf16.msra.mxu1 %v7129_v21 }
 0x619   : > { %v6192_v28 = vsel %vm1327_vm11, %v6191_v55, %v6190_v22 }
 0x61a   : > { %v6193_v26 = vpack.c.b16 %v6192_v28, %v6178_v60 }
 0x61c   : > { %6640 = vmatmul.mubr.msk.bf16.vlgmr.msra.gmra.mxu0 %vm536_vm2, %v6193_v26 }
 0x6dc   : > { %v6243_v4 = vpop.f32.mrf.mxu0 }
 0x6dd   : > { %v6244_v12 = vadd.f32 %v6537_v19, %v6243_v4 }
 0x6de   : > { %v6641_v39 = vpop.f32.mrf.mxu0 }
 0x6df   : > { %7130 = vtanh.f32 %v6244_v12 }
 0x6e0   : > { %v6246_v17 = vpop.f32.mrf.mxu0 }
 0x6e1   : > { %v6247_v57 = vadd.f32 %v6537_v19, %v6246_v17 }
 0x6e2   : > { %v6642_v7 = vpop.f32.mrf.mxu0 }
 0x6e3   : > { %7132 = vtanh.f32 %v6247_v57 }
 0x6ec   : > { %v7131_v53 = vpop.eup %7130 }
 0x6f0   : > { %v7133_v24 = vpop.eup %7132 }
 0x6f1   : > { %v6252_v18 = vpack.c.bf16 %v7133_v24, %v7131_v53 }
 0x6f3   : > { %6652 = vmatmul.mubr.msk.bf16.vlgmr.msra.gmra.mxu1 %vm3473_vm13, %v6252_v18 }
 0x7b3   : > { %v6330_v41 = vpop.f32.mrf.mxu1 }
 0x7b4   : > { %v6331_v14 = vadd.f32 %v6541_v9, %v6330_v41 }
 0x7b5   : > { %v6653_v6 = vpop.f32.mrf.mxu1 }
 0x7b6   : > { %6337 = vmax.xlane.f32.xlu0 %v6331_v14 }
 0x7b7   : > { %v6333_v36 = vpop.f32.mrf.mxu1 }
 0x7b8   : > { %v6334_v43 = vadd.f32 %v6541_v9, %v6333_v36 }
 0x7b9   : > { %v6654_v49 = vpop.f32.mrf.mxu1 }
 0x7ba   : > { %6339 = vmax.xlane.f32.xlu0 %v6334_v43 }
 0x83f   : > { %v6338_v1 = vpop.xlane.xlu0 %6337 }
 0x840   : > { %v6341_v3 = vsub.f32 %v6331_v14, %v6338_v1 }
 0x842   : > { %v6343_v37 = vmul.f32 1.442695, %v6341_v3 }
 0x843   : > { %v6340_v27 = vpop.xlane.xlu0 %6339 }
 0x844   : > { %v6342_v61 = vsub.f32 %v6334_v43, %v6340_v27  ;;  %7134 = vpow2.f32 %v6343_v37 }
 0x846   : > { %v6345_v2 = vmul.f32 1.442695, %v6342_v61 }
 0x848   : > { %7136 = vpow2.f32 %v6345_v2 }
 0x851   : > { %v7135_v13 = vpop.eup %7134 }
 0x852   : > { %6347 = vadd.xlane.f32.xlu1 %v7135_v13 }
 0x855   : > { %v7137_v34 = vpop.eup %7136 }
 0x856   : > { %6349 = vadd.xlane.f32.xlu1 %v7137_v34 }
 0x8db   : > { %v6348_v38 = vpop.xlane.xlu1 %6347 }
 0x8dc   : > { %7138 = vlog2.f32 %v6348_v38 }
 0x8df   : > { %v6350_v52 = vpop.xlane.xlu1 %6349 }
 0x8e0   : > { %7140 = vlog2.f32 %v6350_v52 }
 0x8e9   : > { %v7139_v8 = vpop.eup %7138 }
 0x8ea   : > { %v6352_v5 = vmul.f32 0.6931472, %v7139_v8 }
 0x8ec   : > { %v6355_v32 = vsub.f32 %v6341_v3, %v6352_v5 }
 0x8ed   : > { %v7141_v62 = vpop.eup %7140 }
 0x8ee   : > { %6357 = vst [vmem:[%s7651_s27] sm:$0xff] %v6355_v32  ;;  %v6354_v44 = vmul.f32 0.6931472, %v7141_v62 }
 0x8f0   : > { %v6356_v25 = vsub.f32 %v6342_v61, %v6354_v44 }
 0x8f2   : > { %6358 = vst [vmem:[%s7651_s27 + $0x8] sm:$0xff] %v6356_v25 }
 0x8f3 PF: > { %s23_s25 = sadd.s32 1, %s7153_s25  }
 0x8f4   : > { %p20_p6 = scmp.ge.s32.totalorder %s23_s25, 4  }
 0x8f6   :  { %22 = sbr.rel (!%p20_p6) target bundleno = 1 (0x1), region = 126 }

</bundles_post_ra>
